<compile_context>
chip_gen: v7x
topology: tpu7x:2x2x1
jax: 0.10.0
libtpu: 0.0.40
codegen_flags: <defaults>
</compile_context>

<pallas_src>
import functools

import jax
import jax.numpy as jnp
from jax.experimental import pallas as pl
from jax.experimental.pallas import tpu as pltpu


def net_kernel(x_ref, w1_ref, w2_ref, w3_ref, o_ref):
    # Shapes (batch on the lane axis):
    #   x_ref : (2,  TB) bf16   streamed activations
    #   w1_ref: (10, 2)  bf16   VMEM-resident, PyTorch (out, in) layout
    #   w2_ref: (50, 10) bf16
    #   w3_ref: (4,  50) bf16
    #   o_ref : (4,  TB) bf16   lane-dense output tile
    x = x_ref[...].astype(jnp.float32)          # (2, TB)

    # fc1 + ReLU on the VPU (K=2, M=10 is a waste of an MXU push):
    # lane-broadcast weight columns * sublane-broadcast x rows.
    w1 = w1_ref[...].astype(jnp.float32)        # (10, 2)
    h1 = w1[:, 0:1] * x[0:1, :] + w1[:, 1:2] * x[1:2, :]   # (10, TB) f32
    h1 = jnp.maximum(h1, 0.0)

    # fc2 + ReLU: bf16 x bf16 MXU matmul with f32 accumulation.
    h2 = jnp.dot(w2_ref[...], h1.astype(jnp.bfloat16),
                 preferred_element_type=jnp.float32)        # (50, TB) f32
    h2 = jnp.maximum(h2, 0.0)

    # fc3: bf16 x bf16 MXU matmul, f32 logits.
    logits = jnp.dot(w3_ref[...], h2.astype(jnp.bfloat16),
                     preferred_element_type=jnp.float32)    # (4, TB) f32

    # Softmax over the size-4 sublane axis (cheap sublane reduction),
    # divide via the approx EUP reciprocal.
    m = jnp.max(logits, axis=0, keepdims=True)              # (1, TB)
    e = jnp.exp(logits - m)                                 # (4, TB)
    s = jnp.sum(e, axis=0, keepdims=True)                   # (1, TB)
    o_ref[...] = (e * pl.reciprocal(s, approx=True)).astype(jnp.bfloat16)


@functools.partial(jax.jit, static_argnames=("tb",))
def net_forward(x, w1, w2, w3, *, tb=8192):
    """x: (B, 2) f32; w1: (10, 2); w2: (50, 10); w3: (4, 50) (PyTorch (out,in))."""
    assert tb % 128 == 0, "batch tile must be a multiple of 128 lanes"
    B = x.shape[0]
    n_tiles = -(-B // tb)          # ceil div; ragged tail handled by padding
    b_pad = n_tiles * tb

    # Single fused cast+transpose+pad pass; batch-on-lanes, bf16 streaming.
    # Zero-padded tail columns flow to a uniform softmax and are sliced off.
    x_t = jnp.pad(x.astype(jnp.bfloat16).T, ((0, 0), (0, b_pad - B)))
    w1b = w1.astype(jnp.bfloat16)
    w2b = w2.astype(jnp.bfloat16)
    w3b = w3.astype(jnp.bfloat16)

    out_t = pl.pallas_call(
        net_kernel,
        out_shape=jax.ShapeDtypeStruct((4, b_pad), jnp.bfloat16),
        grid=(n_tiles,),
        in_specs=[
            # x: tiled along the batch (lane) axis.
            pl.BlockSpec((2, tb), lambda i: (0, i)),
            # Weights: full-array blocks with a constant block index ->
            # fetched once and kept VMEM-resident across the batch grid.
            pl.BlockSpec((10, 2), lambda i: (0, 0)),
            pl.BlockSpec((50, 10), lambda i: (0, 0)),
            pl.BlockSpec((4, 50), lambda i: (0, 0)),
        ],
        out_specs=pl.BlockSpec((4, tb), lambda i: (0, i)),
        compiler_params=pltpu.CompilerParams(
            dimension_semantics=("parallel",)),
    )(x_t, w1b, w2b, w3b)

    # Back to the PyTorch (B, 4) f32 layout, dropping the padded tail.
    return out_t[:, :B].T.astype(jnp.float32)


def reference_forward(x, w1, w2, w3):
    h1 = jnp.maximum(x @ w1.T, 0.0)
    h2 = jnp.maximum(h1 @ w2.T, 0.0)
    logits = h2 @ w3.T
    return jax.nn.softmax(logits, axis=1)


if __name__ == "__main__":
    key = jax.random.PRNGKey(0)
    kx, k1, k2, k3 = jax.random.split(key, 4)

    B = 8
    x = jax.random.normal(kx, (B, 2), dtype=jnp.float32)

    # Deterministic synthetic params (PyTorch Linear weight shape: (out, in)).
    w1 = jax.random.normal(k1, (10, 2), dtype=jnp.float32) * 0.5
    w2 = jax.random.normal(k2, (50, 10), dtype=jnp.float32) * 0.3
    w3 = jax.random.normal(k3, (4, 50), dtype=jnp.float32) * 0.2

    out = net_forward(x, w1, w2, w3)
    out = jax.block_until_ready(out)

    # Reference on the same bf16-rounded inputs the kernel actually streams.
    xb = x.astype(jnp.bfloat16).astype(jnp.float32)
    w1b = w1.astype(jnp.bfloat16).astype(jnp.float32)
    w2b = w2.astype(jnp.bfloat16).astype(jnp.float32)
    w3b = w3.astype(jnp.bfloat16).astype(jnp.float32)
    ref = reference_forward(xb, w1b, w2b, w3b)

    assert out.shape == (B, 4)
    # bf16 output + approx reciprocal: elementwise error well under 5e-3,
    # row sums within ~1e-2 of 1.
    assert jnp.allclose(out, ref, atol=5e-3, rtol=5e-3), "mismatch vs reference"
    assert jnp.allclose(jnp.sum(out, axis=1), jnp.ones((B,)), atol=1e-2)

    print("KERNEL_OK")
</pallas_src>

<mosaic_0001>
module attributes {stable_mosaic.version = 11 : i64} {
  func.func @net_kernel(%arg0: i32, %arg1: memref<2x8192xbf16, #tpu.memory_space<vmem>>, %arg2: memref<10x2xbf16, #tpu.memory_space<vmem>>, %arg3: memref<50x10xbf16, #tpu.memory_space<vmem>>, %arg4: memref<4x50xbf16, #tpu.memory_space<vmem>>, %arg5: memref<4x8192xbf16, #tpu.memory_space<vmem>>) attributes {dimension_semantics = [#tpu.dimension_semantics<parallel>], iteration_bounds = array<i64: 1>, scalar_prefetch = 0 : i64, scratch_operands = 0 : i64, tpu.core_type = #tpu.core_type<tc>, window_params = [{transform_indices = @transform_0, window_bounds = array<i64: 2, 8192>}, {pipeline_mode = #tpu.pipeline_mode<synchronous>, transform_indices = @transform_1, window_bounds = array<i64: 10, 2>}, {pipeline_mode = #tpu.pipeline_mode<synchronous>, transform_indices = @transform_2, window_bounds = array<i64: 50, 10>}, {pipeline_mode = #tpu.pipeline_mode<synchronous>, transform_indices = @transform_3, window_bounds = array<i64: 4, 50>}, {transform_indices = @transform_4, window_bounds = array<i64: 4, 8192>}]} {
    %c0 = arith.constant 0 : index
    %c0_0 = arith.constant 0 : index
    %0 = vector.load %arg1[%c0, %c0_0] : memref<2x8192xbf16, #tpu.memory_space<vmem>>, vector<2x8192xbf16>
    %1 = arith.extf %0 : vector<2x8192xbf16> to vector<2x8192xf32>
    %c0_1 = arith.constant 0 : index
    %c0_2 = arith.constant 0 : index
    %2 = vector.load %arg2[%c0_1, %c0_2] : memref<10x2xbf16, #tpu.memory_space<vmem>>, vector<10x2xbf16>
    %3 = arith.extf %2 : vector<10x2xbf16> to vector<10x2xf32>
    %4 = vector.extract_strided_slice %3 {offsets = [0, 0], sizes = [10, 1], strides = [1, 1]} : vector<10x2xf32> to vector<10x1xf32>
    %5 = vector.extract_strided_slice %1 {offsets = [0, 0], sizes = [1, 8192], strides = [1, 1]} : vector<2x8192xf32> to vector<1x8192xf32>
    %6 = vector.broadcast %4 : vector<10x1xf32> to vector<10x8192xf32>
    %7 = vector.broadcast %5 : vector<1x8192xf32> to vector<10x8192xf32>
    %8 = arith.mulf %6, %7 : vector<10x8192xf32>
    %9 = vector.extract_strided_slice %3 {offsets = [0, 1], sizes = [10, 1], strides = [1, 1]} : vector<10x2xf32> to vector<10x1xf32>
    %10 = vector.extract_strided_slice %1 {offsets = [1, 0], sizes = [1, 8192], strides = [1, 1]} : vector<2x8192xf32> to vector<1x8192xf32>
    %11 = vector.broadcast %9 : vector<10x1xf32> to vector<10x8192xf32>
    %12 = vector.broadcast %10 : vector<1x8192xf32> to vector<10x8192xf32>
    %13 = arith.mulf %11, %12 : vector<10x8192xf32>
    %14 = arith.addf %8, %13 : vector<10x8192xf32>
    %cst = arith.constant 0.000000e+00 : f32
    %15 = vector.broadcast %cst : f32 to vector<10x8192xf32>
    %16 = arith.maximumf %14, %15 : vector<10x8192xf32>
    %c0_3 = arith.constant 0 : index
    %c0_4 = arith.constant 0 : index
    %17 = vector.load %arg3[%c0_3, %c0_4] : memref<50x10xbf16, #tpu.memory_space<vmem>>, vector<50x10xbf16>
    %18 = arith.truncf %16 : vector<10x8192xf32> to vector<10x8192xbf16>
    %cst_5 = arith.constant dense<0.000000e+00> : vector<50x8192xf32>
    %19 = tpu.matmul %17, %18, %cst_5 {dimension_numbers = #tpu.dot_dimension_numbers<[1], [0], [0], [1], [0, 0, 1, 1], [], []>} : vector<50x10xbf16>, vector<10x8192xbf16>, vector<50x8192xf32> -> vector<50x8192xf32>
    %cst_6 = arith.constant 0.000000e+00 : f32
    %20 = vector.broadcast %cst_6 : f32 to vector<50x8192xf32>
    %21 = arith.maximumf %19, %20 : vector<50x8192xf32>
    %c0_7 = arith.constant 0 : index
    %c0_8 = arith.constant 0 : index
    %22 = vector.load %arg4[%c0_7, %c0_8] : memref<4x50xbf16, #tpu.memory_space<vmem>>, vector<4x50xbf16>
    %23 = arith.truncf %21 : vector<50x8192xf32> to vector<50x8192xbf16>
    %cst_9 = arith.constant dense<0.000000e+00> : vector<4x8192xf32>
    %24 = tpu.matmul %22, %23, %cst_9 {dimension_numbers = #tpu.dot_dimension_numbers<[1], [0], [0], [1], [0, 0, 1, 1], [], []>} : vector<4x50xbf16>, vector<50x8192xbf16>, vector<4x8192xf32> -> vector<4x8192xf32>
    %cst_10 = arith.constant dense<0xFF800000> : vector<8192xf32>
    %25 = vector.multi_reduction <maximumf>, %24, %cst_10 [0] : vector<4x8192xf32> to vector<8192xf32>
    %26 = vector.shape_cast %25 : vector<8192xf32> to vector<1x8192xf32>
    %27 = vector.broadcast %26 : vector<1x8192xf32> to vector<4x8192xf32>
    %28 = arith.subf %24, %27 : vector<4x8192xf32>
    %29 = math.exp %28 : vector<4x8192xf32>
    %cst_11 = arith.constant dense<0.000000e+00> : vector<8192xf32>
    %30 = vector.multi_reduction <add>, %29, %cst_11 [0] : vector<4x8192xf32> to vector<8192xf32>
    %31 = vector.shape_cast %30 : vector<8192xf32> to vector<1x8192xf32>
    %32 = tpu.reciprocal %31 {approx = true} : vector<1x8192xf32> -> vector<1x8192xf32>
    %33 = vector.broadcast %32 : vector<1x8192xf32> to vector<4x8192xf32>
    %34 = arith.mulf %29, %33 : vector<4x8192xf32>
    %35 = arith.truncf %34 : vector<4x8192xf32> to vector<4x8192xbf16>
    %c0_12 = arith.constant 0 : index
    %c0_13 = arith.constant 0 : index
    %36 = vector.load %arg5[%c0_12, %c0_13] : memref<4x8192xbf16, #tpu.memory_space<vmem>>, vector<4x8192xbf16>
    tpu.vector_store %arg5[%c0_12, %c0_13], %35 {strides = array<i32>} : memref<4x8192xbf16, #tpu.memory_space<vmem>>, vector<4x8192xbf16>,
    return
  }
  func.func @transform_0(%arg0: i32) -> (i32, i32) {
    %c0_i32 = arith.constant 0 : i32
    %c0_i32_0 = arith.constant 0 : i32
    return %c0_i32, %arg0 : i32, i32
  }
  func.func @transform_1(%arg0: i32) -> (i32, i32) {
    %c0_i32 = arith.constant 0 : i32
    %c0_i32_0 = arith.constant 0 : i32
    %c0_i32_1 = arith.constant 0 : i32
    return %c0_i32, %c0_i32_0 : i32, i32
  }
  func.func @transform_2(%arg0: i32) -> (i32, i32) {
    %c0_i32 = arith.constant 0 : i32
    %c0_i32_0 = arith.constant 0 : i32
    %c0_i32_1 = arith.constant 0 : i32
    return %c0_i32, %c0_i32_0 : i32, i32
  }
  func.func @transform_3(%arg0: i32) -> (i32, i32) {
    %c0_i32 = arith.constant 0 : i32
    %c0_i32_0 = arith.constant 0 : i32
    %c0_i32_1 = arith.constant 0 : i32
    return %c0_i32, %c0_i32_0 : i32, i32
  }
  func.func @transform_4(%arg0: i32) -> (i32, i32) {
    %c0_i32 = arith.constant 0 : i32
    %c0_i32_0 = arith.constant 0 : i32
    return %c0_i32, %arg0 : i32, i32
  }
}

</mosaic_0001>

<bundles_post_ra>
// kernel: net_forward.1
= control target key start
LH: loop header
LB: loop body
LE: loop exit
PB: predicated region body
PF: predicated region fallthrough
CT: control target
= control target key end

     0   :  { %v11927_v0 = vmov 0   ;;  %v8723_v6 = vmov 1   ;;  %v72_v7 = vlaneseq  ;;  %vm1846_vm0 = vcmask 1044480   ;;  %s11922_s1 = inlined_call_operand.vmem [shape: bf16[10,2], index: 1, kind: input, shape index: {}]   ;;  %s11923_s2 = inlined_call_operand.vmem [shape: bf16[50,10], index: 2, kind: input, shape index: {}]   ;;  %s11924_s0 = inlined_call_operand.vmem [shape: bf16[2,8192], index: 0, kind: input, shape index: {}]   ;;  %s11925_s3 = inlined_call_operand.vmem [shape: bf16[4,50], index: 3, kind: input, shape index: {}]   ;;  %s11926_s4 = inlined_call_operand.vmem [shape: bf16[4,8192], index: 4, kind: output, shape index: {}]  }
   0x1   :  { %8441 = vset.pattern.permute.xlu0 %v11927_v0  ;;  %v42_v1 = vld [vmem:[%s11922_s1] sm:$0xf]  ;;  %v43_v2 = vld [vmem:[%s11922_s1 + $0x4] sm:$0x1]  ;;  %2071 = vmatprep.mubr.bf16.mxu0 %v11927_v0  ;;  %v8788_v21 = vld [vmem:[%s11924_s0 + $0x8] sm:$0xff]  ;;  %vm1833_vm1 = vcmask 80896  }
   0x2   :  { %v44_v3 = vunpack.c.l.bf16 %v42_v1  ;;  %v45_v4 = vunpack.c.l.bf16 %v43_v2  ;;  %2142 = vmatprep.mubr.bf16.mxu1 %v11927_v0  ;;  %v8759_v8 = vshrl.u32 %v72_v7, 7  ;;  %v18_v9 = vld [vmem:[%s11924_s0] sm:$0xff]  ;;  %v8800_v27 = vunpack.c.l.bf16 %v8788_v21 }
   0x3   :  { %v26_v10 = vunpack.c.l.bf16 %v18_v9  ;;  %v27_v15 = vunpack.c.h.bf16 %v18_v9  ;;  %vm5020_vm2 = vcmask 1040384   ;;  %vm5016_vm3 = vcmask 408576  }
   0x4   :  { %v8442_v5 = vpack.i.bf16 %v45_v4, %v44_v3  ;;  %11934 = vst [vmem:[#allocation2_spill] sm:$0xff] %v8759_v8  ;;  %v8765_v11 = vsub.s32 0, %v8759_v8  ;;  %v8768_v12 = vsub.s32 2, %v8759_v8  ;;  %v8771_v13 = vsub.s32 6, %v8759_v8 }
   0x5   :  { %v8774_v14 = vsub.s32 4, %v8759_v8  ;;  %v8777_v16 = vsub.s32 3, %v8759_v8  ;;  %v8782_v19 = vsub.s32 7, %v8759_v8  ;;  %v8791_v22 = vsub.s32 1, %v8759_v8 }
   0x6   :  { %8443 = vperm.xlu0 %8441, %v8442_v5   ;;  %11935 = vst [vmem:[#allocation3_spill] sm:$0xff] %v8771_v13  ;;  %v79_v17 = vrot.slane %v26_v10, %v8768_v12  ;;  %v87_v18 = vrot.slane %v26_v10, %v8771_v13  ;;  %v75_v20 = vrot.slane %v26_v10, %v8765_v11  ;;  %v8795_v24 = vsub.s32 5, %v8759_v8 }
   0x7   :  { %11936 = vst [vmem:[#allocation4_spill] sm:$0xff] %v8782_v19  ;;  %v83_v23 = vrot.slane %v26_v10, %v8774_v14  ;;  %v791_v25 = vrot.slane %v26_v10, %v8777_v16  ;;  %v95_v26 = vrot.slane %v27_v15, %v8768_v12  ;;  %v799_v30 = vrot.slane %v26_v10, %v8782_v19 }
   0x8   :  { %v399_v28 = vrot.slane %v79_v17, %v8765_v11  ;;  %v407_v29 = vrot.slane %v87_v18, %v8765_v11  ;;  %v395_v31 = vrot.slane %v75_v20, %v8765_v11  ;;  %v787_v32 = vrot.slane %v26_v10, %v8791_v22 }
   0x9   :  { %v403_v33 = vrot.slane %v83_v23, %v8765_v11  ;;  %v795_v34 = vrot.slane %v26_v10, %v8795_v24  ;;  %v807_v35 = vrot.slane %v27_v15, %v8777_v16  ;;  %v103_v36 = vrot.slane %v27_v15, %v8771_v13 }
   0xa   :  { %8447 = vset.pattern.permute.xlu0 %v8723_v6  ;;  %v815_v37 = vrot.slane %v27_v15, %v8782_v19  ;;  %v91_v38 = vrot.slane %v27_v15, %v8765_v11  ;;  %v99_v39 = vrot.slane %v27_v15, %v8774_v14  ;;  %v1111_v40 = vrot.slane %v791_v25, %v8791_v22 }
   0xb   :  { %8449 = vperm.xlu0 %8447, %v8442_v5   ;;  %v415_v41 = vrot.slane %v95_v26, %v8765_v11  ;;  %v803_v42 = vrot.slane %v27_v15, %v8791_v22  ;;  %v111_v43 = vrot.slane %v8800_v27, %v8768_v12  ;;  %v811_v44 = vrot.slane %v27_v15, %v8795_v24 }
   0xc   :  { %v823_v45 = vrot.slane %v8800_v27, %v8777_v16  ;;  %v119_v46 = vrot.slane %v8800_v27, %v8771_v13  ;;  %v831_v47 = vrot.slane %v8800_v27, %v8782_v19  ;;  %v1119_v48 = vrot.slane %v799_v30, %v8791_v22 }
   0xd   :  { %v1107_v49 = vrot.slane %v787_v32, %v8791_v22  ;;  %v1115_v50 = vrot.slane %v795_v34, %v8791_v22  ;;  %v8830_v51 = vrot.slane %v807_v35, %v8791_v22  ;;  %v423_v53 = vrot.slane %v103_v36, %v8765_v11 }
   0xe   :  { %v8834_v54 = vrot.slane %v815_v37, %v8791_v22  ;;  %v411_v55 = vrot.slane %v91_v38, %v8765_v11  ;;  %v419_v56 = vrot.slane %v99_v39, %v8765_v11  ;;  %v8843_v59 = vrot.slane %v803_v42, %v8791_v22 }
   0xf   :  { %v431_v60 = vrot.slane %v111_v43, %v8765_v11  ;;  %v8847_v61 = vrot.slane %v811_v44, %v8791_v22  ;;  %v8850_v62 = vrot.slane %v823_v45, %v8791_v22  ;;  %v8853_v63 = vrot.slane %v119_v46, %v8765_v11 }
  0x10   :  { %v8856_v1 = vrot.slane %v831_v47, %v8791_v22  ;;  %vm6525_vm4 = vcmask 1043456  }
  0x85   :  { %v8444_v52 = vpop.permute.xlu0 %8443 }
  0x86   :  { %v8838_v57 = vunpack.i.h.bf16 %v8444_v52  ;;  %v8840_v58 = vunpack.i.l.bf16 %v8444_v52 }
  0x88   :  { %v649_v2 = vmul.f32 %v8840_v58, %v399_v28  ;;  %v713_v3 = vmul.f32 %v8838_v57, %v399_v28  ;;  %v651_v4 = vmul.f32 %v8840_v58, %v407_v29  ;;  %v715_v5 = vmul.f32 %v8838_v57, %v407_v29 }
  0x89   :  { %v648_v6 = vmul.f32 %v8840_v58, %v395_v31  ;;  %v712_v7 = vmul.f32 %v8838_v57, %v395_v31  ;;  %v650_v9 = vmul.f32 %v8840_v58, %v403_v33  ;;  %v714_v10 = vmul.f32 %v8838_v57, %v403_v33 }
  0x8a   :  { %v8450_v15 = vpop.permute.xlu0 %8449  ;;  %v653_v17 = vmul.f32 %v8840_v58, %v415_v41  ;;  %v717_v18 = vmul.f32 %v8838_v57, %v415_v41  ;;  %v655_v20 = vmul.f32 %v8840_v58, %v423_v53  ;;  %v719_v23 = vmul.f32 %v8838_v57, %v423_v53 }
  0x8b   :  { %v8870_v25 = vunpack.i.h.bf16 %v8450_v15  ;;  %v8872_v26 = vunpack.i.l.bf16 %v8450_v15  ;;  %v652_v28 = vmul.f32 %v8840_v58, %v411_v55  ;;  %v716_v29 = vmul.f32 %v8838_v57, %v411_v55 }
  0x8c   :  { %v8877_v30 = vmul.f32 %v8840_v58, %v419_v56  ;;  %v8880_v31 = vmul.f32 %v8838_v57, %v419_v56  ;;  %v8883_v32 = vmul.f32 %v8840_v58, %v431_v60  ;;  %v8886_v33 = vmul.f32 %v8838_v57, %v431_v60 }
  0x8d   :  { %v1361_v34 = vmul.f32 %v8872_v26, %v1111_v40  ;;  %v1425_v35 = vmul.f32 %v8870_v25, %v1111_v40  ;;  %v1363_v36 = vmul.f32 %v8872_v26, %v1119_v48  ;;  %v1427_v37 = vmul.f32 %v8870_v25, %v1119_v48 }
  0x8e   :  { %v1360_v38 = vmul.f32 %v8872_v26, %v1107_v49  ;;  %v1424_v39 = vmul.f32 %v8870_v25, %v1107_v49  ;;  %v1362_v41 = vmul.f32 %v8872_v26, %v1115_v50  ;;  %v1426_v42 = vmul.f32 %v8870_v25, %v1115_v50 }
  0x8f   :  { %v1489_v43 = vadd.f32 %v1361_v34, %v649_v2  ;;  %v1553_v44 = vadd.f32 %v1425_v35, %v713_v3  ;;  %v1491_v45 = vadd.f32 %v1363_v36, %v651_v4  ;;  %v1555_v46 = vadd.f32 %v1427_v37, %v715_v5 }
  0x90   :  { %v1488_v47 = vadd.f32 %v1360_v38, %v648_v6  ;;  %v1552_v52 = vadd.f32 %v1424_v39, %v712_v7  ;;  %v1490_v53 = vadd.f32 %v1362_v41, %v650_v9  ;;  %v1554_v40 = vadd.f32 %v1426_v42, %v714_v10 }
  0x91   :  { %v1617_v55 = vmax.f32 %v1489_v43, 0.0  ;;  %v1681_v56 = vmax.f32 %v1553_v44, 0.0  ;;  %v1619_v60 = vmax.f32 %v1491_v45, 0.0  ;;  %v1683_v48 = vmax.f32 %v1555_v46, 0.0 }
  0x92   :  { %v1616_v15 = vmax.f32 %v1488_v47, 0.0  ;;  %v1680_v0 = vmax.f32 %v1552_v52, 0.0  ;;  %v1618_v8 = vmax.f32 %v1490_v53, 0.0  ;;  %v1682_v49 = vmax.f32 %v1554_v40, 0.0 }
  0x93   :  { %v1752_v13 = vpack.c.bf16 %v1681_v56, %v1617_v55  ;;  %v1754_v19 = vpack.c.bf16 %v1683_v48, %v1619_v60  ;;  %v1365_v50 = vmul.f32 %v8872_v26, %v8830_v51  ;;  %v1429_v2 = vmul.f32 %v8870_v25, %v8830_v51  ;;  %v8948_v56 = vld [vmem:[%s11923_s2 + $0x8] sm:$0xff]  }
  0x94   :  { %v1751_v3 = vpack.c.bf16 %v1680_v0, %v1616_v15  ;;  %v1753_v4 = vpack.c.bf16 %v1682_v49, %v1618_v8  ;;  %v1367_v5 = vmul.f32 %v8872_v26, %v8834_v54  ;;  %v1431_v6 = vmul.f32 %v8870_v25, %v8834_v54  ;;  %v8913_v54 = vld [vmem:[%s11923_s2] sm:$0xff]  }
  0x95   :  { %8182 = vmatprep.subr.msk.bf16.mxu0 %vm1846_vm0, %v1752_v13  ;;  %8187 = vmatprep.subr.msk.bf16.mxu1 %vm1846_vm0, %v1754_v19  ;;  %v1493_v7 = vadd.f32 %v1365_v50, %v653_v17  ;;  %v1557_v9 = vadd.f32 %v1429_v2, %v717_v18  ;;  %v1364_v10 = vmul.f32 %v8872_v26, %v8843_v59  ;;  %v11937_v45 = vmov 0  }
  0x96   :  { %v1848_v51 = vsel %vm1846_vm0, %v1751_v3, 0  ;;  %v1854_v0 = vsel %vm1846_vm0, %v1753_v4, 0  ;;  %v1495_v8 = vadd.f32 %v1367_v5, %v655_v20  ;;  %v1559_v34 = vadd.f32 %v1431_v6, %v719_v23 }
  0x97   :  { %2040 = vmatpush1.bf16.msra.mxu0 %v1848_v51  ;;  %2111 = vmatpush1.bf16.msra.mxu1 %v1854_v0  ;;  %v1621_v13 = vmax.f32 %v1493_v7, 0.0  ;;  %v1685_v19 = vmax.f32 %v1557_v9, 0.0  ;;  %v1428_v17 = vmul.f32 %v8870_v25, %v8843_v59  ;;  %v1492_v18 = vadd.f32 %v1364_v10, %v652_v28  ;;  %v8978_v10 = vld [vmem:[%s11923_s2 + $0x10] sm:$0xff]  }
  0x98   :  { %v1623_v35 = vmax.f32 %v1495_v8, 0.0  ;;  %v1687_v36 = vmax.f32 %v1559_v34, 0.0  ;;  %v1366_v37 = vmul.f32 %v8872_v26, %v8847_v61  ;;  %v1430_v20 = vmul.f32 %v8870_v25, %v8847_v61  ;;  %v11938_v0 = vld [vmem:[#allocation4_spill] sm:$0xff] }
  0x99   :  { %v1756_v23 = vpack.c.bf16 %v1685_v19, %v1621_v13  ;;  %v1556_v38 = vadd.f32 %v1428_v17, %v716_v29  ;;  %v1620_v39 = vmax.f32 %v1492_v18, 0.0  ;;  %v1369_v41 = vmul.f32 %v8872_v26, %v8850_v62  ;;  %v11939_v19 = vld [vmem:[#allocation3_spill] sm:$0xff] }
  0x9a   :  { %v1758_v42 = vpack.c.bf16 %v1687_v36, %v1623_v35  ;;  %8183 = vmatmul.mubr.msk.bf16.vlgmr.msra.gmra.mrb[0].mxu0 %vm1833_vm1, %v8913_v54  ;;  %8188 = vmatmul.mubr.msk.bf16.vlgmr.msra.gmra.mrb[0].mxu1 %vm1833_vm1, %v8913_v54  ;;  %v1494_v59 = vadd.f32 %v1366_v37, %v8877_v30  ;;  %v1558_v28 = vadd.f32 %v1430_v20, %v8880_v31  ;;  %v8963_v4 = vunpack.c.h.bf16 %v8788_v21 }
  0x9b   :  { %8192 = vmatprep.subr.msk.bf16.mxu0 %vm1846_vm0, %v1756_v23  ;;  %v1684_v61 = vmax.f32 %v1556_v38, 0.0  ;;  %v1433_v29 = vmul.f32 %v8870_v25, %v8850_v62  ;;  %v1497_v43 = vadd.f32 %v1369_v41, %v8883_v32  ;;  %v659_v44 = vmul.f32 %v8840_v58, %v8853_v63  ;;  %2081 = vmatprep.mubr.bf16.mxu0 %v11937_v45 }
  0x9c   :  { %8197 = vmatprep.subr.msk.bf16.mxu1 %vm1846_vm0, %v1758_v42  ;;  %v1622_v46 = vmax.f32 %v1494_v59, 0.0  ;;  %v1686_v47 = vmax.f32 %v1558_v28, 0.0  ;;  %v723_v30 = vmul.f32 %v8838_v57, %v8853_v63  ;;  %v1371_v31 = vmul.f32 %v8872_v26, %v8856_v1  ;;  %2152 = vmatprep.mubr.bf16.mxu1 %v11937_v45 }
  0x9d   :  { %v1755_v62 = vpack.c.bf16 %v1684_v61, %v1620_v39  ;;  %v1561_v32 = vadd.f32 %v1433_v29, %v8886_v33  ;;  %v1625_v52 = vmax.f32 %v1497_v43, 0.0  ;;  %v1435_v53 = vmul.f32 %v8870_v25, %v8856_v1 }
  0x9e   :  { %v1757_v40 = vpack.c.bf16 %v1686_v47, %v1622_v46  ;;  %v1499_v55 = vadd.f32 %v1371_v31, %v659_v44  ;;  %v819_v33 = vrot.slane %v8800_v27, %v8791_v22  ;;  %v827_v2 = vrot.slane %v8800_v27, %v8795_v24  ;;  %v9010_v46 = vld [vmem:[%s11923_s2 + $0x18] ss:$0 sps:$4 sm:$0x11]  }
  0x9f   :  { %v1860_v63 = vsel %vm1846_vm0, %v1755_v62, 0  ;;  %v1689_v60 = vmax.f32 %v1561_v32, 0.0  ;;  %v1563_v48 = vadd.f32 %v1435_v53, %v723_v30  ;;  %v107_v3 = vrot.slane %v8800_v27, %v8765_v11 }
  0xa0   :  { %2182 = vmatpush1.bf16.msra.mxu0 %v1860_v63  ;;  %v1866_v15 = vsel %vm1846_vm0, %v1757_v40, 0  ;;  %v1627_v49 = vmax.f32 %v1499_v55, 0.0  ;;  %v115_v6 = vrot.slane %v8800_v27, %v8774_v14  ;;  %v1139_v7 = vrot.slane %v819_v33, %v8791_v22 }
  0xa1   :  { %2253 = vmatpush1.bf16.msra.mxu1 %v1866_v15  ;;  %v1760_v1 = vpack.c.bf16 %v1689_v60, %v1625_v52  ;;  %v1691_v50 = vmax.f32 %v1563_v48, 0.0  ;;  %v1147_v9 = vrot.slane %v827_v2, %v8791_v22  ;;  %v839_v21 = vrot.slane %v8963_v4, %v8777_v16 }
  0xa2   :  { %8184 = vmatmul.mubr.msk.bf16.gmra.mrb[4].mxu0 %vm1833_vm1, %v8948_v56  ;;  %8189 = vmatmul.mubr.msk.bf16.gmra.mrb[4].mxu1 %vm1833_vm1, %v8948_v56  ;;  %v427_v51 = vrot.slane %v107_v3, %v8765_v11  ;;  %v127_v27 = vrot.slane %v8963_v4, %v8768_v12  ;;  %v847_v8 = vrot.slane %v8963_v4, %v11938_v0 }
  0xa3   :  { %8202 = vmatprep.subr.msk.bf16.mxu0 %vm1846_vm0, %v1760_v1  ;;  %v1762_v5 = vpack.c.bf16 %v1691_v50, %v1627_v49  ;;  %2091 = vmatprep.mubr.bf16.mxu0 %v11937_v45  ;;  %v435_v34 = vrot.slane %v115_v6, %v8765_v11  ;;  %v1368_v13 = vmul.f32 %v8872_v26, %v1139_v7 }
  0xa4   :  { %2162 = vmatprep.mubr.bf16.mxu1 %v11937_v45  ;;  %v135_v17 = vrot.slane %v8963_v4, %v11939_v19  ;;  %v1432_v18 = vmul.f32 %v8870_v25, %v1139_v7  ;;  %v1370_v35 = vmul.f32 %v8872_v26, %v1147_v9  ;;  %v1434_v36 = vmul.f32 %v8870_v25, %v1147_v9 }
  0xa5   :  { %8207 = vmatprep.subr.msk.bf16.mxu1 %vm1846_vm0, %v1762_v5  ;;  %v1159_v37 = vrot.slane %v839_v21, %v8791_v22  ;;  %v656_v20 = vmul.f32 %v8840_v58, %v427_v51  ;;  %v447_v23 = vrot.slane %v127_v27, %v8765_v11  ;;  %v1167_v38 = vrot.slane %v847_v8, %v8791_v22  ;;  %v9038_v27 = vld [vmem:[%s11924_s0 + $0x10] sm:$0xff] }
  0xa6   :  { %v720_v39 = vmul.f32 %v8838_v57, %v427_v51  ;;  %v658_v41 = vmul.f32 %v8840_v58, %v435_v34  ;;  %v722_v42 = vmul.f32 %v8838_v57, %v435_v34  ;;  %v455_v28 = vrot.slane %v135_v17, %v8765_v11 }
  0xa7   :  { %v1496_v59 = vadd.f32 %v1368_v13, %v656_v20  ;;  %v1373_v44 = vmul.f32 %v8872_v26, %v1159_v37  ;;  %v1437_v47 = vmul.f32 %v8870_v25, %v1159_v37  ;;  %v1375_v30 = vmul.f32 %v8872_v26, %v1167_v38 }
  0xa8   :  { %v1560_v61 = vadd.f32 %v1432_v18, %v720_v39  ;;  %v1498_v29 = vadd.f32 %v1370_v35, %v658_v41  ;;  %v1562_v43 = vadd.f32 %v1434_v36, %v722_v42  ;;  %v1439_v31 = vmul.f32 %v8870_v25, %v1167_v38 }
  0xa9   :  { %v661_v62 = vmul.f32 %v8840_v58, %v447_v23  ;;  %v1624_v32 = vmax.f32 %v1496_v59, 0.0  ;;  %v725_v52 = vmul.f32 %v8838_v57, %v447_v23  ;;  %v663_v53 = vmul.f32 %v8840_v58, %v455_v28 }
  0xaa   :  { %8185 = vmatmul.mubr.msk.bf16.gmra.mrb[8].mxu0 %vm1833_vm1, %v8978_v10  ;;  %8190 = vmatmul.mubr.msk.bf16.gmra.mrb[8].mxu1 %vm1833_vm1, %v8978_v10  ;;  %v727_v40 = vmul.f32 %v8838_v57, %v455_v28  ;;  %v1688_v55 = vmax.f32 %v1560_v61, 0.0  ;;  %v1626_v63 = vmax.f32 %v1498_v29, 0.0  ;;  %v1690_v60 = vmax.f32 %v1562_v43, 0.0 }
  0xab   :  { %2101 = vmatprep.mubr.bf16.mxu0 %v11937_v45  ;;  %2172 = vmatprep.mubr.bf16.mxu1 %v11937_v45  ;;  %v1501_v48 = vadd.f32 %v1373_v44, %v661_v62  ;;  %v1565_v15 = vadd.f32 %v1437_v47, %v725_v52  ;;  %v1503_v49 = vadd.f32 %v1375_v30, %v663_v53  ;;  %v9049_v13 = vunpack.c.l.bf16 %v9038_v27 }
  0xac   :  { %v1567_v33 = vadd.f32 %v1439_v31, %v727_v40  ;;  %v1759_v1 = vpack.c.bf16 %v1688_v55, %v1624_v32  ;;  %v1761_v50 = vpack.c.bf16 %v1690_v60, %v1626_v63  ;;  %v835_v8 = vrot.slane %v8963_v4, %v8791_v22 }
  0xad   :  { %v1629_v2 = vmax.f32 %v1501_v48, 0.0  ;;  %v1693_v3 = vmax.f32 %v1565_v15, 0.0  ;;  %v1631_v5 = vmax.f32 %v1503_v49, 0.0  ;;  %v843_v34 = vrot.slane %v8963_v4, %v8795_v24 }
  0xae   :  { %v1695_v6 = vmax.f32 %v1567_v33, 0.0  ;;  %v1872_v7 = vsel %vm1846_vm0, %v1759_v1, 0  ;;  %v1878_v9 = vsel %vm1846_vm0, %v1761_v50, 0  ;;  %v123_v17 = vrot.slane %v8963_v4, %v8765_v11 }
  0xaf   :  { %v1764_v21 = vpack.c.bf16 %v1693_v3, %v1629_v2  ;;  %v131_v18 = vrot.slane %v8963_v4, %v8774_v14  ;;  %v1155_v35 = vrot.slane %v835_v8, %v8791_v22  ;;  %v1163_v36 = vrot.slane %v843_v34, %v8791_v22 }
  0xb0   :  { %v1766_v51 = vpack.c.bf16 %v1695_v6, %v1631_v5  ;;  %v855_v37 = vrot.slane %v9049_v13, %v8777_v16  ;;  %v143_v20 = vrot.slane %v9049_v13, %v8768_v12  ;;  %v863_v23 = vrot.slane %v9049_v13, %v11938_v0 }
  0xb1   :  { %v443_v38 = vrot.slane %v123_v17, %v8765_v11  ;;  %v451_v39 = vrot.slane %v131_v18, %v8765_v11  ;;  %v151_v4 = vrot.slane %v9049_v13, %v11939_v19  ;;  %v1372_v41 = vmul.f32 %v8872_v26, %v1155_v35 }
  0xb2   :  { %8186 = vmatmul.mubr.msk.bf16.gmra.mrb[12].mxu0 %vm1833_vm1, %v9010_v46  ;;  %8191 = vmatmul.mubr.msk.bf16.gmra.mrb[12].mxu1 %vm1833_vm1, %v9010_v46  ;;  %v1436_v42 = vmul.f32 %v8870_v25, %v1155_v35  ;;  %v1374_v59 = vmul.f32 %v8872_v26, %v1163_v36  ;;  %v1175_v28 = vrot.slane %v855_v37, %v8791_v22 }
  0xb3   :  { %2213 = vmatprep.mubr.bf16.mxu0 %v11937_v45  ;;  %2284 = vmatprep.mubr.bf16.mxu1 %v11937_v45  ;;  %v1438_v61 = vmul.f32 %v8870_v25, %v1163_v36  ;;  %v463_v29 = vrot.slane %v143_v20, %v8765_v11  ;;  %v1183_v43 = vrot.slane %v863_v23, %v8791_v22 }
  0xb4   :  { %v660_v44 = vmul.f32 %v8840_v58, %v443_v38  ;;  %v724_v47 = vmul.f32 %v8838_v57, %v443_v38  ;;  %v662_v30 = vmul.f32 %v8840_v58, %v451_v39  ;;  %v726_v31 = vmul.f32 %v8838_v57, %v451_v39 }
  0xb5   :  { %v471_v62 = vrot.slane %v151_v4, %v8765_v11  ;;  %v1377_v40 = vmul.f32 %v8872_v26, %v1175_v28  ;;  %v1441_v63 = vmul.f32 %v8870_v25, %v1175_v28  ;;  %v1379_v60 = vmul.f32 %v8872_v26, %v1183_v43 }
  0xb6   :  { %v1500_v32 = vadd.f32 %v1372_v41, %v660_v44  ;;  %v1564_v52 = vadd.f32 %v1436_v42, %v724_v47  ;;  %v1502_v53 = vadd.f32 %v1374_v59, %v662_v30  ;;  %v1566_v55 = vadd.f32 %v1438_v61, %v726_v31 }
  0xb7   :  { %v1443_v48 = vmul.f32 %v8870_v25, %v1183_v43  ;;  %v665_v15 = vmul.f32 %v8840_v58, %v463_v29  ;;  %v729_v49 = vmul.f32 %v8838_v57, %v463_v29  ;;  %v667_v33 = vmul.f32 %v8840_v58, %v471_v62 }
  0xb8   :  { %v731_v1 = vmul.f32 %v8838_v57, %v471_v62  ;;  %v1628_v50 = vmax.f32 %v1500_v32, 0.0  ;;  %v1692_v2 = vmax.f32 %v1564_v52, 0.0  ;;  %v1630_v3 = vmax.f32 %v1502_v53, 0.0 }
  0xb9   :  { %v1505_v5 = vadd.f32 %v1377_v40, %v665_v15  ;;  %v1694_v6 = vmax.f32 %v1566_v55, 0.0  ;;  %v851_v38 = vrot.slane %v9049_v13, %v8791_v22  ;;  %v859_v39 = vrot.slane %v9049_v13, %v8795_v24 }
  0xba   :  { %8193 = vmatmul.mubr.msk.bf16.vlgmr.msra.gmra.mrb[16].mxu0 %vm1833_vm1, %v8913_v54  ;;  %8198 = vmatmul.mubr.msk.bf16.vlgmr.msra.gmra.mrb[16].mxu1 %vm1833_vm1, %v8913_v54  ;;  %v9120_v4 = vunpack.c.h.bf16 %v9038_v27  ;;  %v139_v41 = vrot.slane %v9049_v13, %v8765_v11  ;;  %v147_v42 = vrot.slane %v9049_v13, %v8774_v14 }
  0xbb   :  { %2324 = vmatpush1.bf16.msra.mxu0 %v1872_v7  ;;  %2395 = vmatpush1.bf16.msra.mxu1 %v1878_v9  ;;  %v1569_v7 = vadd.f32 %v1441_v63, %v729_v49  ;;  %v1507_v9 = vadd.f32 %v1379_v60, %v667_v33  ;;  %v1633_v8 = vmax.f32 %v1505_v5, 0.0  ;;  %v1765_v34 = vpack.c.bf16 %v1694_v6, %v1630_v3 }
  0xbc   :  { %8212 = vmatprep.subr.msk.bf16.mxu0 %vm1846_vm0, %v1764_v21  ;;  %8217 = vmatprep.subr.msk.bf16.mxu1 %vm1846_vm0, %v1766_v51  ;;  %v1571_v21 = vadd.f32 %v1443_v48, %v731_v1  ;;  %v1763_v51 = vpack.c.bf16 %v1692_v2, %v1628_v50  ;;  %v1171_v59 = vrot.slane %v851_v38, %v8791_v22 }
  0xbd   :  { %2223 = vmatprep.mubr.bf16.mxu0 %v11937_v45  ;;  %2294 = vmatprep.mubr.bf16.mxu1 %v11937_v45  ;;  %v1697_v17 = vmax.f32 %v1569_v7, 0.0  ;;  %v1635_v18 = vmax.f32 %v1507_v9, 0.0  ;;  %v1890_v37 = vsel %vm1846_vm0, %v1765_v34, 0  ;;  %v1179_v28 = vrot.slane %v859_v39, %v8791_v22 }
  0xbe   :  { %v1699_v35 = vmax.f32 %v1571_v21, 0.0  ;;  %v1884_v36 = vsel %vm1846_vm0, %v1763_v51, 0  ;;  %v871_v61 = vrot.slane %v9120_v4, %v8777_v16  ;;  %v159_v27 = vrot.slane %v9120_v4, %v8768_v12 }
  0xbf   :  { %v1768_v20 = vpack.c.bf16 %v1697_v17, %v1633_v8  ;;  %v879_v29 = vrot.slane %v9120_v4, %v11938_v0  ;;  %v459_v43 = vrot.slane %v139_v41, %v8765_v11  ;;  %v467_v44 = vrot.slane %v147_v42, %v8765_v11 }
  0xc0   :  { %v1770_v23 = vpack.c.bf16 %v1699_v35, %v1635_v18  ;;  %v167_v13 = vrot.slane %v9120_v4, %v11939_v19  ;;  %v1376_v47 = vmul.f32 %v8872_v26, %v1171_v59  ;;  %v1440_v30 = vmul.f32 %v8870_v25, %v1171_v59 }
  0xc1   :  { %v1378_v31 = vmul.f32 %v8872_v26, %v1179_v28  ;;  %v1191_v62 = vrot.slane %v871_v61, %v8791_v22  ;;  %v1442_v32 = vmul.f32 %v8870_v25, %v1179_v28  ;;  %v479_v52 = vrot.slane %v159_v27, %v8765_v11 }
  0xc2   :  { %8194 = vmatmul.mubr.msk.bf16.gmra.mrb[20].mxu0 %vm1833_vm1, %v8948_v56  ;;  %8199 = vmatmul.mubr.msk.bf16.gmra.mrb[20].mxu1 %vm1833_vm1, %v8948_v56  ;;  %v1199_v53 = vrot.slane %v879_v29, %v8791_v22  ;;  %v664_v40 = vmul.f32 %v8840_v58, %v459_v43  ;;  %v728_v55 = vmul.f32 %v8838_v57, %v459_v43  ;;  %v9185_v29 = vld [vmem:[%s11924_s0 + $0x18] sm:$0xff] }
  0xc3   :  { %2233 = vmatprep.mubr.bf16.mxu0 %v11937_v45  ;;  %2304 = vmatprep.mubr.bf16.mxu1 %v11937_v45  ;;  %v666_v63 = vmul.f32 %v8840_v58, %v467_v44  ;;  %v730_v60 = vmul.f32 %v8838_v57, %v467_v44  ;;  %v487_v48 = vrot.slane %v167_v13, %v8765_v11  ;;  %v9196_v13 = vunpack.c.l.bf16 %v9185_v29 }
  0xc4   :  { %v1504_v15 = vadd.f32 %v1376_v47, %v664_v40  ;;  %v1568_v49 = vadd.f32 %v1440_v30, %v728_v55  ;;  %v1381_v1 = vmul.f32 %v8872_v26, %v1191_v62  ;;  %v1445_v2 = vmul.f32 %v8870_v25, %v1191_v62 }
  0xc5   :  { %v1506_v33 = vadd.f32 %v1378_v31, %v666_v63  ;;  %v1570_v50 = vadd.f32 %v1442_v32, %v730_v60  ;;  %v1383_v3 = vmul.f32 %v8872_v26, %v1199_v53  ;;  %v1447_v5 = vmul.f32 %v8870_v25, %v1199_v53 }
  0xc6   :  { %v669_v6 = vmul.f32 %v8840_v58, %v479_v52  ;;  %v733_v7 = vmul.f32 %v8838_v57, %v479_v52  ;;  %v671_v9 = vmul.f32 %v8840_v58, %v487_v48  ;;  %v735_v21 = vmul.f32 %v8838_v57, %v487_v48 }
  0xc7   :  { %v1632_v51 = vmax.f32 %v1504_v15, 0.0  ;;  %v1696_v8 = vmax.f32 %v1568_v49, 0.0  ;;  %v1634_v34 = vmax.f32 %v1506_v33, 0.0  ;;  %v1698_v18 = vmax.f32 %v1570_v50, 0.0 }
  0xc8   :  { %v1509_v17 = vadd.f32 %v1381_v1, %v669_v6  ;;  %v1573_v35 = vadd.f32 %v1445_v2, %v733_v7  ;;  %v867_v43 = vrot.slane %v9120_v4, %v8791_v22  ;;  %v875_v44 = vrot.slane %v9120_v4, %v8795_v24 }
  0xc9   :  { %v1769_v38 = vpack.c.bf16 %v1698_v18, %v1634_v34  ;;  %v155_v47 = vrot.slane %v9120_v4, %v8765_v11  ;;  %v163_v30 = vrot.slane %v9120_v4, %v8774_v14  ;;  %v887_v32 = vrot.slane %v9196_v13, %v8777_v16 }
  0xca   :  { %8195 = vmatmul.mubr.msk.bf16.gmra.mrb[24].mxu0 %vm1833_vm1, %v8978_v10  ;;  %8200 = vmatmul.mubr.msk.bf16.gmra.mrb[24].mxu1 %vm1833_vm1, %v8978_v10  ;;  %v1701_v39 = vmax.f32 %v1573_v35, 0.0  ;;  %v1187_v31 = vrot.slane %v867_v43, %v8791_v22  ;;  %v1195_v62 = vrot.slane %v875_v44, %v8791_v22  ;;  %v175_v52 = vrot.slane %v9196_v13, %v8768_v12 }
  0xcb   :  { %2243 = vmatprep.mubr.bf16.mxu0 %v11937_v45  ;;  %2314 = vmatprep.mubr.bf16.mxu1 %v11937_v45  ;;  %v1902_v28 = vsel %vm1846_vm0, %v1769_v38, 0  ;;  %v895_v53 = vrot.slane %v9196_v13, %v11938_v0  ;;  %v475_v40 = vrot.slane %v155_v47, %v8765_v11  ;;  %v483_v55 = vrot.slane %v163_v30, %v8765_v11 }
  0xcc   :  { %v183_v4 = vrot.slane %v9196_v13, %v11939_v19  ;;  %v1380_v63 = vmul.f32 %v8872_v26, %v1187_v31  ;;  %v1444_v60 = vmul.f32 %v8870_v25, %v1187_v31  ;;  %v1382_v48 = vmul.f32 %v8872_v26, %v1195_v62 }
  0xcd   :  { %v1207_v15 = vrot.slane %v887_v32, %v8791_v22  ;;  %v1446_v49 = vmul.f32 %v8870_v25, %v1195_v62  ;;  %v495_v33 = vrot.slane %v175_v52, %v8765_v11  ;;  %v1215_v1 = vrot.slane %v895_v53, %v8791_v22 }
  0xce   :  { %v668_v50 = vmul.f32 %v8840_v58, %v475_v40  ;;  %v732_v2 = vmul.f32 %v8838_v57, %v475_v40  ;;  %v503_v6 = vrot.slane %v183_v4, %v8765_v11  ;;  %v883_v40 = vrot.slane %v9196_v13, %v8791_v22 }
  0xcf   :  { %v1449_v34 = vmul.f32 %v8870_v25, %v1207_v15  ;;  %v1451_v18 = vmul.f32 %v8870_v25, %v1215_v1  ;;  %v673_v35 = vmul.f32 %v8840_v58, %v495_v33  ;;  %v9267_v4 = vunpack.c.h.bf16 %v9185_v29 }
  0xd0   :  { %v1508_v7 = vadd.f32 %v1380_v63, %v668_v50  ;;  %v171_v63 = vrot.slane %v9196_v13, %v8765_v11 }
  0xd1   :  { %v191_v29 = vrot.slane %v9267_v4, %v8768_v12 }
  0xd2   :  { %8196 = vmatmul.mubr.msk.bf16.gmra.mrb[28].mxu0 %vm1833_vm1, %v9010_v46  ;;  %8201 = vmatmul.mubr.msk.bf16.gmra.mrb[28].mxu1 %vm1833_vm1, %v9010_v46 }
  0xd3   :  { %2355 = vmatprep.mubr.bf16.mxu0 %v11937_v45  ;;  %2426 = vmatprep.mubr.bf16.mxu1 %v11937_v45 }
  0xda   :  { %8203 = vmatmul.mubr.msk.bf16.vlgmr.msra.gmra.mrb[32].mxu0 %vm1833_vm1, %v8913_v54  ;;  %8208 = vmatmul.mubr.msk.bf16.vlgmr.msra.gmra.mrb[32].mxu1 %vm1833_vm1, %v8913_v54 }
  0xdb   :  { %2466 = vmatpush1.bf16.msra.mxu0 %v1884_v36  ;;  %2537 = vmatpush1.bf16.msra.mxu1 %v1890_v37  ;;  %v1511_v36 = vadd.f32 %v1383_v3, %v671_v9  ;;  %v1575_v37 = vadd.f32 %v1447_v5, %v735_v21  ;;  %v670_v3 = vmul.f32 %v8840_v58, %v483_v55 }
  0xdc   :  { %8222 = vmatprep.subr.msk.bf16.mxu0 %vm1846_vm0, %v1768_v20  ;;  %8227 = vmatprep.subr.msk.bf16.mxu1 %vm1846_vm0, %v1770_v23  ;;  %v1767_v20 = vpack.c.bf16 %v1696_v8, %v1632_v51  ;;  %v1637_v23 = vmax.f32 %v1509_v17, 0.0  ;;  %v734_v5 = vmul.f32 %v8838_v57, %v483_v55  ;;  %v1572_v9 = vadd.f32 %v1444_v60, %v732_v2 }
  0xdd   :  { %2365 = vmatprep.mubr.bf16.mxu0 %v11937_v45  ;;  %2436 = vmatprep.mubr.bf16.mxu1 %v11937_v45  ;;  %v1639_v41 = vmax.f32 %v1511_v36, 0.0  ;;  %v1703_v42 = vmax.f32 %v1575_v37, 0.0  ;;  %v1510_v21 = vadd.f32 %v1382_v48, %v670_v3  ;;  %v1385_v51 = vmul.f32 %v8872_v26, %v1207_v15 }
  0xde   :  { %v1896_v59 = vsel %vm1846_vm0, %v1767_v20, 0  ;;  %v1772_v61 = vpack.c.bf16 %v1701_v39, %v1637_v23  ;;  %v1574_v8 = vadd.f32 %v1446_v49, %v734_v5  ;;  %v1387_v17 = vmul.f32 %v8872_v26, %v1215_v1 }
  0xdf   :  { %v1774_v27 = vpack.c.bf16 %v1703_v42, %v1639_v41  ;;  %v737_v36 = vmul.f32 %v8838_v57, %v495_v33  ;;  %v675_v37 = vmul.f32 %v8840_v58, %v503_v6  ;;  %v739_v20 = vmul.f32 %v8838_v57, %v503_v6 }
  0xe0   :  { %v1636_v23 = vmax.f32 %v1508_v7, 0.0  ;;  %v1700_v38 = vmax.f32 %v1572_v9, 0.0  ;;  %v1638_v39 = vmax.f32 %v1510_v21, 0.0  ;;  %v1513_v41 = vadd.f32 %v1385_v51, %v673_v35 }
  0xe1   :  { %v1702_v42 = vmax.f32 %v1574_v8, 0.0  ;;  %v891_v55 = vrot.slane %v9196_v13, %v8795_v24  ;;  %v179_v60 = vrot.slane %v9196_v13, %v8774_v14  ;;  %v1203_v48 = vrot.slane %v883_v40, %v8791_v22 }
  0xe2   :  { %8204 = vmatmul.mubr.msk.bf16.gmra.mrb[36].mxu0 %vm1833_vm1, %v8948_v56  ;;  %8209 = vmatmul.mubr.msk.bf16.gmra.mrb[36].mxu1 %vm1833_vm1, %v8948_v56  ;;  %v1641_v43 = vmax.f32 %v1513_v41, 0.0  ;;  %v903_v49 = vrot.slane %v9267_v4, %v8777_v16  ;;  %v911_v33 = vrot.slane %v9267_v4, %v11938_v0  ;;  %v491_v1 = vrot.slane %v171_v63, %v8765_v11 }
  0xe3   :  { %2375 = vmatprep.mubr.bf16.mxu0 %v11937_v45  ;;  %2446 = vmatprep.mubr.bf16.mxu1 %v11937_v45  ;;  %v1773_v44 = vpack.c.bf16 %v1702_v42, %v1638_v39  ;;  %v1211_v15 = vrot.slane %v891_v55, %v8791_v22  ;;  %v499_v50 = vrot.slane %v179_v60, %v8765_v11 }
  0xe4   :  { %v199_v13 = vrot.slane %v9267_v4, %v11939_v19  ;;  %v1384_v2 = vmul.f32 %v8872_v26, %v1203_v48  ;;  %v1448_v3 = vmul.f32 %v8870_v25, %v1203_v48  ;;  %v1223_v6 = vrot.slane %v903_v49, %v8791_v22 }
  0xe5   :  { %v1914_v32 = vsel %vm1846_vm0, %v1773_v44, 0  ;;  %v1386_v5 = vmul.f32 %v8872_v26, %v1211_v15  ;;  %v1450_v7 = vmul.f32 %v8870_v25, %v1211_v15  ;;  %v511_v9 = vrot.slane %v191_v29, %v8765_v11 }
  0xe6   :  { %v1231_v21 = vrot.slane %v911_v33, %v8791_v22  ;;  %v672_v51 = vmul.f32 %v8840_v58, %v491_v1  ;;  %v736_v8 = vmul.f32 %v8838_v57, %v491_v1  ;;  %v9332_v33 = vld [vmem:[%s11924_s0 + $0x20] sm:$0xff]  ;;  %v899_v1 = vrot.slane %v9267_v4, %v8791_v22 }
  0xe7   :  { %v677_v42 = vmul.f32 %v8840_v58, %v511_v9 }
  0xe8   :  { %v1512_v35 = vadd.f32 %v1384_v2, %v672_v51  ;;  %v1391_v39 = vmul.f32 %v8872_v26, %v1231_v21  ;;  %v1455_v41 = vmul.f32 %v8870_v25, %v1231_v21  ;;  %v187_v2 = vrot.slane %v9267_v4, %v8765_v11 }
  0xea   :  { %8205 = vmatmul.mubr.msk.bf16.gmra.mrb[40].mxu0 %vm1833_vm1, %v8978_v10  ;;  %8210 = vmatmul.mubr.msk.bf16.gmra.mrb[40].mxu1 %vm1833_vm1, %v8978_v10  ;;  %v507_v51 = vrot.slane %v187_v2, %v8765_v11 }
  0xeb   :  { %2385 = vmatprep.mubr.bf16.mxu0 %v11937_v45  ;;  %2456 = vmatprep.mubr.bf16.mxu1 %v11937_v45 }
  0xf2   :  { %8206 = vmatmul.mubr.msk.bf16.gmra.mrb[44].mxu0 %vm1833_vm1, %v9010_v46  ;;  %8211 = vmatmul.mubr.msk.bf16.gmra.mrb[44].mxu1 %vm1833_vm1, %v9010_v46 }
  0xf3   :  { %2497 = vmatprep.mubr.bf16.mxu0 %v11937_v45  ;;  %2568 = vmatprep.mubr.bf16.mxu1 %v11937_v45 }
  0xfa   :  { %8213 = vmatmul.mubr.msk.bf16.vlgmr.msra.gmra.mrb[48].mxu0 %vm1833_vm1, %v8913_v54  ;;  %8218 = vmatmul.mubr.msk.bf16.vlgmr.msra.gmra.mrb[48].mxu1 %vm1833_vm1, %v8913_v54 }
  0xfb   :  { %2608 = vmatpush1.bf16.msra.mxu0 %v1896_v59  ;;  %2679 = vmatpush1.bf16.msra.mxu1 %v1902_v28  ;;  %v1577_v59 = vadd.f32 %v1449_v34, %v737_v36  ;;  %v1515_v28 = vadd.f32 %v1387_v17, %v675_v37  ;;  %v674_v34 = vmul.f32 %v8840_v58, %v499_v50 }
  0xfc   :  { %8232 = vmatprep.subr.msk.bf16.mxu0 %vm1846_vm0, %v1772_v61  ;;  %8237 = vmatprep.subr.msk.bf16.mxu1 %vm1846_vm0, %v1774_v27  ;;  %v1579_v61 = vadd.f32 %v1451_v18, %v739_v20  ;;  %v1771_v27 = vpack.c.bf16 %v1700_v38, %v1636_v23  ;;  %v738_v17 = vmul.f32 %v8838_v57, %v499_v50 }
  0xfd   :  { %2507 = vmatprep.mubr.bf16.mxu0 %v11937_v45  ;;  %2578 = vmatprep.mubr.bf16.mxu1 %v11937_v45  ;;  %v1705_v47 = vmax.f32 %v1577_v59, 0.0  ;;  %v1643_v30 = vmax.f32 %v1515_v28, 0.0  ;;  %v519_v18 = vrot.slane %v199_v13, %v8765_v11  ;;  %v1576_v36 = vadd.f32 %v1448_v3, %v736_v8 }
  0xfe   :  { %v1707_v31 = vmax.f32 %v1579_v61, 0.0  ;;  %v1908_v62 = vsel %vm1846_vm0, %v1771_v27, 0  ;;  %v1514_v37 = vadd.f32 %v1386_v5, %v674_v34  ;;  %v1389_v20 = vmul.f32 %v8872_v26, %v1223_v6 }
  0xff   :  { %v1776_v52 = vpack.c.bf16 %v1705_v47, %v1641_v43  ;;  %v1578_v23 = vadd.f32 %v1450_v7, %v738_v17  ;;  %v1453_v38 = vmul.f32 %v8870_v25, %v1223_v6  ;;  %v741_v59 = vmul.f32 %v8838_v57, %v511_v9 }
 0x100   :  { %v1778_v53 = vpack.c.bf16 %v1707_v31, %v1643_v30  ;;  %v679_v28 = vmul.f32 %v8840_v58, %v519_v18  ;;  %v743_v61 = vmul.f32 %v8838_v57, %v519_v18  ;;  %v1640_v27 = vmax.f32 %v1512_v35, 0.0 }
 0x101   :  { %v1704_v43 = vmax.f32 %v1576_v36, 0.0  ;;  %v1642_v44 = vmax.f32 %v1514_v37, 0.0  ;;  %v1517_v47 = vadd.f32 %v1389_v20, %v677_v42  ;;  %v1706_v30 = vmax.f32 %v1578_v23, 0.0 }
 0x102   :  { %8214 = vmatmul.mubr.msk.bf16.gmra.mrb[52].mxu0 %vm1833_vm1, %v8948_v56  ;;  %8219 = vmatmul.mubr.msk.bf16.gmra.mrb[52].mxu1 %vm1833_vm1, %v8948_v56  ;;  %v1581_v31 = vadd.f32 %v1453_v38, %v741_v59  ;;  %v907_v50 = vrot.slane %v9267_v4, %v8795_v24  ;;  %v9343_v13 = vunpack.c.l.bf16 %v9332_v33  ;;  %v195_v3 = vrot.slane %v9267_v4, %v8774_v14 }
 0x103   :  { %2517 = vmatprep.mubr.bf16.mxu0 %v11937_v45  ;;  %2588 = vmatprep.mubr.bf16.mxu1 %v11937_v45  ;;  %v1777_v40 = vpack.c.bf16 %v1706_v30, %v1642_v44  ;;  %v1219_v5 = vrot.slane %v899_v1, %v8791_v22  ;;  %v676_v23 = vmul.f32 %v8840_v58, %v507_v51 }
 0x104   :  { %v1709_v55 = vmax.f32 %v1581_v31, 0.0  ;;  %v1227_v6 = vrot.slane %v907_v50, %v8791_v22  ;;  %v919_v7 = vrot.slane %v9343_v13, %v8777_v16  ;;  %v207_v9 = vrot.slane %v9343_v13, %v8768_v12 }
 0x105   :  { %v1926_v15 = vsel %vm1846_vm0, %v1777_v40, 0  ;;  %v927_v21 = vrot.slane %v9343_v13, %v11938_v0  ;;  %v515_v8 = vrot.slane %v195_v3, %v8765_v11  ;;  %v215_v4 = vrot.slane %v9343_v13, %v11939_v19 }
 0x106   :  { %v1388_v34 = vmul.f32 %v8872_v26, %v1219_v5  ;;  %v1452_v17 = vmul.f32 %v8870_v25, %v1219_v5  ;;  %v1390_v18 = vmul.f32 %v8872_v26, %v1227_v6  ;;  %v1239_v35 = vrot.slane %v919_v7, %v8791_v22 }
 0x107   :  { %v1454_v36 = vmul.f32 %v8870_v25, %v1227_v6  ;;  %v527_v37 = vrot.slane %v207_v9, %v8765_v11  ;;  %v1247_v20 = vrot.slane %v927_v21, %v8791_v22  ;;  %v740_v38 = vmul.f32 %v8838_v57, %v507_v51 }
 0x108   :  { %v535_v42 = vrot.slane %v215_v4, %v8765_v11  ;;  %v1516_v59 = vadd.f32 %v1388_v34, %v676_v23  ;;  %v1457_v44 = vmul.f32 %v8870_v25, %v1239_v35  ;;  %v915_v51 = vrot.slane %v9343_v13, %v8791_v22 }
 0x109   :  { %v1459_v30 = vmul.f32 %v8870_v25, %v1247_v20  ;;  %v681_v31 = vmul.f32 %v8840_v58, %v527_v37  ;;  %v9417_v34 = vunpack.c.h.bf16 %v9332_v33 }
 0x10a   :  { %8215 = vmatmul.mubr.msk.bf16.gmra.mrb[56].mxu0 %vm1833_vm1, %v8978_v10  ;;  %8220 = vmatmul.mubr.msk.bf16.gmra.mrb[56].mxu1 %vm1833_vm1, %v8978_v10  ;;  %v1235_v4 = vrot.slane %v915_v51, %v8791_v22 }
 0x10b   :  { %2527 = vmatprep.mubr.bf16.mxu0 %v11937_v45  ;;  %2598 = vmatprep.mubr.bf16.mxu1 %v11937_v45 }
 0x10c   :  { %v1392_v33 = vmul.f32 %v8872_v26, %v1235_v4 }
 0x112   :  { %8216 = vmatmul.mubr.msk.bf16.gmra.mrb[60].mxu0 %vm1833_vm1, %v9010_v46  ;;  %8221 = vmatmul.mubr.msk.bf16.gmra.mrb[60].mxu1 %vm1833_vm1, %v9010_v46 }
 0x113   :  { %2639 = vmatprep.mubr.bf16.mxu0 %v11937_v45  ;;  %2710 = vmatprep.mubr.bf16.mxu1 %v11937_v45 }
 0x11a   :  { %8223 = vmatmul.mubr.msk.bf16.vlgmr.msra.gmra.mrb[64].mxu0 %vm1833_vm1, %v8913_v54  ;;  %8228 = vmatmul.mubr.msk.bf16.vlgmr.msra.gmra.mrb[64].mxu1 %vm1833_vm1, %v8913_v54 }
 0x11b   :  { %2750 = vmatpush1.bf16.msra.mxu0 %v1908_v62  ;;  %2821 = vmatpush1.bf16.msra.mxu1 %v1914_v32  ;;  %v1519_v62 = vadd.f32 %v1391_v39, %v679_v28  ;;  %v1583_v32 = vadd.f32 %v1455_v41, %v743_v61  ;;  %v678_v39 = vmul.f32 %v8840_v58, %v515_v8 }
 0x11c   :  { %8242 = vmatprep.subr.msk.bf16.mxu0 %vm1846_vm0, %v1776_v52  ;;  %8247 = vmatprep.subr.msk.bf16.mxu1 %vm1846_vm0, %v1778_v53  ;;  %v1775_v52 = vpack.c.bf16 %v1704_v43, %v1640_v27  ;;  %v1645_v53 = vmax.f32 %v1517_v47, 0.0  ;;  %v742_v41 = vmul.f32 %v8838_v57, %v515_v8  ;;  %v1580_v28 = vadd.f32 %v1452_v17, %v740_v38 }
 0x11d   :  { %2649 = vmatprep.mubr.bf16.mxu0 %v11937_v45  ;;  %2720 = vmatprep.mubr.bf16.mxu1 %v11937_v45  ;;  %v1647_v63 = vmax.f32 %v1519_v62, 0.0  ;;  %v1711_v60 = vmax.f32 %v1583_v32, 0.0  ;;  %v1518_v61 = vadd.f32 %v1390_v18, %v678_v39  ;;  %v1393_v27 = vmul.f32 %v8872_v26, %v1239_v35 }
 0x11e   :  { %v1920_v48 = vsel %vm1846_vm0, %v1775_v52, 0  ;;  %v1780_v49 = vpack.c.bf16 %v1709_v55, %v1645_v53  ;;  %v1582_v43 = vadd.f32 %v1454_v36, %v742_v41  ;;  %v1395_v47 = vmul.f32 %v8872_v26, %v1247_v20 }
 0x11f   :  { %v1782_v29 = vpack.c.bf16 %v1711_v60, %v1647_v63  ;;  %v745_v62 = vmul.f32 %v8838_v57, %v527_v37  ;;  %v683_v32 = vmul.f32 %v8840_v58, %v535_v42  ;;  %v747_v52 = vmul.f32 %v8838_v57, %v535_v42 }
 0x120   :  { %v1644_v53 = vmax.f32 %v1516_v59, 0.0  ;;  %v1708_v40 = vmax.f32 %v1580_v28, 0.0  ;;  %v1646_v55 = vmax.f32 %v1518_v61, 0.0  ;;  %v1521_v63 = vadd.f32 %v1393_v27, %v681_v31 }
 0x121   :  { %v1710_v60 = vmax.f32 %v1582_v43, 0.0  ;;  %v923_v8 = vrot.slane %v9343_v13, %v8795_v24  ;;  %v211_v17 = vrot.slane %v9343_v13, %v8774_v14  ;;  %v935_v36 = vrot.slane %v9417_v34, %v8777_v16 }
 0x122   :  { %8224 = vmatmul.mubr.msk.bf16.gmra.mrb[68].mxu0 %vm1833_vm1, %v8948_v56  ;;  %8229 = vmatmul.mubr.msk.bf16.gmra.mrb[68].mxu1 %vm1833_vm1, %v8948_v56  ;;  %v1649_v1 = vmax.f32 %v1521_v63, 0.0  ;;  %v223_v37 = vrot.slane %v9417_v34, %v8768_v12  ;;  %v1456_v20 = vmul.f32 %v8870_v25, %v1235_v4 }
 0x123   :  { %2659 = vmatprep.mubr.bf16.mxu0 %v11937_v45  ;;  %2730 = vmatprep.mubr.bf16.mxu1 %v11937_v45  ;;  %v1781_v50 = vpack.c.bf16 %v1710_v60, %v1646_v55  ;;  %v1243_v35 = vrot.slane %v923_v8, %v8791_v22  ;;  %v531_v23 = vrot.slane %v211_v17, %v8765_v11 }
 0x124   :  { %v1255_v42 = vrot.slane %v935_v36, %v8791_v22  ;;  %v543_v27 = vrot.slane %v223_v37, %v8765_v11 }
 0x125   :  { %v1938_v7 = vsel %vm1846_vm0, %v1781_v50, 0  ;;  %v1394_v41 = vmul.f32 %v8872_v26, %v1243_v35  ;;  %v1458_v61 = vmul.f32 %v8870_v25, %v1243_v35 }
 0x126   :  { %v749_v50 = vmul.f32 %v8838_v57, %v543_v27 }
 0x12a   :  { %8225 = vmatmul.mubr.msk.bf16.gmra.mrb[72].mxu0 %vm1833_vm1, %v8978_v10  ;;  %8230 = vmatmul.mubr.msk.bf16.gmra.mrb[72].mxu1 %vm1833_vm1, %v8978_v10 }
 0x12b   :  { %2669 = vmatprep.mubr.bf16.mxu0 %v11937_v45  ;;  %2740 = vmatprep.mubr.bf16.mxu1 %v11937_v45 }
 0x132   :  { %8226 = vmatmul.mubr.msk.bf16.gmra.mrb[76].mxu0 %vm1833_vm1, %v9010_v46  ;;  %8231 = vmatmul.mubr.msk.bf16.gmra.mrb[76].mxu1 %vm1833_vm1, %v9010_v46 }
 0x133   :  { %2781 = vmatprep.mubr.bf16.mxu0 %v11937_v45  ;;  %2852 = vmatprep.mubr.bf16.mxu1 %v11937_v45 }
 0x13a   :  { %8233 = vmatmul.mubr.msk.bf16.vlgmr.msra.gmra.mrb[80].mxu0 %vm1833_vm1, %v8913_v54  ;;  %8238 = vmatmul.mubr.msk.bf16.vlgmr.msra.gmra.mrb[80].mxu1 %vm1833_vm1, %v8913_v54 }
 0x13b   :  { %2892 = vmatpush1.bf16.msra.mxu0 %v1920_v48  ;;  %2963 = vmatpush1.bf16.msra.mxu1 %v1926_v15  ;;  %v1585_v48 = vadd.f32 %v1457_v44, %v745_v62  ;;  %v1523_v15 = vadd.f32 %v1395_v47, %v683_v32  ;;  %v682_v44 = vmul.f32 %v8840_v58, %v531_v23 }
 0x13c   :  { %8252 = vmatprep.subr.msk.bf16.mxu0 %vm1846_vm0, %v1780_v49  ;;  %8257 = vmatprep.subr.msk.bf16.mxu1 %vm1846_vm0, %v1782_v29  ;;  %v1587_v49 = vadd.f32 %v1459_v30, %v747_v52  ;;  %v1779_v29 = vpack.c.bf16 %v1708_v40, %v1644_v53  ;;  %v746_v30 = vmul.f32 %v8838_v57, %v531_v23 }
 0x13d   :  { %2791 = vmatprep.mubr.bf16.mxu0 %v11937_v45  ;;  %2862 = vmatprep.mubr.bf16.mxu1 %v11937_v45  ;;  %v1713_v2 = vmax.f32 %v1585_v48, 0.0  ;;  %v1651_v3 = vmax.f32 %v1523_v15, 0.0  ;;  %v1522_v32 = vadd.f32 %v1394_v41, %v682_v44  ;;  %v1461_v52 = vmul.f32 %v8870_v25, %v1255_v42 }
 0x13e   :  { %v1715_v5 = vmax.f32 %v1587_v49, 0.0  ;;  %v1932_v6 = vsel %vm1846_vm0, %v1779_v29, 0  ;;  %v1586_v60 = vadd.f32 %v1458_v61, %v746_v30  ;;  %v685_v48 = vmul.f32 %v8840_v58, %v543_v27 }
 0x13f   :  { %v1784_v9 = vpack.c.bf16 %v1713_v2, %v1649_v1  ;;  %v1589_v4 = vadd.f32 %v1461_v52, %v749_v50  ;;  %v9494_v52 = vld [vmem:[%s11923_s2] sm:$0xff]  }
 0x140   :  { %v1786_v21 = vpack.c.bf16 %v1715_v5, %v1651_v3  ;;  %v1714_v36 = vmax.f32 %v1586_v60, 0.0  ;;  %v9506_v60 = vld [vmem:[%s11924_s0 + $0x28] sm:$0xff] }
 0x142   :  { %8234 = vmatmul.mubr.msk.bf16.gmra.mrb[84].mxu0 %vm1833_vm1, %v8948_v56  ;;  %8239 = vmatmul.mubr.msk.bf16.gmra.mrb[84].mxu1 %vm1833_vm1, %v8948_v56 }
 0x143   :  { %2801 = vmatprep.mubr.bf16.mxu0 %v11937_v45  ;;  %2872 = vmatprep.mubr.bf16.mxu1 %v11937_v45 }
 0x14a   :  { %8235 = vmatmul.mubr.msk.bf16.gmra.mrb[88].mxu0 %vm1833_vm1, %v8978_v10  ;;  %8240 = vmatmul.mubr.msk.bf16.gmra.mrb[88].mxu1 %vm1833_vm1, %v8978_v10 }
 0x14b   :  { %2811 = vmatprep.mubr.bf16.mxu0 %v11937_v45  ;;  %2882 = vmatprep.mubr.bf16.mxu1 %v11937_v45 }
 0x152   :  { %8236 = vmatmul.mubr.msk.bf16.gmra.mrb[92].mxu0 %vm1833_vm1, %v9010_v46  ;;  %8241 = vmatmul.mubr.msk.bf16.gmra.mrb[92].mxu1 %vm1833_vm1, %v9010_v46 }
 0x153   :  { %2923 = vmatprep.mubr.bf16.mxu0 %v11937_v45  ;;  %2994 = vmatprep.mubr.bf16.mxu1 %v11937_v45 }
 0x15a   :  { %8243 = vmatmul.mubr.msk.bf16.vlgmr.msra.gmra.mrb[96].mxu0 %vm1833_vm1, %v8913_v54  ;;  %8248 = vmatmul.mubr.msk.bf16.vlgmr.msra.gmra.mrb[96].mxu1 %vm1833_vm1, %v8913_v54  ;;  %v203_v54 = vrot.slane %v9343_v13, %v8765_v11  ;;  %v231_v13 = vrot.slane %v9417_v34, %v11939_v19 }
 0x15b   :  { %3034 = vmatpush1.bf16.msra.mxu0 %v1932_v6  ;;  %3105 = vmatpush1.bf16.msra.mxu1 %v1938_v7 }
 0x15c   :  { %8262 = vmatprep.subr.msk.bf16.mxu0 %vm1846_vm0, %v1784_v9  ;;  %8267 = vmatprep.subr.msk.bf16.mxu1 %vm1846_vm0, %v1786_v21  ;;  %v523_v18 = vrot.slane %v203_v54, %v8765_v11  ;;  %v551_v47 = vrot.slane %v231_v13, %v8765_v11  ;;  %v1650_v54 = vmax.f32 %v1522_v32, 0.0  ;;  %v1717_v13 = vmax.f32 %v1589_v4, 0.0 }
 0x15d   :  { %2933 = vmatprep.mubr.bf16.mxu0 %v11937_v45  ;;  %3004 = vmatprep.mubr.bf16.mxu1 %v11937_v45 }
 0x15e   :  { %v680_v38 = vmul.f32 %v8840_v58, %v523_v18  ;;  %v744_v39 = vmul.f32 %v8838_v57, %v523_v18  ;;  %v687_v2 = vmul.f32 %v8840_v58, %v551_v47  ;;  %v751_v3 = vmul.f32 %v8838_v57, %v551_v47 }
 0x15f   :  { %v1785_v41 = vpack.c.bf16 %v1714_v36, %v1650_v54 }
 0x160   :  { %v1520_v28 = vadd.f32 %v1392_v33, %v680_v38  ;;  %v1584_v43 = vadd.f32 %v1456_v20, %v744_v39 }
 0x162   :  { %8244 = vmatmul.mubr.msk.bf16.gmra.mrb[100].mxu0 %vm1833_vm1, %v8948_v56  ;;  %8249 = vmatmul.mubr.msk.bf16.gmra.mrb[100].mxu1 %vm1833_vm1, %v8948_v56  ;;  %v943_v56 = vrot.slane %v9417_v34, %v11938_v0  ;;  %v1648_v63 = vmax.f32 %v1520_v28, 0.0  ;;  %v1712_v1 = vmax.f32 %v1584_v43, 0.0 }
 0x163   :  { %2943 = vmatprep.mubr.bf16.mxu0 %v11937_v45  ;;  %3014 = vmatprep.mubr.bf16.mxu1 %v11937_v45 }
 0x164   :  { %v1263_v59 = vrot.slane %v943_v56, %v8791_v22  ;;  %v1783_v20 = vpack.c.bf16 %v1712_v1, %v1648_v63 }
 0x166   :  { %v1399_v53 = vmul.f32 %v8872_v26, %v1263_v59  ;;  %v1463_v15 = vmul.f32 %v8870_v25, %v1263_v59 }
 0x168   :  { %v1527_v17 = vadd.f32 %v1399_v53, %v687_v2  ;;  %v1591_v56 = vadd.f32 %v1463_v15, %v751_v3  ;;  %v1950_v53 = vsel %vm1846_vm0, %v1785_v41, 0  ;;  %v219_v3 = vrot.slane %v9417_v34, %v8765_v11 }
 0x16a   :  { %8245 = vmatmul.mubr.msk.bf16.gmra.mrb[104].mxu0 %vm1833_vm1, %v8978_v10  ;;  %8250 = vmatmul.mubr.msk.bf16.gmra.mrb[104].mxu1 %vm1833_vm1, %v8978_v10  ;;  %v1397_v10 = vmul.f32 %v8872_v26, %v1255_v42  ;;  %v1655_v42 = vmax.f32 %v1527_v17, 0.0  ;;  %v1719_v59 = vmax.f32 %v1591_v56, 0.0  ;;  %v227_v56 = vrot.slane %v9417_v34, %v8774_v14 }
 0x16b   :  { %2953 = vmatprep.mubr.bf16.mxu0 %v11937_v45  ;;  %3024 = vmatprep.mubr.bf16.mxu1 %v11937_v45 }
 0x16c   :  { %v1525_v8 = vadd.f32 %v1397_v10, %v685_v48  ;;  %v1790_v63 = vpack.c.bf16 %v1719_v59, %v1655_v42 }
 0x16d   :  { %v2073_v31 = vpop.f32.mrb[0].mxu0  ;;  %v2144_v62 = vpop.f32.mrb[0].mxu1 }
 0x16e   :  { %v9455_v40 = vpop.f32.mrb[1].mxu0  ;;  %v9457_v55 = vpop.f32.mrb[1].mxu1  ;;  %v4311_v5 = vmax.f32 %v2073_v31, 0.0  ;;  %v4313_v6 = vmax.f32 %v2144_v62, 0.0  ;;  %v1653_v23 = vmax.f32 %v1525_v8, 0.0  ;;  %v1944_v31 = vsel %vm1846_vm0, %v1783_v20, 0 }
 0x16f   :  { %v2077_v49 = vpop.f32.mrb[2].mxu0  ;;  %v2148_v29 = vpop.f32.mrb[2].mxu1  ;;  %v9537_v20 = vld [vmem:[%s11923_s2 + $0x8] sm:$0xff]  }
 0x170   :  { %v4375_v7 = vmax.f32 %v2077_v49, 0.0  ;;  %v4377_v9 = vmax.f32 %v2148_v29, 0.0  ;;  %v9464_v21 = vpop.f32.mrb[3].mxu0  ;;  %v9466_v51 = vpop.f32.mrb[3].mxu1  ;;  %v1788_v62 = vpack.c.bf16 %v1717_v13, %v1653_v23  ;;  %v931_v49 = vrot.slane %v9417_v34, %v8791_v22 }
 0x172   :  { %v9468_v18 = vpack.c.bf16 %v4375_v7, %v4311_v5  ;;  %v9470_v35 = vpack.c.bf16 %v4377_v9, %v4313_v6  ;;  %8246 = vmatmul.mubr.msk.bf16.gmra.mrb[108].mxu0 %vm1833_vm1, %v9010_v46  ;;  %8251 = vmatmul.mubr.msk.bf16.gmra.mrb[108].mxu1 %vm1833_vm1, %v9010_v46  ;;  %v939_v5 = vrot.slane %v9417_v34, %v8795_v24  ;;  %v9521_v6 = vunpack.c.l.bf16 %v9506_v60 }
 0x173   :  { %3065 = vmatprep.mubr.bf16.mxu0 %v11937_v45  ;;  %3136 = vmatprep.mubr.bf16.mxu1 %v11937_v45  ;;  %v1251_v36 = vrot.slane %v931_v49, %v8791_v22  ;;  %v539_v34 = vrot.slane %v219_v3, %v8765_v11 }
 0x174   :  { %11940 = vst [vmem:[#allocation4_spill] sm:$0xff] %v9468_v18  ;;  %11941 = vst [vmem:[#allocation3_spill] sm:$0xff] %v9470_v35  ;;  %v951_v23 = vrot.slane %v9521_v6, %v8777_v16  ;;  %v1259_v13 = vrot.slane %v939_v5, %v8791_v22  ;;  %v239_v41 = vrot.slane %v9521_v6, %v8768_v12 }
 0x175   :  { %v2083_v33 = vpop.f32.mrb[4].mxu0  ;;  %v2154_v37 = vpop.f32.mrb[4].mxu1 }
 0x176   :  { %v9478_v38 = vpop.f32.mrb[5].mxu0  ;;  %v9480_v39 = vpop.f32.mrb[5].mxu1  ;;  %v4439_v61 = vmax.f32 %v2083_v33, 0.0  ;;  %v4441_v27 = vmax.f32 %v2154_v37, 0.0  ;;  %v1398_v49 = vmul.f32 %v8872_v26, %v1259_v13  ;;  %v559_v3 = vrot.slane %v239_v41, %v8765_v11 }
 0x177   :  { %v2087_v28 = vpop.f32.mrb[6].mxu0  ;;  %v2158_v46 = vpop.f32.mrb[6].mxu1 }
 0x178   :  { %v4503_v43 = vmax.f32 %v2087_v28, 0.0  ;;  %v4505_v44 = vmax.f32 %v2158_v46, 0.0  ;;  %v9482_v47 = vpop.f32.mrb[7].mxu0  ;;  %v9484_v30 = vpop.f32.mrb[7].mxu1  ;;  %v1396_v28 = vmul.f32 %v8872_v26, %v1251_v36  ;;  %v1460_v46 = vmul.f32 %v8870_v25, %v1251_v36 }
 0x179   :  { %v1462_v36 = vmul.f32 %v8870_v25, %v1259_v13 }
 0x17a   :  { %v9487_v32 = vpack.c.bf16 %v4503_v43, %v4439_v61  ;;  %v9489_v10 = vpack.c.bf16 %v4505_v44, %v4441_v27  ;;  %8253 = vmatmul.mubr.msk.bf16.vlgmr.msra.gmra.mrb[112].mxu0 %vm1833_vm1, %v9494_v52  ;;  %8258 = vmatmul.mubr.msk.bf16.vlgmr.msra.gmra.mrb[112].mxu1 %vm1833_vm1, %v9494_v52  ;;  %v547_v61 = vrot.slane %v227_v56, %v8765_v11 }
 0x17b   :  { %3176 = vmatpush1.bf16.msra.mxu0 %v1944_v31  ;;  %3247 = vmatpush1.bf16.msra.mxu1 %v1950_v53  ;;  %v959_v27 = vrot.slane %v9521_v6, %v11938_v0  ;;  %v1271_v31 = vrot.slane %v951_v23, %v8791_v22 }
 0x17c   :  { %11942 = vst [vmem:[#allocation5_spill] sm:$0xff] %v9487_v32  ;;  %11943 = vst [vmem:[#allocation6_spill] sm:$0xff] %v9489_v10  ;;  %8272 = vmatprep.subr.msk.bf16.mxu0 %vm1846_vm0, %v1788_v62  ;;  %8277 = vmatprep.subr.msk.bf16.mxu1 %vm1846_vm0, %v1790_v63  ;;  %v247_v62 = vrot.slane %v9521_v6, %v11939_v19  ;;  %v750_v41 = vmul.f32 %v8838_v57, %v547_v61 }
 0x17d   :  { %v2093_v48 = vpop.f32.mrb[8].mxu0  ;;  %v2164_v15 = vpop.f32.mrb[8].mxu1  ;;  %3075 = vmatprep.mubr.bf16.mxu0 %v11937_v45  ;;  %3146 = vmatprep.mubr.bf16.mxu1 %v11937_v45  ;;  %v1401_v56 = vmul.f32 %v8872_v26, %v1271_v31  ;;  %v1465_v13 = vmul.f32 %v8870_v25, %v1271_v31 }
 0x17e   :  { %v9512_v29 = vpop.f32.mrb[9].mxu0  ;;  %v9514_v1 = vpop.f32.mrb[9].mxu1  ;;  %v4567_v7 = vmax.f32 %v2093_v48, 0.0  ;;  %v4569_v9 = vmax.f32 %v2164_v15, 0.0  ;;  %v684_v48 = vmul.f32 %v8840_v58, %v539_v34  ;;  %v748_v15 = vmul.f32 %v8838_v57, %v539_v34 }
 0x17f   :  { %v2097_v50 = vpop.f32.mrb[10].mxu0  ;;  %v2168_v2 = vpop.f32.mrb[10].mxu1  ;;  %v567_v23 = vrot.slane %v247_v62, %v8765_v11 }
 0x180   :  { %v4631_v54 = vmax.f32 %v2097_v50, 0.0  ;;  %v4633_v8 = vmax.f32 %v2168_v2, 0.0  ;;  %v9523_v4 = vpop.f32.mrb[11].mxu0  ;;  %v9525_v17 = vpop.f32.mrb[11].mxu1  ;;  %v1524_v5 = vadd.f32 %v1396_v28, %v684_v48  ;;  %v689_v28 = vmul.f32 %v8840_v58, %v559_v3 }
 0x181   :  { %v755_v31 = vmul.f32 %v8838_v57, %v567_v23 }
 0x182   :  { %v9530_v33 = vpack.c.bf16 %v4631_v54, %v4567_v7  ;;  %v9532_v37 = vpack.c.bf16 %v4633_v8, %v4569_v9  ;;  %8254 = vmatmul.mubr.msk.bf16.gmra.mrb[116].mxu0 %vm1833_vm1, %v9537_v20  ;;  %8259 = vmatmul.mubr.msk.bf16.gmra.mrb[116].mxu1 %vm1833_vm1, %v9537_v20  ;;  %v1588_v7 = vadd.f32 %v1460_v46, %v748_v15  ;;  %v9576_v8 = vld [vmem:[%s11923_s2 + $0x10] sm:$0xff]  }
 0x183   :  { %3085 = vmatprep.mubr.bf16.mxu0 %v11937_v45  ;;  %3156 = vmatprep.mubr.bf16.mxu1 %v11937_v45  ;;  %v686_v9 = vmul.f32 %v8840_v58, %v547_v61  ;;  %v1279_v54 = vrot.slane %v959_v27, %v8791_v22  ;;  %v753_v46 = vmul.f32 %v8838_v57, %v559_v3  ;;  %v4376_v3 = vmax.f32 %v9464_v21, 0.0 }
 0x184   :  { %11944 = vst [vmem:[#allocation7_spill] sm:$0xff] %v9530_v33  ;;  %11945 = vst [vmem:[#allocation8_spill] sm:$0xff] %v9532_v37  ;;  %v1716_v48 = vmax.f32 %v1588_v7, 0.0  ;;  %v691_v61 = vmul.f32 %v8840_v58, %v567_v23  ;;  %v4378_v37 = vmax.f32 %v9466_v51, 0.0 }
 0x185   :  { %v9551_v42 = vpop.f32.mrb[12].mxu0  ;;  %v9553_v59 = vpop.f32.mrb[12].mxu1  ;;  %v1526_v34 = vadd.f32 %v1398_v49, %v686_v9  ;;  %v1403_v15 = vmul.f32 %v8872_v26, %v1279_v54  ;;  %v1529_v49 = vadd.f32 %v1401_v56, %v689_v28  ;;  %v1467_v9 = vmul.f32 %v8870_v25, %v1279_v54  ;;  %v9614_v23 = vld [vmem:[%s11923_s2 + $0x18] ss:$0 sps:$4 sm:$0x11]  }
 0x186   :  { %11946 = vst [vmem:[#allocation9_spill] sm:$0xff] %v9551_v42  ;;  %11947 = vst [vmem:[#allocation10_spill] sm:$0xff] %v9553_v59  ;;  %v9560_v43 = vpop.f32.mrb[13].mxu0  ;;  %v9562_v44 = vpop.f32.mrb[13].mxu1  ;;  %v4312_v56 = vmax.f32 %v9455_v40, 0.0  ;;  %v4314_v54 = vmax.f32 %v9457_v55, 0.0  ;;  %v1593_v21 = vadd.f32 %v1465_v13, %v753_v46 }
 0x187   :  { %11948 = vst [vmem:[#allocation11_spill] sm:$0xff] %v9560_v43  ;;  %11949 = vst [vmem:[#allocation12_spill] sm:$0xff] %v9562_v44  ;;  %v2107_v53 = vpop.f32.mrb[14].mxu0  ;;  %v2178_v63 = vpop.f32.mrb[14].mxu1  ;;  %v1654_v33 = vmax.f32 %v1526_v34, 0.0  ;;  %v1595_v34 = vadd.f32 %v1467_v9, %v755_v31  ;;  %v1657_v46 = vmax.f32 %v1529_v49, 0.0 }
 0x188   :  { %v2108_v50 = vpop.f32.mrb[15].mxu0  ;;  %v2179_v2 = vpop.f32.mrb[15].mxu1  ;;  %v1652_v63 = vmax.f32 %v1524_v5, 0.0  ;;  %v9622_v55 = vpack.c.bf16 %v4376_v3, %v4312_v56  ;;  %v4504_v9 = vmax.f32 %v9482_v47, 0.0  ;;  %v4440_v49 = vmax.f32 %v9478_v38, 0.0 }
 0x189   :  { %v1590_v2 = vadd.f32 %v1462_v36, %v750_v41  ;;  %v1531_v41 = vadd.f32 %v1403_v15, %v691_v61  ;;  %v1723_v61 = vmax.f32 %v1595_v34, 0.0  ;;  %v947_v38 = vrot.slane %v9521_v6, %v8791_v22 }
 0x18a   :  { %8255 = vmatmul.mubr.msk.bf16.gmra.mrb[120].mxu0 %vm1833_vm1, %v9576_v8  ;;  %8260 = vmatmul.mubr.msk.bf16.gmra.mrb[120].mxu1 %vm1833_vm1, %v9576_v8 }
 0x18b   :  { %3095 = vmatprep.mubr.bf16.mxu0 %v11937_v45  ;;  %3166 = vmatprep.mubr.bf16.mxu1 %v11937_v45  ;;  %v1718_v40 = vmax.f32 %v1590_v2, 0.0  ;;  %v1659_v2 = vmax.f32 %v1531_v41, 0.0 }
 0x18d   :  { %v2215_v27 = vpop.f32.mrb[16].mxu0  ;;  %v2286_v53 = vpop.f32.mrb[16].mxu1  ;;  %v1789_v15 = vpack.c.bf16 %v1718_v40, %v1654_v33  ;;  %v4442_v33 = vmax.f32 %v9480_v39, 0.0  ;;  %v1794_v34 = vpack.c.bf16 %v1723_v61, %v1659_v2  ;;  %v9650_v39 = vpack.c.bf16 %v4504_v9, %v4440_v49 }
 0x18e   :  { %v9592_v62 = vpop.f32.mrb[17].mxu0  ;;  %v9594_v50 = vpop.f32.mrb[17].mxu1  ;;  %v4315_v10 = vmax.f32 %v2215_v27, 0.0  ;;  %v4317_v32 = vmax.f32 %v2286_v53, 0.0  ;;  %v1721_v27 = vmax.f32 %v1593_v21, 0.0  ;;  %v9665_v2 = vunpack.c.h.bf16 %v9506_v60 }
 0x18f   :  { %v2219_v5 = vpop.f32.mrb[18].mxu0  ;;  %v2290_v7 = vpop.f32.mrb[18].mxu1  ;;  %v1962_v40 = vsel %vm1846_vm0, %v1789_v15, 0  ;;  %11955 = vst [vmem:[#allocation18_spill] sm:$0xff] %v9650_v39  ;;  %v4632_v61 = vmax.f32 %v9523_v4, 0.0  ;;  %v4634_v9 = vmax.f32 %v9525_v17, 0.0 }
 0x190   :  { %v4379_v44 = vmax.f32 %v2219_v5, 0.0  ;;  %v4381_v35 = vmax.f32 %v2290_v7, 0.0  ;;  %v9601_v18 = vpop.f32.mrb[19].mxu0  ;;  %v9603_v36 = vpop.f32.mrb[19].mxu1  ;;  %v4506_v5 = vmax.f32 %v9484_v30, 0.0  ;;  %v1792_v41 = vpack.c.bf16 %v1721_v27, %v1657_v46 }
 0x191   :  { %v235_v46 = vrot.slane %v9521_v6, %v8765_v11  ;;  %v4568_v60 = vmax.f32 %v9512_v29, 0.0  ;;  %v4570_v4 = vmax.f32 %v9514_v1, 0.0  ;;  %v967_v29 = vrot.slane %v9665_v2, %v8777_v16 }
 0x192   :  { %v9607_v51 = vpack.c.bf16 %v4379_v44, %v4315_v10  ;;  %v9609_v28 = vpack.c.bf16 %v4381_v35, %v4317_v32  ;;  %8256 = vmatmul.mubr.msk.bf16.gmra.mrb[124].mxu0 %vm1833_vm1, %v9614_v23  ;;  %8261 = vmatmul.mubr.msk.bf16.gmra.mrb[124].mxu1 %vm1833_vm1, %v9614_v23  ;;  %v9624_v35 = vpack.c.bf16 %v4378_v37, %v4314_v54 }
 0x193   :  { %3207 = vmatprep.mubr.bf16.mxu0 %v11937_v45  ;;  %3278 = vmatprep.mubr.bf16.mxu1 %v11937_v45  ;;  %v1787_v44 = vpack.c.bf16 %v1716_v48, %v1652_v63  ;;  %v555_v17 = vrot.slane %v235_v46, %v8765_v11 }
 0x194   :  { %11950 = vst [vmem:[#allocation13_spill] sm:$0xff] %v9607_v51  ;;  %11951 = vst [vmem:[#allocation14_spill] sm:$0xff] %v9609_v28 }
 0x195   :  { %11952 = vst [vmem:[#allocation15_spill] sm:$0xff] %v9624_v35  ;;  %v2225_v32 = vpop.f32.mrb[20].mxu0  ;;  %v2296_v10 = vpop.f32.mrb[20].mxu1  ;;  %v1956_v21 = vsel %vm1846_vm0, %v1787_v44, 0 }
 0x196   :  { %v9626_v53 = vpop.f32.mrb[21].mxu0  ;;  %v9628_v13 = vpop.f32.mrb[21].mxu1  ;;  %v4443_v37 = vmax.f32 %v2225_v32, 0.0  ;;  %v4445_v31 = vmax.f32 %v2296_v10, 0.0  ;;  %v9652_v32 = vpack.c.bf16 %v4506_v5, %v4442_v33 }
 0x197   :  { %v2229_v3 = vpop.f32.mrb[22].mxu0  ;;  %v2300_v7 = vpop.f32.mrb[22].mxu1 }
 0x198   :  { %v4507_v56 = vmax.f32 %v2229_v3, 0.0  ;;  %v4509_v54 = vmax.f32 %v2300_v7, 0.0  ;;  %v9632_v63 = vpop.f32.mrb[23].mxu0  ;;  %v9634_v48 = vpop.f32.mrb[23].mxu1  ;;  %11956 = vst [vmem:[#allocation19_spill] sm:$0xff] %v9652_v32  ;;  %v1267_v7 = vrot.slane %v947_v38, %v8791_v22  ;;  %v9696_v38 = vpack.c.bf16 %v4634_v9, %v4570_v4 }
 0x19a   :  { %v9639_v47 = vpack.c.bf16 %v4507_v56, %v4443_v37  ;;  %v9641_v30 = vpack.c.bf16 %v4509_v54, %v4445_v31  ;;  %8263 = vmatmul.mubr.msk.bf16.vlgmr.msra.gmra.mrb[128].mxu0 %vm1833_vm1, %v9494_v52  ;;  %8268 = vmatmul.mubr.msk.bf16.vlgmr.msra.gmra.mrb[128].mxu1 %vm1833_vm1, %v9494_v52  ;;  %v955_v37 = vrot.slane %v9521_v6, %v8795_v24 }
 0x19b   :  { %3318 = vmatpush1.bf16.msra.mxu0 %v1956_v21  ;;  %3389 = vmatpush1.bf16.msra.mxu1 %v1962_v40  ;;  %11960 = vst [vmem:[#allocation23_spill] sm:$0xff] %v9696_v38 }
 0x19c   :  { %11953 = vst [vmem:[#allocation16_spill] sm:$0xff] %v9639_v47  ;;  %11954 = vst [vmem:[#allocation17_spill] sm:$0xff] %v9641_v30  ;;  %8282 = vmatprep.subr.msk.bf16.mxu0 %vm1846_vm0, %v1792_v41  ;;  %8287 = vmatprep.subr.msk.bf16.mxu1 %vm1846_vm0, %v1794_v34  ;;  %v243_v41 = vrot.slane %v9521_v6, %v8774_v14  ;;  %v1275_v1 = vrot.slane %v955_v37, %v8791_v22 }
 0x19d   :  { %v2235_v10 = vpop.f32.mrb[24].mxu0  ;;  %v2306_v44 = vpop.f32.mrb[24].mxu1  ;;  %3217 = vmatprep.mubr.bf16.mxu0 %v11937_v45  ;;  %3288 = vmatprep.mubr.bf16.mxu1 %v11937_v45  ;;  %v9694_v6 = vpack.c.bf16 %v4632_v61, %v4568_v60  ;;  %v975_v37 = vrot.slane %v9665_v2, %v11938_v0 }
 0x19e   :  { %v9660_v27 = vpop.f32.mrb[25].mxu0  ;;  %v9662_v15 = vpop.f32.mrb[25].mxu1  ;;  %v4571_v31 = vmax.f32 %v2235_v10, 0.0  ;;  %v4573_v56 = vmax.f32 %v2306_v44, 0.0  ;;  %v1400_v10 = vmul.f32 %v8872_v26, %v1267_v7  ;;  %v255_v44 = vrot.slane %v9665_v2, %v8768_v12 }
 0x19f   :  { %v2239_v5 = vpop.f32.mrb[26].mxu0  ;;  %v2310_v3 = vpop.f32.mrb[26].mxu1  ;;  %11959 = vst [vmem:[#allocation22_spill] sm:$0xff] %v9694_v6  ;;  %v1295_v28 = vrot.slane %v975_v37, %v8791_v22 }
 0x1a0   :  { %v4635_v54 = vmax.f32 %v2239_v5, 0.0  ;;  %v4637_v49 = vmax.f32 %v2310_v3, 0.0  ;;  %v9672_v33 = vpop.f32.mrb[27].mxu0  ;;  %v9674_v21 = vpop.f32.mrb[27].mxu1  ;;  %v1464_v3 = vmul.f32 %v8870_v25, %v1267_v7  ;;  %v752_v7 = vmul.f32 %v8838_v57, %v555_v17 }
 0x1a1   :  { %v575_v47 = vrot.slane %v255_v44, %v8765_v11 }
 0x1a2   :  { %v9681_v40 = vpack.c.bf16 %v4635_v54, %v4571_v31  ;;  %v9683_v34 = vpack.c.bf16 %v4637_v49, %v4573_v56  ;;  %8264 = vmatmul.mubr.msk.bf16.gmra.mrb[132].mxu0 %vm1833_vm1, %v9537_v20  ;;  %8269 = vmatmul.mubr.msk.bf16.gmra.mrb[132].mxu1 %vm1833_vm1, %v9537_v20  ;;  %v563_v31 = vrot.slane %v243_v41, %v8765_v11 }
 0x1a3   :  { %3227 = vmatprep.mubr.bf16.mxu0 %v11937_v45  ;;  %3298 = vmatprep.mubr.bf16.mxu1 %v11937_v45  ;;  %v688_v56 = vmul.f32 %v8840_v58, %v555_v17  ;;  %v1287_v54 = vrot.slane %v967_v29, %v8791_v22  ;;  %v263_v49 = vrot.slane %v9665_v2, %v11939_v19 }
 0x1a4   :  { %11957 = vst [vmem:[#allocation20_spill] sm:$0xff] %v9681_v40  ;;  %11958 = vst [vmem:[#allocation21_spill] sm:$0xff] %v9683_v34  ;;  %v1402_v41 = vmul.f32 %v8872_v26, %v1275_v1  ;;  %v1466_v17 = vmul.f32 %v8870_v25, %v1275_v1  ;;  %v754_v44 = vmul.f32 %v8838_v57, %v563_v31 }
 0x1a5   :  { %v9701_v46 = vpop.f32.mrb[28].mxu0  ;;  %v9703_v5 = vpop.f32.mrb[28].mxu1  ;;  %v1528_v30 = vadd.f32 %v1400_v10, %v688_v56  ;;  %v1405_v29 = vmul.f32 %v8872_v26, %v1287_v54  ;;  %v1469_v1 = vmul.f32 %v8870_v25, %v1287_v54 }
 0x1a6   :  { %11961 = vst [vmem:[#allocation24_spill] sm:$0xff] %v9701_v46  ;;  %11962 = vst [vmem:[#allocation25_spill] sm:$0xff] %v9703_v5  ;;  %v9709_v61 = vpop.f32.mrb[29].mxu0  ;;  %v9711_v9 = vpop.f32.mrb[29].mxu1  ;;  %v1594_v5 = vadd.f32 %v1466_v17, %v754_v44 }
 0x1a7   :  { %11963 = vst [vmem:[#allocation26_spill] sm:$0xff] %v9709_v61  ;;  %11964 = vst [vmem:[#allocation27_spill] sm:$0xff] %v9711_v9  ;;  %v2249_v60 = vpop.f32.mrb[30].mxu0  ;;  %v2320_v4 = vpop.f32.mrb[30].mxu1  ;;  %v1592_v61 = vadd.f32 %v1464_v3, %v752_v7  ;;  %v690_v9 = vmul.f32 %v8840_v58, %v563_v31  ;;  %v1656_v10 = vmax.f32 %v1528_v30, 0.0  ;;  %v693_v3 = vmul.f32 %v8840_v58, %v575_v47 }
 0x1a8   :  { %v2250_v34 = vpop.f32.mrb[31].mxu0  ;;  %v2321_v40 = vpop.f32.mrb[31].mxu1  ;;  %v757_v4 = vmul.f32 %v8838_v57, %v575_v47  ;;  %v1407_v7 = vmul.f32 %v8872_v26, %v1295_v28  ;;  %v1471_v31 = vmul.f32 %v8870_v25, %v1295_v28  ;;  %v4318_v28 = vmax.f32 %v9594_v50, 0.0 }
 0x1a9   :  { %v583_v40 = vrot.slane %v263_v49, %v8765_v11  ;;  %v1530_v34 = vadd.f32 %v1402_v41, %v690_v9  ;;  %v1720_v60 = vmax.f32 %v1592_v61, 0.0  ;;  %v1533_v9 = vadd.f32 %v1405_v29, %v693_v3 }
 0x1aa   :  { %8265 = vmatmul.mubr.msk.bf16.gmra.mrb[136].mxu0 %vm1833_vm1, %v9576_v8  ;;  %8270 = vmatmul.mubr.msk.bf16.gmra.mrb[136].mxu1 %vm1833_vm1, %v9576_v8  ;;  %v4380_v41 = vmax.f32 %v9601_v18, 0.0  ;;  %v4382_v61 = vmax.f32 %v9603_v36, 0.0  ;;  %v4316_v29 = vmax.f32 %v9592_v62, 0.0  ;;  %v1597_v18 = vadd.f32 %v1469_v1, %v757_v4 }
 0x1ab   :  { %3237 = vmatprep.mubr.bf16.mxu0 %v11937_v45  ;;  %3308 = vmatprep.mubr.bf16.mxu1 %v11937_v45  ;;  %v695_v30 = vmul.f32 %v8840_v58, %v583_v40  ;;  %v1658_v38 = vmax.f32 %v1530_v34, 0.0  ;;  %v759_v54 = vmul.f32 %v8838_v57, %v583_v40 }
 0x1ac   :  { %v9761_v62 = vpack.c.bf16 %v4380_v41, %v4316_v29  ;;  %v9763_v50 = vpack.c.bf16 %v4382_v61, %v4318_v28  ;;  %v1725_v34 = vmax.f32 %v1597_v18, 0.0  ;;  %v251_v61 = vrot.slane %v9665_v2, %v8765_v11 }
 0x1ad   :  { %v2357_v37 = vpop.f32.mrb[32].mxu0  ;;  %v2428_v56 = vpop.f32.mrb[32].mxu1  ;;  %v1535_v44 = vadd.f32 %v1407_v7, %v695_v30  ;;  %v1599_v40 = vadd.f32 %v1471_v31, %v759_v54  ;;  %v4508_v7 = vmax.f32 %v9632_v63, 0.0  ;;  %v4510_v30 = vmax.f32 %v9634_v48, 0.0 }
 0x1ae   :  { %v9736_v49 = vpop.f32.mrb[33].mxu0  ;;  %v9738_v51 = vpop.f32.mrb[33].mxu1  ;;  %v4319_v6 = vmax.f32 %v2357_v37, 0.0  ;;  %v4321_v32 = vmax.f32 %v2428_v56, 0.0  ;;  %11967 = vst [vmem:[#allocation30_spill] sm:$0xff] %v9761_v62  ;;  %11968 = vst [vmem:[#allocation31_spill] sm:$0xff] %v9763_v50 }
 0x1af   :  { %v2361_v46 = vpop.f32.mrb[34].mxu0  ;;  %v2432_v47 = vpop.f32.mrb[34].mxu1  ;;  %v1727_v1 = vmax.f32 %v1599_v40, 0.0  ;;  %v4446_v28 = vmax.f32 %v9628_v13, 0.0 }
 0x1b0   :  { %v4383_v39 = vmax.f32 %v2361_v46, 0.0  ;;  %v4385_v43 = vmax.f32 %v2432_v47, 0.0  ;;  %v9745_v59 = vpop.f32.mrb[35].mxu0  ;;  %v9747_v17 = vpop.f32.mrb[35].mxu1  ;;  %v1722_v46 = vmax.f32 %v1594_v5, 0.0  ;;  %v1663_v5 = vmax.f32 %v1535_v44, 0.0 }
 0x1b1   :  { %v9791_v13 = vpack.c.bf16 %v4510_v30, %v4446_v28 }
 0x1b2   :  { %v9751_v36 = vpack.c.bf16 %v4383_v39, %v4319_v6  ;;  %v9753_v3 = vpack.c.bf16 %v4385_v43, %v4321_v32  ;;  %8266 = vmatmul.mubr.msk.bf16.gmra.mrb[140].mxu0 %vm1833_vm1, %v9614_v23  ;;  %8271 = vmatmul.mubr.msk.bf16.gmra.mrb[140].mxu1 %vm1833_vm1, %v9614_v23  ;;  %v1791_v43 = vpack.c.bf16 %v1720_v60, %v1656_v10  ;;  %v1661_v32 = vmax.f32 %v1533_v9, 0.0 }
 0x1b3   :  { %3349 = vmatprep.mubr.bf16.mxu0 %v11937_v45  ;;  %3420 = vmatprep.mubr.bf16.mxu1 %v11937_v45  ;;  %v1793_v4 = vpack.c.bf16 %v1722_v46, %v1658_v38  ;;  %v4444_v38 = vmax.f32 %v9626_v53, 0.0  ;;  %v1798_v40 = vpack.c.bf16 %v1727_v1, %v1663_v5  ;;  %11972 = vst [vmem:[#allocation35_spill] sm:$0xff] %v9791_v13  ;;  %v4636_v1 = vmax.f32 %v9672_v33, 0.0 }
 0x1b4   :  { %11965 = vst [vmem:[#allocation28_spill] sm:$0xff] %v9751_v36  ;;  %11966 = vst [vmem:[#allocation29_spill] sm:$0xff] %v9753_v3  ;;  %v1968_v63 = vsel %vm1846_vm0, %v1791_v43, 0  ;;  %v1796_v48 = vpack.c.bf16 %v1725_v34, %v1661_v32  ;;  %v963_v32 = vrot.slane %v9665_v2, %v8791_v22  ;;  %v571_v5 = vrot.slane %v251_v61, %v8765_v11 }
 0x1b5   :  { %v2367_v39 = vpop.f32.mrb[36].mxu0  ;;  %v2438_v6 = vpop.f32.mrb[36].mxu1  ;;  %v1974_v46 = vsel %vm1846_vm0, %v1793_v4, 0  ;;  %v9789_v53 = vpack.c.bf16 %v4508_v7, %v4444_v38  ;;  %v4638_v7 = vmax.f32 %v9674_v21, 0.0  ;;  %v4572_v33 = vmax.f32 %v9660_v27, 0.0 }
 0x1b6   :  { %v9765_v37 = vpop.f32.mrb[37].mxu0  ;;  %v9767_v56 = vpop.f32.mrb[37].mxu1  ;;  %v4447_v47 = vmax.f32 %v2367_v39, 0.0  ;;  %v4449_v10 = vmax.f32 %v2438_v6, 0.0  ;;  %v9798_v39 = vld [vmem:[%s11924_s0 + $0x30] sm:$0xff]  ;;  %v4574_v21 = vmax.f32 %v9662_v15, 0.0  ;;  %v1283_v61 = vrot.slane %v963_v32, %v8791_v22 }
 0x1b7   :  { %v2371_v31 = vpop.f32.mrb[38].mxu0  ;;  %v2442_v41 = vpop.f32.mrb[38].mxu1  ;;  %11971 = vst [vmem:[#allocation34_spill] sm:$0xff] %v9789_v53 }
 0x1b8   :  { %v4511_v60 = vmax.f32 %v2371_v31, 0.0  ;;  %v4513_v9 = vmax.f32 %v2442_v41, 0.0  ;;  %v9773_v54 = vpop.f32.mrb[39].mxu0  ;;  %v9775_v29 = vpop.f32.mrb[39].mxu1  ;;  %v971_v41 = vrot.slane %v9665_v2, %v8795_v24 }
 0x1ba   :  { %v9780_v18 = vpack.c.bf16 %v4511_v60, %v4447_v47  ;;  %v9782_v44 = vpack.c.bf16 %v4513_v9, %v4449_v10  ;;  %8273 = vmatmul.mubr.msk.bf16.vlgmr.msra.gmra.mrb[144].mxu0 %vm1833_vm1, %v9494_v52  ;;  %8278 = vmatmul.mubr.msk.bf16.vlgmr.msra.gmra.mrb[144].mxu1 %vm1833_vm1, %v9494_v52  ;;  %v9814_v47 = vunpack.c.l.bf16 %v9798_v39  ;;  %v1291_v15 = vrot.slane %v971_v41, %v8791_v22 }
 0x1bb   :  { %3460 = vmatpush1.bf16.msra.mxu0 %v1968_v63  ;;  %3531 = vmatpush1.bf16.msra.mxu1 %v1974_v46 }
 0x1bc   :  { %11969 = vst [vmem:[#allocation32_spill] sm:$0xff] %v9780_v18  ;;  %11970 = vst [vmem:[#allocation33_spill] sm:$0xff] %v9782_v44  ;;  %8292 = vmatprep.subr.msk.bf16.mxu0 %vm1846_vm0, %v1796_v48  ;;  %8297 = vmatprep.subr.msk.bf16.mxu1 %vm1846_vm0, %v1798_v40  ;;  %v259_v48 = vrot.slane %v9665_v2, %v8774_v14  ;;  %v983_v27 = vrot.slane %v9814_v47, %v8777_v16 }
 0x1bd   :  { %v2377_v6 = vpop.f32.mrb[40].mxu0  ;;  %v2448_v43 = vpop.f32.mrb[40].mxu1  ;;  %3359 = vmatprep.mubr.bf16.mxu0 %v11937_v45  ;;  %3430 = vmatprep.mubr.bf16.mxu1 %v11937_v45  ;;  %v9838_v2 = vpack.c.bf16 %v4636_v1, %v4572_v33  ;;  %v991_v41 = vrot.slane %v9814_v47, %v11938_v0 }
 0x1be   :  { %v9804_v34 = vpop.f32.mrb[41].mxu0  ;;  %v9806_v4 = vpop.f32.mrb[41].mxu1  ;;  %v4575_v10 = vmax.f32 %v2377_v6, 0.0  ;;  %v4577_v60 = vmax.f32 %v2448_v43, 0.0  ;;  %v9840_v6 = vpack.c.bf16 %v4638_v7, %v4574_v21  ;;  %v271_v43 = vrot.slane %v9814_v47, %v8768_v12 }
 0x1bf   :  { %v2381_v30 = vpop.f32.mrb[42].mxu0  ;;  %v2452_v31 = vpop.f32.mrb[42].mxu1  ;;  %11975 = vst [vmem:[#allocation38_spill] sm:$0xff] %v9838_v2  ;;  %v4386_v2 = vmax.f32 %v9747_v17, 0.0 }
 0x1c0   :  { %v4639_v9 = vmax.f32 %v2381_v30, 0.0  ;;  %v4641_v38 = vmax.f32 %v2452_v31, 0.0  ;;  %v9816_v28 = vpop.f32.mrb[43].mxu0  ;;  %v9818_v63 = vpop.f32.mrb[43].mxu1  ;;  %11976 = vst [vmem:[#allocation39_spill] sm:$0xff] %v9840_v6  ;;  %v1404_v31 = vmul.f32 %v8872_v26, %v1283_v61  ;;  %v591_v18 = vrot.slane %v271_v43, %v8765_v11 }
 0x1c1   :  { %v4384_v6 = vmax.f32 %v9745_v59, 0.0 }
 0x1c2   :  { %v9825_v46 = vpack.c.bf16 %v4639_v9, %v4575_v10  ;;  %v9827_v40 = vpack.c.bf16 %v4641_v38, %v4577_v60  ;;  %8274 = vmatmul.mubr.msk.bf16.gmra.mrb[148].mxu0 %vm1833_vm1, %v9537_v20  ;;  %8279 = vmatmul.mubr.msk.bf16.gmra.mrb[148].mxu1 %vm1833_vm1, %v9537_v20  ;;  %v1468_v10 = vmul.f32 %v8870_v25, %v1283_v61 }
 0x1c3   :  { %3369 = vmatprep.mubr.bf16.mxu0 %v11937_v45  ;;  %3440 = vmatprep.mubr.bf16.mxu1 %v11937_v45  ;;  %v579_v60 = vrot.slane %v259_v48, %v8765_v11  ;;  %v1303_v9 = vrot.slane %v983_v27, %v8791_v22  ;;  %v279_v38 = vrot.slane %v9814_v47, %v11939_v19 }
 0x1c4   :  { %11973 = vst [vmem:[#allocation36_spill] sm:$0xff] %v9825_v46  ;;  %11974 = vst [vmem:[#allocation37_spill] sm:$0xff] %v9827_v40  ;;  %v692_v40 = vmul.f32 %v8840_v58, %v571_v5  ;;  %v756_v61 = vmul.f32 %v8838_v57, %v571_v5  ;;  %v1406_v48 = vmul.f32 %v8872_v26, %v1291_v15 }
 0x1c5   :  { %v9844_v32 = vpop.f32.mrb[44].mxu0  ;;  %v9846_v30 = vpop.f32.mrb[44].mxu1  ;;  %v1311_v27 = vrot.slane %v991_v41, %v8791_v22  ;;  %v1470_v5 = vmul.f32 %v8870_v25, %v1291_v15  ;;  %v697_v43 = vmul.f32 %v8840_v58, %v591_v18 }
 0x1c6   :  { %11977 = vst [vmem:[#allocation40_spill] sm:$0xff] %v9844_v32  ;;  %11978 = vst [vmem:[#allocation41_spill] sm:$0xff] %v9846_v30  ;;  %v9853_v1 = vpop.f32.mrb[45].mxu0  ;;  %v9855_v7 = vpop.f32.mrb[45].mxu1  ;;  %v1596_v3 = vadd.f32 %v1468_v10, %v756_v61  ;;  %v267_v10 = vrot.slane %v9814_v47, %v8765_v11 }
 0x1c7   :  { %11979 = vst [vmem:[#allocation42_spill] sm:$0xff] %v9853_v1  ;;  %11980 = vst [vmem:[#allocation43_spill] sm:$0xff] %v9855_v7  ;;  %v2391_v33 = vpop.f32.mrb[46].mxu0  ;;  %v2462_v21 = vpop.f32.mrb[46].mxu1  ;;  %v1532_v1 = vadd.f32 %v1404_v31, %v692_v40  ;;  %v694_v7 = vmul.f32 %v8840_v58, %v579_v60  ;;  %v758_v40 = vmul.f32 %v8838_v57, %v579_v60 }
 0x1c8   :  { %v2392_v46 = vpop.f32.mrb[47].mxu0  ;;  %v2463_v44 = vpop.f32.mrb[47].mxu1  ;;  %v1409_v33 = vmul.f32 %v8872_v26, %v1303_v9  ;;  %v761_v31 = vmul.f32 %v8838_v57, %v591_v18  ;;  %v1724_v61 = vmax.f32 %v1596_v3, 0.0  ;;  %v1411_v36 = vmul.f32 %v8872_v26, %v1311_v27 }
 0x1c9   :  { %v599_v44 = vrot.slane %v279_v38, %v8765_v11  ;;  %v1534_v46 = vadd.f32 %v1406_v48, %v694_v7  ;;  %v1660_v21 = vmax.f32 %v1532_v1, 0.0  ;;  %v1473_v38 = vmul.f32 %v8870_v25, %v1303_v9 }
 0x1ca   :  { %8275 = vmatmul.mubr.msk.bf16.gmra.mrb[152].mxu0 %vm1833_vm1, %v9576_v8  ;;  %8280 = vmatmul.mubr.msk.bf16.gmra.mrb[152].mxu1 %vm1833_vm1, %v9576_v8  ;;  %v1598_v60 = vadd.f32 %v1470_v5, %v758_v40  ;;  %v1537_v48 = vadd.f32 %v1409_v33, %v697_v43  ;;  %v1475_v18 = vmul.f32 %v8870_v25, %v1311_v27  ;;  %v4320_v33 = vmax.f32 %v9736_v49, 0.0 }
 0x1cb   :  { %3379 = vmatprep.mubr.bf16.mxu0 %v11937_v45  ;;  %3450 = vmatprep.mubr.bf16.mxu1 %v11937_v45  ;;  %v699_v32 = vmul.f32 %v8840_v58, %v599_v44  ;;  %v1662_v13 = vmax.f32 %v1534_v46, 0.0  ;;  %v763_v9 = vmul.f32 %v8838_v57, %v599_v44  ;;  %v4322_v27 = vmax.f32 %v9738_v51, 0.0 }
 0x1cc   :  { %v1601_v59 = vadd.f32 %v1473_v38, %v761_v31  ;;  %v1726_v44 = vmax.f32 %v1598_v60, 0.0  ;;  %v9907_v49 = vpack.c.bf16 %v4384_v6, %v4320_v33 }
 0x1cd   :  { %v2499_v41 = vpop.f32.mrb[48].mxu0  ;;  %v2570_v15 = vpop.f32.mrb[48].mxu1  ;;  %v1539_v40 = vadd.f32 %v1411_v36, %v699_v32  ;;  %v1603_v46 = vadd.f32 %v1475_v18, %v763_v9  ;;  %v9909_v51 = vpack.c.bf16 %v4386_v2, %v4322_v27  ;;  %v587_v36 = vrot.slane %v267_v10, %v8765_v11 }
 0x1ce   :  { %v9882_v30 = vpop.f32.mrb[49].mxu0  ;;  %v9884_v7 = vpop.f32.mrb[49].mxu1  ;;  %v4323_v53 = vmax.f32 %v2499_v41, 0.0  ;;  %v4325_v50 = vmax.f32 %v2570_v15, 0.0  ;;  %v1665_v32 = vmax.f32 %v1537_v48, 0.0  ;;  %v1729_v31 = vmax.f32 %v1601_v59, 0.0 }
 0x1cf   :  { %v2503_v1 = vpop.f32.mrb[50].mxu0  ;;  %v2574_v3 = vpop.f32.mrb[50].mxu1  ;;  %v9915_v41 = vunpack.c.h.bf16 %v9798_v39  ;;  %v1797_v6 = vpack.c.bf16 %v1726_v44, %v1662_v13  ;;  %v1667_v2 = vmax.f32 %v1539_v40, 0.0  ;;  %v1731_v60 = vmax.f32 %v1603_v46, 0.0 }
 0x1d0   :  { %v4387_v62 = vmax.f32 %v2503_v1, 0.0  ;;  %v4389_v42 = vmax.f32 %v2574_v3, 0.0  ;;  %v9891_v35 = vpop.f32.mrb[51].mxu0  ;;  %v9893_v5 = vpop.f32.mrb[51].mxu1  ;;  %v979_v10 = vrot.slane %v9814_v47, %v8791_v22  ;;  %v4512_v18 = vmax.f32 %v9773_v54, 0.0 }
 0x1d1   :  { %v4514_v1 = vmax.f32 %v9775_v29, 0.0  ;;  %v987_v39 = vrot.slane %v9814_v47, %v8795_v24  ;;  %v999_v48 = vrot.slane %v9915_v41, %v8777_v16  ;;  %v4448_v54 = vmax.f32 %v9765_v37, 0.0 }
 0x1d2   :  { %v9897_v17 = vpack.c.bf16 %v4387_v62, %v4323_v53  ;;  %v9899_v43 = vpack.c.bf16 %v4389_v42, %v4325_v50  ;;  %8276 = vmatmul.mubr.msk.bf16.gmra.mrb[156].mxu0 %vm1833_vm1, %v9614_v23  ;;  %8281 = vmatmul.mubr.msk.bf16.gmra.mrb[156].mxu1 %vm1833_vm1, %v9614_v23  ;;  %v275_v42 = vrot.slane %v9814_v47, %v8774_v14  ;;  %v4450_v29 = vmax.f32 %v9767_v56, 0.0 }
 0x1d3   :  { %3491 = vmatprep.mubr.bf16.mxu0 %v11937_v45  ;;  %3562 = vmatprep.mubr.bf16.mxu1 %v11937_v45  ;;  %v1795_v53 = vpack.c.bf16 %v1724_v61, %v1660_v21  ;;  %v1800_v44 = vpack.c.bf16 %v1729_v31, %v1665_v32  ;;  %v1299_v37 = vrot.slane %v979_v10, %v8791_v22 }
 0x1d4   :  { %11981 = vst [vmem:[#allocation44_spill] sm:$0xff] %v9897_v17  ;;  %11982 = vst [vmem:[#allocation45_spill] sm:$0xff] %v9899_v43  ;;  %v9946_v56 = vpack.c.bf16 %v4512_v18, %v4448_v54  ;;  %v696_v10 = vmul.f32 %v8840_v58, %v587_v36  ;;  %v287_v18 = vrot.slane %v9915_v41, %v8768_v12 }
 0x1d5   :  { %v2509_v62 = vpop.f32.mrb[52].mxu0  ;;  %v2580_v50 = vpop.f32.mrb[52].mxu1  ;;  %v1980_v40 = vsel %vm1846_vm0, %v1795_v53, 0  ;;  %v9948_v53 = vpack.c.bf16 %v4514_v1, %v4450_v29  ;;  %v1319_v1 = vrot.slane %v999_v48, %v8791_v22 }
 0x1d6   :  { %v9917_v15 = vpop.f32.mrb[53].mxu0  ;;  %v9919_v38 = vpop.f32.mrb[53].mxu1  ;;  %v4451_v3 = vmax.f32 %v2509_v62, 0.0  ;;  %v4453_v9 = vmax.f32 %v2580_v50, 0.0  ;;  %v1986_v62 = vsel %vm1846_vm0, %v1797_v6, 0  ;;  %v1802_v50 = vpack.c.bf16 %v1731_v60, %v1667_v2 }
 0x1d7   :  { %v2513_v21 = vpop.f32.mrb[54].mxu0  ;;  %v2584_v61 = vpop.f32.mrb[54].mxu1  ;;  %v1307_v6 = vrot.slane %v987_v39, %v8791_v22 }
 0x1d8   :  { %v4515_v13 = vmax.f32 %v2513_v21, 0.0  ;;  %v4517_v33 = vmax.f32 %v2584_v61, 0.0  ;;  %v9929_v27 = vpop.f32.mrb[55].mxu0  ;;  %v9931_v59 = vpop.f32.mrb[55].mxu1  ;;  %v1007_v21 = vrot.slane %v9915_v41, %v11938_v0  ;;  %v4640_v61 = vmax.f32 %v9816_v28, 0.0 }
 0x1d9   :  { %v4578_v28 = vmax.f32 %v9806_v4, 0.0 }
 0x1da   :  { %v9936_v46 = vpack.c.bf16 %v4515_v13, %v4451_v3  ;;  %v9938_v47 = vpack.c.bf16 %v4517_v33, %v4453_v9  ;;  %8283 = vmatmul.mubr.msk.bf16.vlgmr.msra.gmra.mrb[160].mxu0 %vm1833_vm1, %v9494_v52  ;;  %8288 = vmatmul.mubr.msk.bf16.vlgmr.msra.gmra.mrb[160].mxu1 %vm1833_vm1, %v9494_v52  ;;  %v595_v52 = vrot.slane %v275_v42, %v8765_v11  ;;  %v4642_v42 = vmax.f32 %v9818_v63, 0.0 }
 0x1db   :  { %3602 = vmatpush1.bf16.msra.mxu0 %v1980_v40  ;;  %3673 = vmatpush1.bf16.msra.mxu1 %v1986_v62  ;;  %v760_v9 = vmul.f32 %v8838_v57, %v587_v36  ;;  %v1408_v13 = vmul.f32 %v8872_v26, %v1299_v37  ;;  %v4576_v62 = vmax.f32 %v9804_v34, 0.0  ;;  %v1472_v63 = vmul.f32 %v8870_v25, %v1299_v37 }
 0x1dc   :  { %11983 = vst [vmem:[#allocation46_spill] sm:$0xff] %v9936_v46  ;;  %11984 = vst [vmem:[#allocation47_spill] sm:$0xff] %v9938_v47  ;;  %8302 = vmatprep.subr.msk.bf16.mxu0 %vm1846_vm0, %v1800_v44  ;;  %8307 = vmatprep.subr.msk.bf16.mxu1 %vm1846_vm0, %v1802_v50  ;;  %v1410_v50 = vmul.f32 %v8872_v26, %v1307_v6  ;;  %v698_v34 = vmul.f32 %v8840_v58, %v595_v52 }
 0x1dd   :  { %v2519_v32 = vpop.f32.mrb[56].mxu0  ;;  %v2590_v31 = vpop.f32.mrb[56].mxu1  ;;  %3501 = vmatprep.mubr.bf16.mxu0 %v11937_v45  ;;  %3572 = vmatprep.mubr.bf16.mxu1 %v11937_v45  ;;  %v9990_v4 = vpack.c.bf16 %v4640_v61, %v4576_v62  ;;  %v9992_v37 = vpack.c.bf16 %v4642_v42, %v4578_v28  ;;  %v1413_v62 = vmul.f32 %v8872_v26, %v1319_v1 }
 0x1de   :  { %v9956_v2 = vpop.f32.mrb[57].mxu0  ;;  %v9958_v60 = vpop.f32.mrb[57].mxu1  ;;  %v4579_v33 = vmax.f32 %v2519_v32, 0.0  ;;  %v4581_v54 = vmax.f32 %v2590_v31, 0.0  ;;  %v1474_v32 = vmul.f32 %v8870_v25, %v1307_v6  ;;  %v762_v31 = vmul.f32 %v8838_v57, %v595_v52 }
 0x1df   :  { %v2523_v3 = vpop.f32.mrb[58].mxu0  ;;  %v2594_v39 = vpop.f32.mrb[58].mxu1  ;;  %v1477_v52 = vmul.f32 %v8870_v25, %v1319_v1 }
 0x1e0   :  { %v4643_v29 = vmax.f32 %v2523_v3, 0.0  ;;  %v4645_v40 = vmax.f32 %v2594_v39, 0.0  ;;  %v9970_v44 = vpop.f32.mrb[59].mxu0  ;;  %v9972_v48 = vpop.f32.mrb[59].mxu1  ;;  %v607_v3 = vrot.slane %v287_v18, %v8765_v11  ;;  %v295_v39 = vrot.slane %v9915_v41, %v11939_v19 }
 0x1e1   :  { %v1602_v42 = vadd.f32 %v1474_v32, %v762_v31  ;;  %v1327_v18 = vrot.slane %v1007_v21, %v8791_v22 }
 0x1e2   :  { %v9978_v47 = vpack.c.bf16 %v4643_v29, %v4579_v33  ;;  %v9980_v36 = vpack.c.bf16 %v4645_v40, %v4581_v54  ;;  %8284 = vmatmul.mubr.msk.bf16.gmra.mrb[164].mxu0 %vm1833_vm1, %v9537_v20  ;;  %8289 = vmatmul.mubr.msk.bf16.gmra.mrb[164].mxu1 %vm1833_vm1, %v9537_v20  ;;  %v1536_v33 = vadd.f32 %v1408_v13, %v696_v10 }
 0x1e3   :  { %3511 = vmatprep.mubr.bf16.mxu0 %v11937_v45  ;;  %3582 = vmatprep.mubr.bf16.mxu1 %v11937_v45  ;;  %v1600_v54 = vadd.f32 %v1472_v63, %v760_v9  ;;  %v1538_v29 = vadd.f32 %v1410_v50, %v698_v34  ;;  %v701_v43 = vmul.f32 %v8840_v58, %v607_v3  ;;  %v1730_v1 = vmax.f32 %v1602_v42, 0.0 }
 0x1e4   :  { %11985 = vst [vmem:[#allocation48_spill] sm:$0xff] %v9978_v47  ;;  %11986 = vst [vmem:[#allocation49_spill] sm:$0xff] %v9980_v36  ;;  %v765_v10 = vmul.f32 %v8838_v57, %v607_v3  ;;  %v615_v9 = vrot.slane %v295_v39, %v8765_v11  ;;  %v1664_v13 = vmax.f32 %v1536_v33, 0.0 }
 0x1e5   :  { %v9998_v20 = vpop.f32.mrb[60].mxu0  ;;  %v10000_v6 = vpop.f32.mrb[60].mxu1  ;;  %v1728_v63 = vmax.f32 %v1600_v54, 0.0  ;;  %v1666_v50 = vmax.f32 %v1538_v29, 0.0  ;;  %v1541_v21 = vadd.f32 %v1413_v62, %v701_v43  ;;  %v4324_v62 = vmax.f32 %v9882_v30, 0.0 }
 0x1e6   :  { %11987 = vst [vmem:[#allocation50_spill] sm:$0xff] %v10000_v6  ;;  %v10002_v40 = vpop.f32.mrb[61].mxu0  ;;  %v10004_v61 = vpop.f32.mrb[61].mxu1  ;;  %v703_v32 = vmul.f32 %v8840_v58, %v615_v9  ;;  %v767_v39 = vmul.f32 %v8838_v57, %v615_v9 }
 0x1e7   :  { %11988 = vst [vmem:[#allocation51_spill] sm:$0xff] %v10002_v40  ;;  %11989 = vst [vmem:[#allocation52_spill] sm:$0xff] %v10004_v61  ;;  %v2533_v28 = vpop.f32.mrb[62].mxu0  ;;  %v2604_v36 = vpop.f32.mrb[62].mxu1  ;;  %v1799_v3 = vpack.c.bf16 %v1728_v63, %v1664_v13  ;;  %v1801_v54 = vpack.c.bf16 %v1730_v1, %v1666_v50  ;;  %v1669_v43 = vmax.f32 %v1541_v21, 0.0 }
 0x1e8   :  { %v2534_v47 = vpop.f32.mrb[63].mxu0  ;;  %v2605_v46 = vpop.f32.mrb[63].mxu1  ;;  %v1605_v36 = vadd.f32 %v1477_v52, %v765_v10  ;;  %v4388_v52 = vmax.f32 %v9891_v35, 0.0 }
 0x1e9   :  { %v1415_v46 = vmul.f32 %v8872_v26, %v1327_v18  ;;  %v1479_v47 = vmul.f32 %v8870_v25, %v1327_v18  ;;  %v4390_v18 = vmax.f32 %v9893_v5, 0.0  ;;  %v995_v5 = vrot.slane %v9915_v41, %v8791_v22 }
 0x1ea   :  { %8285 = vmatmul.mubr.msk.bf16.gmra.mrb[168].mxu0 %vm1833_vm1, %v9576_v8  ;;  %8290 = vmatmul.mubr.msk.bf16.gmra.mrb[168].mxu1 %vm1833_vm1, %v9576_v8  ;;  %v1733_v29 = vmax.f32 %v1605_v36, 0.0 }
 0x1eb   :  { %3521 = vmatprep.mubr.bf16.mxu0 %v11937_v45  ;;  %3592 = vmatprep.mubr.bf16.mxu1 %v11937_v45  ;;  %v10022_v42 = vadd.f32 %v1415_v46, %v703_v32  ;;  %v1607_v61 = vadd.f32 %v1479_v47, %v767_v39  ;;  %v4326_v46 = vmax.f32 %v9884_v7, 0.0  ;;  %v10044_v7 = vpack.c.bf16 %v4388_v52, %v4324_v62 }
 0x1ec   :  { %v4452_v62 = vmax.f32 %v9917_v15, 0.0  ;;  %v4516_v52 = vmax.f32 %v9929_v27, 0.0  ;;  %v10060_v15 = vld [vmem:[%s11924_s0 + $0x38] sm:$0xff]  ;;  %v4454_v27 = vmax.f32 %v9919_v38, 0.0 }
 0x1ed   :  { %v2641_v34 = vpop.f32.mrb[64].mxu0  ;;  %v2712_v31 = vpop.f32.mrb[64].mxu1 }
 0x1ee   :  { %v2643_v33 = vpop.f32.mrb[65].mxu0  ;;  %v2714_v8 = vpop.f32.mrb[65].mxu1  ;;  %v4327_v40 = vmax.f32 %v2641_v34, 0.0  ;;  %v4329_v13 = vmax.f32 %v2712_v31, 0.0  ;;  %v1992_v34 = vsel %vm1846_vm0, %v1799_v3, 0  ;;  %v1315_v3 = vrot.slane %v995_v5, %v8791_v22  ;;  %v10070_v5 = vld [vmem:[%s11923_s2] sm:$0xff]  }
 0x1ef   :  { %v2645_v28 = vpop.f32.mrb[66].mxu0  ;;  %v2716_v10 = vpop.f32.mrb[66].mxu1  ;;  %v4328_v50 = vmax.f32 %v2643_v33, 0.0  ;;  %v4330_v1 = vmax.f32 %v2714_v8, 0.0  ;;  %v1998_v33 = vsel %vm1846_vm0, %v1801_v54, 0  ;;  %v1804_v8 = vpack.c.bf16 %v1733_v29, %v1669_v43 }
 0x1f0   :  { %v4391_v63 = vmax.f32 %v2645_v28, 0.0  ;;  %v4393_v9 = vmax.f32 %v2716_v10, 0.0  ;;  %v2647_v17 = vpop.f32.mrb[67].mxu0  ;;  %v2718_v6 = vpop.f32.mrb[67].mxu1  ;;  %v1671_v28 = vmax.f32 %v10022_v42, 0.0  ;;  %v1735_v10 = vmax.f32 %v1607_v61, 0.0 }
 0x1f1   :  { %v4392_v21 = vmax.f32 %v2647_v17, 0.0  ;;  %v4394_v36 = vmax.f32 %v2718_v6, 0.0  ;;  %v10046_v17 = vpack.c.bf16 %v4390_v18, %v4326_v46  ;;  %v4518_v18 = vmax.f32 %v9931_v59, 0.0 }
 0x1f2   :  { %v10028_v30 = vpack.c.bf16 %v4391_v63, %v4327_v40  ;;  %v10030_v35 = vpack.c.bf16 %v4393_v9, %v4329_v13  ;;  %8286 = vmatmul.mubr.msk.bf16.gmra.mrb[172].mxu0 %vm1833_vm1, %v9614_v23  ;;  %8291 = vmatmul.mubr.msk.bf16.gmra.mrb[172].mxu1 %vm1833_vm1, %v9614_v23  ;;  %v283_v23 = vrot.slane %v9915_v41, %v8765_v11 }
 0x1f3   :  { %v10038_v47 = vpack.c.bf16 %v4392_v21, %v4328_v50  ;;  %v10040_v32 = vpack.c.bf16 %v4394_v36, %v4330_v1  ;;  %3633 = vmatprep.mubr.bf16.mxu0 %v11937_v45  ;;  %3704 = vmatprep.mubr.bf16.mxu1 %v11937_v45  ;;  %v10080_v38 = vpack.c.bf16 %v4516_v52, %v4452_v62 }
 0x1f4   :  { %11990 = vst [vmem:[#allocation53_spill] sm:$0xff] %v10028_v30  ;;  %11991 = vst [vmem:[#allocation54_spill] sm:$0xff] %v10030_v35  ;;  %v1003_v62 = vrot.slane %v9915_v41, %v8795_v24 }
 0x1f5   :  { %11992 = vst [vmem:[#allocation55_spill] sm:$0xff] %v10038_v47  ;;  %11993 = vst [vmem:[#allocation56_spill] sm:$0xff] %v10040_v32  ;;  %v2651_v6 = vpop.f32.mrb[68].mxu0  ;;  %v2722_v40 = vpop.f32.mrb[68].mxu1 }
 0x1f6   :  { %v2653_v31 = vpop.f32.mrb[69].mxu0  ;;  %v2724_v39 = vpop.f32.mrb[69].mxu1  ;;  %v4455_v9 = vmax.f32 %v2651_v6, 0.0  ;;  %v4457_v50 = vmax.f32 %v2722_v40, 0.0  ;;  %v1806_v6 = vpack.c.bf16 %v1735_v10, %v1671_v28  ;;  %v1412_v10 = vmul.f32 %v8872_v26, %v1315_v3 }
 0x1f7   :  { %v2655_v13 = vpop.f32.mrb[70].mxu0  ;;  %v2726_v63 = vpop.f32.mrb[70].mxu1  ;;  %v4456_v43 = vmax.f32 %v2653_v31, 0.0  ;;  %v4458_v29 = vmax.f32 %v2724_v39, 0.0  ;;  %v10085_v39 = vunpack.c.l.bf16 %v10060_v15 }
 0x1f8   :  { %v4519_v1 = vmax.f32 %v2655_v13, 0.0  ;;  %v4521_v21 = vmax.f32 %v2726_v63, 0.0  ;;  %v2657_v36 = vpop.f32.mrb[71].mxu0  ;;  %v2728_v54 = vpop.f32.mrb[71].mxu1  ;;  %v10087_v13 = vpack.c.bf16 %v4518_v18, %v4454_v27 }
 0x1f9   :  { %v4520_v42 = vmax.f32 %v2657_v36, 0.0  ;;  %v4522_v61 = vmax.f32 %v2728_v54, 0.0  ;;  %v1015_v52 = vrot.slane %v10085_v39, %v8777_v16  ;;  %v1023_v18 = vrot.slane %v10085_v39, %v11938_v0 }
 0x1fa   :  { %v10063_v59 = vpack.c.bf16 %v4519_v1, %v4455_v9  ;;  %v10065_v46 = vpack.c.bf16 %v4521_v21, %v4457_v50  ;;  %8293 = vmatmul.mubr.msk.bf16.vlgmr.msra.gmra.mrb[176].mxu0 %vm1833_vm1, %v10070_v5  ;;  %8298 = vmatmul.mubr.msk.bf16.vlgmr.msra.gmra.mrb[176].mxu1 %vm1833_vm1, %v10070_v5  ;;  %v4580_v50 = vmax.f32 %v9956_v2, 0.0  ;;  %v4646_v1 = vmax.f32 %v9972_v48, 0.0  ;;  %v10113_v48 = vld [vmem:[%s11923_s2 + $0x8] sm:$0xff]  }
 0x1fb   :  { %v10076_v40 = vpack.c.bf16 %v4520_v42, %v4456_v43  ;;  %v10078_v31 = vpack.c.bf16 %v4522_v61, %v4458_v29  ;;  %3744 = vmatpush1.bf16.msra.mxu0 %v1992_v34  ;;  %3815 = vmatpush1.bf16.msra.mxu1 %v1998_v33  ;;  %v603_v34 = vrot.slane %v283_v23, %v8765_v11  ;;  %v4644_v23 = vmax.f32 %v9970_v44, 0.0 }
 0x1fc   :  { %11994 = vst [vmem:[#allocation57_spill] sm:$0xff] %v10063_v59  ;;  %11995 = vst [vmem:[#allocation58_spill] sm:$0xff] %v10065_v46  ;;  %8312 = vmatprep.subr.msk.bf16.mxu0 %vm1846_vm0, %v1804_v8  ;;  %8317 = vmatprep.subr.msk.bf16.mxu1 %vm1846_vm0, %v1806_v6  ;;  %v291_v33 = vrot.slane %v9915_v41, %v8774_v14  ;;  %v1476_v54 = vmul.f32 %v8870_v25, %v1315_v3  ;;  %v4582_v2 = vmax.f32 %v9958_v60, 0.0 }
 0x1fd   :  { %11996 = vst [vmem:[#allocation59_spill] sm:$0xff] %v10076_v40  ;;  %11997 = vst [vmem:[#allocation60_spill] sm:$0xff] %v10078_v31  ;;  %v2661_v63 = vpop.f32.mrb[72].mxu0  ;;  %v2732_v9 = vpop.f32.mrb[72].mxu1  ;;  %3643 = vmatprep.mubr.bf16.mxu0 %v11937_v45  ;;  %3714 = vmatprep.mubr.bf16.mxu1 %v11937_v45  ;;  %v1323_v3 = vrot.slane %v1003_v62, %v8791_v22 }
 0x1fe   :  { %v2663_v28 = vpop.f32.mrb[73].mxu0  ;;  %v2734_v8 = vpop.f32.mrb[73].mxu1  ;;  %v4583_v43 = vmax.f32 %v2661_v63, 0.0  ;;  %v4585_v29 = vmax.f32 %v2732_v9, 0.0  ;;  %v10126_v9 = vpack.c.bf16 %v4644_v23, %v4580_v50 }
 0x1ff   :  { %v2665_v21 = vpop.f32.mrb[74].mxu0  ;;  %v2736_v36 = vpop.f32.mrb[74].mxu1  ;;  %v4584_v6 = vmax.f32 %v2663_v28, 0.0  ;;  %v4586_v46 = vmax.f32 %v2734_v8, 0.0  ;;  %v700_v28 = vmul.f32 %v8840_v58, %v603_v34  ;;  %v303_v8 = vrot.slane %v10085_v39, %v8768_v12 }
 0x200   :  { %v4647_v42 = vmax.f32 %v2665_v21, 0.0  ;;  %v4649_v41 = vmax.f32 %v2736_v36, 0.0  ;;  %v2667_v61 = vpop.f32.mrb[75].mxu0  ;;  %v2738_v27 = vpop.f32.mrb[75].mxu1  ;;  %12002 = vst [vmem:[#allocation65_spill] sm:$0xff] %v10126_v9  ;;  %v10131_v21 = vpack.c.bf16 %v4646_v1, %v4582_v2 }
 0x201   :  { %v4648_v59 = vmax.f32 %v2667_v61, 0.0  ;;  %v4650_v31 = vmax.f32 %v2738_v27, 0.0  ;;  %v1414_v61 = vmul.f32 %v8872_v26, %v1323_v3  ;;  %v1478_v27 = vmul.f32 %v8870_v25, %v1323_v3 }
 0x202   :  { %v10106_v40 = vpack.c.bf16 %v4647_v42, %v4583_v43  ;;  %v10108_v44 = vpack.c.bf16 %v4649_v41, %v4585_v29  ;;  %8294 = vmatmul.mubr.msk.bf16.gmra.mrb[180].mxu0 %vm1833_vm1, %v10113_v48  ;;  %8299 = vmatmul.mubr.msk.bf16.gmra.mrb[180].mxu1 %vm1833_vm1, %v10113_v48  ;;  %12003 = vst [vmem:[#allocation66_spill] sm:$0xff] %v10131_v21 }
 0x203   :  { %v10120_v63 = vpack.c.bf16 %v4648_v59, %v4584_v6  ;;  %v10122_v60 = vpack.c.bf16 %v4650_v31, %v4586_v46  ;;  %3653 = vmatprep.mubr.bf16.mxu0 %v11937_v45  ;;  %3724 = vmatprep.mubr.bf16.mxu1 %v11937_v45  ;;  %v764_v59 = vmul.f32 %v8838_v57, %v603_v34 }
 0x204   :  { %11998 = vst [vmem:[#allocation61_spill] sm:$0xff] %v10106_v40  ;;  %11999 = vst [vmem:[#allocation62_spill] sm:$0xff] %v10108_v44  ;;  %v611_v46 = vrot.slane %v291_v33, %v8765_v11  ;;  %v311_v31 = vrot.slane %v10085_v39, %v11939_v19  ;;  %v1540_v43 = vadd.f32 %v1412_v10, %v700_v28 }
 0x205   :  { %12000 = vst [vmem:[#allocation63_spill] sm:$0xff] %v10120_v63  ;;  %12001 = vst [vmem:[#allocation64_spill] sm:$0xff] %v10122_v60  ;;  %v10133_v36 = vpop.f32.mrb[76].mxu0  ;;  %v10135_v62 = vpop.f32.mrb[76].mxu1  ;;  %v1335_v29 = vrot.slane %v1015_v52, %v8791_v22  ;;  %v1604_v41 = vadd.f32 %v1476_v54, %v764_v59  ;;  %v1343_v34 = vrot.slane %v1023_v18, %v8791_v22  ;;  %v10156_v52 = vld [vmem:[%s11923_s2 + $0x10] sm:$0xff]  }
 0x206   :  { %12004 = vst [vmem:[#allocation67_spill] sm:$0xff] %v10133_v36  ;;  %12005 = vst [vmem:[#allocation68_spill] sm:$0xff] %v10135_v62  ;;  %v10141_v50 = vpop.f32.mrb[77].mxu0  ;;  %v10143_v23 = vpop.f32.mrb[77].mxu1  ;;  %v623_v2 = vrot.slane %v303_v8, %v8765_v11  ;;  %v702_v44 = vmul.f32 %v8840_v58, %v611_v46  ;;  %v766_v40 = vmul.f32 %v8838_v57, %v611_v46  ;;  %v1668_v18 = vmax.f32 %v1540_v43, 0.0 }
 0x207   :  { %12006 = vst [vmem:[#allocation69_spill] sm:$0xff] %v10141_v50  ;;  %12007 = vst [vmem:[#allocation70_spill] sm:$0xff] %v10143_v23  ;;  %v2675_v1 = vpop.f32.mrb[78].mxu0  ;;  %v2746_v42 = vpop.f32.mrb[78].mxu1  ;;  %v631_v10 = vrot.slane %v311_v31, %v8765_v11  ;;  %v1417_v54 = vmul.f32 %v8872_v26, %v1335_v29  ;;  %v1481_v3 = vmul.f32 %v8870_v25, %v1335_v29  ;;  %v1732_v28 = vmax.f32 %v1604_v41, 0.0 }
 0x208   :  { %v2676_v33 = vpop.f32.mrb[79].mxu0  ;;  %v2747_v6 = vpop.f32.mrb[79].mxu1  ;;  %v1542_v8 = vadd.f32 %v1414_v61, %v702_v44  ;;  %v1606_v59 = vadd.f32 %v1478_v27, %v766_v40  ;;  %v1419_v46 = vmul.f32 %v8872_v26, %v1343_v34  ;;  %v705_v31 = vmul.f32 %v8840_v58, %v623_v2 }
 0x209   :  { %v769_v1 = vmul.f32 %v8838_v57, %v623_v2  ;;  %v707_v43 = vmul.f32 %v8840_v58, %v631_v10  ;;  %v771_v23 = vmul.f32 %v8838_v57, %v631_v10  ;;  %v1483_v41 = vmul.f32 %v8870_v25, %v1343_v34  ;;  %v10179_v34 = vld [vmem:[%s11923_s2 + $0x18] ss:$0 sps:$4 sm:$0x11]  }
 0x20a   :  { %8295 = vmatmul.mubr.msk.bf16.gmra.mrb[184].mxu0 %vm1833_vm1, %v10156_v52  ;;  %8300 = vmatmul.mubr.msk.bf16.gmra.mrb[184].mxu1 %vm1833_vm1, %v10156_v52  ;;  %v1545_v29 = vadd.f32 %v1417_v54, %v705_v31  ;;  %v1803_v61 = vpack.c.bf16 %v1732_v28, %v1668_v18  ;;  %v1670_v27 = vmax.f32 %v1542_v8, 0.0  ;;  %v1734_v50 = vmax.f32 %v1606_v59, 0.0 }
 0x20b   :  { %3663 = vmatprep.mubr.bf16.mxu0 %v11937_v45  ;;  %3734 = vmatprep.mubr.bf16.mxu1 %v11937_v45  ;;  %v1609_v63 = vadd.f32 %v1481_v3, %v769_v1  ;;  %v1547_v35 = vadd.f32 %v1419_v46, %v707_v43  ;;  %v1611_v28 = vadd.f32 %v1483_v41, %v771_v23 }
 0x20c   :  { %v1673_v18 = vmax.f32 %v1545_v29, 0.0  ;;  %v1805_v46 = vpack.c.bf16 %v1734_v50, %v1670_v27  ;;  %v299_v43 = vrot.slane %v10085_v39, %v8765_v11 }
 0x20d   :  { %v2783_v42 = vpop.f32.mrb[80].mxu0  ;;  %v2854_v33 = vpop.f32.mrb[80].mxu1  ;;  %v1675_v1 = vmax.f32 %v1547_v35, 0.0 }
 0x20e   :  { %v2785_v6 = vpop.f32.mrb[81].mxu0  ;;  %v2856_v60 = vpop.f32.mrb[81].mxu1  ;;  %v4331_v30 = vmax.f32 %v2783_v42, 0.0  ;;  %v4333_v2 = vmax.f32 %v2854_v33, 0.0  ;;  %v1739_v42 = vmax.f32 %v1611_v28, 0.0 }
 0x20f   :  { %v2787_v44 = vpop.f32.mrb[82].mxu0  ;;  %v2858_v40 = vpop.f32.mrb[82].mxu1  ;;  %v4332_v21 = vmax.f32 %v2785_v6, 0.0  ;;  %v4334_v9 = vmax.f32 %v2856_v60, 0.0 }
 0x210   :  { %v4395_v62 = vmax.f32 %v2787_v44, 0.0  ;;  %v4397_v36 = vmax.f32 %v2858_v40, 0.0  ;;  %v2789_v32 = vpop.f32.mrb[83].mxu0  ;;  %v2860_v47 = vpop.f32.mrb[83].mxu1 }
 0x211   :  { %v4396_v54 = vmax.f32 %v2789_v32, 0.0  ;;  %v4398_v3 = vmax.f32 %v2860_v47, 0.0  ;;  %v1011_v32 = vrot.slane %v10085_v39, %v8791_v22 }
 0x212   :  { %v10172_v31 = vpack.c.bf16 %v4395_v62, %v4331_v30  ;;  %v10174_v10 = vpack.c.bf16 %v4397_v36, %v4333_v2  ;;  %8296 = vmatmul.mubr.msk.bf16.gmra.mrb[188].mxu0 %vm1833_vm1, %v10179_v34  ;;  %8301 = vmatmul.mubr.msk.bf16.gmra.mrb[188].mxu1 %vm1833_vm1, %v10179_v34  ;;  %v1737_v30 = vmax.f32 %v1609_v63, 0.0 }
 0x213   :  { %v10185_v60 = vpack.c.bf16 %v4396_v54, %v4332_v21  ;;  %v10187_v47 = vpack.c.bf16 %v4398_v3, %v4334_v9  ;;  %3775 = vmatprep.mubr.bf16.mxu0 %v11937_v45  ;;  %3846 = vmatprep.mubr.bf16.mxu1 %v11937_v45  ;;  %v2004_v9 = vsel %vm1846_vm0, %v1803_v61, 0  ;;  %v1331_v63 = vrot.slane %v1011_v32, %v8791_v22 }
 0x214   :  { %12008 = vst [vmem:[#allocation71_spill] sm:$0xff] %v10172_v31  ;;  %12009 = vst [vmem:[#allocation72_spill] sm:$0xff] %v10174_v10  ;;  %v1808_v33 = vpack.c.bf16 %v1737_v30, %v1673_v18  ;;  %v2010_v61 = vsel %vm1846_vm0, %v1805_v46, 0  ;;  %v1810_v18 = vpack.c.bf16 %v1739_v42, %v1675_v1  ;;  %v619_v1 = vrot.slane %v299_v43, %v8765_v11 }
 0x215   :  { %v2793_v36 = vpop.f32.mrb[84].mxu0  ;;  %v2864_v62 = vpop.f32.mrb[84].mxu1  ;;  %v10218_v42 = vunpack.c.h.bf16 %v10060_v15 }
 0x216   :  { %v2795_v8 = vpop.f32.mrb[85].mxu0  ;;  %v2866_v59 = vpop.f32.mrb[85].mxu1  ;;  %v4459_v6 = vmax.f32 %v2793_v36, 0.0  ;;  %v4461_v29 = vmax.f32 %v2864_v62, 0.0  ;;  %v1019_v36 = vrot.slane %v10085_v39, %v8795_v24 }
 0x217   :  { %v2797_v23 = vpop.f32.mrb[86].mxu0  ;;  %v2868_v21 = vpop.f32.mrb[86].mxu1  ;;  %v4460_v54 = vmax.f32 %v2795_v8, 0.0  ;;  %v4462_v50 = vmax.f32 %v2866_v59, 0.0 }
 0x218   :  { %v4523_v41 = vmax.f32 %v2797_v23, 0.0  ;;  %v4525_v44 = vmax.f32 %v2868_v21, 0.0  ;;  %v2799_v40 = vpop.f32.mrb[87].mxu0  ;;  %v2870_v2 = vpop.f32.mrb[87].mxu1 }
 0x219   :  { %v4524_v35 = vmax.f32 %v2799_v40, 0.0  ;;  %v4526_v27 = vmax.f32 %v2870_v2, 0.0 }
 0x21a   :  { %v10197_v3 = vpack.c.bf16 %v4523_v41, %v4459_v6  ;;  %v10199_v28 = vpack.c.bf16 %v4525_v44, %v4461_v29  ;;  %8303 = vmatmul.mubr.msk.bf16.vlgmr.msra.gmra.mrb[192].mxu0 %vm1833_vm1, %v10070_v5  ;;  %8308 = vmatmul.mubr.msk.bf16.vlgmr.msra.gmra.mrb[192].mxu1 %vm1833_vm1, %v10070_v5  ;;  %v307_v6 = vrot.slane %v10085_v39, %v8774_v14 }
 0x21b   :  { %v10206_v30 = vpack.c.bf16 %v4524_v35, %v4460_v54  ;;  %v10208_v32 = vpack.c.bf16 %v4526_v27, %v4462_v50  ;;  %3886 = vmatpush1.bf16.msra.mxu0 %v2004_v9  ;;  %3957 = vmatpush1.bf16.msra.mxu1 %v2010_v61  ;;  %v1416_v9 = vmul.f32 %v8872_v26, %v1331_v63 }
 0x21c   :  { %12010 = vst [vmem:[#allocation73_spill] sm:$0xff] %v10197_v3  ;;  %12011 = vst [vmem:[#allocation74_spill] sm:$0xff] %v10199_v28  ;;  %8322 = vmatprep.subr.msk.bf16.mxu0 %vm1846_vm0, %v1808_v33  ;;  %8327 = vmatprep.subr.msk.bf16.mxu1 %vm1846_vm0, %v1810_v18  ;;  %v1480_v33 = vmul.f32 %v8870_v25, %v1331_v63  ;;  %v1339_v29 = vrot.slane %v1019_v36, %v8791_v22 }
 0x21d   :  { %12012 = vst [vmem:[#allocation75_spill] sm:$0xff] %v10206_v30  ;;  %12013 = vst [vmem:[#allocation76_spill] sm:$0xff] %v10208_v32  ;;  %v2803_v62 = vpop.f32.mrb[88].mxu0  ;;  %v2874_v8 = vpop.f32.mrb[88].mxu1  ;;  %3785 = vmatprep.mubr.bf16.mxu0 %v11937_v45  ;;  %3856 = vmatprep.mubr.bf16.mxu1 %v11937_v45  ;;  %v1031_v39 = vrot.slane %v10218_v42, %v8777_v16 }
 0x21e   :  { %v2805_v59 = vpop.f32.mrb[89].mxu0  ;;  %v2876_v46 = vpop.f32.mrb[89].mxu1  ;;  %v4587_v41 = vmax.f32 %v2803_v62, 0.0  ;;  %v4589_v44 = vmax.f32 %v2874_v8, 0.0  ;;  %v1039_v62 = vrot.slane %v10218_v42, %v11938_v0  ;;  %v704_v8 = vmul.f32 %v8840_v58, %v619_v1 }
 0x21f   :  { %v2807_v23 = vpop.f32.mrb[90].mxu0  ;;  %v2878_v21 = vpop.f32.mrb[90].mxu1  ;;  %v4588_v50 = vmax.f32 %v2805_v59, 0.0  ;;  %v4590_v15 = vmax.f32 %v2876_v46, 0.0  ;;  %v768_v59 = vmul.f32 %v8838_v57, %v619_v1  ;;  %v627_v46 = vrot.slane %v307_v6, %v8765_v11 }
 0x220   :  { %v4651_v40 = vmax.f32 %v2807_v23, 0.0  ;;  %v4653_v2 = vmax.f32 %v2878_v21, 0.0  ;;  %v2809_v54 = vpop.f32.mrb[91].mxu0  ;;  %v2880_v43 = vpop.f32.mrb[91].mxu1  ;;  %v319_v21 = vrot.slane %v10218_v42, %v8768_v12  ;;  %v1544_v0 = vadd.f32 %v1416_v9, %v704_v8 }
 0x221   :  { %v4652_v35 = vmax.f32 %v2809_v54, 0.0  ;;  %v4654_v27 = vmax.f32 %v2880_v43, 0.0  ;;  %v1418_v1 = vmul.f32 %v8872_v26, %v1339_v29  ;;  %v1351_v43 = vrot.slane %v1031_v39, %v8791_v22 }
 0x222   :  { %v10225_v61 = vpack.c.bf16 %v4651_v40, %v4587_v41  ;;  %v10227_v18 = vpack.c.bf16 %v4653_v2, %v4589_v44  ;;  %8304 = vmatmul.mubr.msk.bf16.gmra.mrb[196].mxu0 %vm1833_vm1, %v10113_v48  ;;  %8309 = vmatmul.mubr.msk.bf16.gmra.mrb[196].mxu1 %vm1833_vm1, %v10113_v48  ;;  %v327_v41 = vrot.slane %v10218_v42, %v11939_v19  ;;  %v1672_v9 = vmax.f32 %v1544_v0, 0.0 }
 0x223   :  { %v10235_v63 = vpack.c.bf16 %v4652_v35, %v4588_v50  ;;  %v10237_v36 = vpack.c.bf16 %v4654_v27, %v4590_v15  ;;  %3795 = vmatprep.mubr.bf16.mxu0 %v11937_v45  ;;  %3866 = vmatprep.mubr.bf16.mxu1 %v11937_v45  ;;  %v1608_v2 = vadd.f32 %v1480_v33, %v768_v59 }
 0x224   :  { %12014 = vst [vmem:[#allocation77_spill] sm:$0xff] %v10225_v61  ;;  %12015 = vst [vmem:[#allocation78_spill] sm:$0xff] %v10227_v18  ;;  %v1359_v50 = vrot.slane %v1039_v62, %v8791_v22  ;;  %v706_v12 = vmul.f32 %v8840_v58, %v627_v46  ;;  %v639_v19 = vrot.slane %v319_v21, %v8765_v11 }
 0x225   :  { %12016 = vst [vmem:[#allocation79_spill] sm:$0xff] %v10235_v63  ;;  %12017 = vst [vmem:[#allocation80_spill] sm:$0xff] %v10237_v36  ;;  %v10246_v23 = vpop.f32.mrb[92].mxu0  ;;  %v10248_v16 = vpop.f32.mrb[92].mxu1  ;;  %v647_v27 = vrot.slane %v327_v41, %v8765_v11  ;;  %v1736_v33 = vmax.f32 %v1608_v2, 0.0  ;;  %v1482_v39 = vmul.f32 %v8870_v25, %v1339_v29  ;;  %v1421_v62 = vmul.f32 %v8872_v26, %v1351_v43 }
 0x226   :  { %12018 = vst [vmem:[#allocation81_spill] sm:$0xff] %v10248_v16  ;;  %v10254_v44 = vpop.f32.mrb[93].mxu0  ;;  %v10256_v40 = vpop.f32.mrb[93].mxu1  ;;  %v1546_v8 = vadd.f32 %v1418_v1, %v706_v12  ;;  %v1485_v59 = vmul.f32 %v8870_v25, %v1351_v43  ;;  %v1423_v21 = vmul.f32 %v8872_v26, %v1359_v50  ;;  %v770_v41 = vmul.f32 %v8838_v57, %v627_v46 }
 0x227   :  { %12019 = vst [vmem:[#allocation82_spill] sm:$0xff] %v10254_v44  ;;  %12020 = vst [vmem:[#allocation83_spill] sm:$0xff] %v10256_v40  ;;  %v2817_v54 = vpop.f32.mrb[94].mxu0  ;;  %v2888_v6 = vpop.f32.mrb[94].mxu1  ;;  %v709_v0 = vmul.f32 %v8840_v58, %v639_v19  ;;  %v773_v2 = vmul.f32 %v8838_v57, %v639_v19  ;;  %v711_v29 = vmul.f32 %v8840_v58, %v647_v27 }
 0x228   :  { %v2818_v15 = vpop.f32.mrb[95].mxu0  ;;  %v2889_v35 = vpop.f32.mrb[95].mxu1  ;;  %v1610_v12 = vadd.f32 %v1482_v39, %v770_v41  ;;  %v775_v18 = vmul.f32 %v8838_v57, %v647_v27  ;;  %v1487_v43 = vmul.f32 %v8870_v25, %v1359_v50  ;;  %v1674_v63 = vmax.f32 %v1546_v8, 0.0 }
 0x229   :  { %v1807_v35 = vpack.c.bf16 %v1736_v33, %v1672_v9  ;;  %v1549_v46 = vadd.f32 %v1421_v62, %v709_v0  ;;  %v1613_v28 = vadd.f32 %v1485_v59, %v773_v2  ;;  %v1551_v3 = vadd.f32 %v1423_v21, %v711_v29 }
 0x22a   :  { %8305 = vmatmul.mubr.msk.bf16.gmra.mrb[200].mxu0 %vm1833_vm1, %v10156_v52  ;;  %8310 = vmatmul.mubr.msk.bf16.gmra.mrb[200].mxu1 %vm1833_vm1, %v10156_v52  ;;  %v1738_v50 = vmax.f32 %v1610_v12, 0.0  ;;  %v1615_v8 = vadd.f32 %v1487_v43, %v775_v18 }
 0x22b   :  { %3805 = vmatprep.mubr.bf16.mxu0 %v11937_v45  ;;  %3876 = vmatprep.mubr.bf16.mxu1 %v11937_v45  ;;  %v1679_v21 = vmax.f32 %v1551_v3, 0.0 }
 0x22c   :  { %v1809_v59 = vpack.c.bf16 %v1738_v50, %v1674_v63  ;;  %v1743_v41 = vmax.f32 %v1615_v8, 0.0 }
 0x22d   :  { %v2925_v54 = vpop.f32.mrb[96].mxu0  ;;  %v2996_v6 = vpop.f32.mrb[96].mxu1 }
 0x22e   :  { %v2927_v1 = vpop.f32.mrb[97].mxu0  ;;  %v2998_v15 = vpop.f32.mrb[97].mxu1  ;;  %v4335_v40 = vmax.f32 %v2925_v54, 0.0  ;;  %v4337_v44 = vmax.f32 %v2996_v6, 0.0  ;;  %v2022_v3 = vsel %vm1846_vm0, %v1809_v59, 0 }
 0x22f   :  { %v2929_v61 = vpop.f32.mrb[98].mxu0  ;;  %v3000_v36 = vpop.f32.mrb[98].mxu1  ;;  %v4336_v31 = vmax.f32 %v2927_v1, 0.0  ;;  %v4338_v16 = vmax.f32 %v2998_v15, 0.0 }
 0x230   :  { %v4399_v32 = vmax.f32 %v2929_v61, 0.0  ;;  %v4401_v19 = vmax.f32 %v3000_v36, 0.0  ;;  %v2931_v30 = vpop.f32.mrb[99].mxu0  ;;  %v3002_v10 = vpop.f32.mrb[99].mxu1 }
 0x231   :  { %v4400_v9 = vmax.f32 %v2931_v30, 0.0  ;;  %v4402_v33 = vmax.f32 %v3002_v10, 0.0  ;;  %v1677_v10 = vmax.f32 %v1549_v46, 0.0  ;;  %v1741_v30 = vmax.f32 %v1613_v28, 0.0 }
 0x232   :  { %v10280_v39 = vpack.c.bf16 %v4399_v32, %v4335_v40  ;;  %v10282_v27 = vpack.c.bf16 %v4401_v19, %v4337_v44  ;;  %8306 = vmatmul.mubr.msk.bf16.gmra.mrb[204].mxu0 %vm1833_vm1, %v10179_v34  ;;  %8311 = vmatmul.mubr.msk.bf16.gmra.mrb[204].mxu1 %vm1833_vm1, %v10179_v34 }
 0x233   :  { %v10288_v61 = vpack.c.bf16 %v4400_v9, %v4336_v31  ;;  %v10290_v36 = vpack.c.bf16 %v4402_v33, %v4338_v16  ;;  %3917 = vmatprep.mubr.bf16.mxu0 %v11937_v45  ;;  %3988 = vmatprep.mubr.bf16.mxu1 %v11937_v45  ;;  %v2016_v31 = vsel %vm1846_vm0, %v1807_v35, 0  ;;  %v1812_v18 = vpack.c.bf16 %v1741_v30, %v1677_v10 }
 0x234   :  { %v1814_v35 = vpack.c.bf16 %v1743_v41, %v1679_v21 }
 0x235   :  { %v2935_v32 = vpop.f32.mrb[100].mxu0  ;;  %v3006_v44 = vpop.f32.mrb[100].mxu1 }
 0x236   :  { %v2937_v40 = vpop.f32.mrb[101].mxu0  ;;  %v3008_v62 = vpop.f32.mrb[101].mxu1  ;;  %v4463_v16 = vmax.f32 %v2935_v32, 0.0  ;;  %v4465_v0 = vmax.f32 %v3006_v44, 0.0 }
 0x237   :  { %v2939_v54 = vpop.f32.mrb[102].mxu0  ;;  %v3010_v6 = vpop.f32.mrb[102].mxu1  ;;  %v4464_v12 = vmax.f32 %v2937_v40, 0.0  ;;  %v4466_v28 = vmax.f32 %v3008_v62, 0.0  ;;  %v315_v40 = vrot.slane %v10218_v42, %v8765_v11  ;;  %v1027_v62 = vrot.slane %v10218_v42, %v8791_v22 }
 0x238   :  { %v4527_v2 = vmax.f32 %v2939_v54, 0.0  ;;  %v4529_v29 = vmax.f32 %v3010_v6, 0.0  ;;  %v2941_v1 = vpop.f32.mrb[103].mxu0  ;;  %v3012_v15 = vpop.f32.mrb[103].mxu1 }
 0x239   :  { %v4528_v43 = vmax.f32 %v2941_v1, 0.0  ;;  %v4530_v46 = vmax.f32 %v3012_v15, 0.0  ;;  %v1035_v15 = vrot.slane %v10218_v42, %v8795_v24 }
 0x23a   :  { %v10295_v19 = vpack.c.bf16 %v4527_v2, %v4463_v16  ;;  %v10297_v63 = vpack.c.bf16 %v4529_v29, %v4465_v0  ;;  %8313 = vmatmul.mubr.msk.bf16.vlgmr.msra.gmra.mrb[208].mxu0 %vm1833_vm1, %v10070_v5  ;;  %8318 = vmatmul.mubr.msk.bf16.vlgmr.msra.gmra.mrb[208].mxu1 %vm1833_vm1, %v10070_v5 }
 0x23b   :  { %v10304_v9 = vpack.c.bf16 %v4528_v43, %v4464_v12  ;;  %v10306_v33 = vpack.c.bf16 %v4530_v46, %v4466_v28  ;;  %4028 = vmatpush1.bf16.msra.mxu0 %v2016_v31  ;;  %4099 = vmatpush1.bf16.msra.mxu1 %v2022_v3  ;;  %v1347_v43 = vrot.slane %v1027_v62, %v8791_v22 }
 0x23c   :  { %8332 = vmatprep.subr.msk.bf16.mxu0 %vm1846_vm0, %v1812_v18  ;;  %8337 = vmatprep.subr.msk.bf16.mxu1 %vm1846_vm0, %v1814_v35  ;;  %v323_v46 = vrot.slane %v10218_v42, %v8774_v14 }
 0x23d   :  { %v2945_v50 = vpop.f32.mrb[104].mxu0  ;;  %v3016_v8 = vpop.f32.mrb[104].mxu1  ;;  %3927 = vmatprep.mubr.bf16.mxu0 %v11937_v45  ;;  %3998 = vmatprep.mubr.bf16.mxu1 %v11937_v45  ;;  %v1484_v62 = vmul.f32 %v8870_v25, %v1347_v43 }
 0x23e   :  { %v2947_v10 = vpop.f32.mrb[105].mxu0  ;;  %v3018_v30 = vpop.f32.mrb[105].mxu1  ;;  %v4591_v59 = vmax.f32 %v2945_v50, 0.0  ;;  %v4593_v21 = vmax.f32 %v3016_v8, 0.0  ;;  %v635_v50 = vrot.slane %v315_v40, %v8765_v11  ;;  %v643_v42 = vrot.slane %v323_v46, %v8765_v11 }
 0x23f   :  { %v2949_v32 = vpop.f32.mrb[106].mxu0  ;;  %v3020_v44 = vpop.f32.mrb[106].mxu1  ;;  %v4592_v18 = vmax.f32 %v2947_v10, 0.0  ;;  %v4594_v16 = vmax.f32 %v3018_v30, 0.0  ;;  %v1355_v10 = vrot.slane %v1035_v15, %v8791_v22 }
 0x240   :  { %v4655_v41 = vmax.f32 %v2949_v32, 0.0  ;;  %v4657_v54 = vmax.f32 %v3020_v44, 0.0  ;;  %v2951_v6 = vpop.f32.mrb[107].mxu0  ;;  %v3022_v31 = vpop.f32.mrb[107].mxu1  ;;  %v1420_v44 = vmul.f32 %v8872_v26, %v1347_v43  ;;  %v772_v40 = vmul.f32 %v8838_v57, %v635_v50 }
 0x241   :  { %v4656_v0 = vmax.f32 %v2951_v6, 0.0  ;;  %v4658_v2 = vmax.f32 %v3022_v31, 0.0  ;;  %v1422_v22 = vmul.f32 %v8872_v26, %v1355_v10  ;;  %v710_v6 = vmul.f32 %v8840_v58, %v643_v42 }
 0x242   :  { %v10316_v29 = vpack.c.bf16 %v4655_v41, %v4591_v59  ;;  %v10318_v1 = vpack.c.bf16 %v4657_v54, %v4593_v21  ;;  %8314 = vmatmul.mubr.msk.bf16.gmra.mrb[212].mxu0 %vm1833_vm1, %v10113_v48  ;;  %8319 = vmatmul.mubr.msk.bf16.gmra.mrb[212].mxu1 %vm1833_vm1, %v10113_v48  ;;  %v708_v21 = vmul.f32 %v8840_v58, %v635_v50 }
 0x243   :  { %v10326_v12 = vpack.c.bf16 %v4656_v0, %v4592_v18  ;;  %v10328_v28 = vpack.c.bf16 %v4658_v2, %v4594_v16  ;;  %3937 = vmatprep.mubr.bf16.mxu0 %v11937_v45  ;;  %4008 = vmatprep.mubr.bf16.mxu1 %v11937_v45  ;;  %v1486_v41 = vmul.f32 %v8870_v25, %v1355_v10 }
 0x244   :  { %v1548_v54 = vadd.f32 %v1420_v44, %v708_v21  ;;  %v1612_v11 = vadd.f32 %v1484_v62, %v772_v40  ;;  %v774_v31 = vmul.f32 %v8838_v57, %v643_v42  ;;  %v1550_v15 = vadd.f32 %v1422_v22, %v710_v6 }
 0x245   :  { %v10335_v3 = vpop.f32.mrb[108].mxu0  ;;  %v10337_v35 = vpop.f32.mrb[108].mxu1 }
 0x246   :  { %v10340_v24 = vpop.f32.mrb[109].mxu0  ;;  %v10342_v8 = vpop.f32.mrb[109].mxu1  ;;  %v1614_v43 = vadd.f32 %v1486_v41, %v774_v31  ;;  %v1676_v50 = vmax.f32 %v1548_v54, 0.0  ;;  %v1740_v25 = vmax.f32 %v1612_v11, 0.0  ;;  %v1678_v22 = vmax.f32 %v1550_v15, 0.0 }
 0x247   :  { %v2959_v30 = vpop.f32.mrb[110].mxu0  ;;  %v3030_v32 = vpop.f32.mrb[110].mxu1 }
 0x248   :  { %v2960_v59 = vpop.f32.mrb[111].mxu0  ;;  %v3031_v14 = vpop.f32.mrb[111].mxu1  ;;  %v1742_v41 = vmax.f32 %v1614_v43, 0.0 }
 0x24a   :  { %8315 = vmatmul.mubr.msk.bf16.gmra.mrb[216].mxu0 %vm1833_vm1, %v10156_v52  ;;  %8320 = vmatmul.mubr.msk.bf16.gmra.mrb[216].mxu1 %vm1833_vm1, %v10156_v52 }
 0x24b   :  { %3947 = vmatprep.mubr.bf16.mxu0 %v11937_v45  ;;  %4018 = vmatprep.mubr.bf16.mxu1 %v11937_v45 }
 0x24d   :  { %v3067_v18 = vpop.f32.mrb[112].mxu0  ;;  %v3138_v16 = vpop.f32.mrb[112].mxu1 }
 0x24e   :  { %v3069_v0 = vpop.f32.mrb[113].mxu0  ;;  %v3140_v2 = vpop.f32.mrb[113].mxu1  ;;  %v4339_v10 = vmax.f32 %v3067_v18, 0.0  ;;  %v4341_v30 = vmax.f32 %v3138_v16, 0.0 }
 0x24f   :  { %v3071_v46 = vpop.f32.mrb[114].mxu0  ;;  %v3142_v26 = vpop.f32.mrb[114].mxu1  ;;  %v4340_v14 = vmax.f32 %v3069_v0, 0.0  ;;  %v4342_v58 = vmax.f32 %v3140_v2, 0.0  ;;  %v1811_v0 = vpack.c.bf16 %v1740_v25, %v1676_v50  ;;  %v1813_v2 = vpack.c.bf16 %v1742_v41, %v1678_v22 }
 0x250   :  { %v4403_v32 = vmax.f32 %v3071_v46, 0.0  ;;  %v4405_v59 = vmax.f32 %v3142_v26, 0.0  ;;  %v3073_v44 = vpop.f32.mrb[115].mxu0  ;;  %v3144_v62 = vpop.f32.mrb[115].mxu1 }
 0x251   :  { %v4404_v21 = vmax.f32 %v3073_v44, 0.0  ;;  %v4406_v57 = vmax.f32 %v3144_v62, 0.0  ;;  %v2028_v50 = vsel %vm1846_vm0, %v1811_v0, 0  ;;  %v2034_v25 = vsel %vm1846_vm0, %v1813_v2, 0 }
 0x252   :  { %v10360_v42 = vpack.c.bf16 %v4403_v32, %v4339_v10  ;;  %v10362_v40 = vpack.c.bf16 %v4405_v59, %v4341_v30  ;;  %8316 = vmatmul.mubr.msk.bf16.gmra.mrb[220].mxu0 %vm1833_vm1, %v10179_v34  ;;  %8321 = vmatmul.mubr.msk.bf16.gmra.mrb[220].mxu1 %vm1833_vm1, %v10179_v34 }
 0x253   :  { %v10368_v54 = vpack.c.bf16 %v4404_v21, %v4340_v14  ;;  %v10370_v11 = vpack.c.bf16 %v4406_v57, %v4342_v58  ;;  %4059 = vmatprep.mubr.bf16.mxu0 %v11937_v45  ;;  %4130 = vmatprep.mubr.bf16.mxu1 %v11937_v45 }
 0x254   :  { %12021 = vst [vmem:[#allocation84_spill] sm:$0xff] %v10362_v40 }
 0x255   :  { %v3077_v6 = vpop.f32.mrb[116].mxu0  ;;  %v3148_v31 = vpop.f32.mrb[116].mxu1 }
 0x256   :  { %v3079_v18 = vpop.f32.mrb[117].mxu0  ;;  %v3150_v16 = vpop.f32.mrb[117].mxu1  ;;  %v4467_v10 = vmax.f32 %v3077_v6, 0.0  ;;  %v4469_v30 = vmax.f32 %v3148_v31, 0.0  ;;  %v12026_v6 = vld [vmem:[#allocation15_spill] sm:$0xff] }
 0x257   :  { %v3081_v46 = vpop.f32.mrb[118].mxu0  ;;  %v3152_v26 = vpop.f32.mrb[118].mxu1  ;;  %v4468_v44 = vmax.f32 %v3079_v18, 0.0  ;;  %v4470_v62 = vmax.f32 %v3150_v16, 0.0 }
 0x258   :  { %v4531_v15 = vmax.f32 %v3081_v46, 0.0  ;;  %v4533_v43 = vmax.f32 %v3152_v26, 0.0  ;;  %v3083_v32 = vpop.f32.mrb[119].mxu0  ;;  %v3154_v59 = vpop.f32.mrb[119].mxu1 }
 0x259   :  { %v4532_v14 = vmax.f32 %v3083_v32, 0.0  ;;  %v4534_v58 = vmax.f32 %v3154_v59, 0.0 }
 0x25a   :  { %v10374_v21 = vpack.c.bf16 %v4531_v15, %v4467_v10  ;;  %v10376_v57 = vpack.c.bf16 %v4533_v43, %v4469_v30  ;;  %8323 = vmatmul.mubr.msk.bf16.vlgmr.msra.gmra.mrb[224].mxu0 %vm1833_vm1, %v10070_v5  ;;  %8328 = vmatmul.mubr.msk.bf16.vlgmr.msra.gmra.mrb[224].mxu1 %vm1833_vm1, %v10070_v5 }
 0x25b   :  { %v10384_v22 = vpack.c.bf16 %v4532_v14, %v4468_v44  ;;  %v10386_v41 = vpack.c.bf16 %v4534_v58, %v4470_v62  ;;  %4170 = vmatpush1.bf16.msra.mxu0 %v2028_v50  ;;  %4241 = vmatpush1.bf16.msra.mxu1 %v2034_v25 }
 0x25c   :  { %12022 = vst [vmem:[#allocation85_spill] sm:$0xff] %v10374_v21  ;;  %12023 = vst [vmem:[#allocation86_spill] sm:$0xff] %v10376_v57  ;;  %5213 = vmatprep.subr.bf16.mxu0 %v9622_v55  ;;  %5254 = vmatprep.subr.bf16.mxu1 %v12026_v6 }
 0x25d   :  { %12024 = vst [vmem:[#allocation87_spill] sm:$0xff] %v10384_v22  ;;  %12025 = vst [vmem:[#allocation88_spill] sm:$0xff] %v10386_v41  ;;  %v3087_v31 = vpop.f32.mrb[120].mxu0  ;;  %v3158_v18 = vpop.f32.mrb[120].mxu1  ;;  %4069 = vmatprep.mubr.bf16.mxu0 %v11937_v45  ;;  %4140 = vmatprep.mubr.bf16.mxu1 %v11937_v45 }
 0x25e   :  { %v3089_v16 = vpop.f32.mrb[121].mxu0  ;;  %v3160_v0 = vpop.f32.mrb[121].mxu1  ;;  %v4595_v26 = vmax.f32 %v3087_v31, 0.0  ;;  %v4597_v10 = vmax.f32 %v3158_v18, 0.0 }
 0x25f   :  { %v3091_v46 = vpop.f32.mrb[122].mxu0  ;;  %v3162_v2 = vpop.f32.mrb[122].mxu1  ;;  %v4596_v59 = vmax.f32 %v3089_v16, 0.0  ;;  %v4598_v55 = vmax.f32 %v3160_v0, 0.0 }
 0x260   :  { %v4659_v30 = vmax.f32 %v3091_v46, 0.0  ;;  %v4661_v15 = vmax.f32 %v3162_v2, 0.0  ;;  %v3093_v43 = vpop.f32.mrb[123].mxu0  ;;  %v3164_v32 = vpop.f32.mrb[123].mxu1 }
 0x261   :  { %v4660_v44 = vmax.f32 %v3093_v43, 0.0  ;;  %v4662_v62 = vmax.f32 %v3164_v32, 0.0 }
 0x262   :  { %v10392_v14 = vpack.c.bf16 %v4659_v30, %v4595_v26  ;;  %v10394_v58 = vpack.c.bf16 %v4661_v15, %v4597_v10  ;;  %8324 = vmatmul.mubr.msk.bf16.gmra.mrb[228].mxu0 %vm1833_vm1, %v10113_v48  ;;  %8329 = vmatmul.mubr.msk.bf16.gmra.mrb[228].mxu1 %vm1833_vm1, %v10113_v48 }
 0x263   :  { %v10400_v50 = vpack.c.bf16 %v4660_v44, %v4596_v59  ;;  %v10402_v25 = vpack.c.bf16 %v4662_v62, %v4598_v55  ;;  %4079 = vmatprep.mubr.bf16.mxu0 %v11937_v45  ;;  %4150 = vmatprep.mubr.bf16.mxu1 %v11937_v45 }
 0x264   :  { %12027 = vst [vmem:[#allocation15_spill] sm:$0xff] %v10392_v14  ;;  %12028 = vst [vmem:[#allocation89_spill] sm:$0xff] %v10394_v58 }
 0x265   :  { %12029 = vst [vmem:[#allocation90_spill] sm:$0xff] %v10400_v50  ;;  %12030 = vst [vmem:[#allocation91_spill] sm:$0xff] %v10402_v25  ;;  %v10406_v6 = vpop.f32.mrb[124].mxu0  ;;  %v10408_v31 = vpop.f32.mrb[124].mxu1 }
 0x266   :  { %v10410_v18 = vpop.f32.mrb[125].mxu0  ;;  %v10412_v16 = vpop.f32.mrb[125].mxu1 }
 0x267   :  { %12031 = vst [vmem:[#allocation92_spill] sm:$0xff] %v10410_v18  ;;  %12032 = vst [vmem:[#allocation93_spill] sm:$0xff] %v10412_v16  ;;  %v3101_v0 = vpop.f32.mrb[126].mxu0  ;;  %v3172_v46 = vpop.f32.mrb[126].mxu1  ;;  %v12052_v18 = vld [vmem:[#allocation23_spill] sm:$0xff] }
 0x268   :  { %v3102_v2 = vpop.f32.mrb[127].mxu0  ;;  %v3173_v26 = vpop.f32.mrb[127].mxu1 }
 0x26a   :  { %8325 = vmatmul.mubr.msk.bf16.gmra.mrb[232].mxu0 %vm1833_vm1, %v10156_v52  ;;  %8330 = vmatmul.mubr.msk.bf16.gmra.mrb[232].mxu1 %vm1833_vm1, %v10156_v52 }
 0x26b   :  { %4089 = vmatprep.mubr.bf16.mxu0 %v11937_v45  ;;  %4160 = vmatprep.mubr.bf16.mxu1 %v11937_v45 }
 0x26d   :  { %v3209_v10 = vpop.f32.mrb[128].mxu0  ;;  %v3280_v30 = vpop.f32.mrb[128].mxu1 }
 0x26e   :  { %v3211_v15 = vpop.f32.mrb[129].mxu0  ;;  %v3282_v43 = vpop.f32.mrb[129].mxu1  ;;  %v4343_v55 = vmax.f32 %v3209_v10, 0.0  ;;  %v4345_v44 = vmax.f32 %v3280_v30, 0.0 }
 0x26f   :  { %v3213_v32 = vpop.f32.mrb[130].mxu0  ;;  %v3284_v59 = vpop.f32.mrb[130].mxu1  ;;  %v4344_v26 = vmax.f32 %v3211_v15, 0.0  ;;  %v4346_v58 = vmax.f32 %v3282_v43, 0.0 }
 0x270   :  { %v4407_v62 = vmax.f32 %v3213_v32, 0.0  ;;  %v4409_v0 = vmax.f32 %v3284_v59, 0.0  ;;  %v3215_v46 = vpop.f32.mrb[131].mxu0  ;;  %v3286_v2 = vpop.f32.mrb[131].mxu1 }
 0x271   :  { %v4408_v14 = vmax.f32 %v3215_v46, 0.0  ;;  %v4410_v25 = vmax.f32 %v3286_v2, 0.0 }
 0x272   :  { %v10420_v50 = vpack.c.bf16 %v4407_v62, %v4343_v55  ;;  %v10422_v57 = vpack.c.bf16 %v4409_v0, %v4345_v44  ;;  %8326 = vmatmul.mubr.msk.bf16.gmra.mrb[236].mxu0 %vm1833_vm1, %v10179_v34  ;;  %8331 = vmatmul.mubr.msk.bf16.gmra.mrb[236].mxu1 %vm1833_vm1, %v10179_v34 }
 0x273   :  { %v10428_v10 = vpack.c.bf16 %v4408_v14, %v4344_v26  ;;  %v10430_v30 = vpack.c.bf16 %v4410_v25, %v4346_v58  ;;  %4201 = vmatprep.mubr.bf16.mxu0 %v11937_v45  ;;  %4272 = vmatprep.mubr.bf16.mxu1 %v11937_v45 }
 0x274   :  { %12033 = vst [vmem:[#allocation94_spill] sm:$0xff] %v10420_v50  ;;  %12034 = vst [vmem:[#allocation95_spill] sm:$0xff] %v10422_v57 }
 0x275   :  { %12035 = vst [vmem:[#allocation96_spill] sm:$0xff] %v10428_v10  ;;  %12036 = vst [vmem:[#allocation97_spill] sm:$0xff] %v10430_v30  ;;  %v3219_v15 = vpop.f32.mrb[132].mxu0  ;;  %v3290_v43 = vpop.f32.mrb[132].mxu1  ;;  %v12037_v30 = vld [vmem:[#allocation9_spill] sm:$0xff] }
 0x276   :  { %v3221_v32 = vpop.f32.mrb[133].mxu0  ;;  %v3292_v59 = vpop.f32.mrb[133].mxu1  ;;  %v4471_v62 = vmax.f32 %v3219_v15, 0.0  ;;  %v4473_v0 = vmax.f32 %v3290_v43, 0.0  ;;  %v4695_v10 = vmax.f32 %v12037_v30, 0.0  ;;  %v12040_v15 = vld [vmem:[#allocation10_spill] sm:$0xff] }
 0x277   :  { %v3223_v55 = vpop.f32.mrb[134].mxu0  ;;  %v3294_v44 = vpop.f32.mrb[134].mxu1  ;;  %v4472_v14 = vmax.f32 %v3221_v32, 0.0  ;;  %v4474_v26 = vmax.f32 %v3292_v59, 0.0  ;;  %v4697_v43 = vmax.f32 %v12040_v15, 0.0  ;;  %v12045_v30 = vld [vmem:[#allocation3_spill] sm:$0xff] }
 0x278   :  { %v4535_v46 = vmax.f32 %v3223_v55, 0.0  ;;  %v4537_v2 = vmax.f32 %v3294_v44, 0.0  ;;  %v3225_v57 = vpop.f32.mrb[135].mxu0  ;;  %v3296_v50 = vpop.f32.mrb[135].mxu1  ;;  %v12041_v55 = vld [vmem:[#allocation11_spill] sm:$0xff]  ;;  %v12046_v59 = vld [vmem:[#allocation18_spill] sm:$0xff] }
 0x279   :  { %v4536_v58 = vmax.f32 %v3225_v57, 0.0  ;;  %v4538_v25 = vmax.f32 %v3296_v50, 0.0  ;;  %v4696_v44 = vmax.f32 %v12041_v55, 0.0  ;;  %v12044_v50 = vld [vmem:[#allocation4_spill] sm:$0xff]  ;;  %v12049_v55 = vld [vmem:[#allocation5_spill] sm:$0xff] }
 0x27a   :  { %v10435_v21 = vpack.c.bf16 %v4535_v46, %v4471_v62  ;;  %v10437_v16 = vpack.c.bf16 %v4537_v2, %v4473_v0  ;;  %8333 = vmatmul.mubr.msk.bf16.vlgmr.msra.gmra.mrb[240].mxu0 %vm1833_vm1, %v10070_v5  ;;  %8338 = vmatmul.mubr.msk.bf16.vlgmr.msra.gmra.mrb[240].mxu1 %vm1833_vm1, %v10070_v5  ;;  %v12047_v62 = vld [vmem:[#allocation19_spill] sm:$0xff]  ;;  %v12048_v5 = vld [vmem:[#allocation12_spill] sm:$0xff] }
 0x27b   :  { %v10445_v32 = vpack.c.bf16 %v4536_v58, %v4472_v14  ;;  %v10447_v57 = vpack.c.bf16 %v4538_v25, %v4474_v26  ;;  %5214 = vmatpush1.bf16.msra.mxu0 %v12044_v50  ;;  %5255 = vmatpush1.bf16.msra.mxu1 %v12045_v30  ;;  %v4698_v2 = vmax.f32 %v12048_v5, 0.0  ;;  %v4952_v26 = vpack.c.bf16 %v4695_v10, %v4695_v10  ;;  %v12050_v50 = vld [vmem:[#allocation6_spill] sm:$0xff] }
 0x27c   :  { %12038 = vst [vmem:[#allocation9_spill] sm:$0xff] %v10435_v21  ;;  %12039 = vst [vmem:[#allocation98_spill] sm:$0xff] %v10437_v16  ;;  %5215 = vmatprep.subr.bf16.mxu0 %v12046_v59  ;;  %5256 = vmatprep.subr.bf16.mxu1 %v12047_v62  ;;  %v4954_v25 = vpack.c.bf16 %v4697_v43, %v4697_v43  ;;  %v4953_v15 = vpack.c.bf16 %v4696_v44, %v4696_v44 }
 0x27d   :  { %12042 = vst [vmem:[#allocation10_spill] sm:$0xff] %v10445_v32  ;;  %12043 = vst [vmem:[#allocation11_spill] sm:$0xff] %v10447_v57  ;;  %v3229_v0 = vpop.f32.mrb[136].mxu0  ;;  %v3300_v46 = vpop.f32.mrb[136].mxu1  ;;  %4211 = vmatprep.mubr.bf16.mxu0 %v11937_v45  ;;  %4282 = vmatprep.mubr.bf16.mxu1 %v11937_v45  ;;  %v12051_v32 = vld [vmem:[#allocation22_spill] sm:$0xff]  ;;  %v4955_v40 = vpack.c.bf16 %v4698_v2, %v4698_v2 }
 0x27e   :  { %v3231_v14 = vpop.f32.mrb[137].mxu0  ;;  %v3302_v58 = vpop.f32.mrb[137].mxu1  ;;  %v4599_v62 = vmax.f32 %v3229_v0, 0.0  ;;  %v4601_v16 = vmax.f32 %v3300_v46, 0.0  ;;  %v12057_v0 = vld [vmem:[#allocation7_spill] sm:$0xff]  ;;  %v12058_v46 = vld [vmem:[#allocation8_spill] sm:$0xff] }
 0x27f   :  { %5216 = vmatpush1.bf16.msra.mxu0 %v12049_v55  ;;  %5257 = vmatpush1.bf16.msra.mxu1 %v12050_v50  ;;  %v3233_v30 = vpop.f32.mrb[138].mxu0  ;;  %v3304_v59 = vpop.f32.mrb[138].mxu1  ;;  %v4600_v22 = vmax.f32 %v3231_v14, 0.0  ;;  %v4602_v10 = vmax.f32 %v3302_v58, 0.0  ;;  %v12062_v14 = vld [vmem:[#allocation30_spill] sm:$0xff]  ;;  %v12063_v58 = vld [vmem:[#allocation31_spill] sm:$0xff] }
 0x280   :  { %v4663_v21 = vmax.f32 %v3233_v30, 0.0  ;;  %v4665_v57 = vmax.f32 %v3304_v59, 0.0  ;;  %5217 = vmatprep.subr.bf16.mxu0 %v12051_v32  ;;  %5258 = vmatprep.subr.bf16.mxu1 %v12052_v18  ;;  %v3235_v5 = vpop.f32.mrb[139].mxu0  ;;  %v3306_v41 = vpop.f32.mrb[139].mxu1 }
 0x281   :  { %v4664_v43 = vmax.f32 %v3235_v5, 0.0  ;;  %v4666_v44 = vmax.f32 %v3306_v41, 0.0 }
 0x282   :  { %v10460_v55 = vpack.c.bf16 %v4663_v21, %v4599_v62  ;;  %v10462_v50 = vpack.c.bf16 %v4665_v57, %v4601_v16  ;;  %8334 = vmatmul.mubr.msk.bf16.gmra.mrb[244].mxu0 %vm1833_vm1, %v10113_v48  ;;  %8339 = vmatmul.mubr.msk.bf16.gmra.mrb[244].mxu1 %vm1833_vm1, %v10113_v48  ;;  %v5022_v16 = vsel %vm5020_vm2, %v4952_v26, 0  ;;  %v5028_v57 = vsel %vm5020_vm2, %v4954_v25, 0 }
 0x283   :  { %v10468_v32 = vpack.c.bf16 %v4664_v43, %v4600_v22  ;;  %v10470_v18 = vpack.c.bf16 %v4666_v44, %v4602_v10  ;;  %5218 = vmatpush1.bf16.msra.mxu0 %v12057_v0  ;;  %5259 = vmatpush1.bf16.msra.mxu1 %v12058_v46 }
 0x284   :  { %12053 = vst [vmem:[#allocation4_spill] sm:$0xff] %v10460_v55  ;;  %12054 = vst [vmem:[#allocation3_spill] sm:$0xff] %v10462_v50  ;;  %8342 = vmatprep.subr.msk.bf16.mxu0 %vm5020_vm2, %v4953_v15  ;;  %8344 = vmatprep.subr.msk.bf16.mxu1 %vm5020_vm2, %v4955_v40  ;;  %v12082_v55 = vld [vmem:[#allocation38_spill] sm:$0xff] }
 0x285   :  { %12055 = vst [vmem:[#allocation18_spill] sm:$0xff] %v10468_v32  ;;  %12056 = vst [vmem:[#allocation19_spill] sm:$0xff] %v10470_v18  ;;  %v10476_v21 = vpop.f32.mrb[140].mxu0  ;;  %v10478_v41 = vpop.f32.mrb[140].mxu1  ;;  %4221 = vmatprep.mubr.bf16.mxu0 %v11937_v45  ;;  %4292 = vmatprep.mubr.bf16.mxu1 %v11937_v45  ;;  %v12083_v18 = vld [vmem:[#allocation39_spill] sm:$0xff] }
 0x286   :  { %12059 = vst [vmem:[#allocation12_spill] sm:$0xff] %v10478_v41  ;;  %v10482_v48 = vpop.f32.mrb[141].mxu0  ;;  %v10484_v22 = vpop.f32.mrb[141].mxu1 }
 0x287   :  { %12060 = vst [vmem:[#allocation5_spill] sm:$0xff] %v10482_v48  ;;  %12061 = vst [vmem:[#allocation6_spill] sm:$0xff] %v10484_v22  ;;  %5220 = vmatpush1.bf16.msra.mxu0 %v5022_v16  ;;  %5261 = vmatpush1.bf16.msra.mxu1 %v5028_v57  ;;  %v3243_v2 = vpop.f32.mrb[142].mxu0  ;;  %v3314_v40 = vpop.f32.mrb[142].mxu1 }
 0x288   :  { %5295 = vmatprep.subr.bf16.mxu0 %v12062_v14  ;;  %5336 = vmatprep.subr.bf16.mxu1 %v12063_v58  ;;  %v3244_v15 = vpop.f32.mrb[143].mxu0  ;;  %v3315_v30 = vpop.f32.mrb[143].mxu1 }
 0x28a   :  { %8335 = vmatmul.mubr.msk.bf16.gmra.mrb[248].mxu0 %vm1833_vm1, %v10156_v52  ;;  %8340 = vmatmul.mubr.msk.bf16.gmra.mrb[248].mxu1 %vm1833_vm1, %v10156_v52 }
 0x28b   :  { %4231 = vmatprep.mubr.bf16.mxu0 %v11937_v45  ;;  %4302 = vmatprep.mubr.bf16.mxu1 %v11937_v45 }
 0x28d   :  { %v3351_v26 = vpop.f32.mrb[144].mxu0  ;;  %v3422_v25 = vpop.f32.mrb[144].mxu1 }
 0x28e   :  { %v3353_v59 = vpop.f32.mrb[145].mxu0  ;;  %v3424_v62 = vpop.f32.mrb[145].mxu1  ;;  %v4347_v43 = vmax.f32 %v3351_v26, 0.0  ;;  %v4349_v44 = vmax.f32 %v3422_v25, 0.0 }
 0x28f   :  { %v3355_v5 = vpop.f32.mrb[146].mxu0  ;;  %v3426_v10 = vpop.f32.mrb[146].mxu1  ;;  %v4348_v2 = vmax.f32 %v3353_v59, 0.0  ;;  %v4350_v40 = vmax.f32 %v3424_v62, 0.0 }
 0x290   :  { %v4411_v0 = vmax.f32 %v3355_v5, 0.0  ;;  %v4413_v46 = vmax.f32 %v3426_v10, 0.0  ;;  %v3357_v16 = vpop.f32.mrb[147].mxu0  ;;  %v3428_v57 = vpop.f32.mrb[147].mxu1 }
 0x291   :  { %v4412_v14 = vmax.f32 %v3357_v16, 0.0  ;;  %v4414_v52 = vmax.f32 %v3428_v57, 0.0 }
 0x292   :  { %v10496_v58 = vpack.c.bf16 %v4411_v0, %v4347_v43  ;;  %v10498_v15 = vpack.c.bf16 %v4413_v46, %v4349_v44  ;;  %8336 = vmatmul.mubr.msk.bf16.gmra.mrb[252].mxu0 %vm1833_vm1, %v10179_v34  ;;  %8341 = vmatmul.mubr.msk.bf16.gmra.mrb[252].mxu1 %vm1833_vm1, %v10179_v34  ;;  %v10513_v44 = vld [vmem:[%s11925_s3] sm:$0x3] }
 0x293   :  { %v10504_v30 = vpack.c.bf16 %v4412_v14, %v4348_v2  ;;  %v10506_v26 = vpack.c.bf16 %v4414_v52, %v4350_v40  ;;  %5245 = vmatprep.mubr.bf16.mxu0 %v11937_v45  ;;  %5286 = vmatprep.mubr.bf16.mxu1 %v11937_v45 }
 0x294   :  { %12064 = vst [vmem:[#allocation22_spill] sm:$0xff] %v10496_v58  ;;  %12065 = vst [vmem:[#allocation23_spill] sm:$0xff] %v10498_v15 }
 0x295   :  { %12066 = vst [vmem:[#allocation7_spill] sm:$0xff] %v10504_v30  ;;  %12067 = vst [vmem:[#allocation8_spill] sm:$0xff] %v10506_v26  ;;  %v3361_v25 = vpop.f32.mrb[148].mxu0  ;;  %v3432_v59 = vpop.f32.mrb[148].mxu1 }
 0x296   :  { %v3363_v62 = vpop.f32.mrb[149].mxu0  ;;  %v3434_v5 = vpop.f32.mrb[149].mxu1  ;;  %v4475_v34 = vmax.f32 %v3361_v25, 0.0  ;;  %v4477_v0 = vmax.f32 %v3432_v59, 0.0  ;;  %v12070_v25 = vld [vmem:[#allocation24_spill] sm:$0xff] }
 0x297   :  { %v3365_v10 = vpop.f32.mrb[150].mxu0  ;;  %v3436_v43 = vpop.f32.mrb[150].mxu1  ;;  %v4476_v40 = vmax.f32 %v3363_v62, 0.0  ;;  %v4478_v14 = vmax.f32 %v3434_v5, 0.0  ;;  %v4699_v59 = vmax.f32 %v12070_v25, 0.0  ;;  %v12074_v5 = vld [vmem:[#allocation13_spill] sm:$0xff] }
 0x298   :  { %v4539_v46 = vmax.f32 %v3365_v10, 0.0  ;;  %v4541_v16 = vmax.f32 %v3436_v43, 0.0  ;;  %v3367_v57 = vpop.f32.mrb[151].mxu0  ;;  %v3438_v2 = vpop.f32.mrb[151].mxu1  ;;  %v12071_v10 = vld [vmem:[#allocation25_spill] sm:$0xff] }
 0x299   :  { %v4540_v52 = vmax.f32 %v3367_v57, 0.0  ;;  %v4542_v15 = vmax.f32 %v3438_v2, 0.0  ;;  %v4701_v43 = vmax.f32 %v12071_v10, 0.0  ;;  %v12078_v2 = vld [vmem:[#allocation26_spill] sm:$0xff]  ;;  %v4956_v10 = vpack.c.bf16 %v4699_v59, %v4699_v59 }
 0x29a   :  { %v10515_v58 = vpack.c.bf16 %v4539_v46, %v4475_v34  ;;  %v10517_v26 = vpack.c.bf16 %v4541_v16, %v4477_v0  ;;  %8343 = vmatmul.mubr.msk.bf16.vlgmr.msra.gmra.mrb[0].mxu0 %vm5016_vm3, %v10513_v44  ;;  %8345 = vmatmul.mubr.msk.bf16.vlgmr.msra.gmra.mrb[0].mxu1 %vm5016_vm3, %v10513_v44  ;;  %v12075_v34 = vld [vmem:[#allocation14_spill] sm:$0xff]  ;;  %v12077_v46 = vld [vmem:[#allocation35_spill] sm:$0xff]  ;;  %v4700_v25 = vmax.f32 %v12078_v2, 0.0 }
 0x29b   :  { %v10525_v30 = vpack.c.bf16 %v4540_v52, %v4476_v40  ;;  %v10527_v62 = vpack.c.bf16 %v4542_v15, %v4478_v14  ;;  %5296 = vmatpush1.bf16.msra.mxu0 %v12074_v5  ;;  %5337 = vmatpush1.bf16.msra.mxu1 %v12075_v34  ;;  %v12076_v0 = vld [vmem:[#allocation34_spill] sm:$0xff]  ;;  %v12079_v40 = vld [vmem:[#allocation27_spill] sm:$0xff]  ;;  %v4958_v5 = vpack.c.bf16 %v4701_v43, %v4701_v43  ;;  %v12081_v34 = vld [vmem:[#allocation17_spill] sm:$0xff] }
 0x29c   :  { %12068 = vst [vmem:[#allocation30_spill] sm:$0xff] %v10515_v58  ;;  %12069 = vst [vmem:[#allocation31_spill] sm:$0xff] %v10517_v26  ;;  %5297 = vmatprep.subr.bf16.mxu0 %v12076_v0  ;;  %5338 = vmatprep.subr.bf16.mxu1 %v12077_v46  ;;  %v4702_v52 = vmax.f32 %v12079_v40, 0.0  ;;  %v12080_v26 = vld [vmem:[#allocation16_spill] sm:$0xff]  ;;  %v4957_v48 = vpack.c.bf16 %v4700_v25, %v4700_v25 }
 0x29d   :  { %12072 = vst [vmem:[#allocation24_spill] sm:$0xff] %v10525_v30  ;;  %12073 = vst [vmem:[#allocation25_spill] sm:$0xff] %v10527_v62  ;;  %v3371_v16 = vpop.f32.mrb[152].mxu0  ;;  %v3442_v57 = vpop.f32.mrb[152].mxu1  ;;  %5327 = vmatprep.mubr.bf16.mxu0 %v11937_v45  ;;  %5368 = vmatprep.mubr.bf16.mxu1 %v11937_v45 }
 0x29e   :  { %v3373_v15 = vpop.f32.mrb[153].mxu0  ;;  %v3444_v14 = vpop.f32.mrb[153].mxu1  ;;  %v4603_v58 = vmax.f32 %v3371_v16, 0.0  ;;  %v4605_v62 = vmax.f32 %v3442_v57, 0.0 }
 0x29f   :  { %5298 = vmatpush1.bf16.msra.mxu0 %v12080_v26  ;;  %5339 = vmatpush1.bf16.msra.mxu1 %v12081_v34  ;;  %v3375_v0 = vpop.f32.mrb[154].mxu0  ;;  %v3446_v46 = vpop.f32.mrb[154].mxu1  ;;  %v4604_v32 = vmax.f32 %v3373_v15, 0.0  ;;  %v4606_v22 = vmax.f32 %v3444_v14, 0.0  ;;  %v4959_v26 = vpack.c.bf16 %v4702_v52, %v4702_v52  ;;  %v12088_v15 = vld [vmem:[#allocation40_spill] sm:$0xff] }
 0x2a0   :  { %v4667_v30 = vmax.f32 %v3375_v0, 0.0  ;;  %v4669_v50 = vmax.f32 %v3446_v46, 0.0  ;;  %5299 = vmatprep.subr.bf16.mxu0 %v12082_v55  ;;  %5340 = vmatprep.subr.bf16.mxu1 %v12083_v18  ;;  %v3377_v2 = vpop.f32.mrb[155].mxu0  ;;  %v3448_v40 = vpop.f32.mrb[155].mxu1  ;;  %v12086_v0 = vld [vmem:[#allocation20_spill] sm:$0xff]  ;;  %v12087_v55 = vld [vmem:[#allocation21_spill] sm:$0xff] }
 0x2a1   :  { %v4668_v59 = vmax.f32 %v3377_v2, 0.0  ;;  %v4670_v43 = vmax.f32 %v3448_v40, 0.0  ;;  %v4703_v14 = vmax.f32 %v12088_v15, 0.0  ;;  %v12090_v46 = vld [vmem:[#allocation28_spill] sm:$0xff]  ;;  %v12091_v2 = vld [vmem:[#allocation29_spill] sm:$0xff]  ;;  %v12092_v40 = vld [vmem:[#allocation42_spill] sm:$0xff] }
 0x2a2   :  { %v10541_v41 = vpack.c.bf16 %v4667_v30, %v4603_v58  ;;  %v10543_v34 = vpack.c.bf16 %v4669_v50, %v4605_v62 }
 0x2a3   :  { %v10545_v16 = vpack.c.bf16 %v4668_v59, %v4604_v32  ;;  %v10547_v57 = vpack.c.bf16 %v4670_v43, %v4606_v22  ;;  %5300 = vmatpush1.bf16.msra.mxu0 %v12086_v0  ;;  %5341 = vmatpush1.bf16.msra.mxu1 %v12087_v55  ;;  %v5034_v32 = vsel %vm5020_vm2, %v4956_v10, 0  ;;  %v5040_v22 = vsel %vm5020_vm2, %v4958_v5, 0  ;;  %v12089_v10 = vld [vmem:[#allocation41_spill] sm:$0xff]  ;;  %v12093_v43 = vld [vmem:[#allocation43_spill] sm:$0xff] }
 0x2a4   :  { %12084 = vst [vmem:[#allocation13_spill] sm:$0xff] %v10541_v41  ;;  %12085 = vst [vmem:[#allocation14_spill] sm:$0xff] %v10543_v34  ;;  %8346 = vmatprep.subr.msk.bf16.mxu0 %vm5020_vm2, %v4957_v48  ;;  %8348 = vmatprep.subr.msk.bf16.mxu1 %vm5020_vm2, %v4959_v26  ;;  %v4705_v5 = vmax.f32 %v12089_v10, 0.0  ;;  %v4704_v59 = vmax.f32 %v12092_v40, 0.0  ;;  %v4706_v26 = vmax.f32 %v12093_v43, 0.0 }
 0x2a5   :  { %v10553_v18 = vpop.f32.mrb[156].mxu0  ;;  %v10555_v25 = vpop.f32.mrb[156].mxu1 }
 0x2a6   :  { %v10557_v58 = vpop.f32.mrb[157].mxu0  ;;  %v10559_v50 = vpop.f32.mrb[157].mxu1  ;;  %v4961_v34 = vpack.c.bf16 %v4704_v59, %v4704_v59 }
 0x2a7   :  { %5302 = vmatpush1.bf16.msra.mxu0 %v5034_v32  ;;  %5343 = vmatpush1.bf16.msra.mxu1 %v5040_v22  ;;  %v3385_v30 = vpop.f32.mrb[158].mxu0  ;;  %v3456_v62 = vpop.f32.mrb[158].mxu1  ;;  %v4960_v32 = vpack.c.bf16 %v4703_v14, %v4703_v14  ;;  %v4962_v22 = vpack.c.bf16 %v4705_v5, %v4705_v5 }
 0x2a8   :  { %5377 = vmatprep.subr.bf16.mxu0 %v9907_v49  ;;  %5418 = vmatprep.subr.bf16.mxu1 %v9909_v51  ;;  %v3386_v48 = vpop.f32.mrb[159].mxu0  ;;  %v3457_v52 = vpop.f32.mrb[159].mxu1  ;;  %v12094_v30 = vld [vmem:[#allocation32_spill] sm:$0xff]  ;;  %v12095_v62 = vld [vmem:[#allocation33_spill] sm:$0xff] }
 0x2aa   :  { %8347 = vmatmul.mubr.msk.bf16.vlgmr.msra.gmra.mrb[4].mxu0 %vm5016_vm3, %v10513_v44  ;;  %8349 = vmatmul.mubr.msk.bf16.vlgmr.msra.gmra.mrb[4].mxu1 %vm5016_vm3, %v10513_v44 }
 0x2ab   :  { %5378 = vmatpush1.bf16.msra.mxu0 %v12090_v46  ;;  %5419 = vmatpush1.bf16.msra.mxu1 %v12091_v2 }
 0x2ac   :  { %5379 = vmatprep.subr.bf16.mxu0 %v9946_v56  ;;  %5420 = vmatprep.subr.bf16.mxu1 %v9948_v53 }
 0x2ad   :  { %v3493_v49 = vpop.f32.mrb[160].mxu0  ;;  %v3564_v51 = vpop.f32.mrb[160].mxu1  ;;  %5409 = vmatprep.mubr.bf16.mxu0 %v11937_v45  ;;  %5450 = vmatprep.mubr.bf16.mxu1 %v11937_v45 }
 0x2ae   :  { %v3495_v0 = vpop.f32.mrb[161].mxu0  ;;  %v3566_v55 = vpop.f32.mrb[161].mxu1  ;;  %v4351_v48 = vmax.f32 %v3493_v49, 0.0  ;;  %v4353_v52 = vmax.f32 %v3564_v51, 0.0 }
 0x2af   :  { %5380 = vmatpush1.bf16.msra.mxu0 %v12094_v30  ;;  %5421 = vmatpush1.bf16.msra.mxu1 %v12095_v62  ;;  %v3497_v56 = vpop.f32.mrb[162].mxu0  ;;  %v3568_v53 = vpop.f32.mrb[162].mxu1  ;;  %v4352_v40 = vmax.f32 %v3495_v0, 0.0  ;;  %v4354_v43 = vmax.f32 %v3566_v55, 0.0  ;;  %v4963_v30 = vpack.c.bf16 %v4706_v26, %v4706_v26  ;;  %v5046_v55 = vsel %vm5020_vm2, %v4960_v32, 0 }
 0x2b0   :  { %v4415_v15 = vmax.f32 %v3497_v56, 0.0  ;;  %v4417_v10 = vmax.f32 %v3568_v53, 0.0  ;;  %5381 = vmatprep.subr.bf16.mxu0 %v9990_v4  ;;  %5422 = vmatprep.subr.bf16.mxu1 %v9992_v37  ;;  %v3499_v46 = vpop.f32.mrb[163].mxu0  ;;  %v3570_v2 = vpop.f32.mrb[163].mxu1  ;;  %v12097_v56 = vld [vmem:[#allocation36_spill] sm:$0xff]  ;;  %v12098_v4 = vld [vmem:[#allocation37_spill] sm:$0xff] }
 0x2b1   :  { %v4416_v14 = vmax.f32 %v3499_v46, 0.0  ;;  %v4418_v5 = vmax.f32 %v3570_v2, 0.0  ;;  %v5052_v53 = vsel %vm5020_vm2, %v4962_v22, 0 }
 0x2b2   :  { %v10583_v41 = vpack.c.bf16 %v4415_v15, %v4351_v48  ;;  %v10585_v62 = vpack.c.bf16 %v4417_v10, %v4353_v52 }
 0x2b3   :  { %v10587_v49 = vpack.c.bf16 %v4416_v14, %v4352_v40  ;;  %v10589_v51 = vpack.c.bf16 %v4418_v5, %v4354_v43  ;;  %5382 = vmatpush1.bf16.msra.mxu0 %v12097_v56  ;;  %5423 = vmatpush1.bf16.msra.mxu1 %v12098_v4  ;;  %v12101_v56 = vld [vmem:[#allocation50_spill] sm:$0xff] }
 0x2b4   :  { %12096 = vst [vmem:[#allocation34_spill] sm:$0xff] %v10585_v62  ;;  %8350 = vmatprep.subr.msk.bf16.mxu0 %vm5020_vm2, %v4961_v34  ;;  %8352 = vmatprep.subr.msk.bf16.mxu1 %vm5020_vm2, %v4963_v30 }
 0x2b5   :  { %v3503_v37 = vpop.f32.mrb[164].mxu0  ;;  %v3574_v0 = vpop.f32.mrb[164].mxu1 }
 0x2b6   :  { %v3505_v59 = vpop.f32.mrb[165].mxu0  ;;  %v3576_v26 = vpop.f32.mrb[165].mxu1  ;;  %v4479_v15 = vmax.f32 %v3503_v37, 0.0  ;;  %v4481_v10 = vmax.f32 %v3574_v0, 0.0  ;;  %v12104_v0 = vld [vmem:[#allocation44_spill] sm:$0xff] }
 0x2b7   :  { %5384 = vmatpush1.bf16.msra.mxu0 %v5046_v55  ;;  %5425 = vmatpush1.bf16.msra.mxu1 %v5052_v53  ;;  %v3507_v48 = vpop.f32.mrb[166].mxu0  ;;  %v3578_v52 = vpop.f32.mrb[166].mxu1  ;;  %v4480_v43 = vmax.f32 %v3505_v59, 0.0  ;;  %v4482_v14 = vmax.f32 %v3576_v26, 0.0  ;;  %v12105_v59 = vld [vmem:[#allocation45_spill] sm:$0xff] }
 0x2b8   :  { %v4543_v46 = vmax.f32 %v3507_v48, 0.0  ;;  %v4545_v2 = vmax.f32 %v3578_v52, 0.0  ;;  %5459 = vmatprep.subr.bf16.mxu0 %v10044_v7  ;;  %5500 = vmatprep.subr.bf16.mxu1 %v10046_v17  ;;  %v3509_v34 = vpop.f32.mrb[167].mxu0  ;;  %v3580_v40 = vpop.f32.mrb[167].mxu1  ;;  %v4707_v7 = vmax.f32 %v9998_v20, 0.0  ;;  %v4709_v17 = vmax.f32 %v12101_v56, 0.0 }
 0x2b9   :  { %v4544_v5 = vmax.f32 %v3509_v34, 0.0  ;;  %v4546_v32 = vmax.f32 %v3580_v40, 0.0  ;;  %v12106_v20 = vld [vmem:[#allocation51_spill] sm:$0xff]  ;;  %v12107_v48 = vld [vmem:[#allocation52_spill] sm:$0xff]  ;;  %v12108_v34 = vld [vmem:[#allocation46_spill] sm:$0xff] }
 0x2ba   :  { %v10599_v30 = vpack.c.bf16 %v4543_v46, %v4479_v15  ;;  %v10601_v22 = vpack.c.bf16 %v4545_v2, %v4481_v10  ;;  %8351 = vmatmul.mubr.msk.bf16.vlgmr.msra.gmra.mrb[8].mxu0 %vm5016_vm3, %v10513_v44  ;;  %8353 = vmatmul.mubr.msk.bf16.vlgmr.msra.gmra.mrb[8].mxu1 %vm5016_vm3, %v10513_v44  ;;  %v4708_v53 = vmax.f32 %v12106_v20, 0.0  ;;  %v4710_v52 = vmax.f32 %v12107_v48, 0.0  ;;  %v12109_v40 = vld [vmem:[#allocation47_spill] sm:$0xff]  ;;  %v12110_v56 = vld [vmem:[#allocation65_spill] sm:$0xff] }
 0x2bb   :  { %v10609_v4 = vpack.c.bf16 %v4544_v5, %v4480_v43  ;;  %v10611_v37 = vpack.c.bf16 %v4546_v32, %v4482_v14  ;;  %5460 = vmatpush1.bf16.msra.mxu0 %v12104_v0  ;;  %5501 = vmatpush1.bf16.msra.mxu1 %v12105_v59  ;;  %v4964_v46 = vpack.c.bf16 %v4707_v7, %v4707_v7  ;;  %v12111_v0 = vld [vmem:[#allocation66_spill] sm:$0xff] }
 0x2bc   :  { %12099 = vst [vmem:[#allocation35_spill] sm:$0xff] %v10599_v30  ;;  %12100 = vst [vmem:[#allocation26_spill] sm:$0xff] %v10601_v22  ;;  %5461 = vmatprep.subr.bf16.mxu0 %v10080_v38  ;;  %5502 = vmatprep.subr.bf16.mxu1 %v10087_v13  ;;  %v4966_v2 = vpack.c.bf16 %v4709_v17, %v4709_v17  ;;  %v4965_v30 = vpack.c.bf16 %v4708_v53, %v4708_v53 }
 0x2bd   :  { %12102 = vst [vmem:[#allocation27_spill] sm:$0xff] %v10609_v4  ;;  %12103 = vst [vmem:[#allocation16_spill] sm:$0xff] %v10611_v37  ;;  %v3513_v26 = vpop.f32.mrb[168].mxu0  ;;  %v3584_v55 = vpop.f32.mrb[168].mxu1  ;;  %5491 = vmatprep.mubr.bf16.mxu0 %v11937_v45  ;;  %5532 = vmatprep.mubr.bf16.mxu1 %v11937_v45 }
 0x2be   :  { %v3515_v15 = vpop.f32.mrb[169].mxu0  ;;  %v3586_v10 = vpop.f32.mrb[169].mxu1  ;;  %v4607_v43 = vmax.f32 %v3513_v26, 0.0  ;;  %v4609_v14 = vmax.f32 %v3584_v55, 0.0 }
 0x2bf   :  { %5462 = vmatpush1.bf16.msra.mxu0 %v12108_v34  ;;  %5503 = vmatpush1.bf16.msra.mxu1 %v12109_v40  ;;  %v3517_v38 = vpop.f32.mrb[170].mxu0  ;;  %v3588_v13 = vpop.f32.mrb[170].mxu1  ;;  %v4608_v48 = vmax.f32 %v3515_v15, 0.0  ;;  %v4610_v22 = vmax.f32 %v3586_v10, 0.0  ;;  %v4967_v34 = vpack.c.bf16 %v4710_v52, %v4710_v52 }
 0x2c0   :  { %v4671_v5 = vmax.f32 %v3517_v38, 0.0  ;;  %v4673_v32 = vmax.f32 %v3588_v13, 0.0  ;;  %5463 = vmatprep.subr.bf16.mxu0 %v12110_v56  ;;  %5504 = vmatprep.subr.bf16.mxu1 %v12111_v0  ;;  %v3519_v59 = vpop.f32.mrb[171].mxu0  ;;  %v3590_v20 = vpop.f32.mrb[171].mxu1  ;;  %v12116_v38 = vld [vmem:[#allocation48_spill] sm:$0xff]  ;;  %v12117_v13 = vld [vmem:[#allocation49_spill] sm:$0xff] }
 0x2c1   :  { %v4672_v7 = vmax.f32 %v3519_v59, 0.0  ;;  %v4674_v17 = vmax.f32 %v3590_v20, 0.0  ;;  %v12122_v59 = vld [vmem:[#allocation67_spill] sm:$0xff]  ;;  %v12123_v20 = vld [vmem:[#allocation68_spill] sm:$0xff] }
 0x2c2   :  { %v10625_v37 = vpack.c.bf16 %v4671_v5, %v4607_v43  ;;  %v10627_v40 = vpack.c.bf16 %v4673_v32, %v4609_v14  ;;  %v5058_v43 = vsel %vm5020_vm2, %v4964_v46, 0  ;;  %v12120_v32 = vld [vmem:[#allocation55_spill] sm:$0xff]  ;;  %v4711_v46 = vmax.f32 %v12122_v59, 0.0  ;;  %v12130_v59 = vld [vmem:[#allocation57_spill] sm:$0xff] }
 0x2c3   :  { %v10629_v26 = vpack.c.bf16 %v4672_v7, %v4608_v48  ;;  %v10631_v55 = vpack.c.bf16 %v4674_v17, %v4610_v22  ;;  %5464 = vmatpush1.bf16.msra.mxu0 %v12116_v38  ;;  %5505 = vmatpush1.bf16.msra.mxu1 %v12117_v13  ;;  %v5064_v22 = vsel %vm5020_vm2, %v4966_v2, 0  ;;  %v4713_v2 = vmax.f32 %v12123_v20, 0.0  ;;  %v12124_v48 = vld [vmem:[#allocation53_spill] sm:$0xff]  ;;  %v12125_v7 = vld [vmem:[#allocation54_spill] sm:$0xff]  ;;  %v12126_v17 = vld [vmem:[#allocation59_spill] sm:$0xff] }
 0x2c4   :  { %12112 = vst [vmem:[#allocation17_spill] sm:$0xff] %v10625_v37  ;;  %12113 = vst [vmem:[#allocation38_spill] sm:$0xff] %v10627_v40  ;;  %8354 = vmatprep.subr.msk.bf16.mxu0 %vm5020_vm2, %v4965_v30  ;;  %8356 = vmatprep.subr.msk.bf16.mxu1 %vm5020_vm2, %v4967_v34  ;;  %v12121_v30 = vld [vmem:[#allocation56_spill] sm:$0xff]  ;;  %v12131_v20 = vld [vmem:[#allocation58_spill] sm:$0xff] }
 0x2c5   :  { %12114 = vst [vmem:[#allocation39_spill] sm:$0xff] %v10629_v26  ;;  %12115 = vst [vmem:[#allocation20_spill] sm:$0xff] %v10631_v55  ;;  %v10637_v15 = vpop.f32.mrb[172].mxu0  ;;  %v10639_v53 = vpop.f32.mrb[172].mxu1  ;;  %v12127_v34 = vld [vmem:[#allocation60_spill] sm:$0xff]  ;;  %v12132_v55 = vld [vmem:[#allocation63_spill] sm:$0xff] }
 0x2c6   :  { %v10641_v52 = vpop.f32.mrb[173].mxu0  ;;  %v10643_v10 = vpop.f32.mrb[173].mxu1  ;;  %v12133_v26 = vld [vmem:[#allocation64_spill] sm:$0xff] }
 0x2c7   :  { %12118 = vst [vmem:[#allocation21_spill] sm:$0xff] %v10641_v52  ;;  %12119 = vst [vmem:[#allocation40_spill] sm:$0xff] %v10643_v10  ;;  %5466 = vmatpush1.bf16.msra.mxu0 %v5058_v43  ;;  %5507 = vmatpush1.bf16.msra.mxu1 %v5064_v22  ;;  %v3527_v14 = vpop.f32.mrb[174].mxu0  ;;  %v3598_v5 = vpop.f32.mrb[174].mxu1  ;;  %v12128_v43 = vld [vmem:[#allocation69_spill] sm:$0xff] }
 0x2c8   :  { %5541 = vmatprep.subr.bf16.mxu0 %v12120_v32  ;;  %5582 = vmatprep.subr.bf16.mxu1 %v12121_v30  ;;  %v3528_v56 = vpop.f32.mrb[175].mxu0  ;;  %v3599_v0 = vpop.f32.mrb[175].mxu1  ;;  %v4712_v22 = vmax.f32 %v12128_v43, 0.0  ;;  %v12129_v14 = vld [vmem:[#allocation70_spill] sm:$0xff] }
 0x2c9   :  { %v4714_v5 = vmax.f32 %v12129_v14, 0.0  ;;  %v4968_v56 = vpack.c.bf16 %v4711_v46, %v4711_v46  ;;  %v4970_v0 = vpack.c.bf16 %v4713_v2, %v4713_v2 }
 0x2ca   :  { %8355 = vmatmul.mubr.msk.bf16.vlgmr.msra.gmra.mrb[12].mxu0 %vm5016_vm3, %v10513_v44  ;;  %8357 = vmatmul.mubr.msk.bf16.vlgmr.msra.gmra.mrb[12].mxu1 %vm5016_vm3, %v10513_v44  ;;  %v4969_v4 = vpack.c.bf16 %v4712_v22, %v4712_v22 }
 0x2cb   :  { %5542 = vmatpush1.bf16.msra.mxu0 %v12124_v48  ;;  %5583 = vmatpush1.bf16.msra.mxu1 %v12125_v7  ;;  %v5070_v22 = vsel %vm5020_vm2, %v4968_v56, 0 }
 0x2cc   :  { %5543 = vmatprep.subr.bf16.mxu0 %v12126_v17  ;;  %5584 = vmatprep.subr.bf16.mxu1 %v12127_v34 }
 0x2cd   :  { %v3635_v38 = vpop.f32.mrb[176].mxu0  ;;  %v3706_v13 = vpop.f32.mrb[176].mxu1  ;;  %5573 = vmatprep.mubr.bf16.mxu0 %v11937_v45  ;;  %5614 = vmatprep.mubr.bf16.mxu1 %v11937_v45 }
 0x2ce   :  { %v3637_v32 = vpop.f32.mrb[177].mxu0  ;;  %v3708_v30 = vpop.f32.mrb[177].mxu1  ;;  %v4355_v17 = vmax.f32 %v3635_v38, 0.0  ;;  %v4357_v34 = vmax.f32 %v3706_v13, 0.0 }
 0x2cf   :  { %5544 = vmatpush1.bf16.msra.mxu0 %v12130_v59  ;;  %5585 = vmatpush1.bf16.msra.mxu1 %v12131_v20  ;;  %v3639_v48 = vpop.f32.mrb[178].mxu0  ;;  %v3710_v7 = vpop.f32.mrb[178].mxu1  ;;  %v4356_v10 = vmax.f32 %v3637_v32, 0.0  ;;  %v4358_v52 = vmax.f32 %v3708_v30, 0.0  ;;  %v4971_v59 = vpack.c.bf16 %v4714_v5, %v4714_v5 }
 0x2d0   :  { %v4419_v40 = vmax.f32 %v3639_v48, 0.0  ;;  %v4421_v37 = vmax.f32 %v3710_v7, 0.0  ;;  %5545 = vmatprep.subr.bf16.mxu0 %v12132_v55  ;;  %5586 = vmatprep.subr.bf16.mxu1 %v12133_v26  ;;  %v3641_v43 = vpop.f32.mrb[179].mxu0  ;;  %v3712_v14 = vpop.f32.mrb[179].mxu1  ;;  %v12135_v48 = vld [vmem:[#allocation61_spill] sm:$0xff]  ;;  %v12136_v55 = vld [vmem:[#allocation62_spill] sm:$0xff] }
 0x2d1   :  { %v4420_v46 = vmax.f32 %v3641_v43, 0.0  ;;  %v4422_v2 = vmax.f32 %v3712_v14, 0.0 }
 0x2d2   :  { %v10667_v62 = vpack.c.bf16 %v4419_v40, %v4355_v17  ;;  %v10669_v20 = vpack.c.bf16 %v4421_v37, %v4357_v34  ;;  %v5076_v40 = vsel %vm5020_vm2, %v4970_v0, 0 }
 0x2d3   :  { %v10671_v38 = vpack.c.bf16 %v4420_v46, %v4356_v10  ;;  %v10673_v13 = vpack.c.bf16 %v4422_v2, %v4358_v52  ;;  %5546 = vmatpush1.bf16.msra.mxu0 %v12135_v48  ;;  %5587 = vmatpush1.bf16.msra.mxu1 %v12136_v55  ;;  %v12139_v48 = vld [vmem:[#allocation81_spill] sm:$0xff] }
 0x2d4   :  { %12134 = vst [vmem:[#allocation41_spill] sm:$0xff] %v10669_v20  ;;  %8358 = vmatprep.subr.msk.bf16.mxu0 %vm5020_vm2, %v4969_v4  ;;  %8360 = vmatprep.subr.msk.bf16.mxu1 %vm5020_vm2, %v4971_v59 }
 0x2d5   :  { %v3645_v26 = vpop.f32.mrb[180].mxu0  ;;  %v3716_v32 = vpop.f32.mrb[180].mxu1 }
 0x2d6   :  { %v3647_v37 = vpop.f32.mrb[181].mxu0  ;;  %v3718_v5 = vpop.f32.mrb[181].mxu1  ;;  %v4483_v30 = vmax.f32 %v3645_v26, 0.0  ;;  %v4485_v7 = vmax.f32 %v3716_v32, 0.0  ;;  %v12142_v32 = vld [vmem:[#allocation71_spill] sm:$0xff] }
 0x2d7   :  { %5548 = vmatpush1.bf16.msra.mxu0 %v5070_v22  ;;  %5589 = vmatpush1.bf16.msra.mxu1 %v5076_v40  ;;  %v3649_v52 = vpop.f32.mrb[182].mxu0  ;;  %v3720_v10 = vpop.f32.mrb[182].mxu1  ;;  %v4484_v14 = vmax.f32 %v3647_v37, 0.0  ;;  %v4486_v56 = vmax.f32 %v3718_v5, 0.0  ;;  %v12143_v22 = vld [vmem:[#allocation72_spill] sm:$0xff]  ;;  %v12144_v40 = vld [vmem:[#allocation75_spill] sm:$0xff] }
 0x2d8   :  { %v4547_v17 = vmax.f32 %v3649_v52, 0.0  ;;  %v4549_v34 = vmax.f32 %v3720_v10, 0.0  ;;  %5623 = vmatprep.subr.bf16.mxu0 %v10185_v60  ;;  %5664 = vmatprep.subr.bf16.mxu1 %v10187_v47  ;;  %v3651_v4 = vpop.f32.mrb[183].mxu0  ;;  %v3722_v43 = vpop.f32.mrb[183].mxu1  ;;  %v4715_v60 = vmax.f32 %v10246_v23, 0.0  ;;  %v4717_v47 = vmax.f32 %v12139_v48, 0.0 }
 0x2d9   :  { %v4548_v46 = vmax.f32 %v3651_v4, 0.0  ;;  %v4550_v0 = vmax.f32 %v3722_v43, 0.0  ;;  %v12145_v37 = vld [vmem:[#allocation76_spill] sm:$0xff]  ;;  %v12146_v23 = vld [vmem:[#allocation82_spill] sm:$0xff] }
 0x2da   :  { %v10683_v2 = vpack.c.bf16 %v4547_v17, %v4483_v30  ;;  %v10685_v59 = vpack.c.bf16 %v4549_v34, %v4485_v7  ;;  %8359 = vmatmul.mubr.msk.bf16.vlgmr.msra.gmra.mrb[16].mxu0 %vm5016_vm3, %v10513_v44  ;;  %8361 = vmatmul.mubr.msk.bf16.vlgmr.msra.gmra.mrb[16].mxu1 %vm5016_vm3, %v10513_v44  ;;  %v4716_v10 = vmax.f32 %v12146_v23, 0.0  ;;  %v12147_v30 = vld [vmem:[#allocation83_spill] sm:$0xff]  ;;  %v4972_v4 = vpack.c.bf16 %v4715_v60, %v4715_v60 }
 0x2db   :  { %v10693_v55 = vpack.c.bf16 %v4548_v46, %v4484_v14  ;;  %v10695_v26 = vpack.c.bf16 %v4550_v0, %v4486_v56  ;;  %5624 = vmatpush1.bf16.msra.mxu0 %v12142_v32  ;;  %5665 = vmatpush1.bf16.msra.mxu1 %v12143_v22  ;;  %v4718_v7 = vmax.f32 %v12147_v30, 0.0  ;;  %v4974_v43 = vpack.c.bf16 %v4717_v47, %v4717_v47  ;;  %v12148_v14 = vld [vmem:[#allocation73_spill] sm:$0xff]  ;;  %v12149_v56 = vld [vmem:[#allocation74_spill] sm:$0xff] }
 0x2dc   :  { %12137 = vst [vmem:[#allocation28_spill] sm:$0xff] %v10683_v2  ;;  %12138 = vst [vmem:[#allocation29_spill] sm:$0xff] %v10685_v59  ;;  %5625 = vmatprep.subr.bf16.mxu0 %v12144_v40  ;;  %5666 = vmatprep.subr.bf16.mxu1 %v12145_v37  ;;  %v12150_v37 = vld [vmem:[#allocation79_spill] sm:$0xff]  ;;  %v12151_v59 = vld [vmem:[#allocation80_spill] sm:$0xff] }
 0x2dd   :  { %12140 = vst [vmem:[#allocation42_spill] sm:$0xff] %v10693_v55  ;;  %12141 = vst [vmem:[#allocation43_spill] sm:$0xff] %v10695_v26  ;;  %v3655_v5 = vpop.f32.mrb[184].mxu0  ;;  %v3726_v52 = vpop.f32.mrb[184].mxu1  ;;  %5655 = vmatprep.mubr.bf16.mxu0 %v11937_v45  ;;  %5696 = vmatprep.mubr.bf16.mxu1 %v11937_v45  ;;  %v4973_v55 = vpack.c.bf16 %v4716_v10, %v4716_v10 }
 0x2de   :  { %v3657_v17 = vpop.f32.mrb[185].mxu0  ;;  %v3728_v34 = vpop.f32.mrb[185].mxu1  ;;  %v4611_v48 = vmax.f32 %v3655_v5, 0.0  ;;  %v4613_v32 = vmax.f32 %v3726_v52, 0.0 }
 0x2df   :  { %5626 = vmatpush1.bf16.msra.mxu0 %v12148_v14  ;;  %5667 = vmatpush1.bf16.msra.mxu1 %v12149_v56  ;;  %v3659_v46 = vpop.f32.mrb[186].mxu0  ;;  %v3730_v0 = vpop.f32.mrb[186].mxu1  ;;  %v4612_v2 = vmax.f32 %v3657_v17, 0.0  ;;  %v4614_v26 = vmax.f32 %v3728_v34, 0.0  ;;  %v4975_v14 = vpack.c.bf16 %v4718_v7, %v4718_v7  ;;  %v5082_v7 = vsel %vm5020_vm2, %v4972_v4, 0 }
 0x2e0   :  { %v4675_v22 = vmax.f32 %v3659_v46, 0.0  ;;  %v4677_v40 = vmax.f32 %v3730_v0, 0.0  ;;  %5627 = vmatprep.subr.bf16.mxu0 %v12150_v37  ;;  %5668 = vmatprep.subr.bf16.mxu1 %v12151_v59  ;;  %v3661_v23 = vpop.f32.mrb[187].mxu0  ;;  %v3732_v30 = vpop.f32.mrb[187].mxu1  ;;  %v12152_v46 = vld [vmem:[#allocation77_spill] sm:$0xff]  ;;  %v12153_v0 = vld [vmem:[#allocation78_spill] sm:$0xff] }
 0x2e1   :  { %v4676_v60 = vmax.f32 %v3661_v23, 0.0  ;;  %v4678_v47 = vmax.f32 %v3732_v30, 0.0  ;;  %v5088_v17 = vsel %vm5020_vm2, %v4974_v43, 0  ;;  %v4719_v4 = vmax.f32 %v10335_v3, 0.0 }
 0x2e2   :  { %v10709_v20 = vpack.c.bf16 %v4675_v22, %v4611_v48  ;;  %v10711_v56 = vpack.c.bf16 %v4677_v40, %v4613_v32  ;;  %v4721_v43 = vmax.f32 %v10337_v35, 0.0  ;;  %v4720_v22 = vmax.f32 %v10340_v24, 0.0 }
 0x2e3   :  { %v10713_v5 = vpack.c.bf16 %v4676_v60, %v4612_v2  ;;  %v10715_v52 = vpack.c.bf16 %v4678_v47, %v4614_v26  ;;  %5628 = vmatpush1.bf16.msra.mxu0 %v12152_v46  ;;  %5669 = vmatpush1.bf16.msra.mxu1 %v12153_v0  ;;  %v4722_v3 = vmax.f32 %v10342_v8, 0.0  ;;  %v4976_v37 = vpack.c.bf16 %v4719_v4, %v4719_v4 }
 0x2e4   :  { %8362 = vmatprep.subr.msk.bf16.mxu0 %vm5020_vm2, %v4973_v55  ;;  %8364 = vmatprep.subr.msk.bf16.mxu1 %vm5020_vm2, %v4975_v14 }
 0x2e5   :  { %v10721_v59 = vpop.f32.mrb[188].mxu0  ;;  %v10723_v10 = vpop.f32.mrb[188].mxu1 }
 0x2e6   :  { %v10727_v2 = vpop.f32.mrb[189].mxu0  ;;  %v10729_v26 = vpop.f32.mrb[189].mxu1 }
 0x2e7   :  { %5630 = vmatpush1.bf16.msra.mxu0 %v5082_v7  ;;  %5671 = vmatpush1.bf16.msra.mxu1 %v5088_v17  ;;  %v3669_v34 = vpop.f32.mrb[190].mxu0  ;;  %v3740_v48 = vpop.f32.mrb[190].mxu1  ;;  %v4977_v7 = vpack.c.bf16 %v4720_v22, %v4720_v22 }
 0x2e8   :  { %5705 = vmatprep.subr.bf16.mxu0 %v10288_v61  ;;  %5746 = vmatprep.subr.bf16.mxu1 %v10290_v36  ;;  %v3670_v55 = vpop.f32.mrb[191].mxu0  ;;  %v3741_v32 = vpop.f32.mrb[191].mxu1 }
 0x2e9   :  { %v5094_v55 = vsel %vm5020_vm2, %v4976_v37, 0 }
 0x2ea   :  { %8363 = vmatmul.mubr.msk.bf16.vlgmr.msra.gmra.mrb[20].mxu0 %vm5016_vm3, %v10513_v44  ;;  %8365 = vmatmul.mubr.msk.bf16.vlgmr.msra.gmra.mrb[20].mxu1 %vm5016_vm3, %v10513_v44 }
 0x2eb   :  { %5706 = vmatpush1.bf16.msra.mxu0 %v10280_v39  ;;  %5747 = vmatpush1.bf16.msra.mxu1 %v10282_v27  ;;  %v4978_v39 = vpack.c.bf16 %v4721_v43, %v4721_v43 }
 0x2ec   :  { %5707 = vmatprep.subr.bf16.mxu0 %v10304_v9  ;;  %5748 = vmatprep.subr.bf16.mxu1 %v10306_v33 }
 0x2ed   :  { %v3777_v61 = vpop.f32.mrb[192].mxu0  ;;  %v3848_v36 = vpop.f32.mrb[192].mxu1  ;;  %5737 = vmatprep.mubr.bf16.mxu0 %v11937_v45  ;;  %5778 = vmatprep.mubr.bf16.mxu1 %v11937_v45  ;;  %v5100_v32 = vsel %vm5020_vm2, %v4978_v39, 0 }
 0x2ee   :  { %v3779_v40 = vpop.f32.mrb[193].mxu0  ;;  %v3850_v35 = vpop.f32.mrb[193].mxu1  ;;  %v4359_v33 = vmax.f32 %v3777_v61, 0.0  ;;  %v4361_v23 = vmax.f32 %v3848_v36, 0.0 }
 0x2ef   :  { %5708 = vmatpush1.bf16.msra.mxu0 %v10295_v19  ;;  %5749 = vmatpush1.bf16.msra.mxu1 %v10297_v63  ;;  %v3781_v27 = vpop.f32.mrb[194].mxu0  ;;  %v3852_v9 = vpop.f32.mrb[194].mxu1  ;;  %v4360_v47 = vmax.f32 %v3779_v40, 0.0  ;;  %v4362_v14 = vmax.f32 %v3850_v35, 0.0  ;;  %v4979_v19 = vpack.c.bf16 %v4722_v3, %v4722_v3 }
 0x2f0   :  { %v4423_v30 = vmax.f32 %v3781_v27, 0.0  ;;  %v4425_v60 = vmax.f32 %v3852_v9, 0.0  ;;  %5709 = vmatprep.subr.bf16.mxu0 %v10326_v12  ;;  %5750 = vmatprep.subr.bf16.mxu1 %v10328_v28  ;;  %v3783_v24 = vpop.f32.mrb[195].mxu0  ;;  %v3854_v8 = vpop.f32.mrb[195].mxu1 }
 0x2f1   :  { %v4424_v46 = vmax.f32 %v3783_v24, 0.0  ;;  %v4426_v0 = vmax.f32 %v3854_v8, 0.0  ;;  %v12154_v24 = vld [vmem:[#allocation84_spill] sm:$0xff]  ;;  %v12155_v8 = vld [vmem:[#allocation87_spill] sm:$0xff] }
 0x2f2   :  { %v10751_v17 = vpack.c.bf16 %v4423_v30, %v4359_v33  ;;  %v10753_v63 = vpack.c.bf16 %v4425_v60, %v4361_v23 }
 0x2f3   :  { %v10755_v34 = vpack.c.bf16 %v4424_v46, %v4360_v47  ;;  %v10757_v48 = vpack.c.bf16 %v4426_v0, %v4362_v14  ;;  %5710 = vmatpush1.bf16.msra.mxu0 %v10316_v29  ;;  %5751 = vmatpush1.bf16.msra.mxu1 %v10318_v1  ;;  %v12156_v47 = vld [vmem:[#allocation88_spill] sm:$0xff]  ;;  %v12158_v0 = vld [vmem:[#allocation93_spill] sm:$0xff] }
 0x2f4   :  { %8366 = vmatprep.subr.msk.bf16.mxu0 %vm5020_vm2, %v4977_v7  ;;  %8368 = vmatprep.subr.msk.bf16.mxu1 %vm5020_vm2, %v4979_v19  ;;  %v4726_v7 = vmax.f32 %v12158_v0, 0.0 }
 0x2f5   :  { %v3787_v12 = vpop.f32.mrb[196].mxu0  ;;  %v3858_v28 = vpop.f32.mrb[196].mxu1 }
 0x2f6   :  { %v3789_v4 = vpop.f32.mrb[197].mxu0  ;;  %v3860_v43 = vpop.f32.mrb[197].mxu1  ;;  %v4487_v22 = vmax.f32 %v3787_v12, 0.0  ;;  %v4489_v29 = vmax.f32 %v3858_v28, 0.0 }
 0x2f7   :  { %5712 = vmatpush1.bf16.msra.mxu0 %v5094_v55  ;;  %5753 = vmatpush1.bf16.msra.mxu1 %v5100_v32  ;;  %v3791_v61 = vpop.f32.mrb[198].mxu0  ;;  %v3862_v36 = vpop.f32.mrb[198].mxu1  ;;  %v4488_v27 = vmax.f32 %v3789_v4, 0.0  ;;  %v4490_v37 = vmax.f32 %v3860_v43, 0.0  ;;  %v12159_v55 = vld [vmem:[#allocation85_spill] sm:$0xff]  ;;  %v12160_v32 = vld [vmem:[#allocation86_spill] sm:$0xff] }
 0x2f8   :  { %v4551_v3 = vmax.f32 %v3791_v61, 0.0  ;;  %v4553_v1 = vmax.f32 %v3862_v36, 0.0  ;;  %5787 = vmatprep.subr.bf16.mxu0 %v10368_v54  ;;  %5828 = vmatprep.subr.bf16.mxu1 %v10370_v11  ;;  %v3793_v40 = vpop.f32.mrb[199].mxu0  ;;  %v3864_v35 = vpop.f32.mrb[199].mxu1  ;;  %v4723_v54 = vmax.f32 %v10406_v6, 0.0  ;;  %v4725_v11 = vmax.f32 %v10408_v31, 0.0 }
 0x2f9   :  { %v4552_v9 = vmax.f32 %v3793_v40, 0.0  ;;  %v4554_v39 = vmax.f32 %v3864_v35, 0.0  ;;  %v12157_v6 = vld [vmem:[#allocation92_spill] sm:$0xff] }
 0x2fa   :  { %v10767_v33 = vpack.c.bf16 %v4551_v3, %v4487_v22  ;;  %v10769_v23 = vpack.c.bf16 %v4553_v1, %v4489_v29  ;;  %8367 = vmatmul.mubr.msk.bf16.vlgmr.msra.gmra.mrb[24].mxu0 %vm5016_vm3, %v10513_v44  ;;  %8369 = vmatmul.mubr.msk.bf16.vlgmr.msra.gmra.mrb[24].mxu1 %vm5016_vm3, %v10513_v44  ;;  %v4724_v31 = vmax.f32 %v12157_v6, 0.0  ;;  %v4980_v28 = vpack.c.bf16 %v4723_v54, %v4723_v54  ;;  %v12161_v3 = vld [vmem:[#allocation90_spill] sm:$0xff]  ;;  %v12162_v1 = vld [vmem:[#allocation91_spill] sm:$0xff]  ;;  %v12165_v6 = vld [vmem:[#allocation89_spill] sm:$0xff] }
 0x2fb   :  { %v10777_v30 = vpack.c.bf16 %v4552_v9, %v4488_v27  ;;  %v10779_v60 = vpack.c.bf16 %v4554_v39, %v4490_v37  ;;  %5788 = vmatpush1.bf16.msra.mxu0 %v10360_v42  ;;  %5829 = vmatpush1.bf16.msra.mxu1 %v12154_v24  ;;  %v4982_v42 = vpack.c.bf16 %v4725_v11, %v4725_v11 }
 0x2fc   :  { %5789 = vmatprep.subr.bf16.mxu0 %v12155_v8  ;;  %5830 = vmatprep.subr.bf16.mxu1 %v12156_v47  ;;  %v4981_v54 = vpack.c.bf16 %v4724_v31, %v4724_v31  ;;  %v4983_v11 = vpack.c.bf16 %v4726_v7, %v4726_v7  ;;  %v5106_v7 = vsel %vm5020_vm2, %v4980_v28, 0  ;;  %v4727_v28 = vmax.f32 %v10476_v21, 0.0 }
 0x2fd   :  { %v3797_v14 = vpop.f32.mrb[200].mxu0  ;;  %v3868_v46 = vpop.f32.mrb[200].mxu1  ;;  %5819 = vmatprep.mubr.bf16.mxu0 %v11937_v45  ;;  %5860 = vmatprep.mubr.bf16.mxu1 %v11937_v45 }
 0x2fe   :  { %v3799_v19 = vpop.f32.mrb[201].mxu0  ;;  %v3870_v12 = vpop.f32.mrb[201].mxu1  ;;  %v4615_v61 = vmax.f32 %v3797_v14, 0.0  ;;  %v4617_v36 = vmax.f32 %v3868_v46, 0.0  ;;  %v12164_v46 = vld [vmem:[#allocation15_spill] sm:$0xff] }
 0x2ff   :  { %5790 = vmatpush1.bf16.msra.mxu0 %v12159_v55  ;;  %5831 = vmatpush1.bf16.msra.mxu1 %v12160_v32  ;;  %v3801_v4 = vpop.f32.mrb[202].mxu0  ;;  %v3872_v43 = vpop.f32.mrb[202].mxu1  ;;  %v4616_v27 = vmax.f32 %v3799_v19, 0.0  ;;  %v4618_v37 = vmax.f32 %v3870_v12, 0.0  ;;  %v5112_v19 = vsel %vm5020_vm2, %v4982_v42, 0  ;;  %v12168_v42 = vld [vmem:[#allocation12_spill] sm:$0xff] }
 0x300   :  { %v4679_v22 = vmax.f32 %v3801_v4, 0.0  ;;  %v4681_v29 = vmax.f32 %v3872_v43, 0.0  ;;  %5791 = vmatprep.subr.bf16.mxu0 %v12161_v3  ;;  %5832 = vmatprep.subr.bf16.mxu1 %v12162_v1  ;;  %v3803_v40 = vpop.f32.mrb[203].mxu0  ;;  %v3874_v35 = vpop.f32.mrb[203].mxu1  ;;  %v12166_v43 = vld [vmem:[#allocation96_spill] sm:$0xff]  ;;  %v12169_v3 = vld [vmem:[#allocation94_spill] sm:$0xff] }
 0x301   :  { %v4680_v9 = vmax.f32 %v3803_v40, 0.0  ;;  %v4682_v39 = vmax.f32 %v3874_v35, 0.0  ;;  %v12170_v1 = vld [vmem:[#allocation95_spill] sm:$0xff]  ;;  %v12171_v40 = vld [vmem:[#allocation10_spill] sm:$0xff] }
 0x302   :  { %v10793_v24 = vpack.c.bf16 %v4679_v22, %v4615_v61  ;;  %v10795_v8 = vpack.c.bf16 %v4681_v29, %v4617_v36  ;;  %v12167_v61 = vld [vmem:[#allocation97_spill] sm:$0xff]  ;;  %v4729_v29 = vmax.f32 %v12168_v42, 0.0  ;;  %v12172_v35 = vld [vmem:[#allocation11_spill] sm:$0xff]  ;;  %v12177_v42 = vld [vmem:[#allocation18_spill] sm:$0xff] }
 0x303   :  { %v10797_v47 = vpack.c.bf16 %v4680_v9, %v4616_v27  ;;  %v10799_v14 = vpack.c.bf16 %v4682_v39, %v4618_v37  ;;  %5792 = vmatpush1.bf16.msra.mxu0 %v12164_v46  ;;  %5833 = vmatpush1.bf16.msra.mxu1 %v12165_v6  ;;  %v12173_v9 = vld [vmem:[#allocation5_spill] sm:$0xff]  ;;  %v12174_v39 = vld [vmem:[#allocation6_spill] sm:$0xff]  ;;  %v4984_v46 = vpack.c.bf16 %v4727_v28, %v4727_v28 }
 0x304   :  { %12163 = vst [vmem:[#allocation32_spill] sm:$0xff] %v10795_v8  ;;  %8370 = vmatprep.subr.msk.bf16.mxu0 %vm5020_vm2, %v4981_v54  ;;  %8372 = vmatprep.subr.msk.bf16.mxu1 %vm5020_vm2, %v4983_v11  ;;  %v4730_v21 = vmax.f32 %v12174_v39, 0.0  ;;  %v4986_v6 = vpack.c.bf16 %v4729_v29, %v4729_v29 }
 0x305   :  { %v10805_v0 = vpop.f32.mrb[204].mxu0  ;;  %v10807_v31 = vpop.f32.mrb[204].mxu1 }
 0x306   :  { %v10811_v12 = vpop.f32.mrb[205].mxu0  ;;  %v10813_v55 = vpop.f32.mrb[205].mxu1 }
 0x307   :  { %5794 = vmatpush1.bf16.msra.mxu0 %v5106_v7  ;;  %5835 = vmatpush1.bf16.msra.mxu1 %v5112_v19  ;;  %v3811_v32 = vpop.f32.mrb[206].mxu0  ;;  %v3882_v4 = vpop.f32.mrb[206].mxu1  ;;  %v12175_v7 = vld [vmem:[#allocation9_spill] sm:$0xff]  ;;  %v12176_v19 = vld [vmem:[#allocation98_spill] sm:$0xff] }
 0x308   :  { %5869 = vmatprep.subr.bf16.mxu0 %v12166_v43  ;;  %5910 = vmatprep.subr.bf16.mxu1 %v12167_v61  ;;  %v3812_v36 = vpop.f32.mrb[207].mxu0  ;;  %v3883_v22 = vpop.f32.mrb[207].mxu1 }
 0x30a   :  { %8371 = vmatmul.mubr.msk.bf16.vlgmr.msra.gmra.mrb[28].mxu0 %vm5016_vm3, %v10513_v44  ;;  %8373 = vmatmul.mubr.msk.bf16.vlgmr.msra.gmra.mrb[28].mxu1 %vm5016_vm3, %v10513_v44  ;;  %v4728_v44 = vmax.f32 %v12173_v9, 0.0 }
 0x30b   :  { %5870 = vmatpush1.bf16.msra.mxu0 %v12169_v3  ;;  %5911 = vmatpush1.bf16.msra.mxu1 %v12170_v1  ;;  %v12178_v3 = vld [vmem:[#allocation19_spill] sm:$0xff] }
 0x30c   :  { %5871 = vmatprep.subr.bf16.mxu0 %v12171_v40  ;;  %5912 = vmatprep.subr.bf16.mxu1 %v12172_v35  ;;  %v4985_v39 = vpack.c.bf16 %v4728_v44, %v4728_v44  ;;  %v5118_v44 = vsel %vm5020_vm2, %v4984_v46, 0 }
 0x30d   :  { %v3919_v27 = vpop.f32.mrb[208].mxu0  ;;  %v3990_v37 = vpop.f32.mrb[208].mxu1  ;;  %5901 = vmatprep.mubr.bf16.mxu0 %v11937_v45  ;;  %5942 = vmatprep.mubr.bf16.mxu1 %v11937_v45 }
 0x30e   :  { %v3921_v54 = vpop.f32.mrb[209].mxu0  ;;  %v3992_v11 = vpop.f32.mrb[209].mxu1  ;;  %v4363_v43 = vmax.f32 %v3919_v27, 0.0  ;;  %v4365_v61 = vmax.f32 %v3990_v37, 0.0 }
 0x30f   :  { %5872 = vmatpush1.bf16.msra.mxu0 %v12175_v7  ;;  %5913 = vmatpush1.bf16.msra.mxu1 %v12176_v19  ;;  %v3923_v32 = vpop.f32.mrb[210].mxu0  ;;  %v3994_v4 = vpop.f32.mrb[210].mxu1  ;;  %v4364_v35 = vmax.f32 %v3921_v54, 0.0  ;;  %v4366_v9 = vmax.f32 %v3992_v11, 0.0  ;;  %v4987_v7 = vpack.c.bf16 %v4730_v21, %v4730_v21  ;;  %v5124_v21 = vsel %vm5020_vm2, %v4986_v6, 0 }
 0x310   :  { %v4427_v36 = vmax.f32 %v3923_v32, 0.0  ;;  %v4429_v22 = vmax.f32 %v3994_v4, 0.0  ;;  %5873 = vmatprep.subr.bf16.mxu0 %v12177_v42  ;;  %5914 = vmatprep.subr.bf16.mxu1 %v12178_v3  ;;  %v3925_v1 = vpop.f32.mrb[211].mxu0  ;;  %v3996_v40 = vpop.f32.mrb[211].mxu1  ;;  %v12179_v32 = vld [vmem:[#allocation4_spill] sm:$0xff]  ;;  %v12180_v4 = vld [vmem:[#allocation3_spill] sm:$0xff] }
 0x311   :  { %v4428_v28 = vmax.f32 %v3925_v1, 0.0  ;;  %v4430_v29 = vmax.f32 %v3996_v40, 0.0 }
 0x312   :  { %v10835_v8 = vpack.c.bf16 %v4427_v36, %v4363_v43  ;;  %v10837_v19 = vpack.c.bf16 %v4429_v22, %v4365_v61 }
 0x313   :  { %v10839_v27 = vpack.c.bf16 %v4428_v28, %v4364_v35  ;;  %v10841_v37 = vpack.c.bf16 %v4430_v29, %v4366_v9  ;;  %5874 = vmatpush1.bf16.msra.mxu0 %v12179_v32  ;;  %5915 = vmatpush1.bf16.msra.mxu1 %v12180_v4  ;;  %v12181_v35 = vld [vmem:[#allocation7_spill] sm:$0xff]  ;;  %v12182_v9 = vld [vmem:[#allocation8_spill] sm:$0xff] }
 0x314   :  { %8374 = vmatprep.subr.msk.bf16.mxu0 %vm5020_vm2, %v4985_v39  ;;  %8376 = vmatprep.subr.msk.bf16.mxu1 %vm5020_vm2, %v4987_v7 }
 0x315   :  { %v3929_v54 = vpop.f32.mrb[212].mxu0  ;;  %v4000_v11 = vpop.f32.mrb[212].mxu1 }
 0x316   :  { %v3931_v43 = vpop.f32.mrb[213].mxu0  ;;  %v4002_v61 = vpop.f32.mrb[213].mxu1  ;;  %v4491_v42 = vmax.f32 %v3929_v54, 0.0  ;;  %v4493_v3 = vmax.f32 %v4000_v11, 0.0  ;;  %v10858_v54 = vld [vmem:[%s11925_s3] sm:$0x3] }
 0x317   :  { %5876 = vmatpush1.bf16.msra.mxu0 %v5118_v44  ;;  %5917 = vmatpush1.bf16.msra.mxu1 %v5124_v21  ;;  %v3933_v36 = vpop.f32.mrb[214].mxu0  ;;  %v4004_v22 = vpop.f32.mrb[214].mxu1  ;;  %v4492_v39 = vmax.f32 %v3931_v43, 0.0  ;;  %v4494_v46 = vmax.f32 %v4002_v61, 0.0  ;;  %v4731_v11 = vmax.f32 %v10553_v18, 0.0  ;;  %v4733_v44 = vmax.f32 %v10555_v25, 0.0 }
 0x318   :  { %v4555_v1 = vmax.f32 %v3933_v36, 0.0  ;;  %v4557_v40 = vmax.f32 %v4004_v22, 0.0  ;;  %5951 = vmatprep.subr.bf16.mxu0 %v12181_v35  ;;  %5992 = vmatprep.subr.bf16.mxu1 %v12182_v9  ;;  %v3935_v28 = vpop.f32.mrb[215].mxu0  ;;  %v4006_v29 = vpop.f32.mrb[215].mxu1  ;;  %v12186_v61 = vld [vmem:[#allocation22_spill] sm:$0xff]  ;;  %v12187_v36 = vld [vmem:[#allocation23_spill] sm:$0xff] }
 0x319   :  { %v4556_v7 = vmax.f32 %v3935_v28, 0.0  ;;  %v4558_v6 = vmax.f32 %v4006_v29, 0.0  ;;  %v12188_v22 = vld [vmem:[#allocation24_spill] sm:$0xff]  ;;  %v4732_v18 = vmax.f32 %v10557_v58, 0.0  ;;  %v4734_v25 = vmax.f32 %v10559_v50, 0.0  ;;  %v12190_v29 = vld [vmem:[#allocation30_spill] sm:$0xff] }
 0x31a   :  { %v10851_v32 = vpack.c.bf16 %v4555_v1, %v4491_v42  ;;  %v10853_v4 = vpack.c.bf16 %v4557_v40, %v4493_v3  ;;  %8375 = vmatmul.mubr.msk.bf16.vlgmr.msra.gmra.mrb[32].mxu0 %vm5016_vm3, %v10858_v54  ;;  %8377 = vmatmul.mubr.msk.bf16.vlgmr.msra.gmra.mrb[32].mxu1 %vm5016_vm3, %v10858_v54  ;;  %v12189_v42 = vld [vmem:[#allocation25_spill] sm:$0xff]  ;;  %v4988_v9 = vpack.c.bf16 %v4731_v11, %v4731_v11 }
 0x31b   :  { %v10866_v21 = vpack.c.bf16 %v4556_v7, %v4492_v39  ;;  %v10868_v43 = vpack.c.bf16 %v4558_v6, %v4494_v46  ;;  %5952 = vmatpush1.bf16.msra.mxu0 %v12186_v61  ;;  %5993 = vmatpush1.bf16.msra.mxu1 %v12187_v36  ;;  %v4990_v28 = vpack.c.bf16 %v4733_v44, %v4733_v44  ;;  %v12191_v39 = vld [vmem:[#allocation31_spill] sm:$0xff] }
 0x31c   :  { %12183 = vst [vmem:[#allocation33_spill] sm:$0xff] %v10851_v32  ;;  %12184 = vst [vmem:[#allocation36_spill] sm:$0xff] %v10853_v4  ;;  %5953 = vmatprep.subr.bf16.mxu0 %v12188_v22  ;;  %5994 = vmatprep.subr.bf16.mxu1 %v12189_v42  ;;  %v4989_v32 = vpack.c.bf16 %v4732_v18, %v4732_v18 }
 0x31d   :  { %12185 = vst [vmem:[#allocation37_spill] sm:$0xff] %v10868_v43  ;;  %v3939_v3 = vpop.f32.mrb[216].mxu0  ;;  %v4010_v1 = vpop.f32.mrb[216].mxu1  ;;  %5983 = vmatprep.mubr.bf16.mxu0 %v11937_v45  ;;  %6024 = vmatprep.mubr.bf16.mxu1 %v11937_v45 }
 0x31e   :  { %v3941_v40 = vpop.f32.mrb[217].mxu0  ;;  %v4012_v35 = vpop.f32.mrb[217].mxu1  ;;  %v4619_v6 = vmax.f32 %v3939_v3, 0.0  ;;  %v4621_v61 = vmax.f32 %v4010_v1, 0.0 }
 0x31f   :  { %5954 = vmatpush1.bf16.msra.mxu0 %v12190_v29  ;;  %5995 = vmatpush1.bf16.msra.mxu1 %v12191_v39  ;;  %v3943_v46 = vpop.f32.mrb[218].mxu0  ;;  %v4014_v7 = vpop.f32.mrb[218].mxu1  ;;  %v4620_v42 = vmax.f32 %v3941_v40, 0.0  ;;  %v4622_v4 = vmax.f32 %v4012_v35, 0.0  ;;  %v4991_v29 = vpack.c.bf16 %v4734_v25, %v4734_v25  ;;  %v5130_v25 = vsel %vm5020_vm2, %v4988_v9, 0 }
 0x320   :  { %v4683_v36 = vmax.f32 %v3943_v46, 0.0  ;;  %v4685_v22 = vmax.f32 %v4014_v7, 0.0  ;;  %5955 = vmatprep.subr.bf16.mxu0 %v10545_v16  ;;  %5996 = vmatprep.subr.bf16.mxu1 %v10547_v57  ;;  %v3945_v58 = vpop.f32.mrb[219].mxu0  ;;  %v4016_v50 = vpop.f32.mrb[219].mxu1  ;;  %v12195_v46 = vld [vmem:[#allocation13_spill] sm:$0xff]  ;;  %v12196_v16 = vld [vmem:[#allocation14_spill] sm:$0xff] }
 0x321   :  { %v4684_v11 = vmax.f32 %v3945_v58, 0.0  ;;  %v4686_v44 = vmax.f32 %v4016_v50, 0.0  ;;  %v5136_v40 = vsel %vm5020_vm2, %v4990_v28, 0  ;;  %v4735_v9 = vmax.f32 %v10637_v15, 0.0  ;;  %v12200_v50 = vld [vmem:[#allocation21_spill] sm:$0xff] }
 0x322   :  { %v10882_v43 = vpack.c.bf16 %v4683_v36, %v4619_v6  ;;  %v10884_v39 = vpack.c.bf16 %v4685_v22, %v4621_v61  ;;  %v4737_v28 = vmax.f32 %v10639_v53, 0.0  ;;  %v12197_v36 = vld [vmem:[#allocation34_spill] sm:$0xff]  ;;  %v12198_v22 = vld [vmem:[#allocation27_spill] sm:$0xff] }
 0x323   :  { %v10886_v3 = vpack.c.bf16 %v4684_v11, %v4620_v42  ;;  %v10888_v1 = vpack.c.bf16 %v4686_v44, %v4622_v4  ;;  %5956 = vmatpush1.bf16.msra.mxu0 %v12195_v46  ;;  %5997 = vmatpush1.bf16.msra.mxu1 %v12196_v16  ;;  %v4736_v42 = vmax.f32 %v12200_v50, 0.0  ;;  %v12201_v11 = vld [vmem:[#allocation40_spill] sm:$0xff]  ;;  %v12202_v46 = vld [vmem:[#allocation35_spill] sm:$0xff]  ;;  %v12203_v16 = vld [vmem:[#allocation26_spill] sm:$0xff] }
 0x324   :  { %12192 = vst [vmem:[#allocation50_spill] sm:$0xff] %v10882_v43  ;;  %12193 = vst [vmem:[#allocation44_spill] sm:$0xff] %v10884_v39  ;;  %8378 = vmatprep.subr.msk.bf16.mxu0 %vm5020_vm2, %v4989_v32  ;;  %8380 = vmatprep.subr.msk.bf16.mxu1 %vm5020_vm2, %v4991_v29  ;;  %v4738_v15 = vmax.f32 %v12201_v11, 0.0  ;;  %v4992_v29 = vpack.c.bf16 %v4735_v9, %v4735_v9 }
 0x325   :  { %12194 = vst [vmem:[#allocation45_spill] sm:$0xff] %v10888_v1  ;;  %v10894_v57 = vpop.f32.mrb[220].mxu0  ;;  %v10896_v18 = vpop.f32.mrb[220].mxu1  ;;  %v4993_v43 = vpack.c.bf16 %v4736_v42, %v4736_v42 }
 0x326   :  { %v10900_v35 = vpop.f32.mrb[221].mxu0  ;;  %v10902_v4 = vpop.f32.mrb[221].mxu1  ;;  %v5142_v42 = vsel %vm5020_vm2, %v4992_v29, 0 }
 0x327   :  { %5958 = vmatpush1.bf16.msra.mxu0 %v5130_v25  ;;  %5999 = vmatpush1.bf16.msra.mxu1 %v5136_v40  ;;  %v3953_v7 = vpop.f32.mrb[222].mxu0  ;;  %v4024_v6 = vpop.f32.mrb[222].mxu1 }
 0x328   :  { %6033 = vmatprep.subr.bf16.mxu0 %v10587_v49  ;;  %6074 = vmatprep.subr.bf16.mxu1 %v10589_v51  ;;  %v3954_v32 = vpop.f32.mrb[223].mxu0  ;;  %v4025_v61 = vpop.f32.mrb[223].mxu1  ;;  %v12199_v49 = vld [vmem:[#allocation16_spill] sm:$0xff] }
 0x32a   :  { %8379 = vmatmul.mubr.msk.bf16.vlgmr.msra.gmra.mrb[36].mxu0 %vm5016_vm3, %v10858_v54  ;;  %8381 = vmatmul.mubr.msk.bf16.vlgmr.msra.gmra.mrb[36].mxu1 %vm5016_vm3, %v10858_v54 }
 0x32b   :  { %6034 = vmatpush1.bf16.msra.mxu0 %v10583_v41  ;;  %6075 = vmatpush1.bf16.msra.mxu1 %v12197_v36  ;;  %v4994_v41 = vpack.c.bf16 %v4737_v28, %v4737_v28  ;;  %v12204_v36 = vld [vmem:[#allocation39_spill] sm:$0xff] }
 0x32c   :  { %6035 = vmatprep.subr.bf16.mxu0 %v12198_v22  ;;  %6076 = vmatprep.subr.bf16.mxu1 %v12199_v49  ;;  %v12205_v22 = vld [vmem:[#allocation20_spill] sm:$0xff] }
 0x32d   :  { %v4061_v51 = vpop.f32.mrb[224].mxu0  ;;  %v4132_v58 = vpop.f32.mrb[224].mxu1  ;;  %6065 = vmatprep.mubr.bf16.mxu0 %v11937_v45  ;;  %6106 = vmatprep.mubr.bf16.mxu1 %v11937_v45 }
 0x32e   :  { %v4063_v44 = vpop.f32.mrb[225].mxu0  ;;  %v4134_v53 = vpop.f32.mrb[225].mxu1  ;;  %v4367_v7 = vmax.f32 %v4061_v51, 0.0  ;;  %v4369_v6 = vmax.f32 %v4132_v58, 0.0 }
 0x32f   :  { %6036 = vmatpush1.bf16.msra.mxu0 %v12202_v46  ;;  %6077 = vmatpush1.bf16.msra.mxu1 %v12203_v16  ;;  %v4065_v25 = vpop.f32.mrb[226].mxu0  ;;  %v4136_v40 = vpop.f32.mrb[226].mxu1  ;;  %v4368_v11 = vmax.f32 %v4063_v44, 0.0  ;;  %v4370_v39 = vmax.f32 %v4134_v53, 0.0  ;;  %v4995_v46 = vpack.c.bf16 %v4738_v15, %v4738_v15  ;;  %v5148_v15 = vsel %vm5020_vm2, %v4994_v41, 0 }
 0x330   :  { %v4431_v32 = vmax.f32 %v4065_v25, 0.0  ;;  %v4433_v61 = vmax.f32 %v4136_v40, 0.0  ;;  %6037 = vmatprep.subr.bf16.mxu0 %v12204_v36  ;;  %6078 = vmatprep.subr.bf16.mxu1 %v12205_v22  ;;  %v4067_v49 = vpop.f32.mrb[227].mxu0  ;;  %v4138_v50 = vpop.f32.mrb[227].mxu1  ;;  %v12206_v25 = vld [vmem:[#allocation17_spill] sm:$0xff]  ;;  %v12207_v40 = vld [vmem:[#allocation38_spill] sm:$0xff] }
 0x331   :  { %v4432_v9 = vmax.f32 %v4067_v49, 0.0  ;;  %v4434_v28 = vmax.f32 %v4138_v50, 0.0 }
 0x332   :  { %v10924_v1 = vpack.c.bf16 %v4431_v32, %v4367_v7  ;;  %v10926_v16 = vpack.c.bf16 %v4433_v61, %v4369_v6 }
 0x333   :  { %v10928_v51 = vpack.c.bf16 %v4432_v9, %v4368_v11  ;;  %v10930_v58 = vpack.c.bf16 %v4434_v28, %v4370_v39  ;;  %6038 = vmatpush1.bf16.msra.mxu0 %v12206_v25  ;;  %6079 = vmatpush1.bf16.msra.mxu1 %v12207_v40 }
 0x334   :  { %8382 = vmatprep.subr.msk.bf16.mxu0 %vm5020_vm2, %v4993_v43  ;;  %8384 = vmatprep.subr.msk.bf16.mxu1 %vm5020_vm2, %v4995_v46 }
 0x335   :  { %v4071_v44 = vpop.f32.mrb[228].mxu0  ;;  %v4142_v53 = vpop.f32.mrb[228].mxu1 }
 0x336   :  { %v4073_v7 = vpop.f32.mrb[229].mxu0  ;;  %v4144_v6 = vpop.f32.mrb[229].mxu1  ;;  %v4495_v61 = vmax.f32 %v4071_v44, 0.0  ;;  %v4497_v36 = vmax.f32 %v4142_v53, 0.0  ;;  %v12208_v44 = vld [vmem:[#allocation41_spill] sm:$0xff]  ;;  %v12209_v53 = vld [vmem:[#allocation42_spill] sm:$0xff] }
 0x337   :  { %6040 = vmatpush1.bf16.msra.mxu0 %v5142_v42  ;;  %6081 = vmatpush1.bf16.msra.mxu1 %v5148_v15  ;;  %v4075_v39 = vpop.f32.mrb[230].mxu0  ;;  %v4146_v32 = vpop.f32.mrb[230].mxu1  ;;  %v4496_v11 = vmax.f32 %v4073_v7, 0.0  ;;  %v4498_v29 = vmax.f32 %v4144_v6, 0.0  ;;  %v12210_v42 = vld [vmem:[#allocation43_spill] sm:$0xff] }
 0x338   :  { %v4559_v22 = vmax.f32 %v4075_v39, 0.0  ;;  %v4561_v49 = vmax.f32 %v4146_v32, 0.0  ;;  %6115 = vmatprep.subr.bf16.mxu0 %v10671_v38  ;;  %6156 = vmatprep.subr.bf16.mxu1 %v10673_v13  ;;  %v4077_v43 = vpop.f32.mrb[231].mxu0  ;;  %v4148_v50 = vpop.f32.mrb[231].mxu1  ;;  %v4739_v38 = vmax.f32 %v10721_v59, 0.0  ;;  %v4741_v13 = vmax.f32 %v10723_v10, 0.0 }
 0x339   :  { %v4560_v9 = vmax.f32 %v4077_v43, 0.0  ;;  %v4562_v41 = vmax.f32 %v4148_v50, 0.0  ;;  %v4740_v59 = vmax.f32 %v10727_v2, 0.0  ;;  %v4742_v10 = vmax.f32 %v10729_v26, 0.0 }
 0x33a   :  { %v10940_v28 = vpack.c.bf16 %v4559_v22, %v4495_v61  ;;  %v10942_v46 = vpack.c.bf16 %v4561_v49, %v4497_v36  ;;  %8383 = vmatmul.mubr.msk.bf16.vlgmr.msra.gmra.mrb[40].mxu0 %vm5016_vm3, %v10858_v54  ;;  %8385 = vmatmul.mubr.msk.bf16.vlgmr.msra.gmra.mrb[40].mxu1 %vm5016_vm3, %v10858_v54  ;;  %v4996_v32 = vpack.c.bf16 %v4739_v38, %v4739_v38  ;;  %v12211_v61 = vld [vmem:[#allocation28_spill] sm:$0xff]  ;;  %v12212_v36 = vld [vmem:[#allocation29_spill] sm:$0xff] }
 0x33b   :  { %v10950_v25 = vpack.c.bf16 %v4560_v9, %v4496_v11  ;;  %v10952_v40 = vpack.c.bf16 %v4562_v41, %v4498_v29  ;;  %6116 = vmatpush1.bf16.msra.mxu0 %v10667_v62  ;;  %6157 = vmatpush1.bf16.msra.mxu1 %v12208_v44  ;;  %v4998_v62 = vpack.c.bf16 %v4741_v13, %v4741_v13 }
 0x33c   :  { %6117 = vmatprep.subr.bf16.mxu0 %v12209_v53  ;;  %6158 = vmatprep.subr.bf16.mxu1 %v12210_v42  ;;  %v4997_v44 = vpack.c.bf16 %v4740_v59, %v4740_v59  ;;  %v4999_v53 = vpack.c.bf16 %v4742_v10, %v4742_v10  ;;  %v5154_v59 = vsel %vm5020_vm2, %v4996_v32, 0  ;;  %v4743_v32 = vmax.f32 %v10805_v0, 0.0 }
 0x33d   :  { %v4081_v15 = vpop.f32.mrb[232].mxu0  ;;  %v4152_v7 = vpop.f32.mrb[232].mxu1  ;;  %6147 = vmatprep.mubr.bf16.mxu0 %v11937_v45  ;;  %6188 = vmatprep.mubr.bf16.mxu1 %v11937_v45  ;;  %v5160_v10 = vsel %vm5020_vm2, %v4998_v62, 0  ;;  %v4745_v62 = vmax.f32 %v10807_v31, 0.0  ;;  %v4746_v0 = vmax.f32 %v10813_v55, 0.0 }
 0x33e   :  { %v4083_v6 = vpop.f32.mrb[233].mxu0  ;;  %v4154_v39 = vpop.f32.mrb[233].mxu1  ;;  %v4623_v43 = vmax.f32 %v4081_v15, 0.0  ;;  %v4625_v50 = vmax.f32 %v4152_v7, 0.0 }
 0x33f   :  { %6118 = vmatpush1.bf16.msra.mxu0 %v12211_v61  ;;  %6159 = vmatpush1.bf16.msra.mxu1 %v12212_v36  ;;  %v4085_v22 = vpop.f32.mrb[234].mxu0  ;;  %v4156_v49 = vpop.f32.mrb[234].mxu1  ;;  %v4624_v9 = vmax.f32 %v4083_v6, 0.0  ;;  %v4626_v41 = vmax.f32 %v4154_v39, 0.0 }
 0x340   :  { %v4687_v11 = vmax.f32 %v4085_v22, 0.0  ;;  %v4689_v29 = vmax.f32 %v4156_v49, 0.0  ;;  %6119 = vmatprep.subr.bf16.mxu0 %v10713_v5  ;;  %6160 = vmatprep.subr.bf16.mxu1 %v10715_v52  ;;  %v4087_v2 = vpop.f32.mrb[235].mxu0  ;;  %v4158_v26 = vpop.f32.mrb[235].mxu1  ;;  %v4744_v49 = vmax.f32 %v10811_v12, 0.0 }
 0x341   :  { %v4688_v38 = vmax.f32 %v4087_v2, 0.0  ;;  %v4690_v13 = vmax.f32 %v4158_v26, 0.0 }
 0x342   :  { %v10966_v42 = vpack.c.bf16 %v4687_v11, %v4623_v43  ;;  %v10968_v61 = vpack.c.bf16 %v4689_v29, %v4625_v50  ;;  %v5000_v50 = vpack.c.bf16 %v4743_v32, %v4743_v32 }
 0x343   :  { %v10970_v15 = vpack.c.bf16 %v4688_v38, %v4624_v9  ;;  %v10972_v7 = vpack.c.bf16 %v4690_v13, %v4626_v41  ;;  %6120 = vmatpush1.bf16.msra.mxu0 %v10709_v20  ;;  %6161 = vmatpush1.bf16.msra.mxu1 %v10711_v56  ;;  %v5001_v13 = vpack.c.bf16 %v4744_v49, %v4744_v49 }
 0x344   :  { %8386 = vmatprep.subr.msk.bf16.mxu0 %vm5020_vm2, %v4997_v44  ;;  %8388 = vmatprep.subr.msk.bf16.mxu1 %vm5020_vm2, %v4999_v53 }
 0x345   :  { %v10978_v5 = vpop.f32.mrb[236].mxu0  ;;  %v10980_v52 = vpop.f32.mrb[236].mxu1 }
 0x346   :  { %v10984_v6 = vpop.f32.mrb[237].mxu0  ;;  %v10986_v39 = vpop.f32.mrb[237].mxu1 }
 0x347   :  { %6122 = vmatpush1.bf16.msra.mxu0 %v5154_v59  ;;  %6163 = vmatpush1.bf16.msra.mxu1 %v5160_v10  ;;  %v4095_v20 = vpop.f32.mrb[238].mxu0  ;;  %v4166_v56 = vpop.f32.mrb[238].mxu1 }
 0x348   :  { %6197 = vmatprep.subr.bf16.mxu0 %v10755_v34  ;;  %6238 = vmatprep.subr.bf16.mxu1 %v10757_v48  ;;  %v4096_v36 = vpop.f32.mrb[239].mxu0  ;;  %v4167_v22 = vpop.f32.mrb[239].mxu1  ;;  %v5166_v20 = vsel %vm5020_vm2, %v5000_v50, 0 }
 0x34a   :  { %8387 = vmatmul.mubr.msk.bf16.vlgmr.msra.gmra.mrb[44].mxu0 %vm5016_vm3, %v10858_v54  ;;  %8389 = vmatmul.mubr.msk.bf16.vlgmr.msra.gmra.mrb[44].mxu1 %vm5016_vm3, %v10858_v54 }
 0x34b   :  { %6198 = vmatpush1.bf16.msra.mxu0 %v10751_v17  ;;  %6239 = vmatpush1.bf16.msra.mxu1 %v10753_v63  ;;  %v5002_v17 = vpack.c.bf16 %v4745_v62, %v4745_v62 }
 0x34c   :  { %6199 = vmatprep.subr.bf16.mxu0 %v10777_v30  ;;  %6240 = vmatprep.subr.bf16.mxu1 %v10779_v60 }
 0x34d   :  { %v4203_v34 = vpop.f32.mrb[240].mxu0  ;;  %v4274_v48 = vpop.f32.mrb[240].mxu1  ;;  %6229 = vmatprep.mubr.bf16.mxu0 %v11937_v45  ;;  %6270 = vmatprep.mubr.bf16.mxu1 %v11937_v45  ;;  %v5172_v56 = vsel %vm5020_vm2, %v5002_v17, 0 }
 0x34e   :  { %v4205_v43 = vpop.f32.mrb[241].mxu0  ;;  %v4276_v31 = vpop.f32.mrb[241].mxu1  ;;  %v4371_v60 = vmax.f32 %v4203_v34, 0.0  ;;  %v4373_v11 = vmax.f32 %v4274_v48, 0.0 }
 0x34f   :  { %6200 = vmatpush1.bf16.msra.mxu0 %v10767_v33  ;;  %6241 = vmatpush1.bf16.msra.mxu1 %v10769_v23  ;;  %v4207_v63 = vpop.f32.mrb[242].mxu0  ;;  %v4278_v30 = vpop.f32.mrb[242].mxu1  ;;  %v4372_v26 = vmax.f32 %v4205_v43, 0.0  ;;  %v4374_v9 = vmax.f32 %v4276_v31, 0.0  ;;  %v5003_v33 = vpack.c.bf16 %v4746_v0, %v4746_v0 }
 0x350   :  { %v4435_v29 = vmax.f32 %v4207_v63, 0.0  ;;  %v4437_v2 = vmax.f32 %v4278_v30, 0.0  ;;  %6201 = vmatprep.subr.bf16.mxu0 %v10797_v47  ;;  %6242 = vmatprep.subr.bf16.mxu1 %v10799_v14  ;;  %v4209_v12 = vpop.f32.mrb[243].mxu0  ;;  %v4280_v55 = vpop.f32.mrb[243].mxu1  ;;  %v12213_v47 = vld [vmem:[#allocation32_spill] sm:$0xff] }
 0x351   :  { %v4436_v41 = vmax.f32 %v4209_v12, 0.0  ;;  %v4438_v38 = vmax.f32 %v4280_v55, 0.0 }
 0x352   :  { %v11008_v44 = vpack.c.bf16 %v4435_v29, %v4371_v60  ;;  %v11010_v23 = vpack.c.bf16 %v4437_v2, %v4373_v11  ;;  %v12214_v2 = vld [vmem:[#allocation37_spill] sm:$0xff] }
 0x353   :  { %v11012_v53 = vpack.c.bf16 %v4436_v41, %v4372_v26  ;;  %v11014_v59 = vpack.c.bf16 %v4438_v38, %v4374_v9  ;;  %6202 = vmatpush1.bf16.msra.mxu0 %v10793_v24  ;;  %6243 = vmatpush1.bf16.msra.mxu1 %v12213_v47  ;;  %v12215_v38 = vld [vmem:[#allocation33_spill] sm:$0xff] }
 0x354   :  { %8390 = vmatprep.subr.msk.bf16.mxu0 %vm5020_vm2, %v5001_v13  ;;  %8392 = vmatprep.subr.msk.bf16.mxu1 %vm5020_vm2, %v5003_v33 }
 0x355   :  { %v4213_v14 = vpop.f32.mrb[244].mxu0  ;;  %v4284_v10 = vpop.f32.mrb[244].mxu1 }
 0x356   :  { %v4215_v36 = vpop.f32.mrb[245].mxu0  ;;  %v4286_v22 = vpop.f32.mrb[245].mxu1  ;;  %v4499_v34 = vmax.f32 %v4213_v14, 0.0  ;;  %v4501_v24 = vmax.f32 %v4284_v10, 0.0 }
 0x357   :  { %6204 = vmatpush1.bf16.msra.mxu0 %v5166_v20  ;;  %6245 = vmatpush1.bf16.msra.mxu1 %v5172_v56  ;;  %v4217_v32 = vpop.f32.mrb[246].mxu0  ;;  %v4288_v62 = vpop.f32.mrb[246].mxu1  ;;  %v4500_v31 = vmax.f32 %v4215_v36, 0.0  ;;  %v4502_v50 = vmax.f32 %v4286_v22, 0.0  ;;  %v12217_v20 = vld [vmem:[#allocation45_spill] sm:$0xff] }
 0x358   :  { %v4563_v48 = vmax.f32 %v4217_v32, 0.0  ;;  %v4565_v49 = vmax.f32 %v4288_v62, 0.0  ;;  %6279 = vmatprep.subr.bf16.mxu0 %v10839_v27  ;;  %6320 = vmatprep.subr.bf16.mxu1 %v10841_v37  ;;  %v4219_v0 = vpop.f32.mrb[247].mxu0  ;;  %v4290_v43 = vpop.f32.mrb[247].mxu1  ;;  %v4747_v27 = vmax.f32 %v10894_v57, 0.0  ;;  %v4749_v37 = vmax.f32 %v10896_v18, 0.0 }
 0x359   :  { %v4564_v63 = vmax.f32 %v4219_v0, 0.0  ;;  %v4566_v17 = vmax.f32 %v4290_v43, 0.0  ;;  %v4748_v57 = vmax.f32 %v10900_v35, 0.0  ;;  %v4750_v18 = vmax.f32 %v10902_v4, 0.0  ;;  %v12218_v43 = vld [vmem:[#allocation50_spill] sm:$0xff] }
 0x35a   :  { %v11024_v30 = vpack.c.bf16 %v4563_v48, %v4499_v34  ;;  %v11026_v60 = vpack.c.bf16 %v4565_v49, %v4501_v24  ;;  %8391 = vmatmul.mubr.msk.bf16.vlgmr.msra.gmra.mrb[48].mxu0 %vm5016_vm3, %v10858_v54  ;;  %8393 = vmatmul.mubr.msk.bf16.vlgmr.msra.gmra.mrb[48].mxu1 %vm5016_vm3, %v10858_v54  ;;  %v5004_v41 = vpack.c.bf16 %v4747_v27, %v4747_v27 }
 0x35b   :  { %v11034_v11 = vpack.c.bf16 %v4564_v63, %v4500_v31  ;;  %v11036_v29 = vpack.c.bf16 %v4566_v17, %v4502_v50  ;;  %6280 = vmatpush1.bf16.msra.mxu0 %v10835_v8  ;;  %6321 = vmatpush1.bf16.msra.mxu1 %v10837_v19  ;;  %v5006_v8 = vpack.c.bf16 %v4749_v37, %v4749_v37  ;;  %v12216_v19 = vld [vmem:[#allocation36_spill] sm:$0xff] }
 0x35c   :  { %6281 = vmatprep.subr.bf16.mxu0 %v10866_v21  ;;  %6322 = vmatprep.subr.bf16.mxu1 %v12214_v2  ;;  %v5005_v62 = vpack.c.bf16 %v4748_v57, %v4748_v57  ;;  %v5007_v34 = vpack.c.bf16 %v4750_v18, %v4750_v18  ;;  %v5178_v63 = vsel %vm5020_vm2, %v5004_v41, 0 }
 0x35d   :  { %v4223_v12 = vpop.f32.mrb[248].mxu0  ;;  %v4294_v55 = vpop.f32.mrb[248].mxu1  ;;  %6311 = vmatprep.mubr.bf16.mxu0 %v11937_v45  ;;  %6352 = vmatprep.mubr.bf16.mxu1 %v11937_v45  ;;  %v5184_v17 = vsel %vm5020_vm2, %v5006_v8, 0 }
 0x35e   :  { %v4225_v26 = vpop.f32.mrb[249].mxu0  ;;  %v4296_v9 = vpop.f32.mrb[249].mxu1  ;;  %v4627_v33 = vmax.f32 %v4223_v12, 0.0  ;;  %v4629_v47 = vmax.f32 %v4294_v55, 0.0 }
 0x35f   :  { %6282 = vmatpush1.bf16.msra.mxu0 %v12215_v38  ;;  %6323 = vmatpush1.bf16.msra.mxu1 %v12216_v19  ;;  %v4227_v21 = vpop.f32.mrb[250].mxu0  ;;  %v4298_v13 = vpop.f32.mrb[250].mxu1  ;;  %v4628_v56 = vmax.f32 %v4225_v26, 0.0  ;;  %v4630_v36 = vmax.f32 %v4296_v9, 0.0 }
 0x360   :  { %v4691_v14 = vmax.f32 %v4227_v21, 0.0  ;;  %v4693_v10 = vmax.f32 %v4298_v13, 0.0  ;;  %6283 = vmatprep.subr.bf16.mxu0 %v10886_v3  ;;  %6324 = vmatprep.subr.bf16.mxu1 %v12217_v20  ;;  %v4229_v35 = vpop.f32.mrb[251].mxu0  ;;  %v4300_v4 = vpop.f32.mrb[251].mxu1  ;;  %v12219_v3 = vld [vmem:[#allocation44_spill] sm:$0xff] }
 0x361   :  { %v4692_v22 = vmax.f32 %v4229_v35, 0.0  ;;  %v4694_v32 = vmax.f32 %v4300_v4, 0.0 }
 0x362   :  { %v11050_v24 = vpack.c.bf16 %v4691_v14, %v4627_v33  ;;  %v11052_v48 = vpack.c.bf16 %v4693_v10, %v4629_v47 }
 0x363   :  { %v11054_v49 = vpack.c.bf16 %v4692_v22, %v4628_v56  ;;  %v11056_v0 = vpack.c.bf16 %v4694_v32, %v4630_v36  ;;  %6284 = vmatpush1.bf16.msra.mxu0 %v12218_v43  ;;  %6325 = vmatpush1.bf16.msra.mxu1 %v12219_v3 }
 0x364   :  { %8394 = vmatprep.subr.msk.bf16.mxu0 %vm5020_vm2, %v5005_v62  ;;  %8396 = vmatprep.subr.msk.bf16.mxu1 %vm5020_vm2, %v5007_v34 }
 0x365   :  { %v11062_v31 = vpop.f32.mrb[252].mxu0  ;;  %v11064_v50 = vpop.f32.mrb[252].mxu1 }
 0x366   :  { %v11068_v27 = vpop.f32.mrb[253].mxu0  ;;  %v11070_v37 = vpop.f32.mrb[253].mxu1 }
 0x367   :  { %6286 = vmatpush1.bf16.msra.mxu0 %v5178_v63  ;;  %6327 = vmatpush1.bf16.msra.mxu1 %v5184_v17  ;;  %v4237_v2 = vpop.f32.mrb[254].mxu0  ;;  %v4308_v12 = vpop.f32.mrb[254].mxu1 }
 0x368   :  { %6361 = vmatprep.subr.bf16.mxu0 %v10928_v51  ;;  %6402 = vmatprep.subr.bf16.mxu1 %v10930_v58  ;;  %v4238_v55 = vpop.f32.mrb[255].mxu0  ;;  %v4309_v57 = vpop.f32.mrb[255].mxu1  ;;  %v4751_v51 = vmax.f32 %v10978_v5, 0.0  ;;  %v4753_v58 = vmax.f32 %v10980_v52, 0.0 }
 0x36a   :  { %8395 = vmatmul.mubr.msk.bf16.vlgmr.msra.gmra.mrb[52].mxu0 %vm5016_vm3, %v10858_v54  ;;  %8397 = vmatmul.mubr.msk.bf16.vlgmr.msra.gmra.mrb[52].mxu1 %vm5016_vm3, %v10858_v54  ;;  %v5008_v47 = vpack.c.bf16 %v4751_v51, %v4751_v51  ;;  %v5010_v14 = vpack.c.bf16 %v4753_v58, %v4753_v58  ;;  %v4755_v51 = vmax.f32 %v11062_v31, 0.0  ;;  %v4757_v58 = vmax.f32 %v11064_v50, 0.0 }
 0x36b   :  { %6362 = vmatpush1.bf16.msra.mxu0 %v10924_v1  ;;  %6403 = vmatpush1.bf16.msra.mxu1 %v10926_v16  ;;  %v4752_v1 = vmax.f32 %v10984_v6, 0.0  ;;  %v4754_v16 = vmax.f32 %v10986_v39, 0.0 }
 0x36c   :  { %6363 = vmatprep.subr.bf16.mxu0 %v10950_v25  ;;  %6404 = vmatprep.subr.bf16.mxu1 %v10952_v40  ;;  %v5190_v62 = vsel %vm5020_vm2, %v5008_v47, 0  ;;  %v5196_v34 = vsel %vm5020_vm2, %v5010_v14, 0 }
 0x36d   :  { %v11084_v18 = vpop.f32.mrb[0].mxu0  ;;  %v11086_v26 = vpop.f32.mrb[0].mxu1  ;;  %6393 = vmatprep.mubr.bf16.mxu0 %v11937_v45  ;;  %6434 = vmatprep.mubr.bf16.mxu1 %v11937_v45  ;;  %v5009_v35 = vpack.c.bf16 %v4752_v1, %v4752_v1  ;;  %v5011_v4 = vpack.c.bf16 %v4754_v16, %v4754_v16  ;;  %v4758_v16 = vmax.f32 %v11070_v37, 0.0  ;;  %v5012_v37 = vpack.c.bf16 %v4755_v51, %v4755_v51 }
 0x36e   :  { %v6526_v25 = vsel %vm6525_vm4, %v11084_v18, -inf  ;;  %v6540_v40 = vsel %vm6525_vm4, %v11086_v26, -inf  ;;  %v11096_v5 = vpop.f32.mrb[1].mxu0  ;;  %v11098_v52 = vpop.f32.mrb[1].mxu1 }
 0x36f   :  { %v6527_v9 = vrot.slane %v6526_v25, 4  ;;  %v6541_v41 = vrot.slane %v6540_v40, 4  ;;  %v6533_v8 = vsel %vm6525_vm4, %v11096_v5, -inf  ;;  %v6547_v6 = vsel %vm6525_vm4, %v11098_v52, -inf  ;;  %6364 = vmatpush1.bf16.msra.mxu0 %v10940_v28  ;;  %6405 = vmatpush1.bf16.msra.mxu1 %v10942_v46  ;;  %v5251_v39 = vpop.f32.mrb[2].mxu0  ;;  %v5292_v38 = vpop.f32.mrb[2].mxu1 }
 0x370   :  { %v6534_v19 = vrot.slane %v6533_v8, 4  ;;  %v6548_v21 = vrot.slane %v6547_v6, 4  ;;  %6365 = vmatprep.subr.bf16.mxu0 %v10970_v15  ;;  %6406 = vmatprep.subr.bf16.mxu1 %v10972_v7  ;;  %v5252_v13 = vpop.f32.mrb[3].mxu0  ;;  %v5293_v33 = vpop.f32.mrb[3].mxu1 }
 0x371   :  { %v6528_v10 = vmax.f32 %v6526_v25, %v6527_v9  ;;  %v6542_v20 = vmax.f32 %v6540_v40, %v6541_v41  ;;  %v5015_v33 = vpack.c.bf16 %v4758_v16, %v4758_v16 }
 0x372   :  { %v6535_v56 = vmax.f32 %v6533_v8, %v6534_v19  ;;  %v6549_v28 = vmax.f32 %v6547_v6, %v6548_v21 }
 0x373   :  { %v6529_v36 = vrot.slane %v6528_v10, 2  ;;  %v6543_v46 = vrot.slane %v6542_v20, 2  ;;  %6366 = vmatpush1.bf16.msra.mxu0 %v10966_v42  ;;  %6407 = vmatpush1.bf16.msra.mxu1 %v10968_v61 }
 0x374   :  { %v6536_v22 = vrot.slane %v6535_v56, 2  ;;  %v6550_v15 = vrot.slane %v6549_v28, 2  ;;  %8398 = vmatprep.subr.msk.bf16.mxu0 %vm5020_vm2, %v5009_v35  ;;  %8400 = vmatprep.subr.msk.bf16.mxu1 %vm5020_vm2, %v5011_v4 }
 0x375   :  { %v6530_v7 = vmax.f32 %v6528_v10, %v6529_v36  ;;  %v6544_v32 = vmax.f32 %v6542_v20, %v6543_v46  ;;  %v8724_v36 = vmov 1983009808  }
 0x376   :  { %v6537_v43 = vmax.f32 %v6535_v56, %v6536_v22  ;;  %v6551_v3 = vmax.f32 %v6549_v28, %v6550_v15  ;;  %v5202_v56 = vsel %vm5020_vm2, %v5012_v37, 0  ;;  %v11160_v46 = vunpack.c.l.s4 %v8724_v36 }
 0x377   :  { %v6531_v63 = vrot.slane %v6530_v7, 1  ;;  %v6545_v17 = vrot.slane %v6544_v32, 1  ;;  %6368 = vmatpush1.bf16.msra.mxu0 %v5190_v62  ;;  %6409 = vmatpush1.bf16.msra.mxu1 %v5196_v34 }
 0x378   :  { %v6538_v42 = vrot.slane %v6537_v43, 1  ;;  %v6552_v61 = vrot.slane %v6551_v3, 1  ;;  %6443 = vmatprep.subr.bf16.mxu0 %v11012_v53  ;;  %6484 = vmatprep.subr.bf16.mxu1 %v11014_v59  ;;  %v4756_v59 = vmax.f32 %v11068_v27, 0.0 }
 0x379   :  { %v6532_v2 = vmax.f32 %v6530_v7, %v6531_v63  ;;  %v6546_v12 = vmax.f32 %v6544_v32, %v6545_v17  ;;  %v7874_v17 = vunpack.c.0.s8 %v11160_v46 }
 0x37a   :  { %v6539_v55 = vmax.f32 %v6537_v43, %v6538_v42  ;;  %v6553_v57 = vmax.f32 %v6551_v3, %v6552_v61  ;;  %8399 = vmatmul.mubr.msk.bf16.vlgmr.msra.gmra.mrb[56].mxu0 %vm5016_vm3, %v10858_v54  ;;  %8401 = vmatmul.mubr.msk.bf16.vlgmr.msra.gmra.mrb[56].mxu1 %vm5016_vm3, %v10858_v54  ;;  %v5013_v13 = vpack.c.bf16 %v4756_v59, %v4756_v59 }
 0x37b   :  { %v6974_v1 = vsub.f32 %v11084_v18, %v6532_v2  ;;  %v6976_v53 = vsub.f32 %v11086_v26, %v6546_v12  ;;  %6444 = vmatpush1.bf16.msra.mxu0 %v11008_v44  ;;  %6485 = vmatpush1.bf16.msra.mxu1 %v11010_v23 }
 0x37c   :  { %v6975_v25 = vsub.f32 %v11096_v5, %v6539_v55  ;;  %v6977_v40 = vsub.f32 %v11098_v52, %v6553_v57  ;;  %6445 = vmatprep.subr.bf16.mxu0 %v11034_v11  ;;  %6486 = vmatprep.subr.bf16.mxu1 %v11036_v29 }
 0x37d   :  { %v7038_v31 = vmul.f32 1.442695, %v6974_v1  ;;  %v7042_v50 = vmul.f32 1.442695, %v6976_v53  ;;  %v11132_v18 = vpop.f32.mrb[4].mxu0  ;;  %v11134_v26 = vpop.f32.mrb[4].mxu1  ;;  %6475 = vmatprep.mubr.bf16.mxu0 %v11937_v45  ;;  %6516 = vmatprep.mubr.bf16.mxu1 %v11937_v45  ;;  %v5014_v45 = vpack.c.bf16 %v4757_v58, %v4757_v58 }
 0x37e   :  { %v7040_v44 = vmul.f32 1.442695, %v6975_v25  ;;  %v7044_v23 = vmul.f32 1.442695, %v6977_v40  ;;  %v6554_v27 = vsel %vm6525_vm4, %v11132_v18, -inf  ;;  %v6568_v11 = vsel %vm6525_vm4, %v11134_v26, -inf }
 0x37f   :  { %8457 = vpow2.f32 %v7038_v31  ;;  %v6555_v29 = vrot.slane %v6554_v27, 4  ;;  %v6569_v5 = vrot.slane %v6568_v11, 4  ;;  %v11142_v52 = vpop.f32.mrb[5].mxu0  ;;  %v11144_v9 = vpop.f32.mrb[5].mxu1  ;;  %6446 = vmatpush1.bf16.msra.mxu0 %v11024_v30  ;;  %6487 = vmatpush1.bf16.msra.mxu1 %v11026_v60  ;;  %v5208_v28 = vsel %vm5020_vm2, %v5014_v45, 0 }
 0x380   :  { %8459 = vpow2.f32 %v7042_v50  ;;  %v6561_v41 = vsel %vm6525_vm4, %v11142_v52, -inf  ;;  %v6575_v8 = vsel %vm6525_vm4, %v11144_v9, -inf  ;;  %v5333_v6 = vpop.f32.mrb[6].mxu0  ;;  %v5374_v39 = vpop.f32.mrb[6].mxu1  ;;  %6447 = vmatprep.subr.bf16.mxu0 %v11054_v49  ;;  %6488 = vmatprep.subr.bf16.mxu1 %v11056_v0 }
 0x381   :  { %8461 = vpow2.f32 %v7040_v44  ;;  %v6556_v38 = vmax.f32 %v6554_v27, %v6555_v29  ;;  %v6570_v19 = vmax.f32 %v6568_v11, %v6569_v5  ;;  %v6562_v30 = vrot.slane %v6561_v41, 4  ;;  %v5334_v21 = vpop.f32.mrb[7].mxu0  ;;  %v5375_v60 = vpop.f32.mrb[7].mxu1 }
 0x382   :  { %8463 = vpow2.f32 %v7044_v23  ;;  %v6576_v47 = vrot.slane %v6575_v8, 4 }
 0x383   :  { %v6557_v14 = vrot.slane %v6556_v38, 2  ;;  %v6571_v10 = vrot.slane %v6570_v19, 2  ;;  %v6563_v20 = vmax.f32 %v6561_v41, %v6562_v30  ;;  %6448 = vmatpush1.bf16.msra.mxu0 %v11050_v24  ;;  %6489 = vmatpush1.bf16.msra.mxu1 %v11052_v48 }
 0x384   :  { %v6577_v49 = vmax.f32 %v6575_v8, %v6576_v47  ;;  %8402 = vmatprep.subr.msk.bf16.mxu0 %vm5020_vm2, %v5013_v13  ;;  %8404 = vmatprep.subr.msk.bf16.mxu1 %vm5020_vm2, %v5015_v33 }
 0x385   :  { %v6558_v0 = vmax.f32 %v6556_v38, %v6557_v14  ;;  %v6572_v35 = vmax.f32 %v6570_v19, %v6571_v10  ;;  %v6564_v4 = vrot.slane %v6563_v20, 2 }
 0x386   :  { %v6578_v22 = vrot.slane %v6577_v49, 2 }
 0x387   :  { %v6559_v15 = vrot.slane %v6558_v0, 1  ;;  %v6573_v24 = vrot.slane %v6572_v35, 1  ;;  %v6565_v7 = vmax.f32 %v6563_v20, %v6564_v4  ;;  %6450 = vmatpush1.bf16.msra.mxu0 %v5202_v56  ;;  %6491 = vmatpush1.bf16.msra.mxu1 %v5208_v28 }
 0x388   :  { %v6579_v48 = vmax.f32 %v6577_v49, %v6578_v22 }
 0x389   :  { %v11162_v32 = vpop.eup %8457  ;;  %v6560_v62 = vmax.f32 %v6558_v0, %v6559_v15  ;;  %v6574_v34 = vmax.f32 %v6572_v35, %v6573_v24  ;;  %v6566_v43 = vrot.slane %v6565_v7, 1 }
 0x38a   :  { %v11164_v3 = vpop.eup %8459  ;;  %v7166_v63 = vsel %vm6525_vm4, %v11162_v32, 0.0  ;;  %v6580_v42 = vrot.slane %v6579_v48, 1  ;;  %8403 = vmatmul.mubr.msk.bf16.vlgmr.msra.gmra.mrb[60].mxu0 %vm5016_vm3, %v10858_v54  ;;  %8405 = vmatmul.mubr.msk.bf16.vlgmr.msra.gmra.mrb[60].mxu1 %vm5016_vm3, %v10858_v54 }
 0x38b   :  { %v11173_v61 = vpop.eup %8461  ;;  %v7167_v2 = vrot.slane %v7166_v63, 4  ;;  %v7180_v12 = vsel %vm6525_vm4, %v11164_v3, 0.0  ;;  %v6978_v55 = vsub.f32 %v11132_v18, %v6560_v62  ;;  %v6980_v57 = vsub.f32 %v11134_v26, %v6574_v34 }
 0x38c   :  { %v11179_v51 = vpop.eup %8463  ;;  %v7181_v58 = vrot.slane %v7180_v12, 4  ;;  %v7173_v1 = vsel %vm6525_vm4, %v11173_v61, 0.0  ;;  %v6567_v53 = vmax.f32 %v6565_v7, %v6566_v43  ;;  %v6581_v59 = vmax.f32 %v6579_v48, %v6580_v42 }
 0x38d   :  { %v7168_v16 = vadd.f32 %v7167_v2, %v7166_v63  ;;  %v7174_v54 = vrot.slane %v7173_v1, 4  ;;  %v7187_v25 = vsel %vm6525_vm4, %v11179_v51, 0.0  ;;  %v7046_v40 = vmul.f32 1.442695, %v6978_v55  ;;  %v11185_v31 = vpop.f32.mrb[8].mxu0  ;;  %v11187_v50 = vpop.f32.mrb[8].mxu1 }
 0x38e   :  { %v7182_v18 = vadd.f32 %v7181_v58, %v7180_v12  ;;  %v7188_v26 = vrot.slane %v7187_v25, 4  ;;  %v7050_v44 = vmul.f32 1.442695, %v6980_v57  ;;  %v6979_v23 = vsub.f32 %v11142_v52, %v6567_v53  ;;  %v11190_v27 = vpop.f32.mrb[9].mxu0  ;;  %v11192_v11 = vpop.f32.mrb[9].mxu1 }
 0x38f   :  { %v7169_v37 = vrot.slane %v7168_v16, 2  ;;  %v7175_v29 = vadd.f32 %v7174_v54, %v7173_v1  ;;  %8465 = vpow2.f32 %v7046_v40  ;;  %v6981_v5 = vsub.f32 %v11144_v9, %v6581_v59  ;;  %v5415_v45 = vpop.f32.mrb[10].mxu0  ;;  %v5456_v41 = vpop.f32.mrb[10].mxu1 }
 0x390   :  { %v7183_v8 = vrot.slane %v7182_v18, 2  ;;  %v7189_v6 = vadd.f32 %v7188_v26, %v7187_v25  ;;  %8467 = vpow2.f32 %v7050_v44  ;;  %v7048_v39 = vmul.f32 1.442695, %v6979_v23  ;;  %v5416_v38 = vpop.f32.mrb[11].mxu0  ;;  %v5457_v19 = vpop.f32.mrb[11].mxu1 }
 0x391   :  { %v7170_v30 = vadd.f32 %v7169_v37, %v7168_v16  ;;  %v7176_v21 = vrot.slane %v7175_v29, 2  ;;  %v7052_v52 = vmul.f32 1.442695, %v6981_v5  ;;  %v6582_v60 = vsel %vm6525_vm4, %v11185_v31, -inf }
 0x392   :  { %v7184_v13 = vadd.f32 %v7183_v8, %v7182_v18  ;;  %v7190_v33 = vrot.slane %v7189_v6, 2  ;;  %8469 = vpow2.f32 %v7048_v39  ;;  %v6583_v47 = vrot.slane %v6582_v60, 4  ;;  %v12220_v18 = vld [vmem:[#allocation2_spill] sm:$0xff] }
 0x393   :  { %v7171_v14 = vrot.slane %v7170_v30, 1  ;;  %v7177_v9 = vadd.f32 %v7176_v21, %v7175_v29  ;;  %8471 = vpow2.f32 %v7052_v52  ;;  %v6596_v10 = vsel %vm6525_vm4, %v11187_v50, -inf }
 0x394   :  { %v7185_v20 = vrot.slane %v7184_v13, 1  ;;  %v7191_v49 = vadd.f32 %v7190_v33, %v7189_v6  ;;  %v6584_v0 = vmax.f32 %v6582_v60, %v6583_v47  ;;  %v6597_v35 = vrot.slane %v6596_v10, 4 }
 0x395   :  { %v7172_v4 = vadd.f32 %v7171_v14, %v7170_v30  ;;  %v7178_v56 = vrot.slane %v7177_v9, 1  ;;  %v6589_v28 = vsel %vm6525_vm4, %v11190_v27, -inf  ;;  %v6603_v36 = vsel %vm6525_vm4, %v11192_v11, -inf }
 0x396   :  { %v7186_v22 = vadd.f32 %v7185_v20, %v7184_v13  ;;  %v7192_v15 = vrot.slane %v7191_v49, 1  ;;  %v6585_v24 = vrot.slane %v6584_v0, 2  ;;  %v6598_v7 = vmax.f32 %v6596_v10, %v6597_v35 }
 0x397   :  { %8473 = vrcp.f32 %v7172_v4  ;;  %v7179_v48 = vadd.f32 %v7178_v56, %v7177_v9  ;;  %v6590_v62 = vrot.slane %v6589_v28, 4  ;;  %v6604_v34 = vrot.slane %v6603_v36, 4 }
 0x398   :  { %8475 = vrcp.f32 %v7186_v22  ;;  %v7193_v43 = vadd.f32 %v7192_v15, %v7191_v49  ;;  %v6586_v63 = vmax.f32 %v6584_v0, %v6585_v24  ;;  %v6599_v42 = vrot.slane %v6598_v7, 2 }
 0x399   :  { %v11203_v2 = vpop.eup %8465  ;;  %8477 = vrcp.f32 %v7179_v48  ;;  %v6591_v12 = vmax.f32 %v6589_v28, %v6590_v62  ;;  %v6605_v55 = vmax.f32 %v6603_v36, %v6604_v34  ;;  %v11216_v26 = vsub.s32 %v7874_v17, %v12220_v18 }
 0x39a   :  { %v11205_v57 = vpop.eup %8467  ;;  %8479 = vrcp.f32 %v7193_v43  ;;  %v7194_v58 = vsel %vm6525_vm4, %v11203_v2, 0.0  ;;  %v6587_v1 = vrot.slane %v6586_v63, 1  ;;  %v6600_v53 = vmax.f32 %v6598_v7, %v6599_v42 }
 0x39b   :  { %v7195_v59 = vrot.slane %v7194_v58, 4  ;;  %v7208_v16 = vsel %vm6525_vm4, %v11205_v57, 0.0  ;;  %v6592_v54 = vrot.slane %v6591_v12, 2  ;;  %v6606_v25 = vrot.slane %v6605_v55, 2 }
 0x39c   :  { %v11211_v40 = vpop.eup %8469  ;;  %v7209_v44 = vrot.slane %v7208_v16, 4  ;;  %v6588_v23 = vmax.f32 %v6586_v63, %v6587_v1  ;;  %v6601_v37 = vrot.slane %v6600_v53, 1 }
 0x39d   :  { %v11218_v29 = vpop.eup %8471  ;;  %v7196_v5 = vadd.f32 %v7195_v59, %v7194_v58  ;;  %v7201_v45 = vsel %vm6525_vm4, %v11211_v40, 0.0  ;;  %v6593_v41 = vmax.f32 %v6591_v12, %v6592_v54  ;;  %v6607_v8 = vmax.f32 %v6605_v55, %v6606_v25  ;;  %v11222_v6 = vpop.f32.mrb[12].mxu0 }
 0x39e   :  { %v11224_v39 = vpop.f32.mrb[12].mxu1  ;;  %v7210_v38 = vadd.f32 %v7209_v44, %v7208_v16  ;;  %v7202_v19 = vrot.slane %v7201_v45, 4  ;;  %v7215_v46 = vsel %vm6525_vm4, %v11218_v29, 0.0  ;;  %v6982_v17 = vsub.f32 %v11185_v31, %v6588_v23  ;;  %v11229_v30 = vpop.f32.mrb[13].mxu0 }
 0x39f   :  { %v11231_v21 = vpop.f32.mrb[13].mxu1  ;;  %v7197_v52 = vrot.slane %v7196_v5, 2  ;;  %v7216_v60 = vrot.slane %v7215_v46, 4  ;;  %v6602_v13 = vmax.f32 %v6600_v53, %v6601_v37  ;;  %v6594_v33 = vrot.slane %v6593_v41, 1  ;;  %v5497_v47 = vpop.f32.mrb[14].mxu0 }
 0x3a0   :  { %v5538_v14 = vpop.f32.mrb[14].mxu1  ;;  %v7211_v9 = vrot.slane %v7210_v38, 2  ;;  %v7203_v10 = vadd.f32 %v7202_v19, %v7201_v45  ;;  %v7054_v20 = vmul.f32 1.442695, %v6982_v17  ;;  %v6608_v49 = vrot.slane %v6607_v8, 1  ;;  %v5498_v0 = vpop.f32.mrb[15].mxu0 }
 0x3a1   :  { %v5539_v35 = vpop.f32.mrb[15].mxu1  ;;  %v8474_v4 = vpop.eup %8473  ;;  %v7198_v56 = vadd.f32 %v7197_v52, %v7196_v5  ;;  %v7217_v28 = vadd.f32 %v7216_v60, %v7215_v46  ;;  %v6984_v31 = vsub.f32 %v11187_v50, %v6602_v13  ;;  %v6595_v36 = vmax.f32 %v6593_v41, %v6594_v33 }
 0x3a2   :  { %v8476_v22 = vpop.eup %8475  ;;  %v7678_v15 = vmul.f32 %v8474_v4, %v11162_v32  ;;  %v7212_v24 = vadd.f32 %v7211_v9, %v7210_v38  ;;  %v7204_v7 = vrot.slane %v7203_v10, 2  ;;  %8481 = vpow2.f32 %v7054_v20 }
 0x3a3   :  { %v8478_v48 = vpop.eup %8477  ;;  %v7680_v62 = vmul.f32 %v8476_v22, %v11164_v3  ;;  %v7199_v34 = vrot.slane %v7198_v56, 1  ;;  %v7218_v43 = vrot.slane %v7217_v28, 2  ;;  %v7058_v63 = vmul.f32 1.442695, %v6984_v31 }
 0x3a4   :  { %v8480_v42 = vpop.eup %8479  ;;  %v7679_v12 = vmul.f32 %v8478_v48, %v11173_v61  ;;  %v7213_v55 = vrot.slane %v7212_v24, 1  ;;  %v7205_v58 = vadd.f32 %v7204_v7, %v7203_v10  ;;  %v6983_v50 = vsub.f32 %v11190_v27, %v6595_v36 }
 0x3a5   :  { %v7681_v1 = vmul.f32 %v8480_v42, %v11179_v51  ;;  %v7200_v53 = vadd.f32 %v7199_v34, %v7198_v56  ;;  %v7219_v32 = vadd.f32 %v7218_v43, %v7217_v28  ;;  %8483 = vpow2.f32 %v7058_v63 }
 0x3a6   :  { %v8406_v59 = vpack.c.bf16 %v7679_v12, %v7678_v15  ;;  %v7214_v16 = vadd.f32 %v7213_v55, %v7212_v24  ;;  %v7206_v54 = vrot.slane %v7205_v58, 1  ;;  %v7056_v25 = vmul.f32 1.442695, %v6983_v50 }
 0x3a7   :  { %v8407_v3 = vpack.c.bf16 %v7681_v1, %v7680_v62  ;;  %8485 = vrcp.f32 %v7200_v53  ;;  %v7220_v18 = vrot.slane %v7219_v32, 1  ;;  %v6609_v44 = vmax.f32 %v6607_v8, %v6608_v49 }
 0x3a8   :  { %v7878_v23 = vrot.slane %v8406_v59, %v11216_v26  ;;  %8487 = vrcp.f32 %v7214_v16  ;;  %v7207_v61 = vadd.f32 %v7206_v54, %v7205_v58  ;;  %v6610_v27 = vsel %vm6525_vm4, %v11222_v6, -inf }
 0x3a9   :  { %v7885_v51 = vrot.slane %v8407_v3, %v11216_v26  ;;  %v7221_v37 = vadd.f32 %v7220_v18, %v7219_v32  ;;  %8489 = vpow2.f32 %v7056_v25  ;;  %v6985_v5 = vsub.f32 %v11192_v11, %v6609_v44 }
 0x3aa   :  { %8491 = vrcp.f32 %v7207_v61  ;;  %v6611_v45 = vrot.slane %v6610_v27, 4  ;;  %v6624_v41 = vsel %vm6525_vm4, %v11224_v39, -inf  ;;  %v6617_v8 = vsel %vm6525_vm4, %v11229_v30, -inf }
 0x3ab   :  { %v7886_v38 = vcombine.low %v7878_v23, %v7885_v51  ;;  %8493 = vrcp.f32 %v7221_v37  ;;  %v7060_v19 = vmul.f32 1.442695, %v6985_v5  ;;  %v6625_v46 = vrot.slane %v6624_v41, 4 }
 0x3ac   :  { %v11248_v17 = vpop.eup %8481  ;;  %v6612_v52 = vmax.f32 %v6610_v27, %v6611_v45  ;;  %v6618_v60 = vrot.slane %v6617_v8, 4  ;;  %v6631_v13 = vsel %vm6525_vm4, %v11231_v21, -inf }
 0x3ad   :  { %8158 = vst [vmem:[%s11926_s4] sm:$0xff] %v7886_v38  ;;  %v7222_v11 = vsel %vm6525_vm4, %v11248_v17, 0.0  ;;  %8495 = vpow2.f32 %v7060_v19  ;;  %v6626_v33 = vmax.f32 %v6624_v41, %v6625_v46  ;;  %v6632_v47 = vrot.slane %v6631_v13, 4  ;;  %v11257_v14 = vpop.f32.mrb[16].mxu0  ;;  %v11259_v9 = vpop.f32.mrb[16].mxu1 }
 0x3ae   :  { %v7223_v10 = vrot.slane %v7222_v11, 4  ;;  %v6613_v20 = vrot.slane %v6612_v52, 2  ;;  %v6619_v49 = vmax.f32 %v6617_v8, %v6618_v60  ;;  %v6638_v0 = vsel %vm6525_vm4, %v11257_v14, -inf  ;;  %v11263_v35 = vpop.f32.mrb[17].mxu0  ;;  %v11265_v4 = vpop.f32.mrb[17].mxu1 }
 0x3af   :  { %v11267_v56 = vpop.eup %8483  ;;  %v6627_v28 = vrot.slane %v6626_v33, 2  ;;  %v6633_v31 = vmax.f32 %v6631_v13, %v6632_v47  ;;  %v6639_v36 = vrot.slane %v6638_v0, 4  ;;  %v11271_v22 = vsel %vm6525_vm4, %v11259_v9, -inf  ;;  %v5579_v15 = vpop.f32.mrb[18].mxu0 }
 0x3b0   :  { %v5620_v24 = vpop.f32.mrb[18].mxu1  ;;  %v7224_v7 = vadd.f32 %v7223_v10, %v7222_v11  ;;  %v7236_v48 = vsel %vm6525_vm4, %v11267_v56, 0.0  ;;  %v6614_v62 = vmax.f32 %v6612_v52, %v6613_v20  ;;  %v6620_v34 = vrot.slane %v6619_v49, 2  ;;  %v5580_v43 = vpop.f32.mrb[19].mxu0 }
 0x3b1   :  { %v5621_v63 = vpop.f32.mrb[19].mxu1  ;;  %v8486_v42 = vpop.eup %8485  ;;  %v7237_v12 = vrot.slane %v7236_v48, 4  ;;  %v6628_v55 = vmax.f32 %v6626_v33, %v6627_v28  ;;  %v6634_v58 = vrot.slane %v6633_v31, 2  ;;  %v11275_v50 = vmax.f32 %v6638_v0, %v6639_v36 }
 0x3b2   :  { %v8488_v1 = vpop.eup %8487  ;;  %v7682_v53 = vmul.f32 %v8486_v42, %v11203_v2  ;;  %v7225_v32 = vrot.slane %v7224_v7, 2  ;;  %v6615_v59 = vrot.slane %v6614_v62, 1  ;;  %v6621_v16 = vmax.f32 %v6619_v49, %v6620_v34 }
 0x3b3   :  { %v11278_v54 = vpop.eup %8489  ;;  %v7684_v25 = vmul.f32 %v8488_v1, %v11205_v57  ;;  %v7238_v3 = vadd.f32 %v7237_v12, %v7236_v48  ;;  %v6629_v18 = vrot.slane %v6628_v55, 1  ;;  %v6635_v44 = vmax.f32 %v6633_v31, %v6634_v58 }
 0x3b4   :  { %v8492_v23 = vpop.eup %8491  ;;  %v7226_v61 = vadd.f32 %v7225_v32, %v7224_v7  ;;  %v7229_v27 = vsel %vm6525_vm4, %v11278_v54, 0.0  ;;  %v6616_v51 = vmax.f32 %v6614_v62, %v6615_v59  ;;  %v6622_v37 = vrot.slane %v6621_v16, 1 }
 0x3b5   :  { %v8494_v5 = vpop.eup %8493  ;;  %v7683_v2 = vmul.f32 %v8492_v23, %v11211_v40  ;;  %v7239_v45 = vrot.slane %v7238_v3, 2  ;;  %v7230_v41 = vrot.slane %v7229_v27, 4  ;;  %v6630_v8 = vmax.f32 %v6628_v55, %v6629_v18 }
 0x3b6   :  { %v7685_v38 = vmul.f32 %v8494_v5, %v11218_v29  ;;  %v7227_v19 = vrot.slane %v7226_v61, 1  ;;  %v6986_v57 = vsub.f32 %v11222_v6, %v6616_v51  ;;  %v6623_v46 = vmax.f32 %v6621_v16, %v6622_v37 }
 0x3b7   :  { %v11286_v52 = vpop.eup %8495  ;;  %v8408_v60 = vpack.c.bf16 %v7683_v2, %v7682_v53  ;;  %v7240_v13 = vadd.f32 %v7239_v45, %v7238_v3  ;;  %v7231_v11 = vadd.f32 %v7230_v41, %v7229_v27  ;;  %v6988_v33 = vsub.f32 %v11224_v39, %v6630_v8 }
 0x3b8   :  { %v8409_v47 = vpack.c.bf16 %v7685_v38, %v7684_v25  ;;  %v7228_v10 = vadd.f32 %v7227_v19, %v7226_v61  ;;  %v7243_v40 = vsel %vm6525_vm4, %v11286_v52, 0.0  ;;  %v7062_v20 = vmul.f32 1.442695, %v6986_v57 }
 0x3b9   :  { %v7895_v49 = vrot.slane %v8408_v60, %v11216_v26  ;;  %v7241_v29 = vrot.slane %v7240_v13, 1  ;;  %v7232_v0 = vrot.slane %v7231_v11, 2  ;;  %v7244_v28 = vrot.slane %v7243_v40, 4 }
 0x3ba   :  { %v7902_v6 = vrot.slane %v8409_v47, %v11216_v26  ;;  %8497 = vrcp.f32 %v7228_v10  ;;  %v7066_v31 = vmul.f32 1.442695, %v6988_v33  ;;  %v6987_v36 = vsub.f32 %v11229_v30, %v6623_v46 }
 0x3bb   :  { %v7242_v15 = vadd.f32 %v7241_v29, %v7240_v13  ;;  %v7233_v24 = vadd.f32 %v7232_v0, %v7231_v11  ;;  %v7245_v39 = vadd.f32 %v7244_v28, %v7243_v40  ;;  %8499 = vpow2.f32 %v7062_v20 }
 0x3bc   :  { %v7903_v7 = vcombine.low %v7895_v49, %v7902_v6  ;;  %8501 = vpow2.f32 %v7066_v31  ;;  %v7064_v48 = vmul.f32 1.442695, %v6987_v36  ;;  %v6636_v62 = vrot.slane %v6635_v44, 1 }
 0x3bd   :  { %8503 = vrcp.f32 %v7242_v15  ;;  %v7234_v34 = vrot.slane %v7233_v24, 1  ;;  %v7246_v43 = vrot.slane %v7245_v39, 2  ;;  %v6641_v63 = vrot.slane %v11275_v50, 2  ;;  %v11295_v42 = vpop.f32.mrb[20].mxu0  ;;  %v11297_v12 = vpop.f32.mrb[20].mxu1 }
 0x3be   :  { %8159 = vst [vmem:[%s11926_s4 + $0x8] sm:$0xff] %v7903_v7  ;;  %8505 = vpow2.f32 %v7064_v48  ;;  %v6637_v30 = vmax.f32 %v6635_v44, %v6636_v62  ;;  %v6653_v55 = vrot.slane %v11271_v22, 4  ;;  %v6645_v58 = vsel %vm6525_vm4, %v11263_v35, -inf  ;;  %v11305_v1 = vpop.f32.mrb[21].mxu0  ;;  %v11307_v53 = vpop.f32.mrb[21].mxu1 }
 0x3bf   :  { %v7235_v32 = vadd.f32 %v7234_v34, %v7233_v24  ;;  %v7247_v59 = vadd.f32 %v7246_v43, %v7245_v39  ;;  %v6642_v16 = vmax.f32 %v11275_v50, %v6641_v63  ;;  %v6646_v25 = vrot.slane %v6645_v58, 4  ;;  %v5661_v3 = vpop.f32.mrb[22].mxu0  ;;  %v5702_v18 = vpop.f32.mrb[22].mxu1 }
 0x3c0   :  { %v6989_v23 = vsub.f32 %v11231_v21, %v6637_v30  ;;  %v6654_v44 = vmax.f32 %v11271_v22, %v6653_v55  ;;  %v6659_v61 = vsel %vm6525_vm4, %v11265_v4, -inf  ;;  %v6666_v27 = vsel %vm6525_vm4, %v11295_v42, -inf  ;;  %v5662_v51 = vpop.f32.mrb[23].mxu0  ;;  %v5703_v37 = vpop.f32.mrb[23].mxu1 }
 0x3c1   :  { %8507 = vrcp.f32 %v7235_v32  ;;  %v7248_v5 = vrot.slane %v7247_v59, 1  ;;  %v6643_v2 = vrot.slane %v6642_v16, 1  ;;  %v6647_v45 = vmax.f32 %v6645_v58, %v6646_v25 }
 0x3c2   :  { %v7068_v50 = vmul.f32 1.442695, %v6989_v23  ;;  %v6655_v41 = vrot.slane %v6654_v44, 2  ;;  %v6660_v8 = vrot.slane %v6659_v61, 4  ;;  %v6667_v38 = vrot.slane %v6666_v27, 4 }
 0x3c3   :  { %v7249_v19 = vadd.f32 %v7248_v5, %v7247_v59  ;;  %v6644_v21 = vmax.f32 %v6642_v16, %v6643_v2  ;;  %v6648_v57 = vrot.slane %v6647_v45, 2  ;;  %v11318_v22 = vsel %vm6525_vm4, %v11297_v12, -inf }
 0x3c4   :  { %v8498_v46 = vpop.eup %8497  ;;  %8509 = vpow2.f32 %v7068_v50  ;;  %v6656_v60 = vmax.f32 %v6654_v44, %v6655_v41  ;;  %v6661_v13 = vmax.f32 %v6659_v61, %v6660_v8  ;;  %v6668_v11 = vmax.f32 %v6666_v27, %v6667_v38 }
 0x3c5   :  { %v11320_v33 = vpop.eup %8499  ;;  %v7686_v47 = vmul.f32 %v8498_v46, %v11248_v17  ;;  %8511 = vrcp.f32 %v7249_v19  ;;  %v6990_v10 = vsub.f32 %v11257_v14, %v6644_v21  ;;  %v6649_v40 = vmax.f32 %v6647_v45, %v6648_v57 }
 0x3c6   :  { %v11324_v20 = vpop.eup %8501  ;;  %v7250_v49 = vsel %vm6525_vm4, %v11320_v33, 0.0  ;;  %v6657_v29 = vrot.slane %v6656_v60, 1  ;;  %v6662_v0 = vrot.slane %v6661_v13, 2  ;;  %v6669_v28 = vrot.slane %v6668_v11, 2 }
 0x3c7   :  { %v8504_v6 = vpop.eup %8503  ;;  %v7251_v31 = vrot.slane %v7250_v49, 4  ;;  %v7264_v36 = vsel %vm6525_vm4, %v11324_v20, 0.0  ;;  %v7070_v15 = vmul.f32 1.442695, %v6990_v10  ;;  %v6650_v24 = vrot.slane %v6649_v40, 1 }
 0x3c8   :  { %v11330_v17 = vpop.eup %8505  ;;  %v7688_v14 = vmul.f32 %v8504_v6, %v11267_v56  ;;  %v7265_v39 = vrot.slane %v7264_v36, 4  ;;  %v6658_v7 = vmax.f32 %v6656_v60, %v6657_v29  ;;  %v6663_v48 = vmax.f32 %v6661_v13, %v6662_v0 }
 0x3c9   :  { %v7252_v62 = vadd.f32 %v7251_v31, %v7250_v49  ;;  %v7257_v34 = vsel %vm6525_vm4, %v11330_v17, 0.0  ;;  %8513 = vpow2.f32 %v7070_v15  ;;  %v6651_v43 = vmax.f32 %v6649_v40, %v6650_v24 }
 0x3ca   :  { %v7266_v63 = vadd.f32 %v7265_v39, %v7264_v36  ;;  %v7258_v30 = vrot.slane %v7257_v34, 4  ;;  %v6992_v55 = vsub.f32 %v11259_v9, %v6658_v7  ;;  %v6664_v58 = vrot.slane %v6663_v48, 1 }
 0x3cb   :  { %v8508_v32 = vpop.eup %8507  ;;  %v7253_v59 = vrot.slane %v7252_v62, 2  ;;  %v6991_v16 = vsub.f32 %v11263_v35, %v6651_v43  ;;  %v6670_v25 = vmax.f32 %v6668_v11, %v6669_v28  ;;  %v6681_v56 = vrot.slane %v11318_v22, 4 }
 0x3cc   :  { %v7687_v3 = vmul.f32 %v8508_v32, %v11278_v54  ;;  %v7267_v18 = vrot.slane %v7266_v63, 2  ;;  %v7259_v23 = vadd.f32 %v7258_v30, %v7257_v34  ;;  %v7074_v44 = vmul.f32 1.442695, %v6992_v55 }
 0x3cd   :  { %v7254_v61 = vadd.f32 %v7253_v59, %v7252_v62  ;;  %v7072_v27 = vmul.f32 1.442695, %v6991_v16  ;;  %v6665_v51 = vmax.f32 %v6663_v48, %v6664_v58  ;;  %v6671_v37 = vrot.slane %v6670_v25, 1  ;;  %v11339_v5 = vpop.f32.mrb[24].mxu0  ;;  %v11341_v9 = vpop.f32.mrb[24].mxu1 }
 0x3ce   :  { %v11343_v2 = vpop.eup %8509  ;;  %v8410_v45 = vpack.c.bf16 %v7687_v3, %v7686_v47  ;;  %v7268_v35 = vadd.f32 %v7267_v18, %v7266_v63  ;;  %v7260_v50 = vrot.slane %v7259_v23, 2  ;;  %8515 = vpow2.f32 %v7074_v44  ;;  %v11345_v41 = vpop.f32.mrb[25].mxu0 }
 0x3cf   :  { %v11347_v54 = vpop.f32.mrb[25].mxu1  ;;  %v8512_v8 = vpop.eup %8511  ;;  %v7255_v38 = vrot.slane %v7254_v61, 1  ;;  %v7271_v19 = vsel %vm6525_vm4, %v11343_v2, 0.0  ;;  %8517 = vpow2.f32 %v7072_v27  ;;  %v6993_v21 = vsub.f32 %v11265_v4, %v6665_v51 }
 0x3d0   :  { %v5743_v57 = vpop.f32.mrb[26].mxu0  ;;  %v5784_v46 = vpop.f32.mrb[26].mxu1  ;;  %v7912_v60 = vrot.slane %v8410_v45, %v11216_v26  ;;  %v7689_v13 = vmul.f32 %v8512_v8, %v11286_v52  ;;  %v7269_v11 = vrot.slane %v7268_v35, 1  ;;  %v7261_v47 = vadd.f32 %v7260_v50, %v7259_v23 }
 0x3d1   :  { %v5744_v10 = vpop.f32.mrb[27].mxu0  ;;  %v5785_v40 = vpop.f32.mrb[27].mxu1  ;;  %v7256_v49 = vadd.f32 %v7255_v38, %v7254_v61  ;;  %v7272_v29 = vrot.slane %v7271_v19, 4  ;;  %v7076_v0 = vmul.f32 1.442695, %v6993_v21  ;;  %v6672_v28 = vmax.f32 %v6670_v25, %v6671_v37 }
 0x3d2   :  { %v8411_v6 = vpack.c.bf16 %v7689_v13, %v7688_v14  ;;  %v7270_v31 = vadd.f32 %v7269_v11, %v7268_v35  ;;  %v7262_v36 = vrot.slane %v7261_v47, 1  ;;  %v6682_v15 = vmax.f32 %v11318_v22, %v6681_v56 }
 0x3d3   :  { %v11355_v4 = vpop.eup %8513  ;;  %8519 = vrcp.f32 %v7256_v49  ;;  %v7273_v24 = vadd.f32 %v7272_v29, %v7271_v19  ;;  %v6994_v39 = vsub.f32 %v11295_v42, %v6672_v28  ;;  %v6673_v52 = vsel %vm6525_vm4, %v11305_v1, -inf }
 0x3d4   :  { %v7919_v7 = vrot.slane %v8411_v6, %v11216_v26  ;;  %8521 = vrcp.f32 %v7270_v31  ;;  %v7263_v48 = vadd.f32 %v7262_v36, %v7261_v47  ;;  %v7278_v14 = vsel %vm6525_vm4, %v11355_v4, 0.0 }
 0x3d5   :  { %v7274_v62 = vrot.slane %v7273_v24, 2  ;;  %v7279_v34 = vrot.slane %v7278_v14, 4  ;;  %8523 = vpow2.f32 %v7076_v0  ;;  %v7078_v22 = vmul.f32 1.442695, %v6994_v39 }
 0x3d6   :  { %v7920_v43 = vcombine.low %v7912_v60, %v7919_v7  ;;  %8525 = vrcp.f32 %v7263_v48  ;;  %v6683_v63 = vrot.slane %v6682_v15, 2  ;;  %v6674_v30 = vrot.slane %v6673_v52, 4 }
 0x3d7   :  { %v7275_v55 = vadd.f32 %v7274_v62, %v7273_v24  ;;  %v7280_v42 = vadd.f32 %v7279_v34, %v7278_v14  ;;  %8527 = vpow2.f32 %v7078_v22  ;;  %v6687_v58 = vsel %vm6525_vm4, %v11307_v53, -inf }
 0x3d8   :  { %v11365_v32 = vpop.eup %8515  ;;  %8160 = vst [vmem:[%s11926_s4 + $0x10] sm:$0xff] %v7920_v43  ;;  %v6684_v59 = vmax.f32 %v6682_v15, %v6683_v63  ;;  %v6675_v16 = vmax.f32 %v6673_v52, %v6674_v30  ;;  %v6688_v25 = vrot.slane %v6687_v58, 4  ;;  %v6694_v56 = vsel %vm6525_vm4, %v11339_v5, -inf }
 0x3d9   :  { %v11372_v3 = vpop.eup %8517  ;;  %v7276_v18 = vrot.slane %v7275_v55, 1  ;;  %v7281_v23 = vrot.slane %v7280_v42, 2  ;;  %v7292_v44 = vsel %vm6525_vm4, %v11365_v32, 0.0  ;;  %v6695_v61 = vrot.slane %v6694_v56, 4 }
 0x3da   :  { %v7293_v27 = vrot.slane %v7292_v44, 4  ;;  %v7285_v51 = vsel %vm6525_vm4, %v11372_v3, 0.0  ;;  %v6685_v37 = vrot.slane %v6684_v59, 1  ;;  %v6676_v45 = vrot.slane %v6675_v16, 2 }
 0x3db   :  { %v7277_v35 = vadd.f32 %v7276_v18, %v7275_v55  ;;  %v7282_v50 = vadd.f32 %v7281_v23, %v7280_v42  ;;  %v7286_v8 = vrot.slane %v7285_v51, 4  ;;  %v6689_v38 = vmax.f32 %v6687_v58, %v6688_v25 }
 0x3dc   :  { %v7294_v19 = vadd.f32 %v7293_v27, %v7292_v44  ;;  %v6686_v21 = vmax.f32 %v6684_v59, %v6685_v37  ;;  %v6677_v57 = vmax.f32 %v6675_v16, %v6676_v45  ;;  %v6696_v46 = vmax.f32 %v6694_v56, %v6695_v61 }
 0x3dd   :  { %v8520_v60 = vpop.eup %8519  ;;  %8529 = vrcp.f32 %v7277_v35  ;;  %v7283_v13 = vrot.slane %v7282_v50, 1  ;;  %v7287_v11 = vadd.f32 %v7286_v8, %v7285_v51  ;;  %v6690_v47 = vrot.slane %v6689_v38, 2  ;;  %v11378_v10 = vpop.f32.mrb[28].mxu0 }
 0x3de   :  { %v11380_v40 = vpop.f32.mrb[28].mxu1  ;;  %v8522_v49 = vpop.eup %8521  ;;  %v7690_v29 = vmul.f32 %v8520_v60, %v11320_v33  ;;  %v7295_v0 = vrot.slane %v7294_v19, 2  ;;  %v6996_v28 = vsub.f32 %v11297_v12, %v6686_v21  ;;  %v6678_v6 = vrot.slane %v6677_v57, 1 }
 0x3df   :  { %v11384_v31 = vpop.f32.mrb[29].mxu0  ;;  %v11386_v36 = vpop.f32.mrb[29].mxu1  ;;  %v7692_v24 = vmul.f32 %v8522_v49, %v11324_v20  ;;  %v7284_v39 = vadd.f32 %v7283_v13, %v7282_v50  ;;  %v7288_v52 = vrot.slane %v7287_v11, 2  ;;  %v6691_v7 = vmax.f32 %v6689_v38, %v6690_v47 }
 0x3e0   :  { %v11388_v15 = vpop.eup %8523  ;;  %v5825_v48 = vpop.f32.mrb[30].mxu0  ;;  %v7296_v34 = vadd.f32 %v7295_v0, %v7294_v19  ;;  %v7082_v12 = vmul.f32 1.442695, %v6996_v28  ;;  %v6679_v22 = vmax.f32 %v6677_v57, %v6678_v6  ;;  %v6697_v51 = vrot.slane %v6696_v46, 2 }
 0x3e1   :  { %v5866_v14 = vpop.f32.mrb[30].mxu1  ;;  %v8526_v62 = vpop.eup %8525  ;;  %v7299_v33 = vsel %vm6525_vm4, %v11388_v15, 0.0  ;;  %8531 = vrcp.f32 %v7284_v39  ;;  %v7289_v20 = vadd.f32 %v7288_v52, %v7287_v11  ;;  %v6692_v27 = vrot.slane %v6691_v7, 1 }
 0x3e2   :  { %v5826_v43 = vpop.f32.mrb[31].mxu0  ;;  %v5867_v63 = vpop.f32.mrb[31].mxu1  ;;  %v7691_v55 = vmul.f32 %v8526_v62, %v11330_v17  ;;  %v7300_v42 = vrot.slane %v7299_v33, 4  ;;  %v7297_v58 = vrot.slane %v7296_v34, 1  ;;  %8533 = vpow2.f32 %v7082_v12 }
 0x3e3   :  { %v11393_v30 = vpop.eup %8527  ;;  %v6995_v16 = vsub.f32 %v11305_v1, %v6679_v22  ;;  %v7290_v56 = vrot.slane %v7289_v20, 1  ;;  %v6693_v50 = vmax.f32 %v6691_v7, %v6692_v27  ;;  %v6698_v8 = vmax.f32 %v6696_v46, %v6697_v51 }
 0x3e4   :  { %v7306_v59 = vsel %vm6525_vm4, %v11393_v30, 0.0  ;;  %v8412_v25 = vpack.c.bf16 %v7691_v55, %v7690_v29  ;;  %v7301_v18 = vadd.f32 %v7300_v42, %v7299_v33  ;;  %v7298_v44 = vadd.f32 %v7297_v58, %v7296_v34 }
 0x3e5   :  { %v7307_v23 = vrot.slane %v7306_v59, 4  ;;  %v7080_v61 = vmul.f32 1.442695, %v6995_v16  ;;  %v7291_v37 = vadd.f32 %v7290_v56, %v7289_v20  ;;  %v6708_v38 = vsel %vm6525_vm4, %v11341_v9, -inf }
 0x3e6   :  { %v7929_v17 = vrot.slane %v8412_v25, %v11216_v26  ;;  %v7302_v45 = vrot.slane %v7301_v18, 2  ;;  %8535 = vrcp.f32 %v7298_v44  ;;  %v6709_v57 = vrot.slane %v6708_v38, 4 }
 0x3e7   :  { %v7308_v35 = vadd.f32 %v7307_v23, %v7306_v59  ;;  %v8530_v1 = vpop.eup %8529  ;;  %8537 = vrcp.f32 %v7291_v37  ;;  %v6997_v13 = vsub.f32 %v11307_v53, %v6693_v50  ;;  %v6699_v11 = vrot.slane %v6698_v8, 1 }
 0x3e8   :  { %v7303_v19 = vadd.f32 %v7302_v45, %v7301_v18  ;;  %v7693_v60 = vmul.f32 %v8530_v1, %v11343_v2  ;;  %8539 = vpow2.f32 %v7080_v61  ;;  %v6710_v29 = vmax.f32 %v6708_v38, %v6709_v57 }
 0x3e9   :  { %v7309_v21 = vrot.slane %v7308_v35, 2  ;;  %v6701_v46 = vsel %vm6525_vm4, %v11345_v41, -inf  ;;  %v7084_v28 = vmul.f32 1.442695, %v6997_v13  ;;  %v6700_v6 = vmax.f32 %v6698_v8, %v6699_v11 }
 0x3ea   :  { %v7304_v47 = vrot.slane %v7303_v19, 1  ;;  %v8413_v0 = vpack.c.bf16 %v7693_v60, %v7692_v24  ;;  %v6702_v39 = vrot.slane %v6701_v46, 4  ;;  %v6711_v14 = vrot.slane %v6710_v29, 2 }
 0x3eb   :  { %v7310_v49 = vadd.f32 %v7309_v21, %v7308_v35  ;;  %v8532_v52 = vpop.eup %8531  ;;  %v6715_v2 = vsel %vm6525_vm4, %v11347_v54, -inf  ;;  %8541 = vpow2.f32 %v7084_v28  ;;  %v6998_v33 = vsub.f32 %v11339_v5, %v6700_v6 }
 0x3ec   :  { %v7305_v7 = vadd.f32 %v7304_v47, %v7303_v19  ;;  %v11408_v62 = vpop.eup %8533  ;;  %v7936_v53 = vrot.slane %v8413_v0, %v11216_v26  ;;  %v7694_v34 = vmul.f32 %v8532_v52, %v11355_v4  ;;  %v6712_v22 = vmax.f32 %v6710_v29, %v6711_v14 }
 0x3ed   :  { %v7311_v48 = vrot.slane %v7310_v49, 1  ;;  %v7320_v12 = vsel %vm6525_vm4, %v11408_v62, 0.0  ;;  %v11415_v43 = vpop.f32.mrb[32].mxu0  ;;  %v11417_v63 = vpop.f32.mrb[32].mxu1  ;;  %v7086_v42 = vmul.f32 1.442695, %v6998_v33  ;;  %v6703_v58 = vmax.f32 %v6701_v46, %v6702_v39 }
 0x3ee   :  { %8543 = vrcp.f32 %v7305_v7  ;;  %v7937_v55 = vcombine.low %v7929_v17, %v7936_v53  ;;  %v7321_v20 = vrot.slane %v7320_v12, 4  ;;  %v11419_v59 = vpop.f32.mrb[33].mxu0  ;;  %v11421_v4 = vpop.f32.mrb[33].mxu1  ;;  %v6713_v5 = vrot.slane %v6712_v22, 1 }
 0x3ef   :  { %v7312_v24 = vadd.f32 %v7311_v48, %v7310_v49  ;;  %v6716_v16 = vrot.slane %v6715_v2, 4  ;;  %v6722_v25 = vsel %vm6525_vm4, %v11378_v10, -inf  ;;  %v5907_v56 = vpop.f32.mrb[34].mxu0  ;;  %v5948_v18 = vpop.f32.mrb[34].mxu1  ;;  %v6704_v61 = vrot.slane %v6703_v58, 2 }
 0x3f0   :  { %v8536_v23 = vpop.eup %8535  ;;  %8161 = vst [vmem:[%s11926_s4 + $0x18] sm:$0xff] %v7937_v55  ;;  %v7322_v44 = vadd.f32 %v7321_v20, %v7320_v12  ;;  %v6723_v27 = vrot.slane %v6722_v25, 4  ;;  %v5908_v51 = vpop.f32.mrb[35].mxu0  ;;  %v6714_v35 = vmax.f32 %v6712_v22, %v6713_v5  ;;  %v6736_v8 = vsel %vm6525_vm4, %v11380_v40, -inf }
 0x3f1   :  { %8545 = vrcp.f32 %v7312_v24  ;;  %v5949_v17 = vpop.f32.mrb[35].mxu1  ;;  %v8538_v37 = vpop.eup %8537  ;;  %v7696_v45 = vmul.f32 %v8536_v23, %v11365_v32  ;;  %v6717_v50 = vmax.f32 %v6715_v2, %v6716_v16  ;;  %v6705_v21 = vmax.f32 %v6703_v58, %v6704_v61 }
 0x3f2   :  { %8547 = vpow2.f32 %v7086_v42  ;;  %v11431_v38 = vpop.eup %8539  ;;  %v7695_v1 = vmul.f32 %v8538_v37, %v11372_v3  ;;  %v7323_v19 = vrot.slane %v7322_v44, 2  ;;  %v6724_v57 = vmax.f32 %v6722_v25, %v6723_v27 }
 0x3f3   :  { %v7313_v60 = vsel %vm6525_vm4, %v11431_v38, 0.0  ;;  %v7000_v13 = vsub.f32 %v11341_v9, %v6714_v35  ;;  %v6718_v11 = vrot.slane %v6717_v50, 2  ;;  %v6737_v47 = vrot.slane %v6736_v8, 4 }
 0x3f4   :  { %v8414_v32 = vpack.c.bf16 %v7695_v1, %v7694_v34  ;;  %v7324_v49 = vadd.f32 %v7323_v19, %v7322_v44  ;;  %v7314_v29 = vrot.slane %v7313_v60, 4  ;;  %v6706_v46 = vrot.slane %v6705_v21, 1 }
 0x3f5   :  { %v7090_v0 = vmul.f32 1.442695, %v7000_v13  ;;  %v6719_v28 = vmax.f32 %v6717_v50, %v6718_v11  ;;  %v6725_v6 = vrot.slane %v6724_v57, 2  ;;  %v6738_v39 = vmax.f32 %v6736_v8, %v6737_v47  ;;  %v11437_v52 = vpop.eup %8541 }
 0x3f6   :  { %v7946_v3 = vrot.slane %v8414_v32, %v11216_v26  ;;  %v7325_v7 = vrot.slane %v7324_v49, 1  ;;  %v7315_v48 = vadd.f32 %v7314_v29, %v7313_v60  ;;  %v6707_v14 = vmax.f32 %v6705_v21, %v6706_v46 }
 0x3f7   :  { %v7327_v9 = vsel %vm6525_vm4, %v11437_v52, 0.0  ;;  %8549 = vpow2.f32 %v7090_v0  ;;  %v6720_v53 = vrot.slane %v6719_v28, 1  ;;  %v6726_v34 = vmax.f32 %v6724_v57, %v6725_v6 }
 0x3f8   :  { %v8544_v2 = vpop.eup %8543  ;;  %v7326_v24 = vadd.f32 %v7325_v7, %v7324_v49  ;;  %v7316_v12 = vrot.slane %v7315_v48, 2  ;;  %v7328_v22 = vrot.slane %v7327_v9, 4  ;;  %v6999_v20 = vsub.f32 %v11345_v41, %v6707_v14 }
 0x3f9   :  { %v7697_v33 = vmul.f32 %v8544_v2, %v11388_v15  ;;  %v6721_v42 = vmax.f32 %v6719_v28, %v6720_v53  ;;  %v6727_v58 = vrot.slane %v6726_v34, 1  ;;  %v6739_v5 = vrot.slane %v6738_v39, 2 }
 0x3fa   :  { %8551 = vrcp.f32 %v7326_v24  ;;  %v7317_v18 = vadd.f32 %v7316_v12, %v7315_v48  ;;  %v7329_v23 = vadd.f32 %v7328_v22, %v7327_v9  ;;  %v7088_v44 = vmul.f32 1.442695, %v6999_v20 }
 0x3fb   :  { %v8546_v55 = vpop.eup %8545  ;;  %v8415_v25 = vpack.c.bf16 %v7697_v33, %v7696_v45  ;;  %v7001_v61 = vsub.f32 %v11347_v54, %v6721_v42  ;;  %v6728_v17 = vmax.f32 %v6726_v34, %v6727_v58  ;;  %v6740_v35 = vmax.f32 %v6738_v39, %v6739_v5 }
 0x3fc   :  { %v11444_v16 = vpop.eup %8547  ;;  %v11447_v56 = vmul.f32 %v8546_v55, %v11393_v30  ;;  %v7318_v27 = vrot.slane %v7317_v18, 1  ;;  %v7330_v37 = vrot.slane %v7329_v23, 2  ;;  %8553 = vpow2.f32 %v7088_v44 }
 0x3fd   :  { %v7334_v15 = vsel %vm6525_vm4, %v11444_v16, 0.0  ;;  %v7953_v41 = vrot.slane %v8415_v25, %v11216_v26  ;;  %v7092_v45 = vmul.f32 1.442695, %v7001_v61  ;;  %v11453_v30 = vpop.f32.mrb[36].mxu0  ;;  %v11455_v50 = vpop.f32.mrb[36].mxu1  ;;  %v7002_v21 = vsub.f32 %v11378_v10, %v6728_v17 }
 0x3fe   :  { %v7335_v51 = vrot.slane %v7334_v15, 4  ;;  %v7319_v1 = vadd.f32 %v7318_v27, %v7317_v18  ;;  %v11458_v57 = vpop.f32.mrb[37].mxu0  ;;  %v11460_v54 = vpop.f32.mrb[37].mxu1  ;;  %v7331_v60 = vadd.f32 %v7330_v37, %v7329_v23  ;;  %v6741_v13 = vrot.slane %v6740_v35, 1 }
 0x3ff   :  { %v7954_v8 = vcombine.low %v7946_v3, %v7953_v41  ;;  %8555 = vpow2.f32 %v7092_v45  ;;  %v6729_v11 = vsel %vm6525_vm4, %v11384_v31, -inf  ;;  %v5989_v47 = vpop.f32.mrb[38].mxu0  ;;  %v6030_v32 = vpop.f32.mrb[38].mxu1  ;;  %v7094_v29 = vmul.f32 1.442695, %v7002_v21 }
 0x400   :  { %v7336_v19 = vadd.f32 %v7335_v51, %v7334_v15  ;;  %8557 = vrcp.f32 %v7319_v1  ;;  %v6730_v10 = vrot.slane %v6729_v11, 4  ;;  %v5990_v46 = vpop.f32.mrb[39].mxu0  ;;  %v6031_v0 = vpop.f32.mrb[39].mxu1  ;;  %v7332_v6 = vrot.slane %v7331_v60, 1 }
 0x401   :  { %8162 = vst [vmem:[%s11926_s4 + $0x20] sm:$0xff] %v7954_v8  ;;  %v11467_v28 = vpop.eup %8549  ;;  %v6742_v39 = vmax.f32 %v6740_v35, %v6741_v13  ;;  %v6743_v3 = vsel %vm6525_vm4, %v11386_v36, -inf  ;;  %v6750_v7 = vsel %vm6525_vm4, %v11415_v43, -inf  ;;  %8559 = vpow2.f32 %v7094_v29 }
 0x402   :  { %v7337_v49 = vrot.slane %v7336_v19, 2  ;;  %v7348_v14 = vsel %vm6525_vm4, %v11467_v28, 0.0  ;;  %v6731_v2 = vmax.f32 %v6729_v11, %v6730_v10  ;;  %v7333_v9 = vadd.f32 %v7332_v6, %v7331_v60 }
 0x403   :  { %v7349_v53 = vrot.slane %v7348_v14, 4  ;;  %v7004_v34 = vsub.f32 %v11380_v40, %v6742_v39  ;;  %v6744_v33 = vrot.slane %v6743_v3, 4  ;;  %v6751_v55 = vrot.slane %v6750_v7, 4 }
 0x404   :  { %v7338_v48 = vadd.f32 %v7337_v49, %v7336_v19  ;;  %v8552_v24 = vpop.eup %8551  ;;  %v6732_v22 = vrot.slane %v6731_v2, 2  ;;  %v6764_v20 = vsel %vm6525_vm4, %v11417_v63, -inf  ;;  %8561 = vrcp.f32 %v7333_v9 }
 0x405   :  { %v11479_v42 = vmul.f32 %v8552_v24, %v11408_v62  ;;  %v7350_v58 = vadd.f32 %v7349_v53, %v7348_v14  ;;  %v7098_v5 = vmul.f32 1.442695, %v7004_v34  ;;  %v6745_v23 = vmax.f32 %v6743_v3, %v6744_v33 }
 0x406   :  { %v7339_v12 = vrot.slane %v7338_v48, 1  ;;  %v6733_v18 = vmax.f32 %v6731_v2, %v6732_v22  ;;  %v6752_v15 = vmax.f32 %v6750_v7, %v6751_v55  ;;  %v11481_v44 = vpop.eup %8553  ;;  %v6765_v61 = vrot.slane %v6764_v20, 4 }
 0x407   :  { %v7351_v40 = vrot.slane %v7350_v58, 2  ;;  %8563 = vpow2.f32 %v7098_v5  ;;  %v11485_v41 = vsel %vm6525_vm4, %v11419_v59, -inf  ;;  %v7341_v62 = vsel %vm6525_vm4, %v11481_v44, 0.0 }
 0x408   :  { %v7340_v25 = vadd.f32 %v7339_v12, %v7338_v48  ;;  %v6734_v27 = vrot.slane %v6733_v18, 1  ;;  %v6746_v51 = vrot.slane %v6745_v23, 2  ;;  %v7342_v45 = vrot.slane %v7341_v62, 4 }
 0x409   :  { %v11489_v17 = vpop.eup %8555  ;;  %v7352_v37 = vadd.f32 %v7351_v40, %v7350_v58  ;;  %v6753_v35 = vrot.slane %v6752_v15, 2  ;;  %v6766_v8 = vmax.f32 %v6764_v20, %v6765_v61  ;;  %v6758_v13 = vrot.slane %v11485_v41, 4 }
 0x40a   :  { %8565 = vrcp.f32 %v7340_v25  ;;  %v8558_v1 = vpop.eup %8557  ;;  %v7355_v19 = vsel %vm6525_vm4, %v11489_v17, 0.0  ;;  %v6735_v21 = vmax.f32 %v6733_v18, %v6734_v27  ;;  %v6747_v60 = vmax.f32 %v6745_v23, %v6746_v51 }
 0x40b   :  { %v7699_v11 = vmul.f32 %v8558_v1, %v11431_v38  ;;  %v7353_v47 = vrot.slane %v7352_v37, 1  ;;  %v7343_v32 = vadd.f32 %v7342_v45, %v7341_v62  ;;  %v7356_v49 = vrot.slane %v7355_v19, 4  ;;  %v11495_v29 = vpop.eup %8559 }
 0x40c   :  { %v7003_v10 = vsub.f32 %v11384_v31, %v6735_v21  ;;  %v6748_v46 = vrot.slane %v6747_v60, 1  ;;  %v6754_v0 = vmax.f32 %v6752_v15, %v6753_v35  ;;  %v6767_v6 = vrot.slane %v6766_v8, 2 }
 0x40d   :  { %v8416_v39 = vpack.c.bf16 %v7699_v11, %v11447_v56  ;;  %v7354_v3 = vadd.f32 %v7353_v47, %v7352_v37  ;;  %v7344_v7 = vrot.slane %v7343_v32, 2  ;;  %v7357_v48 = vadd.f32 %v7356_v49, %v7355_v19  ;;  %v11499_v14 = vpop.f32.mrb[40].mxu0  ;;  %v11501_v2 = vpop.f32.mrb[40].mxu1 }
 0x40e   :  { %v7362_v38 = vsel %vm6525_vm4, %v11495_v29, 0.0  ;;  %v7096_v9 = vmul.f32 1.442695, %v7003_v10  ;;  %v6749_v53 = vmax.f32 %v6747_v60, %v6748_v46  ;;  %v6755_v34 = vrot.slane %v6754_v0, 1  ;;  %v11505_v33 = vpop.f32.mrb[41].mxu0  ;;  %v11507_v31 = vpop.f32.mrb[41].mxu1 }
 0x40f   :  { %v8562_v24 = vpop.eup %8561  ;;  %v7963_v56 = vrot.slane %v8416_v39, %v11216_v26  ;;  %8567 = vrcp.f32 %v7354_v3  ;;  %v7345_v12 = vadd.f32 %v7344_v7, %v7343_v32  ;;  %v7358_v22 = vrot.slane %v7357_v48, 2  ;;  %v6071_v55 = vpop.f32.mrb[42].mxu0 }
 0x410   :  { %v6112_v20 = vpop.f32.mrb[42].mxu1  ;;  %v7701_v58 = vmul.f32 %v8562_v24, %v11437_v52  ;;  %v7363_v5 = vrot.slane %v7362_v38, 4  ;;  %8569 = vpow2.f32 %v7096_v9  ;;  %v7005_v25 = vsub.f32 %v11386_v36, %v6749_v53  ;;  %v6072_v18 = vpop.f32.mrb[43].mxu0 }
 0x411   :  { %v6113_v23 = vpop.f32.mrb[43].mxu1  ;;  %v11512_v15 = vpop.eup %8563  ;;  %v7346_v40 = vrot.slane %v7345_v12, 1  ;;  %v7359_v61 = vadd.f32 %v7358_v22, %v7357_v48  ;;  %v6756_v62 = vmax.f32 %v6754_v0, %v6755_v34  ;;  %v6768_v27 = vmax.f32 %v6766_v8, %v6767_v6 }
 0x412   :  { %v8417_v37 = vpack.c.bf16 %v7701_v58, %v11479_v42  ;;  %v7364_v45 = vadd.f32 %v7363_v5, %v7362_v38  ;;  %v7376_v35 = vsel %vm6525_vm4, %v11512_v15, 0.0  ;;  %v7100_v52 = vmul.f32 1.442695, %v7005_v25 }
 0x413   :  { %v7347_v36 = vadd.f32 %v7346_v40, %v7345_v12  ;;  %v7360_v19 = vrot.slane %v7359_v61, 1  ;;  %v7377_v21 = vrot.slane %v7376_v35, 4  ;;  %v7006_v8 = vsub.f32 %v11415_v43, %v6756_v62 }
 0x414   :  { %v8566_v51 = vpop.eup %8565  ;;  %v7970_v60 = vrot.slane %v8417_v37, %v11216_v26  ;;  %v7365_v11 = vrot.slane %v7364_v45, 2  ;;  %8571 = vpow2.f32 %v7100_v52  ;;  %v6769_v32 = vrot.slane %v6768_v27, 1 }
 0x415   :  { %v11518_v1 = vmul.f32 %v8566_v51, %v11444_v16  ;;  %8573 = vrcp.f32 %v7347_v36  ;;  %v7361_v47 = vadd.f32 %v7360_v19, %v7359_v61  ;;  %v7378_v42 = vadd.f32 %v7377_v21, %v7376_v35 }
 0x416   :  { %v7971_v49 = vcombine.low %v7963_v56, %v7970_v60  ;;  %v7366_v10 = vadd.f32 %v7365_v11, %v7364_v45  ;;  %v7102_v46 = vmul.f32 1.442695, %v7006_v8  ;;  %v6759_v0 = vmax.f32 %v11485_v41, %v6758_v13 }
 0x417   :  { %8575 = vrcp.f32 %v7361_v47  ;;  %v7379_v16 = vrot.slane %v7378_v42, 2  ;;  %v6770_v6 = vmax.f32 %v6768_v27, %v6769_v32  ;;  %v6771_v39 = vsel %vm6525_vm4, %v11421_v4, -inf }
 0x418   :  { %8163 = vst [vmem:[%s11926_s4 + $0x28] sm:$0xff] %v7971_v49  ;;  %v7367_v43 = vrot.slane %v7366_v10, 1  ;;  %8577 = vpow2.f32 %v7102_v46  ;;  %v6760_v3 = vrot.slane %v6759_v0, 2  ;;  %v6772_v7 = vrot.slane %v6771_v39, 4 }
 0x419   :  { %v8568_v48 = vpop.eup %8567  ;;  %v7380_v38 = vadd.f32 %v7379_v16, %v7378_v42  ;;  %v7008_v9 = vsub.f32 %v11417_v63, %v6770_v6  ;;  %v6778_v41 = vsel %vm6525_vm4, %v11453_v30, -inf  ;;  %v6792_v13 = vsel %vm6525_vm4, %v11455_v50, -inf }
 0x41a   :  { %v11533_v53 = vpop.eup %8569  ;;  %v7704_v34 = vmul.f32 %v8568_v48, %v11467_v28  ;;  %v7368_v24 = vadd.f32 %v7367_v43, %v7366_v10  ;;  %v6761_v56 = vmax.f32 %v6759_v0, %v6760_v3  ;;  %v6773_v12 = vmax.f32 %v6771_v39, %v6772_v7 }
 0x41b   :  { %v7381_v22 = vrot.slane %v7380_v38, 1  ;;  %v7369_v55 = vsel %vm6525_vm4, %v11533_v53, 0.0  ;;  %v7106_v20 = vmul.f32 1.442695, %v7008_v9  ;;  %v6779_v58 = vrot.slane %v6778_v41, 4 }
 0x41c   :  { %8579 = vrcp.f32 %v7368_v24  ;;  %v7370_v63 = vrot.slane %v7369_v55, 4  ;;  %v6762_v5 = vrot.slane %v6761_v56, 1  ;;  %v6774_v25 = vrot.slane %v6773_v12, 2 }
 0x41d   :  { %v7382_v18 = vadd.f32 %v7381_v22, %v7380_v38  ;;  %8581 = vpow2.f32 %v7106_v20  ;;  %v6780_v23 = vmax.f32 %v6778_v41, %v6779_v58  ;;  %v6793_v40 = vrot.slane %v6792_v13, 4  ;;  %v11538_v61 = vpop.f32.mrb[44].mxu0  ;;  %v11540_v28 = vpop.f32.mrb[44].mxu1 }
 0x41e   :  { %v11542_v62 = vpop.eup %8571  ;;  %v7371_v27 = vadd.f32 %v7370_v63, %v7369_v55  ;;  %v6763_v51 = vmax.f32 %v6761_v56, %v6762_v5  ;;  %v6775_v37 = vmax.f32 %v6773_v12, %v6774_v25  ;;  %v6785_v45 = vsel %vm6525_vm4, %v11458_v57, -inf  ;;  %v11546_v35 = vpop.f32.mrb[45].mxu0 }
 0x41f   :  { %v11548_v52 = vpop.f32.mrb[45].mxu1  ;;  %v8574_v36 = vpop.eup %8573  ;;  %8583 = vrcp.f32 %v7382_v18  ;;  %v7383_v19 = vsel %vm6525_vm4, %v11542_v62, 0.0  ;;  %v6781_v21 = vrot.slane %v6780_v23, 2  ;;  %v6794_v60 = vmax.f32 %v6792_v13, %v6793_v40 }
 0x420   :  { %v6153_v11 = vpop.f32.mrb[46].mxu0  ;;  %v6194_v8 = vpop.f32.mrb[46].mxu1  ;;  %v7703_v47 = vmul.f32 %v8574_v36, %v11481_v44  ;;  %v7372_v42 = vrot.slane %v7371_v27, 2  ;;  %v7384_v32 = vrot.slane %v7383_v19, 4  ;;  %v7007_v49 = vsub.f32 %v11419_v59, %v6763_v51 }
 0x421   :  { %v6154_v10 = vpop.f32.mrb[47].mxu0  ;;  %v6195_v46 = vpop.f32.mrb[47].mxu1  ;;  %v6776_v16 = vrot.slane %v6775_v37, 1  ;;  %v6782_v6 = vmax.f32 %v6780_v23, %v6781_v21  ;;  %v6795_v39 = vrot.slane %v6794_v60, 2  ;;  %v6786_v43 = vrot.slane %v6785_v45, 4 }
 0x422   :  { %v8576_v0 = vpop.eup %8575  ;;  %v8418_v7 = vpack.c.bf16 %v7703_v47, %v11518_v1  ;;  %v7373_v38 = vadd.f32 %v7372_v42, %v7371_v27  ;;  %v7385_v9 = vadd.f32 %v7384_v32, %v7383_v19  ;;  %v7104_v41 = vmul.f32 1.442695, %v7007_v49 }
 0x423   :  { %v11554_v3 = vpop.eup %8577  ;;  %v7705_v48 = vmul.f32 %v8576_v0, %v11489_v17  ;;  %v6777_v59 = vmax.f32 %v6775_v37, %v6776_v16  ;;  %v6783_v13 = vrot.slane %v6782_v6, 1  ;;  %v6796_v25 = vmax.f32 %v6794_v60, %v6795_v39 }
 0x424   :  { %v7390_v44 = vsel %vm6525_vm4, %v11554_v3, 0.0  ;;  %v7980_v24 = vrot.slane %v8418_v7, %v11216_v26  ;;  %v7374_v12 = vrot.slane %v7373_v38, 1  ;;  %v7386_v22 = vrot.slane %v7385_v9, 2 }
 0x425   :  { %v8419_v56 = vpack.c.bf16 %v7705_v48, %v7704_v34  ;;  %v7391_v55 = vrot.slane %v7390_v44, 4  ;;  %8585 = vpow2.f32 %v7104_v41  ;;  %v7009_v20 = vsub.f32 %v11421_v4, %v6777_v59 }
 0x426   :  { %v6784_v1 = vmax.f32 %v6782_v6, %v6783_v13  ;;  %v8580_v58 = vpop.eup %8579  ;;  %v7375_v63 = vadd.f32 %v7374_v12, %v7373_v38  ;;  %v7387_v5 = vadd.f32 %v7386_v22, %v7385_v9  ;;  %v6787_v8 = vmax.f32 %v6785_v45, %v6786_v43 }
 0x427   :  { %v7987_v17 = vrot.slane %v8419_v56, %v11216_v26  ;;  %v11563_v18 = vpop.eup %8581  ;;  %v11566_v23 = vmul.f32 %v8580_v58, %v11495_v29  ;;  %v7392_v40 = vadd.f32 %v7391_v55, %v7390_v44  ;;  %v7108_v34 = vmul.f32 1.442695, %v7009_v20 }
 0x428   :  { %v7010_v27 = vsub.f32 %v11453_v30, %v6784_v1  ;;  %8587 = vrcp.f32 %v7375_v63  ;;  %v7388_v37 = vrot.slane %v7387_v5, 1  ;;  %v7404_v4 = vsel %vm6525_vm4, %v11563_v18, 0.0 }
 0x429   :  { %v7988_v51 = vcombine.low %v7980_v24, %v7987_v17  ;;  %v8584_v36 = vpop.eup %8583  ;;  %v7393_v19 = vrot.slane %v7392_v40, 2  ;;  %v7405_v21 = vrot.slane %v7404_v4, 4  ;;  %8589 = vpow2.f32 %v7108_v34 }
 0x42a   :  { %v7110_v60 = vmul.f32 1.442695, %v7010_v27  ;;  %v11575_v29 = vmul.f32 %v8584_v36, %v11512_v15  ;;  %v7389_v11 = vadd.f32 %v7388_v37, %v7387_v5  ;;  %v6797_v30 = vrot.slane %v6796_v25, 1 }
 0x42b   :  { %8164 = vst [vmem:[%s11926_s4 + $0x30] sm:$0xff] %v7988_v51  ;;  %v7394_v47 = vadd.f32 %v7393_v19, %v7392_v40  ;;  %v7406_v42 = vadd.f32 %v7405_v21, %v7404_v4  ;;  %v6799_v32 = vsel %vm6525_vm4, %v11460_v54, -inf  ;;  %v6788_v10 = vrot.slane %v6787_v8, 2 }
 0x42c   :  { %8591 = vpow2.f32 %v7110_v60  ;;  %v6798_v49 = vmax.f32 %v6796_v25, %v6797_v30  ;;  %v6800_v46 = vrot.slane %v6799_v32, 4  ;;  %v6806_v6 = vsel %vm6525_vm4, %v11499_v14, -inf }
 0x42d   :  { %8593 = vrcp.f32 %v7389_v11  ;;  %v7395_v0 = vrot.slane %v7394_v47, 1  ;;  %v7407_v16 = vrot.slane %v7406_v42, 2  ;;  %v6820_v15 = vsel %vm6525_vm4, %v11501_v2, -inf  ;;  %v11583_v39 = vpop.f32.mrb[48].mxu0  ;;  %v11585_v45 = vpop.f32.mrb[48].mxu1 }
 0x42e   :  { %v7012_v43 = vsub.f32 %v11455_v50, %v6798_v49  ;;  %v6789_v7 = vmax.f32 %v6787_v8, %v6788_v10  ;;  %v6801_v48 = vmax.f32 %v6799_v32, %v6800_v46  ;;  %v6807_v38 = vrot.slane %v6806_v6, 4  ;;  %v11588_v9 = vpop.f32.mrb[49].mxu0  ;;  %v11590_v44 = vpop.f32.mrb[49].mxu1 }
 0x42f   :  { %v11592_v41 = vpop.eup %8585  ;;  %v7396_v59 = vadd.f32 %v7395_v0, %v7394_v47  ;;  %v7408_v13 = vadd.f32 %v7407_v16, %v7406_v42  ;;  %v6821_v24 = vrot.slane %v6820_v15, 4  ;;  %v11596_v56 = vsel %vm6525_vm4, %v11505_v33, -inf  ;;  %v6235_v12 = vpop.f32.mrb[50].mxu0 }
 0x430   :  { %v6276_v22 = vpop.f32.mrb[50].mxu1  ;;  %v7397_v50 = vsel %vm6525_vm4, %v11592_v41, 0.0  ;;  %v7114_v55 = vmul.f32 1.442695, %v7012_v43  ;;  %v6790_v20 = vrot.slane %v6789_v7, 1  ;;  %v6802_v1 = vrot.slane %v6801_v48, 2 }
 0x431   :  { %v6236_v58 = vpop.f32.mrb[51].mxu0  ;;  %8595 = vrcp.f32 %v7396_v59  ;;  %v7409_v17 = vrot.slane %v7408_v13, 1  ;;  %v7398_v63 = vrot.slane %v7397_v50, 4  ;;  %v6808_v5 = vmax.f32 %v6806_v6, %v6807_v38  ;;  %v6277_v25 = vpop.f32.mrb[51].mxu1 }
 0x432   :  { %v8588_v40 = vpop.eup %8587  ;;  %8597 = vpow2.f32 %v7114_v55  ;;  %v6791_v34 = vmax.f32 %v6789_v7, %v6790_v20  ;;  %v6803_v27 = vmax.f32 %v6801_v48, %v6802_v1  ;;  %v6822_v51 = vmax.f32 %v6820_v15, %v6821_v24 }
 0x433   :  { %v11600_v37 = vpop.eup %8589  ;;  %v7707_v4 = vmul.f32 %v8588_v40, %v11533_v53  ;;  %v7410_v36 = vadd.f32 %v7409_v17, %v7408_v13  ;;  %v7399_v19 = vadd.f32 %v7398_v63, %v7397_v50  ;;  %v6809_v21 = vrot.slane %v6808_v5, 2 }
 0x434   :  { %v7411_v60 = vsel %vm6525_vm4, %v11600_v37, 0.0  ;;  %v7011_v11 = vsub.f32 %v11458_v57, %v6791_v34  ;;  %v6804_v30 = vrot.slane %v6803_v27, 1  ;;  %v6823_v8 = vrot.slane %v6822_v51, 2 }
 0x435   :  { %v8420_v42 = vpack.c.bf16 %v7707_v4, %v11566_v23  ;;  %8599 = vrcp.f32 %v7410_v36  ;;  %v7400_v32 = vrot.slane %v7399_v19, 2  ;;  %v7412_v49 = vrot.slane %v7411_v60, 4 }
 0x436   :  { %v11606_v47 = vpop.eup %8591  ;;  %v7112_v46 = vmul.f32 1.442695, %v7011_v11  ;;  %v6805_v0 = vmax.f32 %v6803_v27, %v6804_v30  ;;  %v6810_v16 = vmax.f32 %v6808_v5, %v6809_v21  ;;  %v6824_v24 = vmax.f32 %v6822_v51, %v6823_v8 }
 0x437   :  { %v8594_v10 = vpop.eup %8593  ;;  %v7418_v53 = vsel %vm6525_vm4, %v11606_v47, 0.0  ;;  %v7997_v6 = vrot.slane %v8420_v42, %v11216_v26  ;;  %v7401_v15 = vadd.f32 %v7400_v32, %v7399_v19  ;;  %v7413_v43 = vadd.f32 %v7412_v49, %v7411_v60 }
 0x438   :  { %v7709_v57 = vmul.f32 %v8594_v10, %v11542_v62  ;;  %v7419_v7 = vrot.slane %v7418_v53, 4  ;;  %8601 = vpow2.f32 %v7112_v46  ;;  %v7013_v23 = vsub.f32 %v11460_v54, %v6805_v0 }
 0x439   :  { %v6811_v48 = vrot.slane %v6810_v16, 1  ;;  %v7402_v59 = vrot.slane %v7401_v15, 1  ;;  %v7414_v13 = vrot.slane %v7413_v43, 2  ;;  %v6814_v55 = vrot.slane %v11596_v56, 4 }
 0x43a   :  { %v8421_v38 = vpack.c.bf16 %v7709_v57, %v11575_v29  ;;  %v7420_v12 = vadd.f32 %v7419_v7, %v7418_v53  ;;  %v7116_v22 = vmul.f32 1.442695, %v7013_v23  ;;  %v6825_v17 = vrot.slane %v6824_v24, 1 }
 0x43b   :  { %v6812_v50 = vmax.f32 %v6810_v16, %v6811_v48  ;;  %v8596_v20 = vpop.eup %8595  ;;  %v7403_v1 = vadd.f32 %v7402_v59, %v7401_v15  ;;  %v7415_v58 = vadd.f32 %v7414_v13, %v7413_v43  ;;  %v6815_v30 = vmax.f32 %v11596_v56, %v6814_v55 }
 0x43c   :  { %v8004_v62 = vrot.slane %v8421_v38, %v11216_v26  ;;  %v11617_v63 = vpop.eup %8597  ;;  %v11620_v54 = vmul.f32 %v8596_v20, %v11554_v3  ;;  %v7421_v29 = vrot.slane %v7420_v12, 2  ;;  %8603 = vpow2.f32 %v7116_v22 }
 0x43d   :  { %v7014_v5 = vsub.f32 %v11499_v14, %v6812_v50  ;;  %8605 = vrcp.f32 %v7403_v1  ;;  %v7416_v40 = vrot.slane %v7415_v58, 1  ;;  %v7432_v34 = vsel %vm6525_vm4, %v11617_v63, 0.0  ;;  %v11625_v27 = vpop.f32.mrb[52].mxu0  ;;  %v11627_v51 = vpop.f32.mrb[52].mxu1 }
 0x43e   :  { %v8005_v25 = vcombine.low %v7997_v6, %v8004_v62  ;;  %v7422_v4 = vadd.f32 %v7421_v29, %v7420_v12  ;;  %v7433_v36 = vrot.slane %v7432_v34, 4  ;;  %v6826_v21 = vmax.f32 %v6824_v24, %v6825_v17  ;;  %v11629_v3 = vpop.f32.mrb[53].mxu0  ;;  %v11631_v60 = vpop.f32.mrb[53].mxu1 }
 0x43f   :  { %v7118_v19 = vmul.f32 1.442695, %v7014_v5  ;;  %v8600_v11 = vpop.eup %8599  ;;  %v7417_v14 = vadd.f32 %v7416_v40, %v7415_v58  ;;  %v6827_v8 = vsel %vm6525_vm4, %v11507_v31, -inf  ;;  %v6834_v42 = vsel %vm6525_vm4, %v11538_v61, -inf  ;;  %v6317_v32 = vpop.f32.mrb[54].mxu0 }
 0x440   :  { %8165 = vst [vmem:[%s11926_s4 + $0x38] sm:$0xff] %v8005_v25  ;;  %v6358_v49 = vpop.f32.mrb[54].mxu1  ;;  %v11642_v10 = vmul.f32 %v8600_v11, %v11563_v18  ;;  %v7423_v53 = vrot.slane %v7422_v4, 1  ;;  %v7434_v46 = vadd.f32 %v7433_v36, %v7432_v34  ;;  %v6318_v0 = vpop.f32.mrb[55].mxu0  ;;  %v7016_v6 = vsub.f32 %v11501_v2, %v6826_v21 }
 0x441   :  { %8607 = vpow2.f32 %v7118_v19  ;;  %v6359_v16 = vpop.f32.mrb[55].mxu1  ;;  %v6816_v56 = vrot.slane %v6815_v30, 2  ;;  %v6828_v57 = vrot.slane %v6827_v8, 4  ;;  %v6835_v23 = vrot.slane %v6834_v42, 4 }
 0x442   :  { %8609 = vrcp.f32 %v7417_v14  ;;  %v11645_v15 = vpop.eup %8601  ;;  %v7424_v43 = vadd.f32 %v7423_v53, %v7422_v4  ;;  %v7435_v7 = vrot.slane %v7434_v46, 2  ;;  %v6848_v48 = vsel %vm6525_vm4, %v11540_v28, -inf }
 0x443   :  { %v7425_v18 = vsel %vm6525_vm4, %v11645_v15, 0.0  ;;  %v7122_v38 = vmul.f32 1.442695, %v7016_v6  ;;  %v6817_v59 = vmax.f32 %v6815_v30, %v6816_v56  ;;  %v6829_v13 = vmax.f32 %v6827_v8, %v6828_v57 }
 0x444   :  { %8611 = vrcp.f32 %v7424_v43  ;;  %v7436_v24 = vadd.f32 %v7435_v7, %v7434_v46  ;;  %v7426_v12 = vrot.slane %v7425_v18, 4  ;;  %v6836_v2 = vmax.f32 %v6834_v42, %v6835_v23 }
 0x445   :  { %8613 = vpow2.f32 %v7122_v38  ;;  %v6818_v22 = vrot.slane %v6817_v59, 1  ;;  %v6830_v50 = vrot.slane %v6829_v13, 2  ;;  %v6849_v55 = vrot.slane %v6848_v48, 4 }
 0x446   :  { %v11651_v20 = vpop.eup %8603  ;;  %v7437_v62 = vrot.slane %v7436_v24, 1  ;;  %v7427_v1 = vadd.f32 %v7426_v12, %v7425_v18  ;;  %v6837_v58 = vrot.slane %v6836_v2, 2  ;;  %v11655_v17 = vsel %vm6525_vm4, %v11546_v35, -inf }
 0x447   :  { %v8606_v29 = vpop.eup %8605  ;;  %v7439_v5 = vsel %vm6525_vm4, %v11651_v20, 0.0  ;;  %v6819_v25 = vmax.f32 %v6817_v59, %v6818_v22  ;;  %v6831_v40 = vmax.f32 %v6829_v13, %v6830_v50  ;;  %v6850_v34 = vmax.f32 %v6848_v48, %v6849_v55 }
 0x448   :  { %v7711_v4 = vmul.f32 %v8606_v29, %v11592_v41  ;;  %v7438_v36 = vadd.f32 %v7437_v62, %v7436_v24  ;;  %v7428_v19 = vrot.slane %v7427_v1, 2  ;;  %v7440_v21 = vrot.slane %v7439_v5, 4 }
 0x449   :  { %v7015_v11 = vsub.f32 %v11505_v33, %v6819_v25  ;;  %v6832_v14 = vrot.slane %v6831_v40, 1  ;;  %v6838_v30 = vmax.f32 %v6836_v2, %v6837_v58  ;;  %v6851_v8 = vrot.slane %v6850_v34, 2 }
 0x44a   :  { %v8422_v32 = vpack.c.bf16 %v7711_v4, %v11620_v54  ;;  %8615 = vrcp.f32 %v7438_v36  ;;  %v7429_v49 = vadd.f32 %v7428_v19, %v7427_v1  ;;  %v7441_v53 = vadd.f32 %v7440_v21, %v7439_v5 }
 0x44b   :  { %v11661_v42 = vpop.eup %8607  ;;  %v7120_v41 = vmul.f32 1.442695, %v7015_v11  ;;  %v6833_v16 = vmax.f32 %v6831_v40, %v6832_v14  ;;  %v6839_v6 = vrot.slane %v6838_v30, 1  ;;  %v6852_v12 = vmax.f32 %v6850_v34, %v6851_v8 }
 0x44c   :  { %v8610_v46 = vpop.eup %8609  ;;  %v7446_v0 = vsel %vm6525_vm4, %v11661_v42, 0.0  ;;  %v8014_v56 = vrot.slane %v8422_v32, %v11216_v26  ;;  %v7430_v57 = vrot.slane %v7429_v49, 1  ;;  %v7442_v43 = vrot.slane %v7441_v53, 2 }
 0x44d   :  { %v7713_v33 = vmul.f32 %v8610_v46, %v11600_v37  ;;  %v7447_v7 = vrot.slane %v7446_v0, 4  ;;  %8617 = vpow2.f32 %v7120_v41  ;;  %v7017_v54 = vsub.f32 %v11507_v31, %v6833_v16  ;;  %v11669_v48 = vpop.f32.mrb[56].mxu0  ;;  %v11671_v18 = vpop.f32.mrb[56].mxu1 }
 0x44e   :  { %v6840_v23 = vmax.f32 %v6838_v30, %v6839_v6  ;;  %v8612_v38 = vpop.eup %8611  ;;  %v7431_v13 = vadd.f32 %v7430_v57, %v7429_v49  ;;  %v7443_v24 = vadd.f32 %v7442_v43, %v7441_v53  ;;  %v11674_v2 = vpop.f32.mrb[57].mxu0  ;;  %v6853_v21 = vrot.slane %v6852_v12, 1 }
 0x44f   :  { %v8423_v59 = vpack.c.bf16 %v7713_v33, %v11642_v10  ;;  %v11676_v37 = vpop.f32.mrb[57].mxu1  ;;  %v11678_v22 = vpop.eup %8613  ;;  %v11681_v50 = vmul.f32 %v8612_v38, %v11606_v47  ;;  %v7448_v31 = vadd.f32 %v7447_v7, %v7446_v0  ;;  %v7124_v55 = vmul.f32 1.442695, %v7017_v54 }
 0x450   :  { %v7018_v62 = vsub.f32 %v11538_v61, %v6840_v23  ;;  %v6399_v1 = vpop.f32.mrb[58].mxu0  ;;  %v6440_v58 = vpop.f32.mrb[58].mxu1  ;;  %8619 = vrcp.f32 %v7431_v13  ;;  %v7444_v29 = vrot.slane %v7443_v24, 1  ;;  %v7460_v5 = vsel %vm6525_vm4, %v11678_v22, 0.0 }
 0x451   :  { %v8021_v10 = vrot.slane %v8423_v59, %v11216_v26  ;;  %v6400_v25 = vpop.f32.mrb[59].mxu0  ;;  %v6441_v40 = vpop.f32.mrb[59].mxu1  ;;  %v7449_v34 = vrot.slane %v7448_v31, 2  ;;  %v7461_v4 = vrot.slane %v7460_v5, 4  ;;  %8621 = vpow2.f32 %v7124_v55 }
 0x452   :  { %v7126_v47 = vmul.f32 1.442695, %v7018_v62  ;;  %v7445_v19 = vadd.f32 %v7444_v29, %v7443_v24  ;;  %v6842_v61 = vrot.slane %v11655_v17, 4  ;;  %v6855_v30 = vsel %vm6525_vm4, %v11548_v52, -inf }
 0x453   :  { %v8022_v36 = vcombine.low %v8014_v56, %v8021_v10  ;;  %v7450_v11 = vadd.f32 %v7449_v34, %v7448_v31  ;;  %v7462_v14 = vadd.f32 %v7461_v4, %v7460_v5  ;;  %v6854_v32 = vmax.f32 %v6852_v12, %v6853_v21 }
 0x454   :  { %8623 = vpow2.f32 %v7126_v47  ;;  %v8616_v8 = vpop.eup %8615  ;;  %v6843_v49 = vmax.f32 %v11655_v17, %v6842_v61  ;;  %v6856_v53 = vrot.slane %v6855_v30, 4  ;;  %v6862_v16 = vsel %vm6525_vm4, %v11583_v39, -inf }
 0x455   :  { %8166 = vst [vmem:[%s11926_s4 + $0x40] sm:$0xff] %v8022_v36  ;;  %8625 = vrcp.f32 %v7445_v19  ;;  %v11695_v46 = vmul.f32 %v8616_v8, %v11617_v63  ;;  %v7451_v0 = vrot.slane %v7450_v11, 1  ;;  %v7463_v41 = vrot.slane %v7462_v14, 2 }
 0x456   :  { %v7020_v6 = vsub.f32 %v11540_v28, %v6854_v32  ;;  %v6844_v56 = vrot.slane %v6843_v49, 2  ;;  %v6857_v33 = vmax.f32 %v6855_v30, %v6856_v53  ;;  %v6863_v57 = vrot.slane %v6862_v16, 4 }
 0x457   :  { %v11700_v43 = vpop.eup %8617  ;;  %v7452_v7 = vadd.f32 %v7451_v0, %v7450_v11  ;;  %v7464_v54 = vadd.f32 %v7463_v41, %v7462_v14  ;;  %v6876_v17 = vsel %vm6525_vm4, %v11585_v45, -inf  ;;  %v11706_v63 = vsel %vm6525_vm4, %v11588_v9, -inf }
 0x458   :  { %v7453_v23 = vsel %vm6525_vm4, %v11700_v43, 0.0  ;;  %v7130_v38 = vmul.f32 1.442695, %v7020_v6  ;;  %v6845_v59 = vmax.f32 %v6843_v49, %v6844_v56  ;;  %v6858_v28 = vrot.slane %v6857_v33, 2 }
 0x459   :  { %8627 = vrcp.f32 %v7452_v7  ;;  %v7465_v13 = vrot.slane %v7464_v54, 1  ;;  %v7454_v24 = vrot.slane %v7453_v23, 4  ;;  %v6864_v12 = vmax.f32 %v6862_v16, %v6863_v57 }
 0x45a   :  { %v8620_v31 = vpop.eup %8619  ;;  %8629 = vpow2.f32 %v7130_v38  ;;  %v6846_v55 = vrot.slane %v6845_v59, 1  ;;  %v6859_v62 = vmax.f32 %v6857_v33, %v6858_v28  ;;  %v6877_v1 = vrot.slane %v6876_v17, 4 }
 0x45b   :  { %v11710_v58 = vpop.eup %8621  ;;  %v7715_v10 = vmul.f32 %v8620_v31, %v11645_v15  ;;  %v7466_v29 = vadd.f32 %v7465_v13, %v7464_v54  ;;  %v7455_v5 = vadd.f32 %v7454_v24, %v7453_v23  ;;  %v6865_v25 = vrot.slane %v6864_v12, 2 }
 0x45c   :  { %v7467_v40 = vsel %vm6525_vm4, %v11710_v58, 0.0  ;;  %v6847_v34 = vmax.f32 %v6845_v59, %v6846_v55  ;;  %v6860_v4 = vrot.slane %v6859_v62, 1  ;;  %v6878_v47 = vmax.f32 %v6876_v17, %v6877_v1 }
 0x45d   :  { %v8424_v19 = vpack.c.bf16 %v7715_v10, %v11681_v50  ;;  %8631 = vrcp.f32 %v7466_v29  ;;  %v7456_v21 = vrot.slane %v7455_v5, 2  ;;  %v7468_v61 = vrot.slane %v7467_v40, 4  ;;  %v11718_v11 = vpop.f32.mrb[60].mxu0  ;;  %v11720_v14 = vpop.f32.mrb[60].mxu1 }
 0x45e   :  { %v11715_v36 = vpop.eup %8623  ;;  %v7019_v8 = vsub.f32 %v11546_v35, %v6847_v34  ;;  %v6861_v32 = vmax.f32 %v6859_v62, %v6860_v4  ;;  %v6866_v49 = vmax.f32 %v6864_v12, %v6865_v25  ;;  %v11725_v53 = vpop.f32.mrb[61].mxu0  ;;  %v6879_v13 = vrot.slane %v6878_v47, 2 }
 0x45f   :  { %v8626_v15 = vpop.eup %8625  ;;  %v7474_v30 = vsel %vm6525_vm4, %v11715_v36, 0.0  ;;  %v11727_v0 = vpop.f32.mrb[61].mxu1  ;;  %v8031_v50 = vrot.slane %v8424_v19, %v11216_v26  ;;  %v7457_v16 = vadd.f32 %v7456_v21, %v7455_v5  ;;  %v7469_v6 = vadd.f32 %v7468_v61, %v7467_v40 }
 0x460   :  { %v7717_v41 = vmul.f32 %v8626_v15, %v11651_v20  ;;  %v6481_v56 = vpop.f32.mrb[62].mxu0  ;;  %v6522_v33 = vpop.f32.mrb[62].mxu1  ;;  %v7475_v57 = vrot.slane %v7474_v30, 4  ;;  %v7128_v7 = vmul.f32 1.442695, %v7019_v8  ;;  %v7021_v54 = vsub.f32 %v11548_v52, %v6861_v32 }
 0x461   :  { %v6867_v17 = vrot.slane %v6866_v49, 1  ;;  %v6482_v35 = vpop.f32.mrb[63].mxu0  ;;  %v6523_v23 = vpop.f32.mrb[63].mxu1  ;;  %v7458_v59 = vrot.slane %v7457_v16, 1  ;;  %v7470_v28 = vrot.slane %v7469_v6, 2  ;;  %v6880_v10 = vmax.f32 %v6878_v47, %v6879_v13 }
 0x462   :  { %v8425_v38 = vpack.c.bf16 %v7717_v41, %v11695_v46  ;;  %v7476_v24 = vadd.f32 %v7475_v57, %v7474_v30  ;;  %8633 = vpow2.f32 %v7128_v7  ;;  %v7132_v12 = vmul.f32 1.442695, %v7021_v54 }
 0x463   :  { %v6868_v20 = vmax.f32 %v6866_v49, %v6867_v17  ;;  %v8628_v31 = vpop.eup %8627  ;;  %v7459_v62 = vadd.f32 %v7458_v59, %v7457_v16  ;;  %v7471_v1 = vadd.f32 %v7470_v28, %v7469_v6  ;;  %v6881_v61 = vrot.slane %v6880_v10, 1 }
 0x464   :  { %v8038_v55 = vrot.slane %v8425_v38, %v11216_v26  ;;  %v11734_v29 = vpop.eup %8629  ;;  %v11737_v52 = vmul.f32 %v8628_v31, %v11661_v42  ;;  %v7477_v5 = vrot.slane %v7476_v24, 2  ;;  %8635 = vpow2.f32 %v7132_v12 }
 0x465   :  { %v7022_v46 = vsub.f32 %v11583_v39, %v6868_v20  ;;  %8637 = vrcp.f32 %v7459_v62  ;;  %v7472_v40 = vrot.slane %v7471_v1, 1  ;;  %v7488_v34 = vsel %vm6525_vm4, %v11734_v29, 0.0 }
 0x466   :  { %v8039_v25 = vcombine.low %v8031_v50, %v8038_v55  ;;  %v7478_v4 = vadd.f32 %v7477_v5, %v7476_v24  ;;  %v7489_v19 = vrot.slane %v7488_v34, 4  ;;  %v6870_v15 = vrot.slane %v11706_v63, 4 }
 0x467   :  { %v7134_v21 = vmul.f32 1.442695, %v7022_v46  ;;  %v8632_v47 = vpop.eup %8631  ;;  %v7473_v42 = vadd.f32 %v7472_v40, %v7471_v1  ;;  %v6883_v39 = vsel %vm6525_vm4, %v11590_v44, -inf  ;;  %v6890_v30 = vsel %vm6525_vm4, %v11625_v27, -inf }
 0x468   :  { %8167 = vst [vmem:[%s11926_s4 + $0x48] sm:$0xff] %v8039_v25  ;;  %v11751_v8 = vmul.f32 %v8632_v47, %v11678_v22  ;;  %v7479_v32 = vrot.slane %v7478_v4, 1  ;;  %v7490_v49 = vadd.f32 %v7489_v19, %v7488_v34  ;;  %v6882_v50 = vmax.f32 %v6880_v10, %v6881_v61 }
 0x469   :  { %8639 = vpow2.f32 %v7134_v21  ;;  %v6871_v41 = vmax.f32 %v11706_v63, %v6870_v15  ;;  %v6884_v16 = vrot.slane %v6883_v39, 4  ;;  %v6891_v33 = vrot.slane %v6890_v30, 4 }
 0x46a   :  { %8641 = vrcp.f32 %v7473_v42  ;;  %v7480_v6 = vadd.f32 %v7479_v32, %v7478_v4  ;;  %v7491_v56 = vrot.slane %v7490_v49, 2  ;;  %v6904_v57 = vsel %vm6525_vm4, %v11627_v51, -inf }
 0x46b   :  { %v7024_v7 = vsub.f32 %v11585_v45, %v6882_v50  ;;  %v6872_v54 = vrot.slane %v6871_v41, 2  ;;  %v6885_v17 = vmax.f32 %v6883_v39, %v6884_v16  ;;  %v6905_v22 = vrot.slane %v6904_v57, 4 }
 0x46c   :  { %v11757_v35 = vpop.eup %8633  ;;  %8643 = vrcp.f32 %v7480_v6  ;;  %v7492_v23 = vadd.f32 %v7491_v56, %v7490_v49  ;;  %v6892_v38 = vmax.f32 %v6890_v30, %v6891_v33  ;;  %v11761_v63 = vsel %vm6525_vm4, %v11629_v3, -inf }
 0x46d   :  { %v7481_v59 = vsel %vm6525_vm4, %v11757_v35, 0.0  ;;  %v7138_v28 = vmul.f32 1.442695, %v7024_v7  ;;  %v6873_v13 = vmax.f32 %v6871_v41, %v6872_v54  ;;  %v6886_v24 = vrot.slane %v6885_v17, 2 }
 0x46e   :  { %v11765_v12 = vpop.eup %8635  ;;  %v7493_v45 = vrot.slane %v7492_v23, 1  ;;  %v7482_v20 = vrot.slane %v7481_v59, 4  ;;  %v6893_v31 = vrot.slane %v6892_v38, 2  ;;  %v6906_v55 = vmax.f32 %v6904_v57, %v6905_v22 }
 0x46f   :  { %v8638_v62 = vpop.eup %8637  ;;  %v7495_v1 = vsel %vm6525_vm4, %v11765_v12, 0.0  ;;  %8645 = vpow2.f32 %v7138_v28  ;;  %v6874_v10 = vrot.slane %v6873_v13, 1  ;;  %v6887_v5 = vmax.f32 %v6885_v17, %v6886_v24 }
 0x470   :  { %v7719_v46 = vmul.f32 %v8638_v62, %v11700_v43  ;;  %v7494_v25 = vadd.f32 %v7493_v45, %v7492_v23  ;;  %v7483_v40 = vadd.f32 %v7482_v20, %v7481_v59  ;;  %v7496_v34 = vrot.slane %v7495_v1, 4 }
 0x471   :  { %v6875_v4 = vmax.f32 %v6873_v13, %v6874_v10  ;;  %v6888_v19 = vrot.slane %v6887_v5, 1  ;;  %v6894_v21 = vmax.f32 %v6892_v38, %v6893_v31  ;;  %v6907_v61 = vrot.slane %v6906_v55, 2 }
 0x472   :  { %v8426_v42 = vpack.c.bf16 %v7719_v46, %v11737_v52  ;;  %8647 = vrcp.f32 %v7494_v25  ;;  %v7484_v15 = vrot.slane %v7483_v40, 2  ;;  %v7497_v39 = vadd.f32 %v7496_v34, %v7495_v1 }
 0x473   :  { %v11770_v47 = vpop.eup %8639  ;;  %v7023_v43 = vsub.f32 %v11588_v9, %v6875_v4  ;;  %v6889_v49 = vmax.f32 %v6887_v5, %v6888_v19  ;;  %v6895_v50 = vrot.slane %v6894_v21, 1  ;;  %v6908_v38 = vmax.f32 %v6906_v55, %v6907_v61 }
 0x474   :  { %v8642_v30 = vpop.eup %8641  ;;  %v7502_v32 = vsel %vm6525_vm4, %v11770_v47, 0.0  ;;  %v8048_v41 = vrot.slane %v8426_v42, %v11216_v26  ;;  %v7485_v6 = vadd.f32 %v7484_v15, %v7483_v40  ;;  %v7498_v56 = vrot.slane %v7497_v39, 2 }
 0x475   :  { %v7721_v16 = vmul.f32 %v8642_v30, %v11710_v58  ;;  %v7503_v33 = vrot.slane %v7502_v32, 4  ;;  %v7136_v57 = vmul.f32 1.442695, %v7023_v43  ;;  %v7025_v52 = vsub.f32 %v11590_v44, %v6889_v49 }
 0x476   :  { %v6896_v7 = vmax.f32 %v6894_v21, %v6895_v50  ;;  %v8644_v54 = vpop.eup %8643  ;;  %v7486_v22 = vrot.slane %v7485_v6, 1  ;;  %v7499_v23 = vadd.f32 %v7498_v56, %v7497_v39  ;;  %v6898_v31 = vrot.slane %v11761_v63, 4 }
 0x477   :  { %v8427_v17 = vpack.c.bf16 %v7721_v16, %v11751_v8  ;;  %v11781_v9 = vmul.f32 %v8644_v54, %v11715_v36  ;;  %v7504_v59 = vadd.f32 %v7503_v33, %v7502_v32  ;;  %8649 = vpow2.f32 %v7136_v57 }
 0x478   :  { %v7140_v28 = vmul.f32 1.442695, %v7025_v52  ;;  %v7487_v13 = vadd.f32 %v7486_v22, %v7485_v6  ;;  %v7500_v24 = vrot.slane %v7499_v23, 1  ;;  %v7026_v45 = vsub.f32 %v11625_v27, %v6896_v7 }
 0x479   :  { %v8055_v58 = vrot.slane %v8427_v17, %v11216_v26  ;;  %v11785_v44 = vpop.eup %8645  ;;  %v7505_v20 = vrot.slane %v7504_v59, 2  ;;  %v6909_v8 = vrot.slane %v6908_v38, 1  ;;  %v6899_v27 = vmax.f32 %v11761_v63, %v6898_v31 }
 0x47a   :  { %8651 = vpow2.f32 %v7140_v28  ;;  %v7501_v36 = vadd.f32 %v7500_v24, %v7499_v23  ;;  %v7516_v62 = vsel %vm6525_vm4, %v11785_v44, 0.0  ;;  %v7142_v5 = vmul.f32 1.442695, %v7026_v45 }
 0x47b   :  { %v8056_v55 = vcombine.low %v8048_v41, %v8055_v58  ;;  %8653 = vrcp.f32 %v7487_v13  ;;  %v7506_v1 = vadd.f32 %v7505_v20, %v7504_v59  ;;  %v7517_v10 = vrot.slane %v7516_v62, 4 }
 0x47c   :  { %v6910_v46 = vmax.f32 %v6908_v38, %v6909_v8  ;;  %v8648_v25 = vpop.eup %8647  ;;  %8655 = vrcp.f32 %v7501_v36  ;;  %v6911_v40 = vsel %vm6525_vm4, %v11631_v60, -inf  ;;  %v6918_v34 = vsel %vm6525_vm4, %v11669_v48, -inf }
 0x47d   :  { %8168 = vst [vmem:[%s11926_s4 + $0x50] sm:$0xff] %v8056_v55  ;;  %v11799_v4 = vmul.f32 %v8648_v25, %v11734_v29  ;;  %v7507_v19 = vrot.slane %v7506_v1, 1  ;;  %v7518_v21 = vadd.f32 %v7517_v10, %v7516_v62  ;;  %8657 = vpow2.f32 %v7142_v5 }
 0x47e   :  { %v7028_v61 = vsub.f32 %v11627_v51, %v6910_v46  ;;  %v6900_v42 = vrot.slane %v6899_v27, 2  ;;  %v6912_v15 = vrot.slane %v6911_v40, 4  ;;  %v6919_v39 = vrot.slane %v6918_v34, 4 }
 0x47f   :  { %v7508_v30 = vadd.f32 %v7507_v19, %v7506_v1  ;;  %v7519_v32 = vrot.slane %v7518_v21, 2  ;;  %v6932_v63 = vsel %vm6525_vm4, %v11671_v18, -inf  ;;  %v6925_v43 = vsel %vm6525_vm4, %v11674_v2, -inf }
 0x480   :  { %v7146_v49 = vmul.f32 1.442695, %v7028_v61  ;;  %v6901_v50 = vmax.f32 %v6899_v27, %v6900_v42  ;;  %v6913_v29 = vmax.f32 %v6911_v40, %v6912_v15  ;;  %v6920_v41 = vmax.f32 %v6918_v34, %v6919_v39 }
 0x481   :  { %v11806_v16 = vpop.eup %8649  ;;  %8659 = vrcp.f32 %v7508_v30  ;;  %v7520_v6 = vadd.f32 %v7519_v32, %v7518_v21  ;;  %v6933_v51 = vrot.slane %v6932_v63, 4  ;;  %v6926_v56 = vrot.slane %v6925_v43, 4 }
 0x482   :  { %v7509_v33 = vsel %vm6525_vm4, %v11806_v16, 0.0  ;;  %8661 = vpow2.f32 %v7146_v49  ;;  %v6902_v57 = vrot.slane %v6901_v50, 1  ;;  %v6914_v52 = vrot.slane %v6913_v29, 2 }
 0x483   :  { %v7521_v54 = vrot.slane %v7520_v6, 1  ;;  %v7510_v17 = vrot.slane %v7509_v33, 4  ;;  %v6921_v22 = vrot.slane %v6920_v41, 2  ;;  %v6934_v23 = vmax.f32 %v6932_v63, %v6933_v51 }
 0x484   :  { %v11810_v7 = vpop.eup %8651  ;;  %v6903_v28 = vmax.f32 %v6901_v50, %v6902_v57  ;;  %v6915_v58 = vmax.f32 %v6913_v29, %v6914_v52  ;;  %v6927_v13 = vmax.f32 %v6925_v43, %v6926_v56 }
 0x485   :  { %v8654_v38 = vpop.eup %8653  ;;  %v7523_v59 = vsel %vm6525_vm4, %v11810_v7, 0.0  ;;  %v7522_v45 = vadd.f32 %v7521_v54, %v7520_v6  ;;  %v7511_v20 = vadd.f32 %v7510_v17, %v7509_v33  ;;  %v6922_v62 = vmax.f32 %v6920_v41, %v6921_v22 }
 0x486   :  { %v7723_v24 = vmul.f32 %v8654_v38, %v11757_v35  ;;  %v7524_v8 = vrot.slane %v7523_v59, 4  ;;  %v8656_v31 = vpop.eup %8655  ;;  %v7027_v55 = vsub.f32 %v11629_v3, %v6903_v28  ;;  %v6916_v36 = vrot.slane %v6915_v58, 1 }
 0x487   :  { %v6935_v1 = vrot.slane %v6934_v23, 2  ;;  %v11816_v10 = vpop.eup %8657  ;;  %v7725_v46 = vmul.f32 %v8656_v31, %v11765_v12  ;;  %8663 = vrcp.f32 %v7522_v45  ;;  %v7512_v25 = vrot.slane %v7511_v20, 2 }
 0x488   :  { %v8428_v5 = vpack.c.bf16 %v7723_v24, %v11781_v9  ;;  %v7525_v27 = vadd.f32 %v7524_v8, %v7523_v59  ;;  %v7530_v35 = vsel %vm6525_vm4, %v11816_v10, 0.0  ;;  %v7144_v40 = vmul.f32 1.442695, %v7027_v55 }
 0x489   :  { %v6917_v34 = vmax.f32 %v6915_v58, %v6916_v36  ;;  %v8429_v3 = vpack.c.bf16 %v7725_v46, %v11799_v4  ;;  %v7513_v21 = vadd.f32 %v7512_v25, %v7511_v20  ;;  %v7531_v61 = vrot.slane %v7530_v35, 4 }
 0x48a   :  { %v8065_v19 = vrot.slane %v8428_v5, %v11216_v26  ;;  %v7526_v42 = vrot.slane %v7525_v27, 2  ;;  %8665 = vpow2.f32 %v7144_v40  ;;  %v6923_v15 = vrot.slane %v6922_v62, 1 }
 0x48b   :  { %v7029_v9 = vsub.f32 %v11631_v60, %v6917_v34  ;;  %v8660_v12 = vpop.eup %8659  ;;  %v8072_v39 = vrot.slane %v8429_v3, %v11216_v26  ;;  %v7514_v30 = vrot.slane %v7513_v21, 1  ;;  %v7532_v32 = vadd.f32 %v7531_v61, %v7530_v35 }
 0x48c   :  { %v6936_v63 = vmax.f32 %v6934_v23, %v6935_v1  ;;  %v11826_v43 = vpop.eup %8661  ;;  %v7527_v49 = vadd.f32 %v7526_v42, %v7525_v27  ;;  %v6924_v29 = vmax.f32 %v6922_v62, %v6923_v15  ;;  %v6928_v54 = vrot.slane %v6927_v13, 2 }
 0x48d   :  { %v7148_v50 = vmul.f32 1.442695, %v7029_v9  ;;  %v8073_v41 = vcombine.low %v8065_v19, %v8072_v39  ;;  %v7515_v4 = vadd.f32 %v7514_v30, %v7513_v21  ;;  %v7533_v6 = vrot.slane %v7532_v32, 2 }
 0x48e   :  { %v7544_v51 = vsel %vm6525_vm4, %v11826_v43, 0.0  ;;  %v7528_v56 = vrot.slane %v7527_v49, 1  ;;  %v7030_v33 = vsub.f32 %v11669_v48, %v6924_v29  ;;  %v6937_v52 = vrot.slane %v6936_v63, 1 }
 0x48f   :  { %v7545_v60 = vrot.slane %v7544_v51, 4  ;;  %8667 = vpow2.f32 %v7148_v50  ;;  %8169 = vst [vmem:[%s11926_s4 + $0x58] sm:$0xff] %v8073_v41  ;;  %v7534_v57 = vadd.f32 %v7533_v6, %v7532_v32  ;;  %v6939_v38 = vsel %vm6525_vm4, %v11676_v37, -inf }
 0x490   :  { %8669 = vrcp.f32 %v7515_v4  ;;  %v7529_v17 = vadd.f32 %v7528_v56, %v7527_v49  ;;  %v7150_v23 = vmul.f32 1.442695, %v7030_v33  ;;  %v6938_v58 = vmax.f32 %v6936_v63, %v6937_v52 }
 0x491   :  { %v7546_v22 = vadd.f32 %v7545_v60, %v7544_v51  ;;  %v8664_v59 = vpop.eup %8663  ;;  %v7535_v28 = vrot.slane %v7534_v57, 1  ;;  %v6929_v24 = vmax.f32 %v6927_v13, %v6928_v54  ;;  %v6940_v45 = vrot.slane %v6939_v38, 4 }
 0x492   :  { %v7726_v48 = vmul.f32 %v8660_v12, %v11770_v47  ;;  %8671 = vrcp.f32 %v7529_v17  ;;  %v6946_v8 = vsel %vm6525_vm4, %v11718_v11, -inf  ;;  %v11840_v31 = vmul.f32 %v8664_v59, %v11785_v44 }
 0x493   :  { %v7547_v20 = vrot.slane %v7546_v22, 2  ;;  %8673 = vpow2.f32 %v7150_v23  ;;  %v7032_v55 = vsub.f32 %v11671_v18, %v6938_v58  ;;  %v6930_v36 = vrot.slane %v6929_v24, 1 }
 0x494   :  { %v11843_v62 = vpop.eup %8665  ;;  %v6941_v5 = vmax.f32 %v6939_v38, %v6940_v45  ;;  %v6947_v13 = vrot.slane %v6946_v8, 4  ;;  %v6960_v47 = vsel %vm6525_vm4, %v11720_v14, -inf  ;;  %v7536_v46 = vadd.f32 %v7535_v28, %v7534_v57 }
 0x495   :  { %v7548_v1 = vadd.f32 %v7547_v20, %v7546_v22  ;;  %v7537_v25 = vsel %vm6525_vm4, %v11843_v62, 0.0  ;;  %v7154_v27 = vmul.f32 1.442695, %v7032_v55  ;;  %v6931_v35 = vmax.f32 %v6929_v24, %v6930_v36 }
 0x496   :  { %v7538_v40 = vrot.slane %v7537_v25, 4  ;;  %v6942_v34 = vrot.slane %v6941_v5, 2  ;;  %v6948_v19 = vmax.f32 %v6946_v8, %v6947_v13  ;;  %v6961_v3 = vrot.slane %v6960_v47, 4 }
 0x497   :  { %v7549_v44 = vrot.slane %v7548_v1, 1  ;;  %8675 = vpow2.f32 %v7154_v27  ;;  %v7031_v18 = vsub.f32 %v11674_v2, %v6931_v35  ;;  %v6953_v21 = vsel %vm6525_vm4, %v11725_v53, -inf }
 0x498   :  { %v7539_v9 = vadd.f32 %v7538_v40, %v7537_v25  ;;  %v6943_v15 = vmax.f32 %v6941_v5, %v6942_v34  ;;  %v6949_v12 = vrot.slane %v6948_v19, 2  ;;  %8677 = vrcp.f32 %v7536_v46 }
 0x499   :  { %v11852_v61 = vpop.eup %8667  ;;  %v7550_v42 = vadd.f32 %v7549_v44, %v7548_v1  ;;  %v7152_v32 = vmul.f32 1.442695, %v7031_v18  ;;  %v6962_v63 = vmax.f32 %v6960_v47, %v6961_v3  ;;  %v6954_v29 = vrot.slane %v6953_v21, 4 }
 0x49a   :  { %v8670_v39 = vpop.eup %8669  ;;  %v7551_v30 = vsel %vm6525_vm4, %v11852_v61, 0.0  ;;  %v7540_v2 = vrot.slane %v7539_v9, 2  ;;  %v6944_v41 = vrot.slane %v6943_v15, 1  ;;  %v6950_v4 = vmax.f32 %v6948_v19, %v6949_v12 }
 0x49b   :  { %v7727_v49 = vmul.f32 %v8670_v39, %v11806_v16  ;;  %v7552_v50 = vrot.slane %v7551_v30, 4  ;;  %8679 = vpow2.f32 %v7152_v32  ;;  %v6963_v6 = vrot.slane %v6962_v63, 2 }
 0x49c   :  { %v8672_v51 = vpop.eup %8671  ;;  %8681 = vrcp.f32 %v7550_v42  ;;  %v7541_v60 = vadd.f32 %v7540_v2, %v7539_v9  ;;  %v6945_v54 = vmax.f32 %v6943_v15, %v6944_v41  ;;  %v6951_v17 = vrot.slane %v6950_v4, 1 }
 0x49d   :  { %v8430_v56 = vpack.c.bf16 %v7727_v49, %v7726_v48  ;;  %v7553_v33 = vadd.f32 %v7552_v50, %v7551_v30  ;;  %v11857_v57 = vpop.eup %8673  ;;  %v7729_v52 = vmul.f32 %v8672_v51, %v11810_v7  ;;  %v6964_v22 = vmax.f32 %v6962_v63, %v6963_v6 }
 0x49e   :  { %v7542_v23 = vrot.slane %v7541_v60, 1  ;;  %v7558_v59 = vsel %vm6525_vm4, %v11857_v57, 0.0  ;;  %v7033_v24 = vsub.f32 %v11676_v37, %v6945_v54  ;;  %v6952_v45 = vmax.f32 %v6950_v4, %v6951_v17 }
 0x49f   :  { %v8082_v16 = vrot.slane %v8430_v56, %v11216_v26  ;;  %v7554_v38 = vrot.slane %v7553_v33, 2  ;;  %v8431_v28 = vpack.c.bf16 %v7729_v52, %v11840_v31  ;;  %v7559_v58 = vrot.slane %v7558_v59, 4 }
 0x4a0   :  { %v7543_v48 = vadd.f32 %v7542_v23, %v7541_v60  ;;  %v6965_v8 = vrot.slane %v6964_v22, 1  ;;  %v6955_v7 = vmax.f32 %v6953_v21, %v6954_v29  ;;  %v7156_v5 = vmul.f32 1.442695, %v7033_v24 }
 0x4a1   :  { %v7555_v20 = vadd.f32 %v7554_v38, %v7553_v33  ;;  %v11865_v55 = vpop.eup %8675  ;;  %v8089_v36 = vrot.slane %v8431_v28, %v11216_v26  ;;  %v7560_v1 = vadd.f32 %v7559_v58, %v7558_v59  ;;  %v7034_v13 = vsub.f32 %v11718_v11, %v6952_v45 }
 0x4a2   :  { %8683 = vrcp.f32 %v7543_v48  ;;  %v7572_v31 = vsel %vm6525_vm4, %v11865_v55, 0.0  ;;  %v6966_v46 = vmax.f32 %v6964_v22, %v6965_v8  ;;  %v8678_v37 = vpop.eup %8677  ;;  %v6956_v19 = vrot.slane %v6955_v7, 2 }
 0x4a3   :  { %v7556_v47 = vrot.slane %v7555_v20, 1  ;;  %v8090_v25 = vcombine.low %v8082_v16, %v8089_v36  ;;  %v7561_v27 = vrot.slane %v7560_v1, 2  ;;  %v7573_v35 = vrot.slane %v7572_v31, 4 }
 0x4a4   :  { %8685 = vpow2.f32 %v7156_v5  ;;  %v7158_v40 = vmul.f32 1.442695, %v7034_v13  ;;  %v7036_v34 = vsub.f32 %v11720_v14, %v6966_v46  ;;  %v6967_v21 = vsel %vm6525_vm4, %v11727_v0, -inf }
 0x4a5   :  { %v7557_v44 = vadd.f32 %v7556_v47, %v7555_v20  ;;  %v11872_v18 = vpop.eup %8679  ;;  %8170 = vst [vmem:[%s11926_s4 + $0x60] sm:$0xff] %v8090_v25  ;;  %v7562_v11 = vadd.f32 %v7561_v27, %v7560_v1  ;;  %v7574_v3 = vadd.f32 %v7573_v35, %v7572_v31  ;;  %v6957_v12 = vmax.f32 %v6955_v7, %v6956_v19 }
 0x4a6   :  { %v8682_v42 = vpop.eup %8681  ;;  %v7565_v9 = vsel %vm6525_vm4, %v11872_v18, 0.0  ;;  %v7162_v15 = vmul.f32 1.442695, %v7036_v34  ;;  %v6968_v63 = vrot.slane %v6967_v21, 4  ;;  %v7730_v41 = vmul.f32 %v8678_v37, %v11816_v10 }
 0x4a7   :  { %8687 = vrcp.f32 %v7557_v44  ;;  %v7563_v14 = vrot.slane %v7562_v11, 1  ;;  %v7575_v39 = vrot.slane %v7574_v3, 2  ;;  %v7566_v30 = vrot.slane %v7565_v9, 4 }
 0x4a8   :  { %8689 = vpow2.f32 %v7158_v40  ;;  %v6958_v32 = vrot.slane %v6957_v12, 1  ;;  %v6969_v29 = vmax.f32 %v6967_v21, %v6968_v63  ;;  %v7732_v52 = vmul.f32 %v8682_v42, %v11826_v43 }
 0x4a9   :  { %8691 = vpow2.f32 %v7162_v15  ;;  %v7567_v49 = vadd.f32 %v7566_v30, %v7565_v9  ;;  %v7576_v2 = vadd.f32 %v7575_v39, %v7574_v3  ;;  %v7564_v4 = vadd.f32 %v7563_v14, %v7562_v11 }
 0x4aa   :  { %v6959_v50 = vmax.f32 %v6957_v12, %v6958_v32  ;;  %v6970_v60 = vrot.slane %v6969_v29, 2 }
 0x4ab   :  { %v7568_v6 = vrot.slane %v7567_v49, 2  ;;  %v7577_v22 = vrot.slane %v7576_v2, 1  ;;  %8693 = vrcp.f32 %v7564_v4 }
 0x4ac   :  { %v8684_v51 = vpop.eup %8683  ;;  %v7035_v56 = vsub.f32 %v11725_v53, %v6959_v50  ;;  %v6971_v38 = vmax.f32 %v6969_v29, %v6970_v60 }
 0x4ad   :  { %v7731_v54 = vmul.f32 %v8684_v51, %v11843_v62  ;;  %v7569_v17 = vadd.f32 %v7568_v6, %v7567_v49  ;;  %v7578_v8 = vadd.f32 %v7577_v22, %v7576_v2 }
 0x4ae   :  { %v11883_v33 = vpop.eup %8685  ;;  %v7160_v23 = vmul.f32 1.442695, %v7035_v56  ;;  %v6972_v53 = vrot.slane %v6971_v38, 1 }
 0x4af   :  { %v7579_v16 = vsel %vm6525_vm4, %v11883_v33, 0.0  ;;  %v8432_v10 = vpack.c.bf16 %v7731_v54, %v7730_v41  ;;  %v7570_v59 = vrot.slane %v7569_v17, 1 }
 0x4b0   :  { %v7580_v28 = vrot.slane %v7579_v16, 4  ;;  %8695 = vpow2.f32 %v7160_v23  ;;  %v6973_v36 = vmax.f32 %v6971_v38, %v6972_v53 }
 0x4b1   :  { %v8688_v58 = vpop.eup %8687  ;;  %v7571_v45 = vadd.f32 %v7570_v59, %v7569_v17  ;;  %v8099_v20 = vrot.slane %v8432_v10, %v11216_v26 }
 0x4b2   :  { %v11889_v24 = vpop.eup %8689  ;;  %v7733_v43 = vmul.f32 %v8688_v58, %v11852_v61  ;;  %v7581_v62 = vadd.f32 %v7580_v28, %v7579_v16  ;;  %v7037_v61 = vsub.f32 %v11727_v0, %v6973_v36 }
 0x4b3   :  { %v11892_v48 = vpop.eup %8691  ;;  %v7586_v7 = vsel %vm6525_vm4, %v11889_v24, 0.0  ;;  %8697 = vrcp.f32 %v7571_v45 }
 0x4b4   :  { %v8433_v1 = vpack.c.bf16 %v7733_v43, %v7732_v52  ;;  %v7582_v5 = vrot.slane %v7581_v62, 2  ;;  %v7587_v13 = vrot.slane %v7586_v7, 4  ;;  %v7600_v47 = vsel %vm6525_vm4, %v11892_v48, 0.0 }
 0x4b5   :  { %v7601_v25 = vrot.slane %v7600_v47, 4  ;;  %8699 = vrcp.f32 %v7578_v8  ;;  %v7164_v27 = vmul.f32 1.442695, %v7037_v61  ;;  %v8694_v19 = vpop.eup %8693 }
 0x4b6   :  { %v8106_v31 = vrot.slane %v8433_v1, %v11216_v26  ;;  %v7583_v46 = vadd.f32 %v7582_v5, %v7581_v62  ;;  %v7588_v37 = vadd.f32 %v7587_v13, %v7586_v7  ;;  %v7734_v9 = vmul.f32 %v8694_v19, %v11857_v57 }
 0x4b7   :  { %v7602_v34 = vadd.f32 %v7601_v25, %v7600_v47  ;;  %8701 = vpow2.f32 %v7164_v27 }
 0x4b8   :  { %v8107_v35 = vcombine.low %v8099_v20, %v8106_v31  ;;  %v7584_v44 = vrot.slane %v7583_v46, 1  ;;  %v7589_v40 = vrot.slane %v7588_v37, 2 }
 0x4b9   :  { %v7603_v21 = vrot.slane %v7602_v34, 2 }
 0x4ba   :  { %8171 = vst [vmem:[%s11926_s4 + $0x68] sm:$0xff] %v8107_v35  ;;  %v7585_v11 = vadd.f32 %v7584_v44, %v7583_v46  ;;  %v7590_v3 = vadd.f32 %v7589_v40, %v7588_v37  ;;  %v8696_v0 = vpop.eup %8695 }
 0x4bb   :  { %v7593_v42 = vsel %vm6525_vm4, %v8696_v0, 0.0  ;;  %v7604_v32 = vadd.f32 %v7603_v21, %v7602_v34 }
 0x4bc   :  { %8703 = vrcp.f32 %v7585_v11  ;;  %v7591_v15 = vrot.slane %v7590_v3, 1  ;;  %v7594_v12 = vrot.slane %v7593_v42, 4 }
 0x4bd   :  { %v8698_v14 = vpop.eup %8697  ;;  %v7605_v4 = vrot.slane %v7604_v32, 1 }
 0x4be   :  { %v7735_v39 = vmul.f32 %v8698_v14, %v11872_v18  ;;  %v7595_v30 = vadd.f32 %v7594_v12, %v7593_v42  ;;  %v7592_v2 = vadd.f32 %v7591_v15, %v7590_v3 }
 0x4bf   :  { %v8700_v63 = vpop.eup %8699  ;;  %v7606_v17 = vadd.f32 %v7605_v4, %v7604_v32 }
 0x4c0   :  { %v8434_v49 = vpack.c.bf16 %v7735_v39, %v7734_v9  ;;  %v7596_v50 = vrot.slane %v7595_v30, 2  ;;  %v7736_v51 = vmul.f32 %v8700_v63, %v11865_v55  ;;  %8705 = vrcp.f32 %v7592_v2 }
 0x4c1   :  { %v8702_v29 = vpop.eup %8701 }
 0x4c2   :  { %v7597_v41 = vadd.f32 %v7596_v50, %v7595_v30  ;;  %v7607_v6 = vsel %vm6525_vm4, %v8702_v29, 0.0  ;;  %v8116_v22 = vrot.slane %v8434_v49, %v11216_v26 }
 0x4c3   :  { %v7608_v56 = vrot.slane %v7607_v6, 4 }
 0x4c4   :  { %v7598_v57 = vrot.slane %v7597_v41, 1 }
 0x4c5   :  { %v7609_v54 = vadd.f32 %v7608_v56, %v7607_v6 }
 0x4c6   :  { %v8704_v60 = vpop.eup %8703  ;;  %v7599_v18 = vadd.f32 %v7598_v57, %v7597_v41 }
 0x4c7   :  { %v7737_v52 = vmul.f32 %v8704_v60, %v11883_v33  ;;  %v7610_v23 = vrot.slane %v7609_v54, 2 }
 0x4c8   :  { %8707 = vrcp.f32 %v7599_v18 }
 0x4c9   :  { %v8435_v16 = vpack.c.bf16 %v7737_v52, %v7736_v51  ;;  %v7611_v10 = vadd.f32 %v7610_v23, %v7609_v54  ;;  %8709 = vrcp.f32 %v7606_v17 }
 0x4ca   :  { %v8706_v28 = vpop.eup %8705 }
 0x4cb   :  { %v8123_v38 = vrot.slane %v8435_v16, %v11216_v26  ;;  %v7612_v55 = vrot.slane %v7611_v10, 1  ;;  %v7738_v58 = vmul.f32 %v8706_v28, %v11889_v24 }
 0x4cd   :  { %v8124_v59 = vcombine.low %v8116_v22, %v8123_v38  ;;  %v7613_v33 = vadd.f32 %v7612_v55, %v7611_v10 }
 0x4cf   :  { %8172 = vst [vmem:[%s11926_s4 + $0x70] sm:$0xff] %v8124_v59  ;;  %8711 = vrcp.f32 %v7613_v33 }
 0x4d2   :  { %v8708_v53 = vpop.eup %8707 }
 0x4d3   :  { %v7739_v43 = vmul.f32 %v8708_v53, %v8696_v0  ;;  %v8710_v62 = vpop.eup %8709 }
 0x4d4   :  { %v7740_v20 = vmul.f32 %v8710_v62, %v11892_v48 }
 0x4d5   :  { %v8436_v45 = vpack.c.bf16 %v7739_v43, %v7738_v58 }
 0x4d7   :  { %v8133_v36 = vrot.slane %v8436_v45, %v11216_v26 }
 0x4d9   :  { %v8712_v8 = vpop.eup %8711 }
 0x4da   :  { %v7741_v7 = vmul.f32 %v8712_v8, %v8702_v29 }
 0x4dc   :  { %v8437_v1 = vpack.c.bf16 %v7741_v7, %v7740_v20 }
 0x4de   :  { %v8140_v5 = vrot.slane %v8437_v1, %v11216_v26 }
 0x4e0   :  { %v8141_v13 = vcombine.low %v8133_v36, %v8140_v5 }
 0x4e2   :  { %8173 = vst [vmem:[%s11926_s4 + $0x78] sm:$0xff] %v8141_v13 }

</bundles_post_ra>
